<compile_context>
chip_gen: v7x
topology: tpu7x:2x2x1
jax: 0.10.0
libtpu: 0.0.40
codegen_flags: <defaults>
</compile_context>

<pallas_src>
import functools

import jax
import jax.numpy as jnp
from jax.experimental import pallas as pl
from jax.experimental.pallas import tpu as pltpu

NEG_SLOPE = 0.2  # LeakyReLU negative_slope from the module.
LANE = 128


def bigan_disc_kernel(x_ref, w1_ref, b1_ref, w2_ref, b2_ref, w3_ref, b3_ref,
                      out_ref):
    # Layer 1: Linear(in -> hidden) + LeakyReLU(0.2).
    h1 = jnp.dot(x_ref[...], w1_ref[...],
                 preferred_element_type=jnp.float32) + b1_ref[...]
    h1 = jnp.maximum(h1, NEG_SLOPE * h1)  # LeakyReLU (valid: 0 < slope < 1)

    # Layer 2: Linear(hidden -> hidden) + LeakyReLU(0.2).
    h2 = jnp.dot(h1.astype(jnp.bfloat16), w2_ref[...],
                 preferred_element_type=jnp.float32) + b2_ref[...]
    h2 = jnp.maximum(h2, NEG_SLOPE * h2)

    # Layer 3: Linear(hidden -> 1) padded to 128 lanes + Sigmoid.
    h3 = jnp.dot(h2.astype(jnp.bfloat16), w3_ref[...],
                 preferred_element_type=jnp.float32) + b3_ref[...]
    out_ref[...] = jax.nn.sigmoid(h3)


def prepare_params(params):
    """One-time pad + bf16 cast of the parameters (hoisted out of the forward).

    Weights are stored (in_features, out_features); biases (1, out_features).
    Returns the padded/cast param tuple plus the original (in_features, out_dim)
    needed to slice the kernel output back.
    """
    w1, b1, w2, b2, w3, b3 = params
    in_f = w1.shape[0]
    out_dim = w3.shape[1]
    k_pad = pl.cdiv(in_f, LANE) * LANE        # 834 -> 896
    out_pad = pl.cdiv(out_dim, LANE) * LANE   # 1   -> 128

    w1_p = jnp.pad(w1, ((0, k_pad - in_f), (0, 0))).astype(jnp.bfloat16)
    w2_p = w2.astype(jnp.bfloat16)
    w3_p = jnp.pad(w3, ((0, 0), (0, out_pad - out_dim))).astype(jnp.bfloat16)
    b1_p = b1.astype(jnp.float32)
    b2_p = b2.astype(jnp.float32)
    b3_p = jnp.pad(b3, ((0, 0), (0, out_pad - out_dim))).astype(jnp.float32)

    padded = (w1_p, b1_p, w2_p, b2_p, w3_p, b3_p)
    # Materialize once so the per-call path never re-runs the cast.
    padded = jax.tree_util.tree_map(jax.block_until_ready, padded)
    return padded, in_f, out_dim


@functools.partial(jax.jit, static_argnames=("tm", "out_dim"))
def bigan_discriminator_forward(x, padded_params, *, tm=128, out_dim=1):
    """Runs the discriminator network; returns D(x) with shape (N, out_dim)."""
    w1_p, b1_p, w2_p, b2_p, w3_p, b3_p = padded_params
    n, in_f = x.shape
    k_pad, hidden = w1_p.shape
    out_pad = w3_p.shape[1]
    m_pad = pl.cdiv(n, tm) * tm

    # Only the (cheap) activation pad/cast remains per call.
    x_p = jnp.pad(x, ((0, m_pad - n), (0, k_pad - in_f))).astype(jnp.bfloat16)

    grid = (m_pad // tm,)

    # Weights/biases never change across the batch grid: single-buffer them so
    # the pipeline does not allocate a dead second copy in VMEM.
    resident = pl.Buffered(1)

    cost = pl.CostEstimate(
        flops=2 * m_pad * (k_pad * hidden + hidden * hidden + hidden * out_pad),
        transcendentals=m_pad * out_pad,  # sigmoid
        bytes_accessed=(x_p.size * 2
                        + (w1_p.size + w2_p.size + w3_p.size) * 2
                        + (b1_p.size + b2_p.size + b3_p.size) * 4
                        + m_pad * out_pad * 4),
    )

    out = pl.pallas_call(
        bigan_disc_kernel,
        out_shape=jax.ShapeDtypeStruct((m_pad, out_pad), jnp.float32),
        grid_spec=pltpu.PrefetchScalarGridSpec(
            num_scalar_prefetch=0,
            grid=grid,
            in_specs=[
                pl.BlockSpec((tm, k_pad), lambda i: (i, 0)),        # x tile
                pl.BlockSpec((k_pad, hidden), lambda i: (0, 0),     # w1 resident
                             pipeline_mode=resident),
                pl.BlockSpec((1, hidden), lambda i: (0, 0),         # b1
                             pipeline_mode=resident),
                pl.BlockSpec((hidden, hidden), lambda i: (0, 0),    # w2 resident
                             pipeline_mode=resident),
                pl.BlockSpec((1, hidden), lambda i: (0, 0),         # b2
                             pipeline_mode=resident),
                pl.BlockSpec((hidden, out_pad), lambda i: (0, 0),   # w3 resident
                             pipeline_mode=resident),
                pl.BlockSpec((1, out_pad), lambda i: (0, 0),        # b3
                             pipeline_mode=resident),
            ],
            out_specs=pl.BlockSpec((tm, out_pad), lambda i: (i, 0)),
        ),
        compiler_params=pltpu.CompilerParams(
            dimension_semantics=("parallel",),
            vmem_limit_bytes=64 * 1024 * 1024,
        ),
        cost_estimate=cost,
    )(x_p, w1_p, b1_p, w2_p, b2_p, w3_p, b3_p)

    # Drop batch padding and the padded output lanes.
    return out[:n, :out_dim]


def init_params(key, in_features, hidden_dim, out_dim=1):
    """Deterministic parameter init (weights (in, out), biases (1, out))."""
    k1, k2, k3, k4, k5, k6 = jax.random.split(key, 6)
    w1 = jax.random.normal(k1, (in_features, hidden_dim), jnp.float32) * 0.05
    b1 = jax.random.normal(k2, (1, hidden_dim), jnp.float32) * 0.05
    w2 = jax.random.normal(k3, (hidden_dim, hidden_dim), jnp.float32) * 0.05
    b2 = jax.random.normal(k4, (1, hidden_dim), jnp.float32) * 0.05
    w3 = jax.random.normal(k5, (hidden_dim, out_dim), jnp.float32) * 0.05
    b3 = jax.random.normal(k6, (1, out_dim), jnp.float32) * 0.05
    return (w1, b1, w2, b2, w3, b3)


def reference_forward(x, params):
    """Pure-JAX f32 reference of the module forward (sanity check)."""
    w1, b1, w2, b2, w3, b3 = params
    h1 = x @ w1 + b1
    h1 = jnp.where(h1 >= 0.0, h1, NEG_SLOPE * h1)
    h2 = h1 @ w2 + b2
    h2 = jnp.where(h2 >= 0.0, h2, NEG_SLOPE * h2)
    h3 = h2 @ w3 + b3
    return jax.nn.sigmoid(h3)


if __name__ == "__main__":
    # Module defaults: in_features = 28*28 + 50 = 834, hidden = 1024, out = 1.
    # batch=256 with tm=128 gives grid=(2,): both v7x TensorCores get a tile,
    # the MXU rows are filled, and everything fits easily in VMEM (~5 MiB).
    batch = 256
    in_features = 28 * 28 + 50
    hidden_dim = 1024

    key = jax.random.PRNGKey(0)
    kx, kp = jax.random.split(key)

    params = init_params(kp, in_features, hidden_dim)
    x = jax.random.normal(kx, (batch, in_features), jnp.float32)

    # Pad/cast the weights ONCE, outside the per-call path.
    padded_params, _, out_dim = prepare_params(params)

    dx = bigan_discriminator_forward(x, padded_params, tm=128, out_dim=out_dim)
    jax.block_until_ready(dx)

    assert dx.shape == (batch, 1)
    assert bool(jnp.all((dx >= 0.0) & (dx <= 1.0)))  # sigmoid range

    # Loose tolerance: kernel uses bf16 matmul operands with f32 accumulation.
    ref = reference_forward(x, params)
    max_err = float(jnp.max(jnp.abs(dx - ref)))
    assert max_err < 5e-2, f"max abs error vs f32 reference: {max_err}"

    print("KERNEL_OK")
</pallas_src>

<mosaic_0001>
module attributes {stable_mosaic.version = 11 : i64} {
  func.func @bigan_disc_kernel(%arg0: i32, %arg1: memref<128x896xbf16, #tpu.memory_space<vmem>>, %arg2: memref<896x1024xbf16, #tpu.memory_space<vmem>>, %arg3: memref<1x1024xf32, #tpu.memory_space<vmem>>, %arg4: memref<1024x1024xbf16, #tpu.memory_space<vmem>>, %arg5: memref<1x1024xf32, #tpu.memory_space<vmem>>, %arg6: memref<1024x128xbf16, #tpu.memory_space<vmem>>, %arg7: memref<1x128xf32, #tpu.memory_space<vmem>>, %arg8: memref<128x128xf32, #tpu.memory_space<vmem>>) attributes {dimension_semantics = [#tpu.dimension_semantics<parallel>], iteration_bounds = array<i64: 2>, scalar_prefetch = 0 : i64, scratch_operands = 0 : i64, tpu.core_type = #tpu.core_type<tc>, window_params = [{transform_indices = @transform_0, window_bounds = array<i64: 128, 896>}, {pipeline_mode = #tpu.pipeline_mode<synchronous>, transform_indices = @transform_1, window_bounds = array<i64: 896, 1024>}, {pipeline_mode = #tpu.pipeline_mode<synchronous>, transform_indices = @transform_2, window_bounds = array<i64: 1, 1024>}, {pipeline_mode = #tpu.pipeline_mode<synchronous>, transform_indices = @transform_3, window_bounds = array<i64: 1024, 1024>}, {pipeline_mode = #tpu.pipeline_mode<synchronous>, transform_indices = @transform_4, window_bounds = array<i64: 1, 1024>}, {pipeline_mode = #tpu.pipeline_mode<synchronous>, transform_indices = @transform_5, window_bounds = array<i64: 1024, 128>}, {pipeline_mode = #tpu.pipeline_mode<synchronous>, transform_indices = @transform_6, window_bounds = array<i64: 1, 128>}, {transform_indices = @transform_7, window_bounds = array<i64: 128, 128>}]} {
    %c0 = arith.constant 0 : index
    %c0_0 = arith.constant 0 : index
    %0 = vector.load %arg1[%c0, %c0_0] : memref<128x896xbf16, #tpu.memory_space<vmem>>, vector<128x896xbf16>
    %c0_1 = arith.constant 0 : index
    %c0_2 = arith.constant 0 : index
    %1 = vector.load %arg2[%c0_1, %c0_2] : memref<896x1024xbf16, #tpu.memory_space<vmem>>, vector<896x1024xbf16>
    %cst = arith.constant dense<0.000000e+00> : vector<128x1024xf32>
    %2 = tpu.matmul %0, %1, %cst {dimension_numbers = #tpu.dot_dimension_numbers<[1], [0], [0], [1], [0, 0, 1, 1], [], []>} : vector<128x896xbf16>, vector<896x1024xbf16>, vector<128x1024xf32> -> vector<128x1024xf32>
    %c0_3 = arith.constant 0 : index
    %c0_4 = arith.constant 0 : index
    %3 = vector.load %arg3[%c0_3, %c0_4] : memref<1x1024xf32, #tpu.memory_space<vmem>>, vector<1x1024xf32>
    %4 = vector.broadcast %3 : vector<1x1024xf32> to vector<128x1024xf32>
    %5 = arith.addf %2, %4 : vector<128x1024xf32>
    %cst_5 = arith.constant 2.000000e-01 : f32
    %6 = vector.broadcast %cst_5 : f32 to vector<128x1024xf32>
    %7 = arith.mulf %6, %5 : vector<128x1024xf32>
    %8 = arith.maximumf %5, %7 : vector<128x1024xf32>
    %9 = arith.truncf %8 : vector<128x1024xf32> to vector<128x1024xbf16>
    %c0_6 = arith.constant 0 : index
    %c0_7 = arith.constant 0 : index
    %10 = vector.load %arg4[%c0_6, %c0_7] : memref<1024x1024xbf16, #tpu.memory_space<vmem>>, vector<1024x1024xbf16>
    %cst_8 = arith.constant dense<0.000000e+00> : vector<128x1024xf32>
    %11 = tpu.matmul %9, %10, %cst_8 {dimension_numbers = #tpu.dot_dimension_numbers<[1], [0], [0], [1], [0, 0, 1, 1], [], []>} : vector<128x1024xbf16>, vector<1024x1024xbf16>, vector<128x1024xf32> -> vector<128x1024xf32>
    %c0_9 = arith.constant 0 : index
    %c0_10 = arith.constant 0 : index
    %12 = vector.load %arg5[%c0_9, %c0_10] : memref<1x1024xf32, #tpu.memory_space<vmem>>, vector<1x1024xf32>
    %13 = vector.broadcast %12 : vector<1x1024xf32> to vector<128x1024xf32>
    %14 = arith.addf %11, %13 : vector<128x1024xf32>
    %cst_11 = arith.constant 2.000000e-01 : f32
    %15 = vector.broadcast %cst_11 : f32 to vector<128x1024xf32>
    %16 = arith.mulf %15, %14 : vector<128x1024xf32>
    %17 = arith.maximumf %14, %16 : vector<128x1024xf32>
    %18 = arith.truncf %17 : vector<128x1024xf32> to vector<128x1024xbf16>
    %c0_12 = arith.constant 0 : index
    %c0_13 = arith.constant 0 : index
    %19 = vector.load %arg6[%c0_12, %c0_13] : memref<1024x128xbf16, #tpu.memory_space<vmem>>, vector<1024x128xbf16>
    %cst_14 = arith.constant dense<0.000000e+00> : vector<128x128xf32>
    %20 = tpu.matmul %18, %19, %cst_14 {dimension_numbers = #tpu.dot_dimension_numbers<[1], [0], [0], [1], [0, 0, 1, 1], [], []>} : vector<128x1024xbf16>, vector<1024x128xbf16>, vector<128x128xf32> -> vector<128x128xf32>
    %c0_15 = arith.constant 0 : index
    %c0_16 = arith.constant 0 : index
    %21 = vector.load %arg7[%c0_15, %c0_16] : memref<1x128xf32, #tpu.memory_space<vmem>>, vector<1x128xf32>
    %22 = vector.broadcast %21 : vector<1x128xf32> to vector<128x128xf32>
    %23 = arith.addf %20, %22 : vector<128x128xf32>
    %24 = arith.negf %23 : vector<128x128xf32>
    %25 = math.exp %24 : vector<128x128xf32>
    %cst_17 = arith.constant 1.000000e+00 : f32
    %26 = vector.broadcast %cst_17 : f32 to vector<128x128xf32>
    %27 = arith.addf %26, %25 : vector<128x128xf32>
    %28 = arith.divf %26, %27 : vector<128x128xf32>
    %c0_18 = arith.constant 0 : index
    %c0_19 = arith.constant 0 : index
    %29 = vector.load %arg8[%c0_18, %c0_19] : memref<128x128xf32, #tpu.memory_space<vmem>>, vector<128x128xf32>
    tpu.vector_store %arg8[%c0_18, %c0_19], %28 {strides = array<i32>} : memref<128x128xf32, #tpu.memory_space<vmem>>, vector<128x128xf32>,
    return
  }
  func.func @transform_0(%arg0: i32) -> (i32, i32) {
    %c0_i32 = arith.constant 0 : i32
    %c0_i32_0 = arith.constant 0 : i32
    return %arg0, %c0_i32 : i32, i32
  }
  func.func @transform_1(%arg0: i32) -> (i32, i32) {
    %c0_i32 = arith.constant 0 : i32
    %c0_i32_0 = arith.constant 0 : i32
    %c0_i32_1 = arith.constant 0 : i32
    return %c0_i32, %c0_i32_0 : i32, i32
  }
  func.func @transform_2(%arg0: i32) -> (i32, i32) {
    %c0_i32 = arith.constant 0 : i32
    %c0_i32_0 = arith.constant 0 : i32
    %c0_i32_1 = arith.constant 0 : i32
    return %c0_i32, %c0_i32_0 : i32, i32
  }
  func.func @transform_3(%arg0: i32) -> (i32, i32) {
    %c0_i32 = arith.constant 0 : i32
    %c0_i32_0 = arith.constant 0 : i32
    %c0_i32_1 = arith.constant 0 : i32
    return %c0_i32, %c0_i32_0 : i32, i32
  }
  func.func @transform_4(%arg0: i32) -> (i32, i32) {
    %c0_i32 = arith.constant 0 : i32
    %c0_i32_0 = arith.constant 0 : i32
    %c0_i32_1 = arith.constant 0 : i32
    return %c0_i32, %c0_i32_0 : i32, i32
  }
  func.func @transform_5(%arg0: i32) -> (i32, i32) {
    %c0_i32 = arith.constant 0 : i32
    %c0_i32_0 = arith.constant 0 : i32
    %c0_i32_1 = arith.constant 0 : i32
    return %c0_i32, %c0_i32_0 : i32, i32
  }
  func.func @transform_6(%arg0: i32) -> (i32, i32) {
    %c0_i32 = arith.constant 0 : i32
    %c0_i32_0 = arith.constant 0 : i32
    %c0_i32_1 = arith.constant 0 : i32
    return %c0_i32, %c0_i32_0 : i32, i32
  }
  func.func @transform_7(%arg0: i32) -> (i32, i32) {
    %c0_i32 = arith.constant 0 : i32
    %c0_i32_0 = arith.constant 0 : i32
    return %arg0, %c0_i32 : i32, i32
  }
}

</mosaic_0001>

<bundles_post_ra>
// kernel: bigan_discriminator_forward.1
= control target key start
LH: loop header
LB: loop body
LE: loop exit
PB: predicated region body
PF: predicated region fallthrough
CT: control target
= control target key end

     0   :  { %s17510_s0 = inlined_call_operand.hbm [shape: bf16[256,896], index: 0, kind: input, shape index: {}]   ;;  %s17511_s1 = inlined_call_operand.hbm [shape: bf16[896,1024], index: 1, kind: input, shape index: {}]   ;;  %s17512_s2 = inlined_call_operand.hbm [shape: f32[1,1024], index: 2, kind: input, shape index: {}]   ;;  %s17513_s3 = inlined_call_operand.hbm [shape: bf16[1024,1024], index: 3, kind: input, shape index: {}]   ;;  %s17514_s4 = inlined_call_operand.hbm [shape: f32[1,1024], index: 4, kind: input, shape index: {}]   ;;  %s17515_s5 = inlined_call_operand.hbm [shape: bf16[1024,128], index: 5, kind: input, shape index: {}]   ;;  %s17516_s6 = inlined_call_operand.hbm [shape: f32[1,128], index: 6, kind: input, shape index: {}]   ;;  %s17517_s7 = inlined_call_operand.hbm [shape: f32[256,128], index: 7, kind: output, shape index: {}]  }
   0x1   :  { %17653 = sst [smem:[#allocation77_spill]] %s17511_s1 }
   0x2   :  { %12 = vsyncpa [#allocation3], 0 }
   0x3   :  { %14 = vsyncpa [#allocation3 + $0x1], 0 }
   0x4   :  { %15 = vsyncpa [#allocation6], 0 }
   0x5   :  { %16 = vsyncpa [#allocation9], 0 }
   0x6   :  { %17 = vsyncpa [#allocation12], 0 }
   0x7   :  { %18 = vsyncpa [#allocation4], 0 }
   0x8   :  { %20 = vsyncpa [#allocation4 + $0x1], 0  ;;  %s15120_s24 = smov 0   ;;  %s15122_s25 = smov 0  }
   0x9   :  { %s15124_s26 = smov 0   ;;  %s15126_s27 = smov 0  }
   0xa LB: > { %s15063_s28 = smov [#allocation5]   ;;  %s15141_s30 = sadd.s32 4294967295, %s15061_s27   ;;  %s15061_s27 = sphi %s15126_s27, %s17923_s27   ;;  %s15057_s26 = sphi %s15124_s26, %s17922_s26   ;;  %s15053_s25 = sphi %s15122_s25, %s17921_s25   ;;  %s15049_s24 = sphi %s15120_s24, %s17920_s24  }
   0xb   : > { %s221_s29 = sshll.u32 %s15063_s28, 4  ;;  %p11998_p0 = scmp.ge.s32.totalorder %s15061_s27, 1  ;;  %s15146_s29 = int_to_ptr.vmem [resolvable:$true] %s221_s29 }
   0xc   : > { %p17518_p1 = scmp.eq.s32.totalorder %s15141_s30, 0  ;;  %p209_p2 = scmp.lt.s32.totalorder %s15061_s27, 3 }
   0xd   : > { %s15064_s9 = smov [#allocation8]   ;;  %s15065_s12 = smov [#allocation11]  }
   0xe   : > { %p15148_p3 = pnand %p11998_p0, %p209_p2  ;;  %s245_s10 = sshll.u32 %s15064_s9, 4  ;;  %s15161_s10 = int_to_ptr.vmem [resolvable:$true] %s245_s10 }
   0xf   : > { %s269_s13 = sshll.u32 %s15065_s12, 4  ;;  %s17656_s1 = sld [smem:[#allocation77_spill]]  ;;  %s15163_s13 = int_to_ptr.vmem [resolvable:$true] %s269_s13 }
  0x10   : > { %s17654_s8 = scalar_select %p15148_p3, 1, 0 }
  0x11   : > { %p14431_p5 = pneg %p15148_p3 }
  0x13   : > { %p15157_p6 = pnand %p14431_p5, %p17518_p1 }
  0x15   : > { %s14785_s16 = scalar_lea.hbm %s17656_s1, 57344  ;;  %p15173_p8 = pneg %p15157_p6 }
  0x16   : > { %p14786_p7 = scmp.ne.s32.totalorder %s17656_s1, %s14785_s16  ;;  %p14792_p11 = scmp.lt.u32.totalorder %s14785_s16, %s17656_s1 }
  0x18   : > { %p14788_p9 = pnand %p15173_p8, %p14786_p7 }
  0x1a   : > { %p14789_p10 = pneg %p14788_p9 }
  0x1c   : > { %p14794_p12 = pnand %p14792_p11, %p14789_p10 }
  0x1e   : > { %14797 = shalt.err (!%p14794_p12)
}
  0x1f   : > { %s14798_s22 = scalar_lea.vmem %s15146_s29, 57344  ;;  %p14806_p5 = scmp.lt.s32.totalorder %s15146_s29, %s15146_s29 }
  0x20   : > { %p14799_p13 = scmp.ne.s32.totalorder %s15146_s29, %s14798_s22  ;;  %p14807_p4 = scmp.lt.s32.totalorder %s14798_s22, %s14798_s22 }
  0x22   : > { %p14801_p0 = pnand %p14799_p13, %p15173_p8  ;;  %p14808_p7 = por %p14807_p4, %p14806_p5 }
  0x24   : > { %p14802_p2 = pneg %p14801_p0 }
  0x26   : > { %p14809_p9 = pnand %p14808_p7, %p14802_p2 }
  0x28   : > { %14812 = shalt.err (!%p14809_p9)
}
  0x29   : > { %s15066_s23 = smov 512   ;;  %s15067_s28 = smov 32  }
  0x2a   : > { %14434 = dma.hbm_to_vmem [thread:$0]  (!%p15157_p6), %s17656_s1, 57344, %s15146_s29, [#allocation6], %s15066_s23, %s15066_s23, %s15067_s28  }
  0x2b   : > { %s14813_s16 = scalar_lea.hbm %s17513_s3, 65536 }
  0x2c   : > { %p14814_p4 = scmp.ne.s32.totalorder %s17513_s3, %s14813_s16  ;;  %p14820_p12 = scmp.lt.u32.totalorder %s14813_s16, %s17513_s3 }
  0x2e   : > { %p14816_p10 = pnand %p14814_p4, %p15173_p8 }
  0x30   : > { %p14817_p11 = pneg %p14816_p10 }
  0x32   : > { %p14822_p13 = pnand %p14820_p12, %p14817_p11 }
  0x34   : > { %14825 = shalt.err (!%p14822_p13)
}
  0x35   : > { %s14826_s29 = scalar_lea.vmem %s15161_s10, 65536  ;;  %p14834_p7 = scmp.lt.s32.totalorder %s15161_s10, %s15161_s10 }
  0x36   : > { %p14827_p0 = scmp.ne.s32.totalorder %s15161_s10, %s14826_s29  ;;  %p14835_p9 = scmp.lt.s32.totalorder %s14826_s29, %s14826_s29 }
  0x38   : > { %p14829_p2 = pnand %p14827_p0, %p15173_p8  ;;  %p14836_p4 = por %p14835_p9, %p14834_p7 }
  0x3a   : > { %p14830_p5 = pneg %p14829_p2 }
  0x3c   : > { %p14837_p10 = pnand %p14836_p4, %p14830_p5 }
  0x3e   : > { %14840 = shalt.err (!%p14837_p10)
}
  0x3f   : > { %14440 = dma.hbm_to_vmem [thread:$0]  (!%p15157_p6), %s17513_s3, 65536, %s15161_s10, [#allocation9], %s15066_s23, %s15066_s23, %s15067_s28  }
  0x40   : > { %s14841_s15 = scalar_lea.hbm %s17515_s5, 8192 }
  0x41   : > { %p14842_p11 = scmp.ne.s32.totalorder %s17515_s5, %s14841_s15  ;;  %p14848_p0 = scmp.lt.u32.totalorder %s14841_s15, %s17515_s5 }
  0x43   : > { %p14844_p12 = pnand %p14842_p11, %p15173_p8 }
  0x45   : > { %p14845_p13 = pneg %p14844_p12 }
  0x47   : > { %p14850_p2 = pnand %p14848_p0, %p14845_p13 }
  0x49   : > { %14853 = shalt.err (!%p14850_p2)
}
  0x4a   : > { %s14854_s10 = scalar_lea.vmem %s15163_s13, 8192  ;;  %p14862_p4 = scmp.lt.s32.totalorder %s15163_s13, %s15163_s13 }
  0x4b   : > { %p14855_p5 = scmp.ne.s32.totalorder %s15163_s13, %s14854_s10  ;;  %p14863_p10 = scmp.lt.s32.totalorder %s14854_s10, %s14854_s10 }
  0x4d   : > { %p14857_p7 = pnand %p14855_p5, %p15173_p8  ;;  %p14864_p11 = por %p14863_p10, %p14862_p4 }
  0x4f   : > { %p14858_p9 = pneg %p14857_p7 }
  0x51   : > { %p14865_p12 = pnand %p14864_p11, %p14858_p9 }
  0x53   : > { %14868 = shalt.err (!%p14865_p12)
}
  0x54   : > { %s15068_s23 = smov 64   ;;  %s15069_s28 = smov 4  }
  0x55   : > { %14446 = dma.hbm_to_vmem [thread:$0]  (!%p15157_p6), %s17515_s5, 8192, %s15163_s13, [#allocation12], %s15068_s23, %s15068_s23, %s15069_s28  }
  0x56   : > { %s15070_s22 = smov [#allocation7]   ;;  %s15071_s12 = smov [#allocation10]  }
  0x57   : > { %s235_s9 = sshll.u32 %s15070_s22, 4  ;;  %s259_s14 = sshll.u32 %s15071_s12, 4  ;;  %s236_s9 = int_to_ptr.vmem [resolvable:$true] %s235_s9  ;;  %s260_s14 = int_to_ptr.vmem [resolvable:$true] %s259_s14 }
  0x58   : > { %s14869_s17 = scalar_lea.hbm %s17512_s2, 128 }
  0x59   : > { %p14870_p13 = scmp.ne.s32.totalorder %s17512_s2, %s14869_s17  ;;  %p14876_p5 = scmp.lt.u32.totalorder %s14869_s17, %s17512_s2 }
  0x5b   : > { %p14872_p0 = pnand %p14870_p13, %p15173_p8 }
  0x5d   : > { %p14873_p2 = pneg %p14872_p0 }
  0x5f   : > { %p14878_p7 = pnand %p14876_p5, %p14873_p2 }
  0x61   : > { %14881 = shalt.err (!%p14878_p7)
}
  0x62   : > { %s14882_s13 = scalar_lea.vmem %s236_s9, 128  ;;  %p14890_p11 = scmp.lt.s32.totalorder %s236_s9, %s236_s9 }
  0x63   : > { %p14883_p9 = scmp.ne.s32.totalorder %s236_s9, %s14882_s13  ;;  %p14891_p12 = scmp.lt.s32.totalorder %s14882_s13, %s14882_s13 }
  0x65   : > { %p14885_p4 = pnand %p14883_p9, %p15173_p8  ;;  %p14892_p1 = por %p14891_p12, %p14890_p11 }
  0x67   : > { %p14886_p10 = pneg %p14885_p4 }
  0x69   : > { %p14893_p3 = pnand %p14892_p1, %p14886_p10 }
  0x6b   : > { %14896 = shalt.err (!%p14893_p3)
}
  0x6c   : > { %14437 = dma.hbm_to_vmem [thread:$0]  (!%p15157_p6), %s17512_s2, 128, %s236_s9, [#allocation6]  }
  0x6d   : > { %s14897_s29 = scalar_lea.hbm %s17514_s4, 128 }
  0x6e   : > { %p14898_p13 = scmp.ne.s32.totalorder %s17514_s4, %s14897_s29  ;;  %p14904_p3 = scmp.lt.u32.totalorder %s14897_s29, %s17514_s4 }
  0x70   : > { %p14900_p0 = pnand %p14898_p13, %p15173_p8 }
  0x72   : > { %p14901_p1 = pneg %p14900_p0 }
  0x74   : > { %p14906_p2 = pnand %p14904_p3, %p14901_p1 }
  0x76   : > { %14909 = shalt.err (!%p14906_p2)
}
  0x77   : > { %s14910_s17 = scalar_lea.vmem %s260_s14, 128  ;;  %p14918_p4 = scmp.lt.s32.totalorder %s260_s14, %s260_s14 }
  0x78   : > { %p14911_p5 = scmp.ne.s32.totalorder %s260_s14, %s14910_s17  ;;  %p14919_p10 = scmp.lt.s32.totalorder %s14910_s17, %s14910_s17 }
  0x7a   : > { %p14913_p7 = pnand %p14911_p5, %p15173_p8  ;;  %p14920_p11 = por %p14919_p10, %p14918_p4 }
  0x7c   : > { %p14914_p9 = pneg %p14913_p7 }
  0x7e   : > { %p14921_p12 = pnand %p14920_p11, %p14914_p9 }
  0x80   : > { %14924 = shalt.err (!%p14921_p12)
}
  0x81   : > { %14443 = dma.hbm_to_vmem [thread:$0]  (!%p15157_p6), %s17514_s4, 128, %s260_s14, [#allocation9]  }
  0x82   : > { %s15072_s20 = smov [#allocation13]   ;;  %s14925_s28 = scalar_lea.hbm %s17516_s6, 16 }
  0x83   : > { %s283_s10 = sshll.u32 %s15072_s20, 4  ;;  %p14926_p13 = scmp.ne.s32.totalorder %s17516_s6, %s14925_s28  ;;  %s284_s10 = int_to_ptr.vmem [resolvable:$true] %s283_s10 }
  0x84   : > { %p14932_p3 = scmp.lt.u32.totalorder %s14925_s28, %s17516_s6 }
  0x85   : > { %p14928_p0 = pnand %p14926_p13, %p15173_p8 }
  0x87   : > { %p14929_p1 = pneg %p14928_p0 }
  0x89   : > { %p14934_p2 = pnand %p14932_p3, %p14929_p1 }
  0x8b   : > { %14937 = shalt.err (!%p14934_p2)
}
  0x8c   : > { %s14938_s14 = scalar_lea.vmem %s284_s10, 16  ;;  %s14945_s12 = scalar_lea.vmem %s284_s10, 32 }
  0x8d   : > { %p14939_p5 = scmp.ne.s32.totalorder %s284_s10, %s14938_s14  ;;  %p14946_p4 = scmp.lt.s32.totalorder %s284_s10, %s284_s10 }
  0x8e   : > { %p14947_p10 = scmp.lt.s32.totalorder %s14945_s12, %s14938_s14 }
  0x8f   : > { %p14941_p7 = pnand %p14939_p5, %p15173_p8 }
  0x90   : > { %p14948_p11 = por %p14947_p10, %p14946_p4 }
  0x91   : > { %p14942_p9 = pneg %p14941_p7 }
  0x93   : > { %p14949_p12 = pnand %p14948_p11, %p14942_p9 }
  0x95   : > { %14952 = shalt.err (!%p14949_p12)
}
  0x96   : > { %14449 = dma.hbm_to_vmem [thread:$0]  (!%p15157_p6), %s17516_s6, 16, %s284_s10, [#allocation12]  }
  0x97   : > { %s11997_s19 = sadd.s32 4294967294, %s15061_s27   ;;  %s15296_s11 = sadd.s32 1, %s15061_s27  }
  0x98   : > { %s30_s17 = ssub.s32 %s15061_s27, %s15296_s11  ;;  %s33_s9 = sadd.s32 1, %s15057_s26 }
  0x99   : > { %p31_p8 = scmp.eq.s32.totalorder %s30_s17, 0  ;;  %p40_p13 = scmp.ne.s32.totalorder %s15057_s26, %s15053_s25 }
  0x9a   : > { %p41_p0 = scmp.eq.s32.totalorder %s15061_s27, 0  ;;  %p46_p1 = scmp.ne.s32.totalorder %s15053_s25, %s15049_s24 }
  0x9b   : > { %s15307_s18 = scalar_select %p31_p8, %s15057_s26, %s33_s9  }
  0x9c   : > { %p42_p3 = por %p41_p0, %p40_p13  ;;  %p17658_p2 = scmp.eq.s32.totalorder %s15141_s30, 0 }
  0x9d   : > { %p196_p6 = scmp.eq.s32.totalorder %s15141_s30, 1  ;;  %p202_p7 = scmp.eq.s32.totalorder %s11997_s19, 1 }
  0x9e   : > { %p15311_p5 = por %p17658_p2, %p46_p1  ;;  %p14464_p9 = scmp.lt.s32.totalorder %s15061_s27, 2 }
  0x9f   : > { %s294_s10 = sand.u32 1, %s15057_s26   ;;  %p15318_p4 = por %p196_p6, %p40_p13 }
  0xa0   : > { %p15322_p10 = por %p202_p7, %p46_p1  ;;  %s14400_s28 = smul.u32 448, %s294_s10 }
  0xa1   : > { %s17660_s13 = scalar_select %p15318_p4, 1, 0 }
  0xa2   : > { %s17661_s23 = scalar_select %p15322_p10, 1, 0 }
  0xa3   : > { %s14401_s1 = smul.u32 7168, %s15061_s27  ;;  %p15327_p11 = pnand %p14464_p9, %p42_p3 }
  0xa4   : > { %s298_s12 = scalar_lea.vmem [#allocation2], %s14400_s28  ;;  %s15338_s16 = scalar_lea.sflag [#allocation3], %s294_s10 }
  0xa5   : > { %s15334_s14 = scalar_lea.hbm %s17510_s0, %s14401_s1  ;;  %s306_s15 = sshll.u32 %s298_s12, 4  ;;  %s15336_s15 = int_to_ptr.vmem [resolvable:$true] %s306_s15 }
  0xa6   : > { %s14953_s19 = scalar_lea.hbm %s15334_s14, 7168  ;;  %p14955_p8 = pneg %p15327_p11 }
  0xa7   : > { %p14954_p12 = scmp.ne.s32.totalorder %s15334_s14, %s14953_s19  ;;  %s14958_s1 = scalar_lea.hbm %s17510_s0, 14336 }
  0xa8   : > { %p14959_p1 = scmp.lt.u32.totalorder %s15334_s14, %s17510_s0  ;;  %p14960_p3 = scmp.lt.u32.totalorder %s14958_s1, %s14953_s19 }
  0xa9   : > { %p14956_p13 = pnand %p14955_p8, %p14954_p12  ;;  %p14962_p6 = scmp.lt.u32.totalorder %s14953_s19, %s15334_s14 }
  0xaa   : > { %p14961_p2 = por %p14960_p3, %p14959_p1 }
  0xab   : > { %p14957_p0 = pneg %p14956_p13 }
  0xac   : > { %p14963_p7 = por %p14962_p6, %p14961_p2 }
  0xae   : > { %p14964_p9 = pnand %p14963_p7, %p14957_p0 }
  0xb0   : > { %14967 = shalt.err (!%p14964_p9)
}
  0xb1   : > { %s14968_s10 = scalar_lea.vmem %s15336_s15, 7168  ;;  %s15073_s28 = smov [#allocation2]  }
  0xb2   : > { %p14969_p12 = scmp.ne.s32.totalorder %s15336_s15, %s14968_s10  ;;  %s14973_s12 = sshll.u32 %s15073_s28, 4  ;;  %s14974_s12 = int_to_ptr.vmem [resolvable:$false] %s14973_s12 }
  0xb3   : > { %s14975_s17 = scalar_lea.vmem %s14974_s12, 14336  ;;  %p14976_p4 = scmp.lt.s32.totalorder %s15336_s15, %s14974_s12 }
  0xb4   : > { %p14971_p13 = pnand %p14969_p12, %p14955_p8  ;;  %p14977_p1 = scmp.lt.s32.totalorder %s14975_s17, %s14968_s10 }
  0xb6   : > { %p14972_p10 = pneg %p14971_p13  ;;  %p14978_p3 = por %p14977_p1, %p14976_p4 }
  0xb8   : > { %p14979_p2 = pnand %p14978_p3, %p14972_p10 }
  0xba   : > { %14982 = shalt.err (!%p14979_p2)
}
  0xbb   : > { %s15074_s19 = smov 448   ;;  %s15075_s9 = smov 28  }
  0xbc   : > { %14453 = dma.hbm_to_vmem [thread:$0]  (!%p15327_p11), %s15334_s14, 7168, %s15336_s15, %s15338_s16, %s15074_s19, %s15074_s19, %s15075_s9  }
  0xbd   : > { %p17663_p8 = scmp.ne.s32.totalorder %s17654_s8, 0 }
  0xbf   : > { %318 = sbr.rel (%p17663_p8) target bundleno = 1840 (0x730), region = 48 }
  0xc6   : > { %s15369_s1 = sand.u32 1, %s15053_s25  }
  0xc7   : > { %s14402_s29 = smul.u32 448, %s15369_s1  ;;  %s321_s22 = scalar_lea.sflag [#allocation3], %s15369_s1 }
  0xc9   : > { %s15373_s10 = scalar_lea.vmem [#allocation2], %s14402_s29 }
  0xca   : > { %15028 = dma.done.wait (%p15311_p5), %s321_s22, 7168  }
  0xcb   : > { %15030 = vsyncadd (%p15311_p5), %s321_s22, 4294960128  ;;  %p17664_p4 = scmp.eq.s32.totalorder %s15141_s30, 0 }
  0xcd   : > { %15032 = dma.done.wait (%p17664_p4), [#allocation6], 57472   ;;  %p17665_p10 = pmov %p17664_p4 }
  0xce   : > { %p17666_p11 = pmov %p17664_p4 }
  0xcf   : > { %15034 = vsyncadd (%p17665_p10), [#allocation6], 4294909824 }
  0xd0   : > { %15036 = dma.done.wait (%p17666_p11), [#allocation9], 65664   ;;  %p17667_p0 = pmov %p17664_p4 }
  0xd2   : > { %15038 = vsyncadd (%p17667_p0), [#allocation9], 4294901632  ;;  %p17668_p6 = pmov %p17667_p0 }
  0xd3   : > { %p17669_p7 = pmov %p17667_p0 }
  0xd4   : > { %15040 = dma.done.wait (%p17668_p6), [#allocation12], 8208  }
  0xd5   : > { %15042 = vsyncadd (%p17669_p7), [#allocation12], 4294959088  ;;  %v446_v0 = vld [vmem:[#allocation5] sm:$0xff]  ;;  %v447_v2 = vld [vmem:[#allocation5 + $0x8] sm:$0xff]  ;;  %s12016_s8 = sshll.u32 %s15369_s1, 7  ;;  %s13119_s21 = sshll.u32 %s15141_s30, 11 }
  0xd6   : > { %v450_v1 = vld [vmem:[#allocation5 + $0x20] sm:$0xff]  ;;  %v451_v4 = vld [vmem:[#allocation5 + $0x28] sm:$0xff]  ;;  %s17433_s20 = scalar_lea.vmem [#allocation14], %s12016_s8  ;;  %s17462_s28 = scalar_lea.hbm %s17517_s7, %s13119_s21 }
  0xd7   : > { %v12074_v3 = vcombine.high %v446_v0, %v450_v1  ;;  %v12073_v5 = vcombine.low %v446_v0, %v450_v1  ;;  %v454_v6 = vld [vmem:[#allocation5 + $0x40] sm:$0xff]  ;;  %v12076_v8 = vcombine.high %v447_v2, %v451_v4  ;;  %v12075_v9 = vcombine.low %v447_v2, %v451_v4  ;;  %v455_v11 = vld [vmem:[#allocation5 + $0x48] sm:$0xff]  ;;  %s11867_s14 = sshll.u32 %s17433_s20, 4  ;;  %s11854_s12 = scalar_lea.sflag [#allocation4], %s15369_s1  ;;  %s17464_s14 = int_to_ptr.vmem [resolvable:$true] %s11867_s14 }
  0xd8   : > { %v458_v7 = vld [vmem:[#allocation5 + $0x60] sm:$0xff]  ;;  %v459_v12 = vld [vmem:[#allocation5 + $0x68] sm:$0xff]  ;;  %s14983_s17 = scalar_lea.vmem %s17464_s14, 2048  ;;  %p17917_p9 = scmp.ne.s32.totalorder %s17660_s13, 0 }
  0xd9   : > { %v12082_v10 = vcombine.high %v454_v6, %v458_v7  ;;  %v462_v13 = vld [vmem:[#allocation5 + $0x80] sm:$0xff]  ;;  %3464 = vmatprep.subr.bf16.mxu0 %v12074_v3  ;;  %v12084_v14 = vcombine.high %v455_v11, %v459_v12  ;;  %v463_v16 = vld [vmem:[#allocation5 + $0x88] sm:$0xff]  ;;  %3916 = vmatprep.subr.bf16.mxu1 %v12076_v8  ;;  %v12081_v18 = vcombine.low %v454_v6, %v458_v7  ;;  %p14984_p5 = scmp.ne.s32.totalorder %s17464_s14, %s14983_s17  ;;  %s15077_s30 = smov [#allocation14]  }
  0xda   : > { %v466_v15 = vld [vmem:[#allocation5 + $0xa0] sm:$0xff]  ;;  %v467_v17 = vld [vmem:[#allocation5 + $0xa8] sm:$0xff]  ;;  %3465 = vmatpush1.bf16.msra.mxu0 %v12073_v5  ;;  %3917 = vmatpush1.bf16.msra.mxu1 %v12075_v9  ;;  %v12083_v19 = vcombine.low %v455_v11, %v459_v12  ;;  %s14987_s19 = sshll.u32 %s15077_s30, 4  ;;  %s14988_s19 = int_to_ptr.vmem [resolvable:$false] %s14987_s19 }
  0xdb   : > { %3466 = vmatprep.subr.bf16.mxu0 %v12082_v10  ;;  %v12090_v20 = vcombine.high %v462_v13, %v466_v15  ;;  %3918 = vmatprep.subr.bf16.mxu1 %v12084_v14  ;;  %v12092_v21 = vcombine.high %v463_v16, %v467_v17  ;;  %v470_v22 = vld [vmem:[#allocation5 + $0xc0] sm:$0xff]  ;;  %v471_v24 = vld [vmem:[#allocation5 + $0xc8] sm:$0xff]  ;;  %v12089_v26 = vcombine.low %v462_v13, %v466_v15  ;;  %p14985_p12 = pnand %p14984_p5, %p17917_p9  ;;  %s14989_s9 = scalar_lea.vmem %s14988_s19, 4096 }
  0xdc   : > { %v474_v23 = vld [vmem:[#allocation5 + $0xe0] sm:$0xff]  ;;  %v475_v25 = vld [vmem:[#allocation5 + $0xe8] sm:$0xff]  ;;  %v12091_v27 = vcombine.low %v463_v16, %v467_v17  ;;  %p14990_p1 = scmp.lt.s32.totalorder %s17464_s14, %s14988_s19  ;;  %p14991_p3 = scmp.lt.s32.totalorder %s14989_s9, %s14983_s17 }
  0xdd   : > { %v12098_v28 = vcombine.high %v470_v22, %v474_v23  ;;  %v12100_v29 = vcombine.high %v471_v24, %v475_v25  ;;  %v478_v30 = vld [vmem:[#allocation5 + $0x100] sm:$0xff]  ;;  %v479_v32 = vld [vmem:[#allocation5 + $0x108] sm:$0xff]  ;;  %v12097_v34 = vcombine.low %v470_v22, %v474_v23  ;;  %v12099_v35 = vcombine.low %v471_v24, %v475_v25  ;;  %p14986_p13 = pneg %p14985_p12 }
  0xde   : > { %3467 = vmatpush1.bf16.msra.mxu0 %v12081_v18  ;;  %3919 = vmatpush1.bf16.msra.mxu1 %v12083_v19  ;;  %v482_v31 = vld [vmem:[#allocation5 + $0x120] sm:$0xff]  ;;  %v483_v33 = vld [vmem:[#allocation5 + $0x128] sm:$0xff]  ;;  %p14992_p2 = por %p14991_p3, %p14990_p1 }
  0xdf   : > { %3468 = vmatprep.subr.bf16.mxu0 %v12090_v20  ;;  %3920 = vmatprep.subr.bf16.mxu1 %v12092_v21  ;;  %v12106_v36 = vcombine.high %v478_v30, %v482_v31  ;;  %v12108_v37 = vcombine.high %v479_v32, %v483_v33  ;;  %v486_v38 = vld [vmem:[#allocation5 + $0x140] sm:$0xff]  ;;  %v487_v40 = vld [vmem:[#allocation5 + $0x148] sm:$0xff]  ;;  %v12105_v42 = vcombine.low %v478_v30, %v482_v31 }
  0xe0   : > { %v490_v39 = vld [vmem:[#allocation5 + $0x160] sm:$0xff]  ;;  %v491_v41 = vld [vmem:[#allocation5 + $0x168] sm:$0xff]  ;;  %v12107_v43 = vcombine.low %v479_v32, %v483_v33  ;;  %p14993_p8 = pnand %p14992_p2, %p14986_p13 }
  0xe1   : > { %v12114_v44 = vcombine.high %v486_v38, %v490_v39  ;;  %v12116_v45 = vcombine.high %v487_v40, %v491_v41  ;;  %v494_v46 = vld [vmem:[#allocation5 + $0x180] sm:$0xff]  ;;  %v495_v48 = vld [vmem:[#allocation5 + $0x188] sm:$0xff]  ;;  %v12113_v50 = vcombine.low %v486_v38, %v490_v39  ;;  %v12115_v51 = vcombine.low %v487_v40, %v491_v41 }
  0xe2   : > { %3469 = vmatpush1.bf16.msra.mxu0 %v12089_v26  ;;  %3921 = vmatpush1.bf16.msra.mxu1 %v12091_v27  ;;  %v498_v47 = vld [vmem:[#allocation5 + $0x1a0] sm:$0xff]  ;;  %v499_v49 = vld [vmem:[#allocation5 + $0x1a8] sm:$0xff] }
  0xe3   : > { %3470 = vmatprep.subr.bf16.mxu0 %v12098_v28  ;;  %3922 = vmatprep.subr.bf16.mxu1 %v12100_v29  ;;  %v12122_v52 = vcombine.high %v494_v46, %v498_v47  ;;  %v12124_v53 = vcombine.high %v495_v48, %v499_v49  ;;  %v502_v54 = vld [vmem:[#allocation5 + $0x1c0] sm:$0xff]  ;;  %v503_v57 = vld [vmem:[#allocation5 + $0x1c8] sm:$0xff]  ;;  %v12121_v59 = vcombine.low %v494_v46, %v498_v47 }
  0xe4   : > { %v506_v55 = vld [vmem:[#allocation5 + $0x1e0] sm:$0xff]  ;;  %v507_v58 = vld [vmem:[#allocation5 + $0x1e8] sm:$0xff]  ;;  %v12123_v60 = vcombine.low %v495_v48, %v499_v49 }
  0xe5   : > { %v14519_v56 = vld [vmem:[%s15373_s10 + $0x4] ss:$28 sps:$4 sm:$0xff]   ;;  %v12130_v61 = vcombine.high %v502_v54, %v506_v55  ;;  %v12132_v62 = vcombine.high %v503_v57, %v507_v58  ;;  %v511_v1 = vld [vmem:[#allocation5 + $0x208] sm:$0xff]  ;;  %v12129_v3 = vcombine.low %v502_v54, %v506_v55  ;;  %v12131_v4 = vcombine.low %v503_v57, %v507_v58 }
  0xe6   : > { %3471 = vmatpush1.bf16.msra.mxu0 %v12097_v34  ;;  %3923 = vmatpush1.bf16.msra.mxu1 %v12099_v35  ;;  %v510_v63 = vld [vmem:[#allocation5 + $0x200] sm:$0xff]  ;;  %v515_v2 = vld [vmem:[#allocation5 + $0x228] sm:$0xff] }
  0xe7   : > { %3472 = vmatprep.subr.bf16.mxu0 %v12106_v36  ;;  %3924 = vmatprep.subr.bf16.mxu1 %v12108_v37  ;;  %v514_v0 = vld [vmem:[#allocation5 + $0x220] sm:$0xff]  ;;  %v12140_v6 = vcombine.high %v511_v1, %v515_v2  ;;  %v519_v9 = vld [vmem:[#allocation5 + $0x248] sm:$0xff]  ;;  %v12139_v12 = vcombine.low %v511_v1, %v515_v2 }
  0xe8   : > { %3496 = vmatprep.mubr.bf16.mxu0 %v14519_v56  ;;  %3948 = vmatprep.mubr.bf16.mxu1 %v14519_v56  ;;  %v12138_v5 = vcombine.high %v510_v63, %v514_v0  ;;  %v518_v7 = vld [vmem:[#allocation5 + $0x240] sm:$0xff]  ;;  %v523_v10 = vld [vmem:[#allocation5 + $0x268] sm:$0xff]  ;;  %v12137_v11 = vcombine.low %v510_v63, %v514_v0 }
  0xe9   : > { %v522_v8 = vld [vmem:[#allocation5 + $0x260] sm:$0xff]  ;;  %v12148_v14 = vcombine.high %v519_v9, %v523_v10  ;;  %v527_v17 = vld [vmem:[#allocation5 + $0x288] sm:$0xff]  ;;  %v12147_v20 = vcombine.low %v519_v9, %v523_v10 }
  0xea   : > { %3473 = vmatpush1.bf16.msra.mxu0 %v12105_v42  ;;  %3925 = vmatpush1.bf16.msra.mxu1 %v12107_v43  ;;  %v12146_v13 = vcombine.high %v518_v7, %v522_v8  ;;  %v526_v15 = vld [vmem:[#allocation5 + $0x280] sm:$0xff]  ;;  %v531_v18 = vld [vmem:[#allocation5 + $0x2a8] sm:$0xff]  ;;  %v12145_v19 = vcombine.low %v518_v7, %v522_v8 }
  0xeb   : > { %3474 = vmatprep.subr.bf16.mxu0 %v12114_v44  ;;  %3926 = vmatprep.subr.bf16.mxu1 %v12116_v45  ;;  %v530_v16 = vld [vmem:[#allocation5 + $0x2a0] sm:$0xff]  ;;  %v12156_v22 = vcombine.high %v527_v17, %v531_v18  ;;  %v535_v25 = vld [vmem:[#allocation5 + $0x2c8] sm:$0xff]  ;;  %v12155_v28 = vcombine.low %v527_v17, %v531_v18 }
  0xec   : > { %v12154_v21 = vcombine.high %v526_v15, %v530_v16  ;;  %v534_v23 = vld [vmem:[#allocation5 + $0x2c0] sm:$0xff]  ;;  %v539_v26 = vld [vmem:[#allocation5 + $0x2e8] sm:$0xff]  ;;  %v12153_v27 = vcombine.low %v526_v15, %v530_v16  ;;  %v14522_v16 = vld [vmem:[%s15373_s10 + $0x3c] ss:$28 sps:$4 sm:$0xff]  }
  0xed   : > { %v538_v24 = vld [vmem:[#allocation5 + $0x2e0] sm:$0xff]  ;;  %v12164_v30 = vcombine.high %v535_v25, %v539_v26  ;;  %v543_v33 = vld [vmem:[#allocation5 + $0x308] sm:$0xff]  ;;  %v12163_v36 = vcombine.low %v535_v25, %v539_v26 }
  0xee   : > { %3475 = vmatpush1.bf16.msra.mxu0 %v12113_v50  ;;  %3927 = vmatpush1.bf16.msra.mxu1 %v12115_v51  ;;  %v12162_v29 = vcombine.high %v534_v23, %v538_v24  ;;  %v542_v31 = vld [vmem:[#allocation5 + $0x300] sm:$0xff]  ;;  %v547_v34 = vld [vmem:[#allocation5 + $0x328] sm:$0xff]  ;;  %v12161_v35 = vcombine.low %v534_v23, %v538_v24 }
  0xef   : > { %3476 = vmatprep.subr.bf16.mxu0 %v12122_v52  ;;  %3928 = vmatprep.subr.bf16.mxu1 %v12124_v53  ;;  %v546_v32 = vld [vmem:[#allocation5 + $0x320] sm:$0xff]  ;;  %v12172_v38 = vcombine.high %v543_v33, %v547_v34  ;;  %v551_v41 = vld [vmem:[#allocation5 + $0x348] sm:$0xff]  ;;  %v12171_v44 = vcombine.low %v543_v33, %v547_v34  ;;  %v14525_v34 = vld [vmem:[%s15373_s10 + $0x74] ss:$28 sps:$4 sm:$0xff]  }
  0xf0   : > { %v12170_v37 = vcombine.high %v542_v31, %v546_v32  ;;  %v550_v39 = vld [vmem:[#allocation5 + $0x340] sm:$0xff]  ;;  %v555_v42 = vld [vmem:[#allocation5 + $0x368] sm:$0xff]  ;;  %v12169_v43 = vcombine.low %v542_v31, %v546_v32 }
  0xf1   : > { %v554_v40 = vld [vmem:[#allocation5 + $0x360] sm:$0xff]  ;;  %v12180_v46 = vcombine.high %v551_v41, %v555_v42  ;;  %v559_v49 = vld [vmem:[#allocation5 + $0x388] sm:$0xff]  ;;  %v12179_v52 = vcombine.low %v551_v41, %v555_v42 }
  0xf2   : > { %3477 = vmatpush1.bf16.msra.mxu0 %v12121_v59  ;;  %3929 = vmatpush1.bf16.msra.mxu1 %v12123_v60  ;;  %v12178_v45 = vcombine.high %v550_v39, %v554_v40  ;;  %v558_v47 = vld [vmem:[#allocation5 + $0x380] sm:$0xff]  ;;  %v563_v50 = vld [vmem:[#allocation5 + $0x3a8] sm:$0xff]  ;;  %v12177_v51 = vcombine.low %v550_v39, %v554_v40 }
  0xf3   : > { %3478 = vmatprep.subr.bf16.mxu0 %v12130_v61  ;;  %3930 = vmatprep.subr.bf16.mxu1 %v12132_v62  ;;  %v562_v48 = vld [vmem:[#allocation5 + $0x3a0] sm:$0xff]  ;;  %v12188_v54 = vcombine.high %v559_v49, %v563_v50  ;;  %v567_v57 = vld [vmem:[#allocation5 + $0x3c8] sm:$0xff]  ;;  %v12187_v60 = vcombine.low %v559_v49, %v563_v50 }
  0xf4   : > { %v12186_v53 = vcombine.high %v558_v47, %v562_v48  ;;  %v566_v55 = vld [vmem:[#allocation5 + $0x3c0] sm:$0xff]  ;;  %v571_v58 = vld [vmem:[#allocation5 + $0x3e8] sm:$0xff]  ;;  %v12185_v59 = vcombine.low %v558_v47, %v562_v48 }
  0xf5   : > { %v570_v56 = vld [vmem:[#allocation5 + $0x3e0] sm:$0xff]  ;;  %v12196_v62 = vcombine.high %v567_v57, %v571_v58  ;;  %v575_v1 = vld [vmem:[#allocation5 + $0x408] sm:$0xff] }
  0xf6   : > { %3479 = vmatpush1.bf16.msra.mxu0 %v12129_v3  ;;  %3931 = vmatpush1.bf16.msra.mxu1 %v12131_v4  ;;  %v12194_v61 = vcombine.high %v566_v55, %v570_v56  ;;  %v574_v63 = vld [vmem:[#allocation5 + $0x400] sm:$0xff]  ;;  %v579_v2 = vld [vmem:[#allocation5 + $0x428] sm:$0xff]  ;;  %v12193_v3 = vcombine.low %v566_v55, %v570_v56  ;;  %v12195_v4 = vcombine.low %v567_v57, %v571_v58 }
  0xf7   : > { %3480 = vmatprep.subr.bf16.mxu0 %v12138_v5  ;;  %3932 = vmatprep.subr.bf16.mxu1 %v12140_v6  ;;  %v578_v0 = vld [vmem:[#allocation5 + $0x420] sm:$0xff]  ;;  %v12204_v6 = vcombine.high %v575_v1, %v579_v2  ;;  %v583_v10 = vld [vmem:[#allocation5 + $0x448] sm:$0xff] }
  0xf8   : > { %v12202_v5 = vcombine.high %v574_v63, %v578_v0  ;;  %v582_v7 = vld [vmem:[#allocation5 + $0x440] sm:$0xff]  ;;  %v619_v47 = vld [vmem:[#allocation5 + $0x568] sm:$0xff] }
  0xf9   : > { %v586_v8 = vld [vmem:[#allocation5 + $0x460] sm:$0xff]  ;;  %v623_v55 = vld [vmem:[#allocation5 + $0x588] sm:$0xff] }
  0xfa   : > { %3481 = vmatpush1.bf16.msra.mxu0 %v12137_v11  ;;  %3933 = vmatpush1.bf16.msra.mxu1 %v12139_v12  ;;  %v14521_v9 = vld [vmem:[%s15373_s10] ss:$28 sps:$4 sm:$0xff]   ;;  %v587_v11 = vld [vmem:[#allocation5 + $0x468] sm:$0xff]  ;;  %v12201_v12 = vcombine.low %v574_v63, %v578_v0 }
  0xfb   : > { %3482 = vmatprep.subr.bf16.mxu0 %v12146_v13  ;;  %3934 = vmatprep.subr.bf16.mxu1 %v12148_v14  ;;  %v12203_v13 = vcombine.low %v575_v1, %v579_v2  ;;  %v12210_v14 = vcombine.high %v582_v7, %v586_v8  ;;  %v12212_v15 = vcombine.high %v583_v10, %v587_v11  ;;  %v590_v17 = vld [vmem:[#allocation5 + $0x480] sm:$0xff]  ;;  %v627_v56 = vld [vmem:[#allocation5 + $0x5a8] sm:$0xff] }
  0xfc   : > { %v594_v18 = vld [vmem:[#allocation5 + $0x4a0] sm:$0xff]  ;;  %v631_v0 = vld [vmem:[#allocation5 + $0x5c8] sm:$0xff] }
  0xfd   : > { %v12218_v23 = vcombine.high %v590_v17, %v594_v18  ;;  %v598_v25 = vld [vmem:[#allocation5 + $0x4c0] sm:$0xff]  ;;  %v635_v1 = vld [vmem:[#allocation5 + $0x5e8] sm:$0xff] }
  0xfe   : > { %3483 = vmatpush1.bf16.msra.mxu0 %v12145_v19  ;;  %3935 = vmatpush1.bf16.msra.mxu1 %v12147_v20  ;;  %v591_v19 = vld [vmem:[#allocation5 + $0x488] sm:$0xff]  ;;  %v602_v26 = vld [vmem:[#allocation5 + $0x4e0] sm:$0xff] }
  0xff   : > { %3484 = vmatprep.subr.bf16.mxu0 %v12154_v21  ;;  %3936 = vmatprep.subr.bf16.mxu1 %v12156_v22  ;;  %v595_v20 = vld [vmem:[#allocation5 + $0x4a8] sm:$0xff]  ;;  %v12209_v21 = vcombine.low %v582_v7, %v586_v8  ;;  %v12211_v22 = vcombine.low %v583_v10, %v587_v11  ;;  %v12226_v32 = vcombine.high %v598_v25, %v602_v26  ;;  %v634_v63 = vld [vmem:[#allocation5 + $0x5e0] sm:$0xff] }
 0x100   : > { %v12220_v24 = vcombine.high %v591_v19, %v595_v20  ;;  %v12219_v31 = vcombine.low %v591_v19, %v595_v20  ;;  %v12225_v39 = vcombine.low %v598_v25, %v602_v26  ;;  %v638_v7 = vld [vmem:[#allocation5 + $0x600] sm:$0xff]  ;;  %v643_v10 = vld [vmem:[#allocation5 + $0x628] sm:$0xff] }
 0x101   : > { %v642_v8 = vld [vmem:[#allocation5 + $0x620] sm:$0xff]  ;;  %v651_v19 = vld [vmem:[#allocation5 + $0x668] sm:$0xff] }
 0x102   : > { %3485 = vmatpush1.bf16.msra.mxu0 %v12153_v27  ;;  %3937 = vmatpush1.bf16.msra.mxu1 %v12155_v28  ;;  %v14524_v27 = vld [vmem:[%s15373_s10 + $0x38] ss:$28 sps:$4 sm:$0xff]   ;;  %v599_v28 = vld [vmem:[#allocation5 + $0x4c8] sm:$0xff]  ;;  %v12265_v20 = vcombine.low %v638_v7, %v642_v8  ;;  %v658_v25 = vld [vmem:[#allocation5 + $0x6a0] sm:$0xff] }
 0x103   : > { %3486 = vmatprep.subr.bf16.mxu0 %v12162_v29  ;;  %3938 = vmatprep.subr.bf16.mxu1 %v12164_v30  ;;  %v603_v29 = vld [vmem:[#allocation5 + $0x4e8] sm:$0xff]  ;;  %v12217_v30 = vcombine.low %v590_v17, %v594_v18 }
 0x104   : > { %v12228_v33 = vcombine.high %v599_v28, %v603_v29  ;;  %v12227_v40 = vcombine.low %v599_v28, %v603_v29  ;;  %v647_v18 = vld [vmem:[#allocation5 + $0x648] sm:$0xff] }
 0x105   : > { %v12276_v26 = vcombine.high %v647_v18, %v651_v19  ;;  %v659_v28 = vld [vmem:[#allocation5 + $0x6a8] sm:$0xff] }
 0x106   : > { %3487 = vmatpush1.bf16.msra.mxu0 %v12161_v35  ;;  %3939 = vmatpush1.bf16.msra.mxu1 %v12163_v36  ;;  %v606_v35 = vld [vmem:[#allocation5 + $0x500] sm:$0xff] }
 0x107   : > { %3488 = vmatprep.subr.bf16.mxu0 %v12170_v37  ;;  %3940 = vmatprep.subr.bf16.mxu1 %v12172_v38  ;;  %v610_v36 = vld [vmem:[#allocation5 + $0x520] sm:$0xff]  ;;  %v607_v37 = vld [vmem:[#allocation5 + $0x508] sm:$0xff] }
 0x108   : > { %v611_v38 = vld [vmem:[#allocation5 + $0x528] sm:$0xff]  ;;  %v12234_v41 = vcombine.high %v606_v35, %v610_v36  ;;  %v12233_v48 = vcombine.low %v606_v35, %v610_v36 }
 0x109   : > { %v12236_v42 = vcombine.high %v607_v37, %v611_v38  ;;  %v12235_v49 = vcombine.low %v607_v37, %v611_v38  ;;  %v663_v35 = vld [vmem:[#allocation5 + $0x6c8] sm:$0xff] }
 0x10a   : > { %3489 = vmatpush1.bf16.msra.mxu0 %v12169_v43  ;;  %3941 = vmatpush1.bf16.msra.mxu1 %v12171_v44  ;;  %v614_v43 = vld [vmem:[#allocation5 + $0x540] sm:$0xff]  ;;  %v667_v36 = vld [vmem:[#allocation5 + $0x6e8] sm:$0xff] }
 0x10b   : > { %3490 = vmatprep.subr.bf16.mxu0 %v12178_v45  ;;  %3942 = vmatprep.subr.bf16.mxu1 %v12180_v46  ;;  %v618_v44 = vld [vmem:[#allocation5 + $0x560] sm:$0xff]  ;;  %v14527_v45 = vld [vmem:[%s15373_s10 + $0x70] ss:$28 sps:$4 sm:$0xff]  }
 0x10c   : > { %v615_v46 = vld [vmem:[#allocation5 + $0x548] sm:$0xff]  ;;  %v12242_v50 = vcombine.high %v614_v43, %v618_v44  ;;  %v12241_v57 = vcombine.low %v614_v43, %v618_v44  ;;  %v674_v43 = vld [vmem:[#allocation5 + $0x720] sm:$0xff]  ;;  %v12292_v44 = vcombine.high %v663_v35, %v667_v36 }
 0x10d   : > { %v12243_v58 = vcombine.low %v615_v46, %v619_v47 }
 0x10e   : > { %3491 = vmatpush1.bf16.msra.mxu0 %v12177_v51  ;;  %3943 = vmatpush1.bf16.msra.mxu1 %v12179_v52  ;;  %v12244_v51 = vcombine.high %v615_v46, %v619_v47  ;;  %v14528_v52 = vld [vmem:[%s15373_s10 + $0xac] ss:$28 sps:$4 sm:$0xff]  }
 0x10f   : > { %3492 = vmatprep.subr.bf16.mxu0 %v12186_v53  ;;  %3944 = vmatprep.subr.bf16.mxu1 %v12188_v54  ;;  %v622_v53 = vld [vmem:[#allocation5 + $0x580] sm:$0xff]  ;;  %v675_v46 = vld [vmem:[#allocation5 + $0x728] sm:$0xff] }
 0x110   : > { %v626_v54 = vld [vmem:[#allocation5 + $0x5a0] sm:$0xff] }
 0x111   : > { %v12249_v2 = vcombine.low %v622_v53, %v626_v54 }
 0x112   : > { %3493 = vmatpush1.bf16.msra.mxu0 %v12185_v59  ;;  %3945 = vmatpush1.bf16.msra.mxu1 %v12187_v60  ;;  %v14530_v59 = vld [vmem:[%s15373_s10 + $0xa8] ss:$28 sps:$4 sm:$0xff]   ;;  %v12250_v60 = vcombine.high %v622_v53, %v626_v54 }
 0x113   : > { %3494 = vmatprep.subr.bf16.mxu0 %v12194_v61  ;;  %3946 = vmatprep.subr.bf16.mxu1 %v12196_v62  ;;  %v12252_v61 = vcombine.high %v623_v55, %v627_v56  ;;  %v630_v62 = vld [vmem:[#allocation5 + $0x5c0] sm:$0xff]  ;;  %v679_v53 = vld [vmem:[#allocation5 + $0x748] sm:$0xff] }
 0x114   : > { %v12257_v11 = vcombine.low %v630_v62, %v634_v63  ;;  %v683_v54 = vld [vmem:[#allocation5 + $0x768] sm:$0xff] }
 0x116   : > { %3495 = vmatpush1.bf16.msra.mxu0 %v12193_v3  ;;  %3947 = vmatpush1.bf16.msra.mxu1 %v12195_v4  ;;  %v12251_v3 = vcombine.low %v623_v55, %v627_v56  ;;  %v12258_v4 = vcombine.high %v630_v62, %v634_v63  ;;  %v12308_v62 = vcombine.high %v679_v53, %v683_v54  ;;  %v687_v63 = vld [vmem:[#allocation5 + $0x788] sm:$0xff] }
 0x117   : > { %3577 = vmatprep.subr.bf16.mxu0 %v12202_v5  ;;  %4029 = vmatprep.subr.bf16.mxu1 %v12204_v6  ;;  %v14531_v5 = vld [vmem:[%s15373_s10 + $0xe4] ss:$28 sps:$4 sm:$0xff]   ;;  %v12260_v6 = vcombine.high %v631_v0, %v635_v1 }
 0x119   : > { %3497 = vmatmul.mubr.bf16.vlgmr.msra.gmra.mrb[0].mxu0 %v14521_v9  ;;  %3949 = vmatmul.mubr.bf16.vlgmr.msra.gmra.mrb[0].mxu1 %v14521_v9  ;;  %v639_v9 = vld [vmem:[#allocation5 + $0x608] sm:$0xff] }
 0x11a   : > { %3578 = vmatpush1.bf16.msra.mxu0 %v12201_v12  ;;  %4030 = vmatpush1.bf16.msra.mxu1 %v12203_v13  ;;  %v646_v12 = vld [vmem:[#allocation5 + $0x640] sm:$0xff]  ;;  %v12259_v13 = vcombine.low %v631_v0, %v635_v1  ;;  %v12268_v17 = vcombine.high %v639_v9, %v643_v10  ;;  %v691_v0 = vld [vmem:[#allocation5 + $0x7a8] sm:$0xff] }
 0x11b   : > { %3579 = vmatprep.subr.bf16.mxu0 %v12210_v14  ;;  %4031 = vmatprep.subr.bf16.mxu1 %v12212_v15  ;;  %v14533_v14 = vld [vmem:[%s15373_s10 + $0xe0] ss:$28 sps:$4 sm:$0xff]   ;;  %v12266_v15 = vcombine.high %v638_v7, %v642_v8  ;;  %v695_v7 = vld [vmem:[#allocation5 + $0x7c8] sm:$0xff] }
 0x11c   : > { %3506 = vmatprep.mubr.bf16.mxu0 %v14522_v16  ;;  %3958 = vmatprep.mubr.bf16.mxu1 %v14522_v16  ;;  %v650_v16 = vld [vmem:[#allocation5 + $0x660] sm:$0xff]  ;;  %v699_v8 = vld [vmem:[#allocation5 + $0x7e8] sm:$0xff] }
 0x11d   : > { %v12273_v29 = vcombine.low %v646_v12, %v650_v16 }
 0x11e   : > { %3580 = vmatpush1.bf16.msra.mxu0 %v12209_v21  ;;  %4032 = vmatpush1.bf16.msra.mxu1 %v12211_v22  ;;  %v14534_v21 = vld [vmem:[%s15373_s10 + $0x11c] ss:$28 sps:$4 sm:$0xff]   ;;  %v12267_v22 = vcombine.low %v639_v9, %v643_v10  ;;  %v12316_v9 = vcombine.high %v687_v63, %v691_v0 }
 0x11f   : > { %3581 = vmatprep.subr.bf16.mxu0 %v12218_v23  ;;  %4033 = vmatprep.subr.bf16.mxu1 %v12220_v24  ;;  %v12274_v23 = vcombine.high %v646_v12, %v650_v16  ;;  %v654_v24 = vld [vmem:[#allocation5 + $0x680] sm:$0xff]  ;;  %v12315_v12 = vcombine.low %v687_v63, %v691_v0  ;;  %v12324_v16 = vcombine.high %v695_v7, %v699_v8  ;;  %v747_v63 = vld [vmem:[#allocation5 + $0x968] sm:$0xff] }
 0x120   : > { %v12281_v38 = vcombine.low %v654_v24, %v658_v25 }
 0x121   : > { %3507 = vmatmul.mubr.bf16.gmra.mrb[4].mxu0 %v14524_v27  ;;  %3959 = vmatmul.mubr.bf16.gmra.mrb[4].mxu1 %v14524_v27  ;;  %v655_v27 = vld [vmem:[#allocation5 + $0x688] sm:$0xff] }
 0x122   : > { %3582 = vmatpush1.bf16.msra.mxu0 %v12217_v30  ;;  %4034 = vmatpush1.bf16.msra.mxu1 %v12219_v31  ;;  %v662_v30 = vld [vmem:[#allocation5 + $0x6c0] sm:$0xff]  ;;  %v12284_v37 = vcombine.high %v655_v27, %v659_v28 }
 0x123   : > { %3583 = vmatprep.subr.bf16.mxu0 %v12226_v32  ;;  %4035 = vmatprep.subr.bf16.mxu1 %v12228_v33  ;;  %v666_v31 = vld [vmem:[#allocation5 + $0x6e0] sm:$0xff]  ;;  %v12275_v32 = vcombine.low %v647_v18, %v651_v19  ;;  %v14536_v33 = vld [vmem:[%s15373_s10 + $0x118] ss:$28 sps:$4 sm:$0xff]   ;;  %v707_v18 = vld [vmem:[#allocation5 + $0x828] sm:$0xff] }
 0x124   : > { %3516 = vmatprep.mubr.bf16.mxu0 %v14525_v34  ;;  %3968 = vmatprep.mubr.bf16.mxu1 %v14525_v34  ;;  %v12282_v34 = vcombine.high %v654_v24, %v658_v25  ;;  %v12289_v47 = vcombine.low %v662_v30, %v666_v31  ;;  %v711_v25 = vld [vmem:[#allocation5 + $0x848] sm:$0xff] }
 0x126   : > { %3584 = vmatpush1.bf16.msra.mxu0 %v12225_v39  ;;  %4036 = vmatpush1.bf16.msra.mxu1 %v12227_v40  ;;  %v14537_v39 = vld [vmem:[%s15373_s10 + $0x154] ss:$28 sps:$4 sm:$0xff]   ;;  %v12283_v40 = vcombine.low %v655_v27, %v659_v28 }
 0x127   : > { %3585 = vmatprep.subr.bf16.mxu0 %v12234_v41  ;;  %4037 = vmatprep.subr.bf16.mxu1 %v12236_v42  ;;  %v12290_v41 = vcombine.high %v662_v30, %v666_v31  ;;  %v670_v42 = vld [vmem:[#allocation5 + $0x700] sm:$0xff] }
 0x128   : > { %v12297_v56 = vcombine.low %v670_v42, %v674_v43 }
 0x129   : > { %3517 = vmatmul.mubr.bf16.gmra.mrb[8].mxu0 %v14527_v45  ;;  %3969 = vmatmul.mubr.bf16.gmra.mrb[8].mxu1 %v14527_v45  ;;  %v671_v45 = vld [vmem:[#allocation5 + $0x708] sm:$0xff] }
 0x12a   : > { %3586 = vmatpush1.bf16.msra.mxu0 %v12233_v48  ;;  %4038 = vmatpush1.bf16.msra.mxu1 %v12235_v49  ;;  %v678_v48 = vld [vmem:[#allocation5 + $0x740] sm:$0xff]  ;;  %v12300_v55 = vcombine.high %v671_v45, %v675_v46 }
 0x12b   : > { %3587 = vmatprep.subr.bf16.mxu0 %v12242_v50  ;;  %4039 = vmatprep.subr.bf16.mxu1 %v12244_v51  ;;  %v682_v49 = vld [vmem:[#allocation5 + $0x760] sm:$0xff]  ;;  %v12291_v50 = vcombine.low %v663_v35, %v667_v36  ;;  %v14539_v51 = vld [vmem:[%s15373_s10 + $0x150] ss:$28 sps:$4 sm:$0xff]  }
 0x12c   : > { %3526 = vmatprep.mubr.bf16.mxu0 %v14528_v52  ;;  %3978 = vmatprep.mubr.bf16.mxu1 %v14528_v52  ;;  %v12298_v52 = vcombine.high %v670_v42, %v674_v43  ;;  %v12305_v1 = vcombine.low %v678_v48, %v682_v49  ;;  %v723_v36 = vld [vmem:[#allocation5 + $0x8a8] sm:$0xff]  ;;  %v730_v42 = vld [vmem:[#allocation5 + $0x8e0] sm:$0xff] }
 0x12d   : > { %v727_v43 = vld [vmem:[#allocation5 + $0x8c8] sm:$0xff] }
 0x12e   : > { %3588 = vmatpush1.bf16.msra.mxu0 %v12241_v57  ;;  %4040 = vmatpush1.bf16.msra.mxu1 %v12243_v58  ;;  %v14540_v57 = vld [vmem:[%s15373_s10 + $0x18c] ss:$28 sps:$4 sm:$0xff]   ;;  %v12299_v58 = vcombine.low %v671_v45, %v675_v46 }
 0x12f   : > { %3589 = vmatprep.subr.bf16.mxu0 %v12250_v60  ;;  %4041 = vmatprep.subr.bf16.mxu1 %v12252_v61  ;;  %v686_v60 = vld [vmem:[#allocation5 + $0x780] sm:$0xff]  ;;  %v731_v45 = vld [vmem:[#allocation5 + $0x8e8] sm:$0xff] }
 0x130   : > { %v690_v61 = vld [vmem:[#allocation5 + $0x7a0] sm:$0xff] }
 0x131   : > { %3527 = vmatmul.mubr.bf16.gmra.mrb[12].mxu0 %v14530_v59  ;;  %3979 = vmatmul.mubr.bf16.gmra.mrb[12].mxu1 %v14530_v59  ;;  %v12306_v59 = vcombine.high %v678_v48, %v682_v49  ;;  %v12313_v10 = vcombine.low %v686_v60, %v690_v61  ;;  %v14549_v49 = vld [vmem:[%s15373_s10 + $0x7c] ss:$28 sps:$4 sm:$0xff]  }
 0x132   : > { %3590 = vmatpush1.bf16.msra.mxu0 %v12249_v2  ;;  %4042 = vmatpush1.bf16.msra.mxu1 %v12251_v3  ;;  %v694_v2 = vld [vmem:[#allocation5 + $0x7c0] sm:$0xff] }
 0x133   : > { %3591 = vmatprep.subr.bf16.mxu0 %v12258_v4  ;;  %4043 = vmatprep.subr.bf16.mxu1 %v12260_v6  ;;  %v698_v3 = vld [vmem:[#allocation5 + $0x7e0] sm:$0xff]  ;;  %v12307_v4 = vcombine.low %v679_v53, %v683_v54  ;;  %v12314_v6 = vcombine.high %v686_v60, %v690_v61  ;;  %v735_v53 = vld [vmem:[#allocation5 + $0x908] sm:$0xff] }
 0x134   : > { %3536 = vmatprep.mubr.bf16.mxu0 %v14531_v5  ;;  %3988 = vmatprep.mubr.bf16.mxu1 %v14531_v5  ;;  %v14542_v5 = vld [vmem:[%s15373_s10 + $0x188] ss:$28 sps:$4 sm:$0xff]   ;;  %v12321_v19 = vcombine.low %v694_v2, %v698_v3 }
 0x135   : > { %v739_v54 = vld [vmem:[#allocation5 + $0x928] sm:$0xff]  ;;  %v746_v60 = vld [vmem:[#allocation5 + $0x960] sm:$0xff] }
 0x136   : > { %3592 = vmatpush1.bf16.msra.mxu0 %v12257_v11  ;;  %4044 = vmatpush1.bf16.msra.mxu1 %v12259_v13  ;;  %v14545_v11 = vld [vmem:[%s15373_s10 + $0xc] ss:$28 sps:$4 sm:$0xff]   ;;  %v12322_v13 = vcombine.high %v694_v2, %v698_v3  ;;  %v14552_v3 = vld [vmem:[%s15373_s10 + $0xb4] ss:$28 sps:$4 sm:$0xff]  }
 0x137   : > { %3593 = vmatprep.subr.bf16.mxu0 %v12266_v15  ;;  %4045 = vmatprep.subr.bf16.mxu1 %v12268_v17  ;;  %v706_v15 = vld [vmem:[#allocation5 + $0x820] sm:$0xff]  ;;  %v703_v17 = vld [vmem:[#allocation5 + $0x808] sm:$0xff] }
 0x138   : > { %v12332_v27 = vcombine.high %v703_v17, %v707_v18  ;;  %v12331_v30 = vcombine.low %v703_v17, %v707_v18  ;;  %v743_v61 = vld [vmem:[#allocation5 + $0x948] sm:$0xff] }
 0x139   : > { %3537 = vmatmul.mubr.bf16.gmra.mrb[16].mxu0 %v14533_v14  ;;  %3989 = vmatmul.mubr.bf16.gmra.mrb[16].mxu1 %v14533_v14  ;;  %v702_v14 = vld [vmem:[#allocation5 + $0x800] sm:$0xff]  ;;  %v763_v17 = vld [vmem:[#allocation5 + $0x9e8] sm:$0xff] }
 0x13a   : > { %3594 = vmatpush1.bf16.msra.mxu0 %v12265_v20  ;;  %4046 = vmatpush1.bf16.msra.mxu1 %v12267_v22  ;;  %v710_v20 = vld [vmem:[#allocation5 + $0x840] sm:$0xff]  ;;  %v12323_v22 = vcombine.low %v695_v7, %v699_v8  ;;  %v12330_v24 = vcombine.high %v702_v14, %v706_v15  ;;  %v12329_v28 = vcombine.low %v702_v14, %v706_v15  ;;  %v751_v7 = vld [vmem:[#allocation5 + $0x988] sm:$0xff] }
 0x13b   : > { %3595 = vmatprep.subr.bf16.mxu0 %v12274_v23  ;;  %4047 = vmatprep.subr.bf16.mxu1 %v12276_v26  ;;  %v14543_v23 = vld [vmem:[%s15373_s10 + $0x8] ss:$28 sps:$4 sm:$0xff]  }
 0x13c   : > { %3546 = vmatprep.mubr.bf16.mxu0 %v14534_v21  ;;  %3998 = vmatprep.mubr.bf16.mxu1 %v14534_v21  ;;  %v714_v21 = vld [vmem:[#allocation5 + $0x860] sm:$0xff]  ;;  %v715_v26 = vld [vmem:[#allocation5 + $0x868] sm:$0xff] }
 0x13d   : > { %v12338_v31 = vcombine.high %v710_v20, %v714_v21  ;;  %v12340_v35 = vcombine.high %v711_v25, %v715_v26  ;;  %v755_v8 = vld [vmem:[#allocation5 + $0x9a8] sm:$0xff]  ;;  %v762_v14 = vld [vmem:[#allocation5 + $0x9e0] sm:$0xff] }
 0x13e   : > { %3596 = vmatpush1.bf16.msra.mxu0 %v12273_v29  ;;  %4048 = vmatpush1.bf16.msra.mxu1 %v12275_v32  ;;  %v14546_v29 = vld [vmem:[%s15373_s10 + $0x44] ss:$28 sps:$4 sm:$0xff]   ;;  %v759_v15 = vld [vmem:[#allocation5 + $0x9c8] sm:$0xff] }
 0x13f   : > { %3597 = vmatprep.subr.bf16.mxu0 %v12282_v34  ;;  %4049 = vmatprep.subr.bf16.mxu1 %v12284_v37  ;;  %v718_v32 = vld [vmem:[#allocation5 + $0x880] sm:$0xff]  ;;  %v719_v34 = vld [vmem:[#allocation5 + $0x888] sm:$0xff]  ;;  %v12337_v37 = vcombine.low %v710_v20, %v714_v21 }
 0x140   : > { %v14555_v21 = vld [vmem:[%s15373_s10 + $0xec] ss:$28 sps:$4 sm:$0xff]  }
 0x141   : > { %3547 = vmatmul.mubr.bf16.gmra.mrb[20].mxu0 %v14536_v33  ;;  %3999 = vmatmul.mubr.bf16.gmra.mrb[20].mxu1 %v14536_v33  ;;  %v722_v33 = vld [vmem:[#allocation5 + $0x8a0] sm:$0xff] }
 0x142   : > { %3598 = vmatpush1.bf16.msra.mxu0 %v12281_v38  ;;  %4050 = vmatpush1.bf16.msra.mxu1 %v12283_v40  ;;  %v12339_v38 = vcombine.low %v711_v25, %v715_v26  ;;  %v12346_v40 = vcombine.high %v718_v32, %v722_v33  ;;  %v12345_v46 = vcombine.low %v718_v32, %v722_v33  ;;  %v767_v25 = vld [vmem:[#allocation5 + $0xa08] sm:$0xff]  ;;  %v778_v32 = vld [vmem:[#allocation5 + $0xa60] sm:$0xff] }
 0x143   : > { %3599 = vmatprep.subr.bf16.mxu0 %v12290_v41  ;;  %4051 = vmatprep.subr.bf16.mxu1 %v12292_v44  ;;  %v726_v41 = vld [vmem:[#allocation5 + $0x8c0] sm:$0xff]  ;;  %v12348_v44 = vcombine.high %v719_v34, %v723_v36  ;;  %v771_v26 = vld [vmem:[#allocation5 + $0xa28] sm:$0xff] }
 0x144   : > { %3556 = vmatprep.mubr.bf16.mxu0 %v14537_v39  ;;  %4008 = vmatprep.mubr.bf16.mxu1 %v14537_v39  ;;  %v14548_v39 = vld [vmem:[%s15373_s10 + $0x40] ss:$28 sps:$4 sm:$0xff]   ;;  %v12354_v48 = vcombine.high %v726_v41, %v730_v42  ;;  %v775_v33 = vld [vmem:[#allocation5 + $0xa48] sm:$0xff] }
 0x146   : > { %3600 = vmatpush1.bf16.msra.mxu0 %v12289_v47  ;;  %4052 = vmatpush1.bf16.msra.mxu1 %v12291_v50  ;;  %v12347_v47 = vcombine.low %v719_v34, %v723_v36  ;;  %v734_v50 = vld [vmem:[#allocation5 + $0x900] sm:$0xff]  ;;  %v12396_v34 = vcombine.high %v767_v25, %v771_v26 }
 0x147   : > { %3601 = vmatprep.subr.bf16.mxu0 %v12298_v52  ;;  %4053 = vmatprep.subr.bf16.mxu1 %v12300_v55  ;;  %v12356_v52 = vcombine.high %v727_v43, %v731_v45  ;;  %v12353_v55 = vcombine.low %v726_v41, %v730_v42  ;;  %v786_v41 = vld [vmem:[#allocation5 + $0xaa0] sm:$0xff] }
 0x149   : > { %3557 = vmatmul.mubr.bf16.gmra.mrb[24].mxu0 %v14539_v51  ;;  %4009 = vmatmul.mubr.bf16.gmra.mrb[24].mxu1 %v14539_v51  ;;  %v738_v51 = vld [vmem:[#allocation5 + $0x920] sm:$0xff] }
 0x14a   : > { %3602 = vmatpush1.bf16.msra.mxu0 %v12297_v56  ;;  %4054 = vmatpush1.bf16.msra.mxu1 %v12299_v58  ;;  %v12355_v56 = vcombine.low %v727_v43, %v731_v45  ;;  %v12362_v58 = vcombine.high %v734_v50, %v738_v51  ;;  %v12361_v0 = vcombine.low %v734_v50, %v738_v51  ;;  %v783_v43 = vld [vmem:[#allocation5 + $0xa88] sm:$0xff]  ;;  %v794_v50 = vld [vmem:[#allocation5 + $0xae0] sm:$0xff] }
 0x14b   : > { %3603 = vmatprep.subr.bf16.mxu0 %v12306_v59  ;;  %4055 = vmatprep.subr.bf16.mxu1 %v12308_v62  ;;  %v742_v59 = vld [vmem:[#allocation5 + $0x940] sm:$0xff]  ;;  %v12364_v62 = vcombine.high %v735_v53, %v739_v54  ;;  %v791_v51 = vld [vmem:[#allocation5 + $0xac8] sm:$0xff] }
 0x14c   : > { %3566 = vmatprep.mubr.bf16.mxu0 %v14540_v57  ;;  %4018 = vmatprep.mubr.bf16.mxu1 %v14540_v57  ;;  %v14551_v57 = vld [vmem:[%s15373_s10 + $0x78] ss:$28 sps:$4 sm:$0xff]   ;;  %v12370_v2 = vcombine.high %v742_v59, %v746_v60 }
 0x14e   : > { %3604 = vmatpush1.bf16.msra.mxu0 %v12305_v1  ;;  %4056 = vmatpush1.bf16.msra.mxu1 %v12307_v4  ;;  %v12363_v1 = vcombine.low %v735_v53, %v739_v54  ;;  %v750_v4 = vld [vmem:[#allocation5 + $0x980] sm:$0xff]  ;;  %v795_v53 = vld [vmem:[#allocation5 + $0xae8] sm:$0xff] }
 0x14f   : > { %3605 = vmatprep.subr.bf16.mxu0 %v12314_v6  ;;  %4057 = vmatprep.subr.bf16.mxu1 %v12316_v9  ;;  %v12372_v6 = vcombine.high %v743_v61, %v747_v63  ;;  %v12369_v9 = vcombine.low %v742_v59, %v746_v60  ;;  %v798_v59 = vld [vmem:[#allocation5 + $0xb00] sm:$0xff] }
 0x150   : > { %v802_v60 = vld [vmem:[#allocation5 + $0xb20] sm:$0xff] }
 0x151   : > { %3567 = vmatmul.mubr.bf16.gmra.mrb[28].mxu0 %v14542_v5  ;;  %4019 = vmatmul.mubr.bf16.gmra.mrb[28].mxu1 %v14542_v5  ;;  %v754_v5 = vld [vmem:[#allocation5 + $0x9a0] sm:$0xff] }
 0x152   : > { %3606 = vmatpush1.bf16.msra.mxu0 %v12313_v10  ;;  %4058 = vmatpush1.bf16.msra.mxu1 %v12315_v12  ;;  %v12371_v10 = vcombine.low %v743_v61, %v747_v63  ;;  %v12378_v12 = vcombine.high %v750_v4, %v754_v5  ;;  %v12377_v18 = vcombine.low %v750_v4, %v754_v5  ;;  %v799_v61 = vld [vmem:[#allocation5 + $0xb08] sm:$0xff]  ;;  %v810_v4 = vld [vmem:[#allocation5 + $0xb60] sm:$0xff]  ;;  %v14563_v5 = vld [vmem:[%s15373_s10 + $0x158] ss:$28 sps:$4 sm:$0xff]  }
 0x153   : > { %3607 = vmatprep.subr.bf16.mxu0 %v12322_v13  ;;  %4059 = vmatprep.subr.bf16.mxu1 %v12324_v16  ;;  %v758_v13 = vld [vmem:[#allocation5 + $0x9c0] sm:$0xff]  ;;  %v12380_v16 = vcombine.high %v751_v7, %v755_v8 }
 0x154   : > { %3609 = vmatprep.mubr.bf16.mxu0 %v14545_v11  ;;  %4061 = vmatprep.mubr.bf16.mxu1 %v14545_v11  ;;  %v14554_v11 = vld [vmem:[%s15373_s10 + $0xb0] ss:$28 sps:$4 sm:$0xff]   ;;  %v12386_v20 = vcombine.high %v758_v13, %v762_v14 }
 0x156   : > { %3608 = vmatpush1.bf16.msra.mxu0 %v12321_v19  ;;  %4060 = vmatpush1.bf16.msra.mxu1 %v12323_v22  ;;  %v12379_v19 = vcombine.low %v751_v7, %v755_v8  ;;  %v766_v22 = vld [vmem:[#allocation5 + $0xa00] sm:$0xff]  ;;  %v811_v7 = vld [vmem:[#allocation5 + $0xb68] sm:$0xff]  ;;  %v12425_v8 = vcombine.low %v798_v59, %v802_v60 }
 0x157   : > { %3690 = vmatprep.subr.bf16.mxu0 %v12330_v24  ;;  %4142 = vmatprep.subr.bf16.mxu1 %v12332_v27  ;;  %v12388_v24 = vcombine.high %v759_v15, %v763_v17  ;;  %v12385_v27 = vcombine.low %v758_v13, %v762_v14  ;;  %v814_v13 = vld [vmem:[#allocation5 + $0xb80] sm:$0xff] }
 0x158   : > { %v818_v14 = vld [vmem:[#allocation5 + $0xba0] sm:$0xff] }
 0x159   : > { %3610 = vmatmul.mubr.bf16.vlgmr.msra.gmra.mrb[0].mxu0 %v14543_v23  ;;  %4062 = vmatmul.mubr.bf16.vlgmr.msra.gmra.mrb[0].mxu1 %v14543_v23  ;;  %v770_v23 = vld [vmem:[#allocation5 + $0xa20] sm:$0xff] }
 0x15a   : > { %3691 = vmatpush1.bf16.msra.mxu0 %v12329_v28  ;;  %4143 = vmatpush1.bf16.msra.mxu1 %v12331_v30  ;;  %v12387_v28 = vcombine.low %v759_v15, %v763_v17  ;;  %v12394_v30 = vcombine.high %v766_v22, %v770_v23  ;;  %v12393_v36 = vcombine.low %v766_v22, %v770_v23  ;;  %v815_v15 = vld [vmem:[#allocation5 + $0xb88] sm:$0xff]  ;;  %v826_v22 = vld [vmem:[#allocation5 + $0xbe0] sm:$0xff] }
 0x15b   : > { %3692 = vmatprep.subr.bf16.mxu0 %v12338_v31  ;;  %4144 = vmatprep.subr.bf16.mxu1 %v12340_v35  ;;  %v774_v31 = vld [vmem:[#allocation5 + $0xa40] sm:$0xff]  ;;  %v779_v35 = vld [vmem:[#allocation5 + $0xa68] sm:$0xff] }
 0x15c   : > { %3619 = vmatprep.mubr.bf16.mxu0 %v14546_v29  ;;  %4071 = vmatprep.mubr.bf16.mxu1 %v14546_v29  ;;  %v14557_v29 = vld [vmem:[%s15373_s10 + $0xe8] ss:$28 sps:$4 sm:$0xff]   ;;  %v12404_v42 = vcombine.high %v775_v33, %v779_v35  ;;  %v12401_v45 = vcombine.low %v774_v31, %v778_v32  ;;  %v14566_v23 = vld [vmem:[%s15373_s10 + $0x190] ss:$28 sps:$4 sm:$0xff]  }
 0x15e   : > { %3693 = vmatpush1.bf16.msra.mxu0 %v12337_v37  ;;  %4145 = vmatpush1.bf16.msra.mxu1 %v12339_v38  ;;  %v12395_v37 = vcombine.low %v767_v25, %v771_v26  ;;  %v12402_v38 = vcombine.high %v774_v31, %v778_v32  ;;  %v827_v25 = vld [vmem:[#allocation5 + $0xbe8] sm:$0xff]  ;;  %v12441_v26 = vcombine.low %v814_v13, %v818_v14  ;;  %v830_v31 = vld [vmem:[#allocation5 + $0xc00] sm:$0xff] }
 0x15f   : > { %3694 = vmatprep.subr.bf16.mxu0 %v12346_v40  ;;  %4146 = vmatprep.subr.bf16.mxu1 %v12348_v44  ;;  %v782_v40 = vld [vmem:[#allocation5 + $0xa80] sm:$0xff]  ;;  %v787_v44 = vld [vmem:[#allocation5 + $0xaa8] sm:$0xff] }
 0x160   : > { %v12409_v54 = vcombine.low %v782_v40, %v786_v41  ;;  %v834_v32 = vld [vmem:[#allocation5 + $0xc20] sm:$0xff] }
 0x161   : > { %3620 = vmatmul.mubr.bf16.gmra.mrb[4].mxu0 %v14548_v39  ;;  %4072 = vmatmul.mubr.bf16.gmra.mrb[4].mxu1 %v14548_v39  ;;  %v14558_v39 = vld [vmem:[%s15373_s10 + $0x124] ss:$28 sps:$4 sm:$0xff]  }
 0x162   : > { %3695 = vmatpush1.bf16.msra.mxu0 %v12345_v46  ;;  %4147 = vmatpush1.bf16.msra.mxu1 %v12347_v47  ;;  %v12403_v46 = vcombine.low %v775_v33, %v779_v35  ;;  %v14560_v47 = vld [vmem:[%s15373_s10 + $0x120] ss:$28 sps:$4 sm:$0xff]   ;;  %v831_v33 = vld [vmem:[#allocation5 + $0xc08] sm:$0xff] }
 0x163   : > { %3696 = vmatprep.subr.bf16.mxu0 %v12354_v48  ;;  %4148 = vmatprep.subr.bf16.mxu1 %v12356_v52  ;;  %v12410_v48 = vcombine.high %v782_v40, %v786_v41  ;;  %v12412_v52 = vcombine.high %v783_v43, %v787_v44  ;;  %v838_v40 = vld [vmem:[#allocation5 + $0xc40] sm:$0xff] }
 0x164   : > { %3629 = vmatprep.mubr.bf16.mxu0 %v14549_v49  ;;  %4081 = vmatprep.mubr.bf16.mxu1 %v14549_v49  ;;  %v790_v49 = vld [vmem:[#allocation5 + $0xac0] sm:$0xff] }
 0x165   : > { %v12417_v63 = vcombine.low %v790_v49, %v794_v50  ;;  %v842_v41 = vld [vmem:[#allocation5 + $0xc60] sm:$0xff] }
 0x166   : > { %3697 = vmatpush1.bf16.msra.mxu0 %v12353_v55  ;;  %4149 = vmatpush1.bf16.msra.mxu1 %v12355_v56  ;;  %v12411_v55 = vcombine.low %v783_v43, %v787_v44  ;;  %v12418_v56 = vcombine.high %v790_v49, %v794_v50  ;;  %v839_v43 = vld [vmem:[#allocation5 + $0xc48] sm:$0xff] }
 0x167   : > { %3698 = vmatprep.subr.bf16.mxu0 %v12362_v58  ;;  %4150 = vmatprep.subr.bf16.mxu1 %v12364_v62  ;;  %v12420_v58 = vcombine.high %v791_v51, %v795_v53  ;;  %v803_v62 = vld [vmem:[#allocation5 + $0xb28] sm:$0xff] }
 0x168   : > { %v843_v44 = vld [vmem:[#allocation5 + $0xc68] sm:$0xff] }
 0x169   : > { %3630 = vmatmul.mubr.bf16.gmra.mrb[8].mxu0 %v14551_v57  ;;  %4082 = vmatmul.mubr.bf16.gmra.mrb[8].mxu1 %v14551_v57  ;;  %v14561_v57 = vld [vmem:[%s15373_s10 + $0x15c] ss:$28 sps:$4 sm:$0xff]   ;;  %v12468_v50 = vcombine.high %v839_v43, %v843_v44 }
 0x16a   : > { %3699 = vmatpush1.bf16.msra.mxu0 %v12361_v0  ;;  %4151 = vmatpush1.bf16.msra.mxu1 %v12363_v1  ;;  %v12419_v0 = vcombine.low %v791_v51, %v795_v53  ;;  %v12426_v1 = vcombine.high %v798_v59, %v802_v60  ;;  %v12465_v51 = vcombine.low %v838_v40, %v842_v41  ;;  %v851_v53 = vld [vmem:[#allocation5 + $0xca8] sm:$0xff]  ;;  %v14573_v60 = vld [vmem:[%s15373_s10 + $0x84] ss:$28 sps:$4 sm:$0xff]  }
 0x16b   : > { %3700 = vmatprep.subr.bf16.mxu0 %v12370_v2  ;;  %4152 = vmatprep.subr.bf16.mxu1 %v12372_v6  ;;  %v12428_v2 = vcombine.high %v799_v61, %v803_v62  ;;  %v807_v6 = vld [vmem:[#allocation5 + $0xb48] sm:$0xff] }
 0x16c   : > { %3639 = vmatprep.mubr.bf16.mxu0 %v14552_v3  ;;  %4091 = vmatprep.mubr.bf16.mxu1 %v14552_v3  ;;  %v806_v3 = vld [vmem:[#allocation5 + $0xb40] sm:$0xff] }
 0x16d   : > { %v12433_v17 = vcombine.low %v806_v3, %v810_v4 }
 0x16e   : > { %3701 = vmatpush1.bf16.msra.mxu0 %v12369_v9  ;;  %4153 = vmatpush1.bf16.msra.mxu1 %v12371_v10  ;;  %v12427_v9 = vcombine.low %v799_v61, %v803_v62  ;;  %v12434_v10 = vcombine.high %v806_v3, %v810_v4  ;;  %v855_v61 = vld [vmem:[#allocation5 + $0xcc8] sm:$0xff]  ;;  %v866_v3 = vld [vmem:[#allocation5 + $0xd20] sm:$0xff] }
 0x16f   : > { %3702 = vmatprep.subr.bf16.mxu0 %v12378_v12  ;;  %4154 = vmatprep.subr.bf16.mxu1 %v12380_v16  ;;  %v14564_v12 = vld [vmem:[%s15373_s10 + $0x194] ss:$28 sps:$4 sm:$0xff]   ;;  %v819_v16 = vld [vmem:[#allocation5 + $0xba8] sm:$0xff] }
 0x170   : > { %v859_v62 = vld [vmem:[#allocation5 + $0xce8] sm:$0xff] }
 0x171   : > { %3640 = vmatmul.mubr.bf16.gmra.mrb[12].mxu0 %v14554_v11  ;;  %4092 = vmatmul.mubr.bf16.gmra.mrb[12].mxu1 %v14554_v11  ;;  %v12436_v11 = vcombine.high %v807_v6, %v811_v7  ;;  %v12484_v4 = vcombine.high %v855_v61, %v859_v62 }
 0x172   : > { %3703 = vmatpush1.bf16.msra.mxu0 %v12377_v18  ;;  %4155 = vmatpush1.bf16.msra.mxu1 %v12379_v19  ;;  %v12435_v18 = vcombine.low %v807_v6, %v811_v7  ;;  %v12442_v19 = vcombine.high %v814_v13, %v818_v14  ;;  %v867_v6 = vld [vmem:[#allocation5 + $0xd28] sm:$0xff]  ;;  %v14576_v14 = vld [vmem:[%s15373_s10 + $0xbc] ss:$28 sps:$4 sm:$0xff]  }
 0x173   : > { %3704 = vmatprep.subr.bf16.mxu0 %v12386_v20  ;;  %4156 = vmatprep.subr.bf16.mxu1 %v12388_v24  ;;  %v12444_v20 = vcombine.high %v815_v15, %v819_v16  ;;  %v823_v24 = vld [vmem:[#allocation5 + $0xbc8] sm:$0xff] }
 0x174   : > { %3649 = vmatprep.mubr.bf16.mxu0 %v14555_v21  ;;  %4101 = vmatprep.mubr.bf16.mxu1 %v14555_v21  ;;  %v822_v21 = vld [vmem:[#allocation5 + $0xbc0] sm:$0xff] }
 0x175   : > { %v12449_v35 = vcombine.low %v822_v21, %v826_v22 }
 0x176   : > { %3705 = vmatpush1.bf16.msra.mxu0 %v12385_v27  ;;  %4157 = vmatpush1.bf16.msra.mxu1 %v12387_v28  ;;  %v12443_v27 = vcombine.low %v815_v15, %v819_v16  ;;  %v12450_v28 = vcombine.high %v822_v21, %v826_v22  ;;  %v871_v15 = vld [vmem:[#allocation5 + $0xd48] sm:$0xff]  ;;  %v882_v21 = vld [vmem:[#allocation5 + $0xda0] sm:$0xff] }
 0x177   : > { %3706 = vmatprep.subr.bf16.mxu0 %v12394_v30  ;;  %4158 = vmatprep.subr.bf16.mxu1 %v12396_v34  ;;  %v14569_v30 = vld [vmem:[%s15373_s10 + $0x14] ss:$28 sps:$4 sm:$0xff]   ;;  %v835_v34 = vld [vmem:[#allocation5 + $0xc28] sm:$0xff] }
 0x178   : > { %v12459_v49 = vcombine.low %v831_v33, %v835_v34  ;;  %v875_v16 = vld [vmem:[#allocation5 + $0xd68] sm:$0xff] }
 0x179   : > { %3650 = vmatmul.mubr.bf16.gmra.mrb[16].mxu0 %v14557_v29  ;;  %4102 = vmatmul.mubr.bf16.gmra.mrb[16].mxu1 %v14557_v29  ;;  %v12452_v29 = vcombine.high %v823_v24, %v827_v25  ;;  %v12500_v22 = vcombine.high %v871_v15, %v875_v16 }
 0x17a   : > { %3707 = vmatpush1.bf16.msra.mxu0 %v12393_v36  ;;  %4159 = vmatpush1.bf16.msra.mxu1 %v12395_v37  ;;  %v12451_v36 = vcombine.low %v823_v24, %v827_v25  ;;  %v12458_v37 = vcombine.high %v830_v31, %v834_v32  ;;  %v883_v24 = vld [vmem:[#allocation5 + $0xda8] sm:$0xff] }
 0x17b   : > { %3708 = vmatprep.subr.bf16.mxu0 %v12402_v38  ;;  %4160 = vmatprep.subr.bf16.mxu1 %v12404_v42  ;;  %v12460_v38 = vcombine.high %v831_v33, %v835_v34  ;;  %v12457_v42 = vcombine.low %v830_v31, %v834_v32  ;;  %v14579_v32 = vld [vmem:[%s15373_s10 + $0xf4] ss:$28 sps:$4 sm:$0xff]   ;;  %v887_v33 = vld [vmem:[#allocation5 + $0xdc8] sm:$0xff] }
 0x17c   : > { %3659 = vmatprep.mubr.bf16.mxu0 %v14558_v39  ;;  %4111 = vmatprep.mubr.bf16.mxu1 %v14558_v39  ;;  %v14567_v39 = vld [vmem:[%s15373_s10 + $0x10] ss:$28 sps:$4 sm:$0xff]  }
 0x17d   : > { %v891_v34 = vld [vmem:[#allocation5 + $0xde8] sm:$0xff] }
 0x17e   : > { %3709 = vmatpush1.bf16.msra.mxu0 %v12401_v45  ;;  %4161 = vmatpush1.bf16.msra.mxu1 %v12403_v46  ;;  %v14570_v45 = vld [vmem:[%s15373_s10 + $0x4c] ss:$28 sps:$4 sm:$0xff]   ;;  %v12466_v46 = vcombine.high %v838_v40, %v842_v41  ;;  %v452_v40 = vld [vmem:[#allocation5 + $0x30] sm:$0xff]  ;;  %v449_v41 = vld [vmem:[#allocation5 + $0x18] sm:$0xff] }
 0x17f   : > { %3710 = vmatprep.subr.bf16.mxu0 %v12410_v48  ;;  %4162 = vmatprep.subr.bf16.mxu1 %v12412_v52  ;;  %v850_v48 = vld [vmem:[#allocation5 + $0xca0] sm:$0xff]  ;;  %v847_v52 = vld [vmem:[#allocation5 + $0xc88] sm:$0xff] }
 0x180   : > { %v12476_v59 = vcombine.high %v847_v52, %v851_v53 }
 0x181   : > { %3660 = vmatmul.mubr.bf16.gmra.mrb[20].mxu0 %v14560_v47  ;;  %4112 = vmatmul.mubr.bf16.gmra.mrb[20].mxu1 %v14560_v47  ;;  %v846_v47 = vld [vmem:[#allocation5 + $0xc80] sm:$0xff] }
 0x182   : > { %3711 = vmatpush1.bf16.msra.mxu0 %v12409_v54  ;;  %4163 = vmatpush1.bf16.msra.mxu1 %v12411_v55  ;;  %v12474_v54 = vcombine.high %v846_v47, %v850_v48  ;;  %v12467_v55 = vcombine.low %v839_v43, %v843_v44  ;;  %v12515_v44 = vcombine.low %v887_v33, %v891_v34 }
 0x183   : > { %3712 = vmatprep.subr.bf16.mxu0 %v12418_v56  ;;  %4164 = vmatprep.subr.bf16.mxu1 %v12420_v58  ;;  %v14572_v56 = vld [vmem:[%s15373_s10 + $0x48] ss:$28 sps:$4 sm:$0xff]  }
 0x184   : > { %3669 = vmatprep.mubr.bf16.mxu0 %v14561_v57  ;;  %4121 = vmatprep.mubr.bf16.mxu1 %v14561_v57  ;;  %v854_v57 = vld [vmem:[#allocation5 + $0xcc0] sm:$0xff] }
 0x185   : > { %v858_v58 = vld [vmem:[#allocation5 + $0xce0] sm:$0xff] }
 0x186   : > { %3713 = vmatpush1.bf16.msra.mxu0 %v12417_v63  ;;  %4165 = vmatpush1.bf16.msra.mxu1 %v12419_v0  ;;  %v12473_v63 = vcombine.low %v846_v47, %v850_v48  ;;  %v12482_v0 = vcombine.high %v854_v57, %v858_v58  ;;  %v12481_v7 = vcombine.low %v854_v57, %v858_v58  ;;  %v14582_v48 = vld [vmem:[%s15373_s10 + $0x12c] ss:$28 sps:$4 sm:$0xff]   ;;  %v14591_v57 = vld [vmem:[%s15373_s10 + $0x18] ss:$28 sps:$4 sm:$0xff]  }
 0x187   : > { %3714 = vmatprep.subr.bf16.mxu0 %v12426_v1  ;;  %4166 = vmatprep.subr.bf16.mxu1 %v12428_v2  ;;  %v12475_v1 = vcombine.low %v847_v52, %v851_v53  ;;  %v862_v2 = vld [vmem:[#allocation5 + $0xd00] sm:$0xff]  ;;  %v14588_v52 = vld [vmem:[%s15373_s10 + $0x19c] ss:$28 sps:$4 sm:$0xff]  }
 0x188   : > { %v14590_v53 = vld [vmem:[%s15373_s10 + $0x198] ss:$28 sps:$4 sm:$0xff]  }
 0x189   : > { %3670 = vmatmul.mubr.bf16.gmra.mrb[24].mxu0 %v14563_v5  ;;  %4122 = vmatmul.mubr.bf16.gmra.mrb[24].mxu1 %v14563_v5  ;;  %v863_v5 = vld [vmem:[#allocation5 + $0xd08] sm:$0xff]  ;;  %v457_v58 = vld [vmem:[#allocation5 + $0x58] sm:$0xff] }
 0x18a   : > { %3715 = vmatpush1.bf16.msra.mxu0 %v12425_v8  ;;  %4167 = vmatpush1.bf16.msra.mxu1 %v12427_v9  ;;  %v12490_v8 = vcombine.high %v862_v2, %v866_v3  ;;  %v12483_v9 = vcombine.low %v855_v61, %v859_v62  ;;  %v12492_v13 = vcombine.high %v863_v5, %v867_v6 }
 0x18b   : > { %3716 = vmatprep.subr.bf16.mxu0 %v12434_v10  ;;  %4168 = vmatprep.subr.bf16.mxu1 %v12436_v11  ;;  %v14575_v10 = vld [vmem:[%s15373_s10 + $0x80] ss:$28 sps:$4 sm:$0xff]  }
 0x18c   : > { %3679 = vmatprep.mubr.bf16.mxu0 %v14564_v12  ;;  %4131 = vmatprep.mubr.bf16.mxu1 %v14564_v12  ;;  %v870_v11 = vld [vmem:[#allocation5 + $0xd40] sm:$0xff] }
 0x18d   : > { %v874_v12 = vld [vmem:[#allocation5 + $0xd60] sm:$0xff] }
 0x18e   : > { %3717 = vmatpush1.bf16.msra.mxu0 %v12433_v17  ;;  %4169 = vmatpush1.bf16.msra.mxu1 %v12435_v18  ;;  %v12489_v17 = vcombine.low %v862_v2, %v866_v3  ;;  %v12498_v18 = vcombine.high %v870_v11, %v874_v12  ;;  %v12497_v25 = vcombine.low %v870_v11, %v874_v12  ;;  %v465_v2 = vld [vmem:[#allocation5 + $0x98] sm:$0xff] }
 0x18f   : > { %3718 = vmatprep.subr.bf16.mxu0 %v12442_v19  ;;  %4170 = vmatprep.subr.bf16.mxu1 %v12444_v20  ;;  %v12491_v19 = vcombine.low %v863_v5, %v867_v6  ;;  %v878_v20 = vld [vmem:[#allocation5 + $0xd80] sm:$0xff]  ;;  %v469_v3 = vld [vmem:[#allocation5 + $0xb8] sm:$0xff] }
 0x190   : > { %v473_v11 = vld [vmem:[#allocation5 + $0xd8] sm:$0xff] }
 0x191   : > { %3680 = vmatmul.mubr.bf16.gmra.mrb[28].mxu0 %v14566_v23  ;;  %4132 = vmatmul.mubr.bf16.gmra.mrb[28].mxu1 %v14566_v23  ;;  %v879_v23 = vld [vmem:[#allocation5 + $0xd88] sm:$0xff]  ;;  %v477_v12 = vld [vmem:[#allocation5 + $0xf8] sm:$0xff] }
 0x192   : > { %3719 = vmatpush1.bf16.msra.mxu0 %v12441_v26  ;;  %4171 = vmatpush1.bf16.msra.mxu1 %v12443_v27  ;;  %v12506_v26 = vcombine.high %v878_v20, %v882_v21  ;;  %v12499_v27 = vcombine.low %v871_v15, %v875_v16  ;;  %v12508_v31 = vcombine.high %v879_v23, %v883_v24 }
 0x193   : > { %3720 = vmatprep.subr.bf16.mxu0 %v12450_v28  ;;  %4172 = vmatprep.subr.bf16.mxu1 %v12452_v29  ;;  %v14578_v28 = vld [vmem:[%s15373_s10 + $0xb8] ss:$28 sps:$4 sm:$0xff]   ;;  %v886_v29 = vld [vmem:[#allocation5 + $0xdc0] sm:$0xff]  ;;  %v12104_v16 = vcombine.high %v473_v11, %v477_v12 }
 0x194   : > { %3722 = vmatprep.mubr.bf16.mxu0 %v14569_v30  ;;  %4174 = vmatprep.mubr.bf16.mxu1 %v14569_v30  ;;  %v890_v30 = vld [vmem:[#allocation5 + $0xde0] sm:$0xff] }
 0x195   : > { %v12513_v43 = vcombine.low %v886_v29, %v890_v30 }
 0x196   : > { %3721 = vmatpush1.bf16.msra.mxu0 %v12449_v35  ;;  %4173 = vmatpush1.bf16.msra.mxu1 %v12451_v36  ;;  %v12505_v35 = vcombine.low %v878_v20, %v882_v21  ;;  %v12514_v36 = vcombine.high %v886_v29, %v890_v30  ;;  %v485_v20 = vld [vmem:[#allocation5 + $0x138] sm:$0xff] }
 0x197   : > { %3803 = vmatprep.subr.bf16.mxu0 %v12458_v37  ;;  %4255 = vmatprep.subr.bf16.mxu1 %v12460_v38  ;;  %v12507_v37 = vcombine.low %v879_v23, %v883_v24  ;;  %v12516_v38 = vcombine.high %v887_v33, %v891_v34  ;;  %v493_v29 = vld [vmem:[#allocation5 + $0x178] sm:$0xff]  ;;  %v496_v34 = vld [vmem:[#allocation5 + $0x190] sm:$0xff] }
 0x199   : > { %3723 = vmatmul.mubr.bf16.vlgmr.msra.gmra.mrb[0].mxu0 %v14567_v39  ;;  %4175 = vmatmul.mubr.bf16.vlgmr.msra.gmra.mrb[0].mxu1 %v14567_v39  ;;  %v448_v39 = vld [vmem:[#allocation5 + $0x10] sm:$0xff] }
 0x19a   : > { %3804 = vmatpush1.bf16.msra.mxu0 %v12457_v42  ;;  %3732 = vmatprep.mubr.bf16.mxu0 %v14570_v45  ;;  %v453_v42 = vld [vmem:[#allocation5 + $0x38] sm:$0xff] }
 0x19b   : > { %4184 = vmatprep.mubr.bf16.mxu1 %v14570_v45  ;;  %3805 = vmatprep.subr.bf16.mxu0 %v12466_v46  ;;  %v12078_v45 = vcombine.high %v448_v39, %v452_v40  ;;  %v14581_v46 = vld [vmem:[%s15373_s10 + $0xf0] ss:$28 sps:$4 sm:$0xff]   ;;  %v12080_v47 = vcombine.high %v449_v41, %v453_v42  ;;  %v12079_v61 = vcombine.low %v449_v41, %v453_v42 }
 0x19c   : > { %4256 = vmatpush1.bf16.msra.mxu1 %v12459_v49  ;;  %v14584_v49 = vld [vmem:[%s15373_s10 + $0x128] ss:$28 sps:$4 sm:$0xff]   ;;  %v504_v42 = vld [vmem:[#allocation5 + $0x1d0] sm:$0xff] }
 0x19d   : > { %4257 = vmatprep.subr.bf16.mxu1 %v12468_v50  ;;  %v14585_v50 = vld [vmem:[%s15373_s10 + $0x164] ss:$28 sps:$4 sm:$0xff]  }
 0x19e   : > { %3806 = vmatpush1.bf16.msra.mxu0 %v12465_v51  ;;  %v14587_v51 = vld [vmem:[%s15373_s10 + $0x160] ss:$28 sps:$4 sm:$0xff]  }
 0x19f   : > { %3807 = vmatprep.subr.bf16.mxu0 %v12474_v54  ;;  %v17531_v54 = vmov 0  }
 0x1a0   : > { %4258 = vmatpush1.bf16.msra.mxu1 %v12467_v55  ;;  %v456_v55 = vld [vmem:[#allocation5 + $0x50] sm:$0xff] }
 0x1a1   : > { %3733 = vmatmul.mubr.bf16.gmra.mrb[4].mxu0 %v14572_v56  ;;  %4259 = vmatprep.subr.bf16.mxu1 %v12476_v59  ;;  %v461_v59 = vld [vmem:[#allocation5 + $0x78] sm:$0xff] }
 0x1a2   : > { %4185 = vmatmul.mubr.bf16.gmra.mrb[4].mxu1 %v14572_v56  ;;  %3742 = vmatprep.mubr.bf16.mxu0 %v14573_v60  ;;  %v460_v56 = vld [vmem:[#allocation5 + $0x70] sm:$0xff]  ;;  %v12087_v5 = vcombine.low %v457_v58, %v461_v59 }
 0x1a3   : > { %4194 = vmatprep.mubr.bf16.mxu1 %v14573_v60  ;;  %3808 = vmatpush1.bf16.msra.mxu0 %v12473_v63  ;;  %v12077_v60 = vcombine.low %v448_v39, %v452_v40  ;;  %v12086_v62 = vcombine.high %v456_v55, %v460_v56  ;;  %v12088_v63 = vcombine.high %v457_v58, %v461_v59 }
 0x1a4   : > { %3809 = vmatprep.subr.bf16.mxu0 %v12482_v0  ;;  %4260 = vmatpush1.bf16.msra.mxu1 %v12475_v1  ;;  %v464_v0 = vld [vmem:[#allocation5 + $0x90] sm:$0xff] }
 0x1a5   : > { %4261 = vmatprep.subr.bf16.mxu1 %v12484_v4  ;;  %v468_v1 = vld [vmem:[#allocation5 + $0xb0] sm:$0xff]  ;;  %v12085_v4 = vcombine.low %v456_v55, %v460_v56  ;;  %v517_v55 = vld [vmem:[#allocation5 + $0x238] sm:$0xff] }
 0x1a6   : > { %v12094_v6 = vcombine.high %v464_v0, %v468_v1 }
 0x1a7   : > { %3810 = vmatpush1.bf16.msra.mxu0 %v12481_v7  ;;  %v12096_v7 = vcombine.high %v465_v2, %v469_v3 }
 0x1a8   : > { %3811 = vmatprep.subr.bf16.mxu0 %v12490_v8  ;;  %4262 = vmatpush1.bf16.msra.mxu1 %v12483_v9  ;;  %v472_v8 = vld [vmem:[#allocation5 + $0xd0] sm:$0xff] }
 0x1a9   : > { %3743 = vmatmul.mubr.bf16.gmra.mrb[8].mxu0 %v14575_v10  ;;  %4263 = vmatprep.subr.bf16.mxu1 %v12492_v13  ;;  %v476_v9 = vld [vmem:[#allocation5 + $0xf0] sm:$0xff]  ;;  %v12093_v13 = vcombine.low %v464_v0, %v468_v1  ;;  %v525_v0 = vld [vmem:[#allocation5 + $0x278] sm:$0xff] }
 0x1aa   : > { %4195 = vmatmul.mubr.bf16.gmra.mrb[8].mxu1 %v14575_v10  ;;  %3752 = vmatprep.mubr.bf16.mxu0 %v14576_v14  ;;  %v14592_v10 = vld [vmem:[%s15373_s10 + $0x50] ss:$28 sps:$4 sm:$0xff]   ;;  %v12102_v15 = vcombine.high %v472_v8, %v476_v9  ;;  %v12101_v21 = vcombine.low %v472_v8, %v476_v9  ;;  %v533_v8 = vld [vmem:[#allocation5 + $0x2b8] sm:$0xff] }
 0x1ab   : > { %4204 = vmatprep.mubr.bf16.mxu1 %v14576_v14  ;;  %3812 = vmatpush1.bf16.msra.mxu0 %v12489_v17  ;;  %v12095_v14 = vcombine.low %v465_v2, %v469_v3  ;;  %v480_v17 = vld [vmem:[#allocation5 + $0x110] sm:$0xff] }
 0x1ac   : > { %3813 = vmatprep.subr.bf16.mxu0 %v12498_v18  ;;  %4264 = vmatpush1.bf16.msra.mxu1 %v12491_v19  ;;  %v484_v18 = vld [vmem:[#allocation5 + $0x130] sm:$0xff]  ;;  %v481_v19 = vld [vmem:[#allocation5 + $0x118] sm:$0xff] }
 0x1ad   : > { %4265 = vmatprep.subr.bf16.mxu1 %v12500_v22  ;;  %v12103_v22 = vcombine.low %v473_v11, %v477_v12  ;;  %v12110_v23 = vcombine.high %v480_v17, %v484_v18  ;;  %v12112_v24 = vcombine.high %v481_v19, %v485_v20  ;;  %v12109_v30 = vcombine.low %v480_v17, %v484_v18  ;;  %v541_v17 = vld [vmem:[#allocation5 + $0x2f8] sm:$0xff] }
 0x1af   : > { %3814 = vmatpush1.bf16.msra.mxu0 %v12497_v25  ;;  %v488_v25 = vld [vmem:[#allocation5 + $0x150] sm:$0xff] }
 0x1b0   : > { %3815 = vmatprep.subr.bf16.mxu0 %v12506_v26  ;;  %4266 = vmatpush1.bf16.msra.mxu1 %v12499_v27  ;;  %v492_v26 = vld [vmem:[#allocation5 + $0x170] sm:$0xff]  ;;  %v14593_v27 = vld [vmem:[%s15373_s10 + $0x88] ss:$28 sps:$4 sm:$0xff]  }
 0x1b1   : > { %3753 = vmatmul.mubr.bf16.gmra.mrb[12].mxu0 %v14578_v28  ;;  %4267 = vmatprep.subr.bf16.mxu1 %v12508_v31  ;;  %v12111_v31 = vcombine.low %v481_v19, %v485_v20 }
 0x1b2   : > { %4205 = vmatmul.mubr.bf16.gmra.mrb[12].mxu1 %v14578_v28  ;;  %3762 = vmatprep.mubr.bf16.mxu0 %v14579_v32  ;;  %v489_v28 = vld [vmem:[#allocation5 + $0x158] sm:$0xff] }
 0x1b3   : > { %4214 = vmatprep.mubr.bf16.mxu1 %v14579_v32  ;;  %3816 = vmatpush1.bf16.msra.mxu0 %v12505_v35  ;;  %v12118_v32 = vcombine.high %v488_v25, %v492_v26  ;;  %v12120_v33 = vcombine.high %v489_v28, %v493_v29  ;;  %v500_v35 = vld [vmem:[#allocation5 + $0x1b0] sm:$0xff]  ;;  %v12119_v39 = vcombine.low %v489_v28, %v493_v29 }
 0x1b4   : > { %3817 = vmatprep.subr.bf16.mxu0 %v12514_v36  ;;  %4268 = vmatpush1.bf16.msra.mxu1 %v12507_v37  ;;  %v497_v36 = vld [vmem:[#allocation5 + $0x198] sm:$0xff]  ;;  %v12126_v40 = vcombine.high %v496_v34, %v500_v35 }
 0x1b5   : > { %4269 = vmatprep.subr.bf16.mxu1 %v12516_v38  ;;  %v501_v37 = vld [vmem:[#allocation5 + $0x1b8] sm:$0xff]  ;;  %v12117_v38 = vcombine.low %v488_v25, %v492_v26 }
 0x1b6   : > { %v12128_v41 = vcombine.high %v497_v36, %v501_v37  ;;  %v549_v25 = vld [vmem:[#allocation5 + $0x338] sm:$0xff] }
 0x1b7   : > { %3818 = vmatpush1.bf16.msra.mxu0 %v12513_v43  ;;  %v508_v43 = vld [vmem:[#allocation5 + $0x1f0] sm:$0xff] }
 0x1b8   : > { %4270 = vmatpush1.bf16.msra.mxu1 %v12515_v44  ;;  %4368 = vmatprep.subr.bf16.mxu0 %v12078_v45  ;;  %v14594_v44 = vld [vmem:[%s15373_s10 + $0xc0] ss:$28 sps:$4 sm:$0xff]   ;;  %v12133_v56 = vcombine.low %v504_v42, %v508_v43 }
 0x1b9   : > { %3763 = vmatmul.mubr.bf16.gmra.mrb[16].mxu0 %v14581_v46  ;;  %4820 = vmatprep.subr.bf16.mxu1 %v12080_v47  ;;  %v505_v45 = vld [vmem:[#allocation5 + $0x1d8] sm:$0xff]  ;;  %v12125_v47 = vcombine.low %v496_v34, %v500_v35 }
 0x1ba   : > { %4215 = vmatmul.mubr.bf16.gmra.mrb[16].mxu1 %v14581_v46  ;;  %3772 = vmatprep.mubr.bf16.mxu0 %v14582_v48  ;;  %v509_v46 = vld [vmem:[#allocation5 + $0x1f8] sm:$0xff] }
 0x1bb   : > { %4224 = vmatprep.mubr.bf16.mxu1 %v14582_v48  ;;  %v12127_v48 = vcombine.low %v497_v36, %v501_v37  ;;  %v557_v34 = vld [vmem:[#allocation5 + $0x378] sm:$0xff] }
 0x1c1   : > { %3773 = vmatmul.mubr.bf16.gmra.mrb[20].mxu0 %v14584_v49 }
 0x1c2   : > { %4225 = vmatmul.mubr.bf16.gmra.mrb[20].mxu1 %v14584_v49  ;;  %3782 = vmatprep.mubr.bf16.mxu0 %v14585_v50  ;;  %v12134_v49 = vcombine.high %v504_v42, %v508_v43  ;;  %v565_v42 = vld [vmem:[#allocation5 + $0x3b8] sm:$0xff] }
 0x1c3   : > { %4234 = vmatprep.mubr.bf16.mxu1 %v14585_v50  ;;  %v12136_v50 = vcombine.high %v505_v45, %v509_v46 }
 0x1c9   : > { %3783 = vmatmul.mubr.bf16.gmra.mrb[24].mxu0 %v14587_v51 }
 0x1ca   : > { %4235 = vmatmul.mubr.bf16.gmra.mrb[24].mxu1 %v14587_v51  ;;  %3792 = vmatprep.mubr.bf16.mxu0 %v14588_v52  ;;  %v512_v51 = vld [vmem:[#allocation5 + $0x210] sm:$0xff] }
 0x1cb   : > { %4244 = vmatprep.mubr.bf16.mxu1 %v14588_v52  ;;  %v516_v52 = vld [vmem:[#allocation5 + $0x230] sm:$0xff] }
 0x1cc   : > { %v12142_v58 = vcombine.high %v512_v51, %v516_v52  ;;  %v12141_v1 = vcombine.low %v512_v51, %v516_v52  ;;  %v573_v51 = vld [vmem:[#allocation5 + $0x3f8] sm:$0xff] }
 0x1d1   : > { %3793 = vmatmul.mubr.bf16.gmra.mrb[28].mxu0 %v14590_v53 }
 0x1d2   : > { %4245 = vmatmul.mubr.bf16.gmra.mrb[28].mxu1 %v14590_v53  ;;  %3835 = vmatprep.mubr.bf16.mxu0 %v17531_v54  ;;  %v513_v53 = vld [vmem:[#allocation5 + $0x218] sm:$0xff] }
 0x1d3   : > { %4287 = vmatprep.mubr.bf16.mxu1 %v17531_v54  ;;  %v12144_v59 = vcombine.high %v513_v53, %v517_v55  ;;  %v12143_v2 = vcombine.low %v513_v53, %v517_v55 }
 0x1d9   : > { %3836 = vmatmul.mubr.bf16.vlgmr.msra.gmra.mrb[0].mxu0 %v14591_v57 }
 0x1da   : > { %4288 = vmatmul.mubr.bf16.vlgmr.msra.gmra.mrb[0].mxu1 %v14591_v57  ;;  %4369 = vmatpush1.bf16.msra.mxu0 %v12077_v60  ;;  %v12135_v57 = vcombine.low %v505_v45, %v509_v46  ;;  %v520_v60 = vld [vmem:[#allocation5 + $0x250] sm:$0xff] }
 0x1db   : > { %4821 = vmatpush1.bf16.msra.mxu1 %v12079_v61  ;;  %4370 = vmatprep.subr.bf16.mxu0 %v12086_v62  ;;  %v524_v61 = vld [vmem:[#allocation5 + $0x270] sm:$0xff] }
 0x1dc   : > { %4822 = vmatprep.subr.bf16.mxu1 %v12088_v63  ;;  %3845 = vmatprep.mubr.bf16.mxu0 %v17531_v54  ;;  %v14595_v62 = vld [vmem:[%s15373_s10 + $0xf8] ss:$28 sps:$4 sm:$0xff]   ;;  %v12150_v3 = vcombine.high %v520_v60, %v524_v61  ;;  %v12149_v9 = vcombine.low %v520_v60, %v524_v61 }
 0x1dd   : > { %4297 = vmatprep.mubr.bf16.mxu1 %v17531_v54  ;;  %v521_v63 = vld [vmem:[#allocation5 + $0x258] sm:$0xff] }
 0x1de   : > { %4371 = vmatpush1.bf16.msra.mxu0 %v12085_v4  ;;  %v12152_v4 = vcombine.high %v521_v63, %v525_v0  ;;  %v581_v60 = vld [vmem:[#allocation5 + $0x438] sm:$0xff] }
 0x1df   : > { %4823 = vmatpush1.bf16.msra.mxu1 %v12087_v5  ;;  %4372 = vmatprep.subr.bf16.mxu0 %v12094_v6  ;;  %v528_v5 = vld [vmem:[#allocation5 + $0x290] sm:$0xff] }
 0x1e0   : > { %4824 = vmatprep.subr.bf16.mxu1 %v12096_v7  ;;  %v532_v6 = vld [vmem:[#allocation5 + $0x2b0] sm:$0xff]  ;;  %v529_v7 = vld [vmem:[#allocation5 + $0x298] sm:$0xff] }
 0x1e1   : > { %3846 = vmatmul.mubr.bf16.gmra.mrb[4].mxu0 %v14592_v10  ;;  %v12158_v11 = vcombine.high %v528_v5, %v532_v6  ;;  %v12160_v12 = vcombine.high %v529_v7, %v533_v8  ;;  %v12157_v18 = vcombine.low %v528_v5, %v532_v6  ;;  %v12159_v19 = vcombine.low %v529_v7, %v533_v8  ;;  %v589_v5 = vld [vmem:[#allocation5 + $0x478] sm:$0xff] }
 0x1e2   : > { %4298 = vmatmul.mubr.bf16.gmra.mrb[4].mxu1 %v14592_v10  ;;  %4373 = vmatpush1.bf16.msra.mxu0 %v12093_v13  ;;  %v12151_v10 = vcombine.low %v521_v63, %v525_v0  ;;  %v536_v13 = vld [vmem:[#allocation5 + $0x2d0] sm:$0xff]  ;;  %v14727_v0 = vld [vmem:[%s15373_s10 + $0x4] ss:$28 sps:$4 sm:$0xff]  }
 0x1e3   : > { %4825 = vmatpush1.bf16.msra.mxu1 %v12095_v14  ;;  %4374 = vmatprep.subr.bf16.mxu0 %v12102_v15  ;;  %v540_v14 = vld [vmem:[#allocation5 + $0x2f0] sm:$0xff] }
 0x1e4   : > { %4826 = vmatprep.subr.bf16.mxu1 %v12104_v16  ;;  %3855 = vmatprep.mubr.bf16.mxu0 %v17531_v54  ;;  %v14596_v15 = vld [vmem:[%s15373_s10 + $0x130] ss:$28 sps:$4 sm:$0xff]   ;;  %v537_v16 = vld [vmem:[#allocation5 + $0x2d8] sm:$0xff]  ;;  %v12166_v20 = vcombine.high %v536_v13, %v540_v14  ;;  %v12165_v26 = vcombine.low %v536_v13, %v540_v14 }
 0x1e5   : > { %4307 = vmatprep.mubr.bf16.mxu1 %v17531_v54  ;;  %v593_v13 = vld [vmem:[#allocation5 + $0x498] sm:$0xff] }
 0x1e6   : > { %4375 = vmatpush1.bf16.msra.mxu0 %v12101_v21  ;;  %v12168_v21 = vcombine.high %v537_v16, %v541_v17  ;;  %v597_v14 = vld [vmem:[#allocation5 + $0x4b8] sm:$0xff] }
 0x1e7   : > { %4827 = vmatpush1.bf16.msra.mxu1 %v12103_v22  ;;  %4376 = vmatprep.subr.bf16.mxu0 %v12110_v23  ;;  %v544_v22 = vld [vmem:[#allocation5 + $0x310] sm:$0xff] }
 0x1e8   : > { %4828 = vmatprep.subr.bf16.mxu1 %v12112_v24  ;;  %v548_v23 = vld [vmem:[#allocation5 + $0x330] sm:$0xff]  ;;  %v545_v24 = vld [vmem:[#allocation5 + $0x318] sm:$0xff] }
 0x1e9   : > { %3856 = vmatmul.mubr.bf16.gmra.mrb[8].mxu0 %v14593_v27  ;;  %v12174_v28 = vcombine.high %v544_v22, %v548_v23  ;;  %v12176_v29 = vcombine.high %v545_v24, %v549_v25  ;;  %v12173_v35 = vcombine.low %v544_v22, %v548_v23  ;;  %v12175_v36 = vcombine.low %v545_v24, %v549_v25  ;;  %v601_v22 = vld [vmem:[#allocation5 + $0x4d8] sm:$0xff] }
 0x1ea   : > { %4308 = vmatmul.mubr.bf16.gmra.mrb[8].mxu1 %v14593_v27  ;;  %4377 = vmatpush1.bf16.msra.mxu0 %v12109_v30  ;;  %v12167_v27 = vcombine.low %v537_v16, %v541_v17  ;;  %v552_v30 = vld [vmem:[#allocation5 + $0x350] sm:$0xff]  ;;  %v605_v23 = vld [vmem:[#allocation5 + $0x4f8] sm:$0xff]  ;;  %v12223_v25 = vcombine.low %v593_v13, %v597_v14 }
 0x1eb   : > { %4829 = vmatpush1.bf16.msra.mxu1 %v12111_v31  ;;  %4378 = vmatprep.subr.bf16.mxu0 %v12118_v32  ;;  %v556_v31 = vld [vmem:[#allocation5 + $0x370] sm:$0xff]  ;;  %v14597_v32 = vld [vmem:[%s15373_s10 + $0x168] ss:$28 sps:$4 sm:$0xff]  }
 0x1ec   : > { %4830 = vmatprep.subr.bf16.mxu1 %v12120_v33  ;;  %3865 = vmatprep.mubr.bf16.mxu0 %v17531_v54  ;;  %v553_v33 = vld [vmem:[#allocation5 + $0x358] sm:$0xff]  ;;  %v12182_v37 = vcombine.high %v552_v30, %v556_v31  ;;  %v12181_v43 = vcombine.low %v552_v30, %v556_v31 }
 0x1ed   : > { %4317 = vmatprep.mubr.bf16.mxu1 %v17531_v54  ;;  %v14730_v30 = vld [vmem:[%s15373_s10 + $0x38] ss:$28 sps:$4 sm:$0xff]  }
 0x1ee   : > { %4379 = vmatpush1.bf16.msra.mxu0 %v12117_v38  ;;  %v12184_v38 = vcombine.high %v553_v33, %v557_v34  ;;  %v609_v31 = vld [vmem:[#allocation5 + $0x518] sm:$0xff] }
 0x1ef   : > { %4831 = vmatpush1.bf16.msra.mxu1 %v12119_v39  ;;  %4380 = vmatprep.subr.bf16.mxu0 %v12126_v40  ;;  %v560_v39 = vld [vmem:[#allocation5 + $0x390] sm:$0xff] }
 0x1f0   : > { %4832 = vmatprep.subr.bf16.mxu1 %v12128_v41  ;;  %v564_v40 = vld [vmem:[#allocation5 + $0x3b0] sm:$0xff]  ;;  %v561_v41 = vld [vmem:[#allocation5 + $0x398] sm:$0xff] }
 0x1f1   : > { %3866 = vmatmul.mubr.bf16.gmra.mrb[12].mxu0 %v14594_v44  ;;  %v12190_v45 = vcombine.high %v560_v39, %v564_v40  ;;  %v12192_v46 = vcombine.high %v561_v41, %v565_v42  ;;  %v12189_v52 = vcombine.low %v560_v39, %v564_v40  ;;  %v12191_v53 = vcombine.low %v561_v41, %v565_v42  ;;  %v620_v39 = vld [vmem:[#allocation5 + $0x570] sm:$0xff]  ;;  %v617_v40 = vld [vmem:[#allocation5 + $0x558] sm:$0xff] }
 0x1f2   : > { %4318 = vmatmul.mubr.bf16.gmra.mrb[12].mxu1 %v14594_v44  ;;  %4381 = vmatpush1.bf16.msra.mxu0 %v12125_v47  ;;  %v12183_v44 = vcombine.low %v553_v33, %v557_v34  ;;  %v568_v47 = vld [vmem:[#allocation5 + $0x3d0] sm:$0xff]  ;;  %v12231_v34 = vcombine.low %v601_v22, %v605_v23  ;;  %v621_v41 = vld [vmem:[#allocation5 + $0x578] sm:$0xff] }
 0x1f3   : > { %4833 = vmatpush1.bf16.msra.mxu1 %v12127_v48  ;;  %4382 = vmatprep.subr.bf16.mxu0 %v12134_v49  ;;  %v572_v48 = vld [vmem:[#allocation5 + $0x3f0] sm:$0xff]  ;;  %v14598_v49 = vld [vmem:[%s15373_s10 + $0x1a0] ss:$28 sps:$4 sm:$0xff]  }
 0x1f4   : > { %4834 = vmatprep.subr.bf16.mxu1 %v12136_v50  ;;  %3875 = vmatprep.mubr.bf16.mxu0 %v17531_v54  ;;  %v569_v50 = vld [vmem:[#allocation5 + $0x3d8] sm:$0xff]  ;;  %v12198_v55 = vcombine.high %v568_v47, %v572_v48  ;;  %v12197_v61 = vcombine.low %v568_v47, %v572_v48  ;;  %v628_v47 = vld [vmem:[#allocation5 + $0x5b0] sm:$0xff] }
 0x1f5   : > { %4327 = vmatprep.mubr.bf16.mxu1 %v17531_v54  ;;  %v14732_v48 = vld [vmem:[%s15373_s10 + $0x70] ss:$28 sps:$4 sm:$0xff]  }
 0x1f6   : > { %4383 = vmatpush1.bf16.msra.mxu0 %v12133_v56  ;;  %v12200_v56 = vcombine.high %v569_v50, %v573_v51 }
 0x1f7   : > { %4835 = vmatpush1.bf16.msra.mxu1 %v12135_v57  ;;  %4384 = vmatprep.subr.bf16.mxu0 %v12142_v58  ;;  %v576_v57 = vld [vmem:[#allocation5 + $0x410] sm:$0xff] }
 0x1f8   : > { %4836 = vmatprep.subr.bf16.mxu1 %v12144_v59  ;;  %v580_v58 = vld [vmem:[#allocation5 + $0x430] sm:$0xff]  ;;  %v577_v59 = vld [vmem:[#allocation5 + $0x418] sm:$0xff] }
 0x1f9   : > { %3876 = vmatmul.mubr.bf16.gmra.mrb[16].mxu0 %v14595_v62  ;;  %v12206_v63 = vcombine.high %v576_v57, %v580_v58  ;;  %v12205_v6 = vcombine.low %v576_v57, %v580_v58  ;;  %v12207_v7 = vcombine.low %v577_v59, %v581_v60  ;;  %v632_v57 = vld [vmem:[#allocation5 + $0x5d0] sm:$0xff] }
 0x1fa   : > { %4328 = vmatmul.mubr.bf16.gmra.mrb[16].mxu1 %v14595_v62  ;;  %4385 = vmatpush1.bf16.msra.mxu0 %v12141_v1  ;;  %v12199_v62 = vcombine.low %v569_v50, %v573_v51  ;;  %v12208_v1 = vcombine.high %v577_v59, %v581_v60  ;;  %v629_v50 = vld [vmem:[#allocation5 + $0x5b8] sm:$0xff]  ;;  %v636_v58 = vld [vmem:[#allocation5 + $0x5f0] sm:$0xff] }
 0x1fb   : > { %4837 = vmatpush1.bf16.msra.mxu1 %v12143_v2  ;;  %4386 = vmatprep.subr.bf16.mxu0 %v12150_v3  ;;  %v584_v2 = vld [vmem:[#allocation5 + $0x450] sm:$0xff]  ;;  %v633_v59 = vld [vmem:[#allocation5 + $0x5d8] sm:$0xff] }
 0x1fc   : > { %4838 = vmatprep.subr.bf16.mxu1 %v12152_v4  ;;  %3885 = vmatprep.mubr.bf16.mxu0 %v17531_v54  ;;  %v588_v3 = vld [vmem:[#allocation5 + $0x470] sm:$0xff]  ;;  %v585_v4 = vld [vmem:[#allocation5 + $0x458] sm:$0xff] }
 0x1fd   : > { %4337 = vmatprep.mubr.bf16.mxu1 %v17531_v54  ;;  %v12214_v8 = vcombine.high %v584_v2, %v588_v3  ;;  %v12215_v16 = vcombine.low %v585_v4, %v589_v5  ;;  %v637_v60 = vld [vmem:[#allocation5 + $0x5f8] sm:$0xff] }
 0x1fe   : > { %4387 = vmatpush1.bf16.msra.mxu0 %v12149_v9  ;;  %v12216_v9 = vcombine.high %v585_v4, %v589_v5  ;;  %v641_v4 = vld [vmem:[#allocation5 + $0x618] sm:$0xff] }
 0x1ff   : > { %4839 = vmatpush1.bf16.msra.mxu1 %v12151_v10  ;;  %4388 = vmatprep.subr.bf16.mxu0 %v12158_v11  ;;  %v592_v10 = vld [vmem:[#allocation5 + $0x490] sm:$0xff]  ;;  %v645_v5 = vld [vmem:[#allocation5 + $0x638] sm:$0xff] }
 0x200   : > { %4840 = vmatprep.subr.bf16.mxu1 %v12160_v12  ;;  %v596_v11 = vld [vmem:[#allocation5 + $0x4b0] sm:$0xff]  ;;  %v14728_v12 = vld [vmem:[%s15373_s10] ss:$28 sps:$4 sm:$0xff]  }
 0x201   : > { %3886 = vmatmul.mubr.bf16.gmra.mrb[20].mxu0 %v14596_v15  ;;  %v12222_v17 = vcombine.high %v592_v10, %v596_v11  ;;  %v12221_v24 = vcombine.low %v592_v10, %v596_v11  ;;  %v12272_v10 = vcombine.high %v641_v4, %v645_v5  ;;  %v648_v11 = vld [vmem:[#allocation5 + $0x650] sm:$0xff] }
 0x202   : > { %4338 = vmatmul.mubr.bf16.gmra.mrb[20].mxu1 %v14596_v15  ;;  %4389 = vmatpush1.bf16.msra.mxu0 %v12157_v18  ;;  %v12213_v15 = vcombine.low %v584_v2, %v588_v3  ;;  %v14729_v18 = vld [vmem:[%s15373_s10 + $0x3c] ss:$28 sps:$4 sm:$0xff]   ;;  %v644_v2 = vld [vmem:[#allocation5 + $0x630] sm:$0xff]  ;;  %v14734_v3 = vld [vmem:[%s15373_s10 + $0xa8] ss:$28 sps:$4 sm:$0xff]  }
 0x203   : > { %4841 = vmatpush1.bf16.msra.mxu1 %v12159_v19  ;;  %4390 = vmatprep.subr.bf16.mxu0 %v12166_v20  ;;  %v12224_v19 = vcombine.high %v593_v13, %v597_v14  ;;  %v600_v20 = vld [vmem:[#allocation5 + $0x4d0] sm:$0xff]  ;;  %v649_v13 = vld [vmem:[#allocation5 + $0x658] sm:$0xff] }
 0x204   : > { %4842 = vmatprep.subr.bf16.mxu1 %v12168_v21  ;;  %3895 = vmatprep.mubr.bf16.mxu0 %v17531_v54  ;;  %v604_v21 = vld [vmem:[#allocation5 + $0x4f0] sm:$0xff]  ;;  %v653_v14 = vld [vmem:[#allocation5 + $0x678] sm:$0xff] }
 0x205   : > { %4347 = vmatprep.mubr.bf16.mxu1 %v17531_v54  ;;  %v12229_v33 = vcombine.low %v600_v20, %v604_v21 }
 0x206   : > { %4391 = vmatpush1.bf16.msra.mxu0 %v12165_v26  ;;  %v12230_v26 = vcombine.high %v600_v20, %v604_v21  ;;  %v660_v20 = vld [vmem:[#allocation5 + $0x6b0] sm:$0xff]  ;;  %v14736_v21 = vld [vmem:[%s15373_s10 + $0xe0] ss:$28 sps:$4 sm:$0xff]  }
 0x207   : > { %4843 = vmatpush1.bf16.msra.mxu1 %v12167_v27  ;;  %4392 = vmatprep.subr.bf16.mxu0 %v12174_v28  ;;  %v12232_v27 = vcombine.high %v601_v22, %v605_v23  ;;  %v608_v28 = vld [vmem:[#allocation5 + $0x510] sm:$0xff]  ;;  %v657_v22 = vld [vmem:[#allocation5 + $0x698] sm:$0xff] }
 0x208   : > { %4844 = vmatprep.subr.bf16.mxu1 %v12176_v29  ;;  %v612_v29 = vld [vmem:[#allocation5 + $0x530] sm:$0xff]  ;;  %v661_v23 = vld [vmem:[#allocation5 + $0x6b8] sm:$0xff] }
 0x209   : > { %3896 = vmatmul.mubr.bf16.gmra.mrb[24].mxu0 %v14597_v32  ;;  %v12237_v42 = vcombine.low %v608_v28, %v612_v29 }
 0x20a   : > { %4348 = vmatmul.mubr.bf16.gmra.mrb[24].mxu1 %v14597_v32  ;;  %4393 = vmatpush1.bf16.msra.mxu0 %v12173_v35  ;;  %v613_v32 = vld [vmem:[#allocation5 + $0x538] sm:$0xff]  ;;  %v12238_v35 = vcombine.high %v608_v28, %v612_v29  ;;  %v12288_v28 = vcombine.high %v657_v22, %v661_v23  ;;  %v664_v29 = vld [vmem:[#allocation5 + $0x6d0] sm:$0xff] }
 0x20b   : > { %4845 = vmatpush1.bf16.msra.mxu1 %v12175_v36  ;;  %4394 = vmatprep.subr.bf16.mxu0 %v12182_v37  ;;  %v14731_v36 = vld [vmem:[%s15373_s10 + $0x74] ss:$28 sps:$4 sm:$0xff]   ;;  %v12240_v37 = vcombine.high %v609_v31, %v613_v32 }
 0x20c   : > { %4846 = vmatprep.subr.bf16.mxu1 %v12184_v38  ;;  %3905 = vmatprep.mubr.bf16.mxu0 %v17531_v54  ;;  %v616_v38 = vld [vmem:[#allocation5 + $0x550] sm:$0xff] }
 0x20d   : > { %4357 = vmatprep.mubr.bf16.mxu1 %v17531_v54  ;;  %v12245_v51 = vcombine.low %v616_v38, %v620_v39 }
 0x20e   : > { %4395 = vmatpush1.bf16.msra.mxu0 %v12181_v43  ;;  %v12239_v43 = vcombine.low %v609_v31, %v613_v32  ;;  %v665_v31 = vld [vmem:[#allocation5 + $0x6d8] sm:$0xff] }
 0x20f   : > { %4847 = vmatpush1.bf16.msra.mxu1 %v12183_v44  ;;  %4396 = vmatprep.subr.bf16.mxu0 %v12190_v45  ;;  %v12246_v44 = vcombine.high %v616_v38, %v620_v39  ;;  %v12248_v45 = vcombine.high %v617_v40, %v621_v41  ;;  %v669_v32 = vld [vmem:[#allocation5 + $0x6f8] sm:$0xff]  ;;  %v676_v38 = vld [vmem:[#allocation5 + $0x730] sm:$0xff] }
 0x210   : > { %4848 = vmatprep.subr.bf16.mxu1 %v12192_v46  ;;  %v624_v46 = vld [vmem:[#allocation5 + $0x590] sm:$0xff] }
 0x211   : > { %3906 = vmatmul.mubr.bf16.gmra.mrb[28].mxu0 %v14598_v49  ;;  %v14738_v39 = vld [vmem:[%s15373_s10 + $0x118] ss:$28 sps:$4 sm:$0xff]  }
 0x212   : > { %4358 = vmatmul.mubr.bf16.gmra.mrb[28].mxu1 %v14598_v49  ;;  %4397 = vmatpush1.bf16.msra.mxu0 %v12189_v52  ;;  %v625_v49 = vld [vmem:[#allocation5 + $0x598] sm:$0xff]  ;;  %v12247_v52 = vcombine.low %v617_v40, %v621_v41 }
 0x213   : > { %4849 = vmatpush1.bf16.msra.mxu1 %v12191_v53  ;;  %4398 = vmatprep.subr.bf16.mxu0 %v12198_v55  ;;  %v12254_v53 = vcombine.high %v624_v46, %v628_v47  ;;  %v14733_v55 = vld [vmem:[%s15373_s10 + $0xac] ss:$28 sps:$4 sm:$0xff]   ;;  %v673_v40 = vld [vmem:[#allocation5 + $0x718] sm:$0xff] }
 0x214   : > { %4850 = vmatprep.subr.bf16.mxu1 %v12200_v56  ;;  %4400 = vmatprep.mubr.bf16.mxu0 %v14727_v0  ;;  %v12256_v56 = vcombine.high %v625_v49, %v629_v50  ;;  %v677_v41 = vld [vmem:[#allocation5 + $0x738] sm:$0xff] }
 0x215   : > { %4852 = vmatprep.mubr.bf16.mxu1 %v14727_v0  ;;  %v12264_v0 = vcombine.high %v633_v59, %v637_v60 }
 0x216   : > { %4399 = vmatpush1.bf16.msra.mxu0 %v12197_v61  ;;  %v12253_v61 = vcombine.low %v624_v46, %v628_v47  ;;  %v12304_v46 = vcombine.high %v673_v40, %v677_v41  ;;  %v680_v47 = vld [vmem:[#allocation5 + $0x750] sm:$0xff] }
 0x217   : > { %4851 = vmatpush1.bf16.msra.mxu1 %v12199_v62  ;;  %4481 = vmatprep.subr.bf16.mxu0 %v12206_v63  ;;  %v12255_v62 = vcombine.low %v625_v49, %v629_v50  ;;  %v12262_v63 = vcombine.high %v632_v57, %v636_v58  ;;  %v681_v49 = vld [vmem:[#allocation5 + $0x758] sm:$0xff] }
 0x218   : > { %4933 = vmatprep.subr.bf16.mxu1 %v12208_v1  ;;  %v640_v1 = vld [vmem:[#allocation5 + $0x610] sm:$0xff]  ;;  %v685_v50 = vld [vmem:[#allocation5 + $0x778] sm:$0xff] }
 0x219   : > { %4401 = vmatmul.mubr.bf16.vlgmr.msra.gmra.mrb[32].mxu0 %v14728_v12 }
 0x21a   : > { %4853 = vmatmul.mubr.bf16.vlgmr.msra.gmra.mrb[32].mxu1 %v14728_v12  ;;  %4482 = vmatpush1.bf16.msra.mxu0 %v12205_v6  ;;  %v12261_v6 = vcombine.low %v632_v57, %v636_v58  ;;  %v652_v12 = vld [vmem:[#allocation5 + $0x670] sm:$0xff] }
 0x21b   : > { %4934 = vmatpush1.bf16.msra.mxu1 %v12207_v7  ;;  %4483 = vmatprep.subr.bf16.mxu0 %v12214_v8  ;;  %v12263_v7 = vcombine.low %v633_v59, %v637_v60  ;;  %v12270_v8 = vcombine.high %v640_v1, %v644_v2  ;;  %v692_v57 = vld [vmem:[#allocation5 + $0x7b0] sm:$0xff]  ;;  %v689_v59 = vld [vmem:[#allocation5 + $0x798] sm:$0xff] }
 0x21c   : > { %4935 = vmatprep.subr.bf16.mxu1 %v12216_v9  ;;  %4410 = vmatprep.mubr.bf16.mxu0 %v14729_v18  ;;  %v14735_v9 = vld [vmem:[%s15373_s10 + $0xe4] ss:$28 sps:$4 sm:$0xff]   ;;  %v14740_v58 = vld [vmem:[%s15373_s10 + $0x150] ss:$28 sps:$4 sm:$0xff]   ;;  %v693_v60 = vld [vmem:[#allocation5 + $0x7b8] sm:$0xff] }
 0x21d   : > { %4862 = vmatprep.mubr.bf16.mxu1 %v14729_v18  ;;  %v12280_v18 = vcombine.high %v649_v13, %v653_v14 }
 0x21e   : > { %4484 = vmatpush1.bf16.msra.mxu0 %v12213_v15  ;;  %v12269_v15 = vcombine.low %v640_v1, %v644_v2  ;;  %v12320_v1 = vcombine.high %v689_v59, %v693_v60  ;;  %v696_v2 = vld [vmem:[#allocation5 + $0x7d0] sm:$0xff] }
 0x21f   : > { %4936 = vmatpush1.bf16.msra.mxu1 %v12215_v16  ;;  %4485 = vmatprep.subr.bf16.mxu0 %v12222_v17  ;;  %v12271_v16 = vcombine.low %v641_v4, %v645_v5  ;;  %v12278_v17 = vcombine.high %v648_v11, %v652_v12  ;;  %v697_v4 = vld [vmem:[#allocation5 + $0x7d8] sm:$0xff] }
 0x220   : > { %4937 = vmatprep.subr.bf16.mxu1 %v12224_v19  ;;  %v656_v19 = vld [vmem:[#allocation5 + $0x690] sm:$0xff]  ;;  %v701_v5 = vld [vmem:[#allocation5 + $0x7f8] sm:$0xff] }
 0x221   : > { %4411 = vmatmul.mubr.bf16.gmra.mrb[36].mxu0 %v14730_v30 }
 0x222   : > { %4863 = vmatmul.mubr.bf16.gmra.mrb[36].mxu1 %v14730_v30  ;;  %4486 = vmatpush1.bf16.msra.mxu0 %v12221_v24  ;;  %v12277_v24 = vcombine.low %v648_v11, %v652_v12  ;;  %v668_v30 = vld [vmem:[#allocation5 + $0x6f0] sm:$0xff]  ;;  %v14742_v12 = vld [vmem:[%s15373_s10 + $0x188] ss:$28 sps:$4 sm:$0xff]  }
 0x223   : > { %4938 = vmatpush1.bf16.msra.mxu1 %v12223_v25  ;;  %4487 = vmatprep.subr.bf16.mxu0 %v12230_v26  ;;  %v12279_v25 = vcombine.low %v649_v13, %v653_v14  ;;  %v12286_v26 = vcombine.high %v656_v19, %v660_v20  ;;  %v708_v11 = vld [vmem:[#allocation5 + $0x830] sm:$0xff]  ;;  %v705_v13 = vld [vmem:[#allocation5 + $0x818] sm:$0xff] }
 0x224   : > { %4939 = vmatprep.subr.bf16.mxu1 %v12232_v27  ;;  %4420 = vmatprep.mubr.bf16.mxu0 %v14731_v36  ;;  %v14737_v27 = vld [vmem:[%s15373_s10 + $0x11c] ss:$28 sps:$4 sm:$0xff]  }
 0x225   : > { %4872 = vmatprep.mubr.bf16.mxu1 %v14731_v36  ;;  %v12296_v36 = vcombine.high %v665_v31, %v669_v32  ;;  %v709_v14 = vld [vmem:[#allocation5 + $0x838] sm:$0xff] }
 0x226   : > { %4488 = vmatpush1.bf16.msra.mxu0 %v12229_v33  ;;  %v12285_v33 = vcombine.low %v656_v19, %v660_v20  ;;  %v12336_v19 = vcombine.high %v705_v13, %v709_v14  ;;  %v712_v20 = vld [vmem:[#allocation5 + $0x850] sm:$0xff] }
 0x227   : > { %4940 = vmatpush1.bf16.msra.mxu1 %v12231_v34  ;;  %4489 = vmatprep.subr.bf16.mxu0 %v12238_v35  ;;  %v12287_v34 = vcombine.low %v657_v22, %v661_v23  ;;  %v12294_v35 = vcombine.high %v664_v29, %v668_v30  ;;  %v713_v22 = vld [vmem:[#allocation5 + $0x858] sm:$0xff] }
 0x228   : > { %4941 = vmatprep.subr.bf16.mxu1 %v12240_v37  ;;  %v672_v37 = vld [vmem:[#allocation5 + $0x710] sm:$0xff]  ;;  %v717_v23 = vld [vmem:[#allocation5 + $0x878] sm:$0xff] }
 0x229   : > { %4421 = vmatmul.mubr.bf16.gmra.mrb[40].mxu0 %v14732_v48 }
 0x22a   : > { %4873 = vmatmul.mubr.bf16.gmra.mrb[40].mxu1 %v14732_v48  ;;  %4490 = vmatpush1.bf16.msra.mxu0 %v12237_v42  ;;  %v12293_v42 = vcombine.low %v664_v29, %v668_v30  ;;  %v684_v48 = vld [vmem:[#allocation5 + $0x770] sm:$0xff]  ;;  %v14744_v30 = vld [vmem:[%s15373_s10 + $0x8] ss:$28 sps:$4 sm:$0xff]  }
 0x22b   : > { %4942 = vmatpush1.bf16.msra.mxu1 %v12239_v43  ;;  %4491 = vmatprep.subr.bf16.mxu0 %v12246_v44  ;;  %v12295_v43 = vcombine.low %v665_v31, %v669_v32  ;;  %v12302_v44 = vcombine.high %v672_v37, %v676_v38  ;;  %v724_v29 = vld [vmem:[#allocation5 + $0x8b0] sm:$0xff]  ;;  %v721_v31 = vld [vmem:[#allocation5 + $0x898] sm:$0xff] }
 0x22c   : > { %4943 = vmatprep.subr.bf16.mxu1 %v12248_v45  ;;  %4430 = vmatprep.mubr.bf16.mxu0 %v14733_v55  ;;  %v14739_v45 = vld [vmem:[%s15373_s10 + $0x154] ss:$28 sps:$4 sm:$0xff]   ;;  %v725_v32 = vld [vmem:[#allocation5 + $0x8b8] sm:$0xff] }
 0x22d   : > { %4882 = vmatprep.mubr.bf16.mxu1 %v14733_v55  ;;  %v12312_v55 = vcombine.high %v681_v49, %v685_v50 }
 0x22e   : > { %4492 = vmatpush1.bf16.msra.mxu0 %v12245_v51  ;;  %v12301_v51 = vcombine.low %v672_v37, %v676_v38  ;;  %v12352_v37 = vcombine.high %v721_v31, %v725_v32  ;;  %v728_v38 = vld [vmem:[#allocation5 + $0x8d0] sm:$0xff] }
 0x22f   : > { %4944 = vmatpush1.bf16.msra.mxu1 %v12247_v52  ;;  %4493 = vmatprep.subr.bf16.mxu0 %v12254_v53  ;;  %v12303_v52 = vcombine.low %v673_v40, %v677_v41  ;;  %v12310_v53 = vcombine.high %v680_v47, %v684_v48  ;;  %v729_v40 = vld [vmem:[#allocation5 + $0x8d8] sm:$0xff] }
 0x230   : > { %4945 = vmatprep.subr.bf16.mxu1 %v12256_v56  ;;  %v688_v56 = vld [vmem:[#allocation5 + $0x790] sm:$0xff]  ;;  %v733_v41 = vld [vmem:[#allocation5 + $0x8f8] sm:$0xff] }
 0x231   : > { %4431 = vmatmul.mubr.bf16.gmra.mrb[44].mxu0 %v14734_v3 }
 0x232   : > { %4883 = vmatmul.mubr.bf16.gmra.mrb[44].mxu1 %v14734_v3  ;;  %4494 = vmatpush1.bf16.msra.mxu0 %v12253_v61  ;;  %v12309_v61 = vcombine.low %v680_v47, %v684_v48  ;;  %v700_v3 = vld [vmem:[#allocation5 + $0x7f0] sm:$0xff]  ;;  %v14746_v48 = vld [vmem:[%s15373_s10 + $0x40] ss:$28 sps:$4 sm:$0xff]  }
 0x233   : > { %4946 = vmatpush1.bf16.msra.mxu1 %v12255_v62  ;;  %4495 = vmatprep.subr.bf16.mxu0 %v12262_v63  ;;  %v12311_v62 = vcombine.low %v681_v49, %v685_v50  ;;  %v12318_v63 = vcombine.high %v688_v56, %v692_v57  ;;  %v740_v47 = vld [vmem:[#allocation5 + $0x930] sm:$0xff]  ;;  %v737_v49 = vld [vmem:[#allocation5 + $0x918] sm:$0xff] }
 0x234   : > { %4947 = vmatprep.subr.bf16.mxu1 %v12264_v0  ;;  %4440 = vmatprep.mubr.bf16.mxu0 %v14735_v9  ;;  %v14741_v0 = vld [vmem:[%s15373_s10 + $0x18c] ss:$28 sps:$4 sm:$0xff]   ;;  %v741_v50 = vld [vmem:[#allocation5 + $0x938] sm:$0xff] }
 0x235   : > { %4892 = vmatprep.mubr.bf16.mxu1 %v14735_v9  ;;  %v12328_v9 = vcombine.high %v697_v4, %v701_v5 }
 0x236   : > { %4496 = vmatpush1.bf16.msra.mxu0 %v12261_v6  ;;  %v12317_v6 = vcombine.low %v688_v56, %v692_v57  ;;  %v12368_v56 = vcombine.high %v737_v49, %v741_v50  ;;  %v744_v57 = vld [vmem:[#allocation5 + $0x950] sm:$0xff] }
 0x237   : > { %4948 = vmatpush1.bf16.msra.mxu1 %v12263_v7  ;;  %4497 = vmatprep.subr.bf16.mxu0 %v12270_v8  ;;  %v12319_v7 = vcombine.low %v689_v59, %v693_v60  ;;  %v12326_v8 = vcombine.high %v696_v2, %v700_v3  ;;  %v745_v59 = vld [vmem:[#allocation5 + $0x958] sm:$0xff] }
 0x238   : > { %4949 = vmatprep.subr.bf16.mxu1 %v12272_v10  ;;  %v704_v10 = vld [vmem:[#allocation5 + $0x810] sm:$0xff]  ;;  %v749_v60 = vld [vmem:[#allocation5 + $0x978] sm:$0xff] }
 0x239   : > { %4441 = vmatmul.mubr.bf16.gmra.mrb[48].mxu0 %v14736_v21 }
 0x23a   : > { %4893 = vmatmul.mubr.bf16.gmra.mrb[48].mxu1 %v14736_v21  ;;  %4498 = vmatpush1.bf16.msra.mxu0 %v12269_v15  ;;  %v12325_v15 = vcombine.low %v696_v2, %v700_v3  ;;  %v716_v21 = vld [vmem:[#allocation5 + $0x870] sm:$0xff] }
 0x23b   : > { %4950 = vmatpush1.bf16.msra.mxu1 %v12271_v16  ;;  %4499 = vmatprep.subr.bf16.mxu0 %v12278_v17  ;;  %v12327_v16 = vcombine.low %v697_v4, %v701_v5  ;;  %v12334_v17 = vcombine.high %v704_v10, %v708_v11  ;;  %v756_v2 = vld [vmem:[#allocation5 + $0x9b0] sm:$0xff]  ;;  %v753_v4 = vld [vmem:[#allocation5 + $0x998] sm:$0xff] }
 0x23c   : > { %4951 = vmatprep.subr.bf16.mxu1 %v12280_v18  ;;  %4450 = vmatprep.mubr.bf16.mxu0 %v14737_v27  ;;  %v14743_v18 = vld [vmem:[%s15373_s10 + $0xc] ss:$28 sps:$4 sm:$0xff]   ;;  %v14748_v3 = vld [vmem:[%s15373_s10 + $0x78] ss:$28 sps:$4 sm:$0xff]  }
 0x23d   : > { %4902 = vmatprep.mubr.bf16.mxu1 %v14737_v27  ;;  %v12344_v27 = vcombine.high %v713_v22, %v717_v23  ;;  %v757_v5 = vld [vmem:[#allocation5 + $0x9b8] sm:$0xff] }
 0x23e   : > { %4500 = vmatpush1.bf16.msra.mxu0 %v12277_v24  ;;  %v12333_v24 = vcombine.low %v704_v10, %v708_v11  ;;  %v12384_v10 = vcombine.high %v753_v4, %v757_v5  ;;  %v760_v11 = vld [vmem:[#allocation5 + $0x9d0] sm:$0xff] }
 0x23f   : > { %4952 = vmatpush1.bf16.msra.mxu1 %v12279_v25  ;;  %4501 = vmatprep.subr.bf16.mxu0 %v12286_v26  ;;  %v12335_v25 = vcombine.low %v705_v13, %v709_v14  ;;  %v12342_v26 = vcombine.high %v712_v20, %v716_v21  ;;  %v761_v13 = vld [vmem:[#allocation5 + $0x9d8] sm:$0xff] }
 0x240   : > { %4953 = vmatprep.subr.bf16.mxu1 %v12288_v28  ;;  %v720_v28 = vld [vmem:[#allocation5 + $0x890] sm:$0xff]  ;;  %v765_v14 = vld [vmem:[#allocation5 + $0x9f8] sm:$0xff] }
 0x241   : > { %4451 = vmatmul.mubr.bf16.gmra.mrb[52].mxu0 %v14738_v39 }
 0x242   : > { %4903 = vmatmul.mubr.bf16.gmra.mrb[52].mxu1 %v14738_v39  ;;  %4502 = vmatpush1.bf16.msra.mxu0 %v12285_v33  ;;  %v12341_v33 = vcombine.low %v712_v20, %v716_v21  ;;  %v732_v39 = vld [vmem:[#allocation5 + $0x8f0] sm:$0xff] }
 0x243   : > { %4954 = vmatpush1.bf16.msra.mxu1 %v12287_v34  ;;  %4503 = vmatprep.subr.bf16.mxu0 %v12294_v35  ;;  %v12343_v34 = vcombine.low %v713_v22, %v717_v23  ;;  %v12350_v35 = vcombine.high %v720_v28, %v724_v29  ;;  %v772_v20 = vld [vmem:[#allocation5 + $0xa30] sm:$0xff]  ;;  %v769_v22 = vld [vmem:[#allocation5 + $0xa18] sm:$0xff] }
 0x244   : > { %4955 = vmatprep.subr.bf16.mxu1 %v12296_v36  ;;  %4460 = vmatprep.mubr.bf16.mxu0 %v14739_v45  ;;  %v14745_v36 = vld [vmem:[%s15373_s10 + $0x44] ss:$28 sps:$4 sm:$0xff]   ;;  %v14750_v21 = vld [vmem:[%s15373_s10 + $0xb0] ss:$28 sps:$4 sm:$0xff]   ;;  %v773_v23 = vld [vmem:[#allocation5 + $0xa38] sm:$0xff] }
 0x245   : > { %4912 = vmatprep.mubr.bf16.mxu1 %v14739_v45  ;;  %v12360_v45 = vcombine.high %v729_v40, %v733_v41 }
 0x246   : > { %4504 = vmatpush1.bf16.msra.mxu0 %v12293_v42  ;;  %v12349_v42 = vcombine.low %v720_v28, %v724_v29  ;;  %v12400_v28 = vcombine.high %v769_v22, %v773_v23  ;;  %v776_v29 = vld [vmem:[#allocation5 + $0xa50] sm:$0xff] }
 0x247   : > { %4956 = vmatpush1.bf16.msra.mxu1 %v12295_v43  ;;  %4505 = vmatprep.subr.bf16.mxu0 %v12302_v44  ;;  %v12351_v43 = vcombine.low %v721_v31, %v725_v32  ;;  %v12358_v44 = vcombine.high %v728_v38, %v732_v39  ;;  %v777_v31 = vld [vmem:[#allocation5 + $0xa58] sm:$0xff] }
 0x248   : > { %4957 = vmatprep.subr.bf16.mxu1 %v12304_v46  ;;  %v736_v46 = vld [vmem:[#allocation5 + $0x910] sm:$0xff]  ;;  %v781_v32 = vld [vmem:[#allocation5 + $0xa78] sm:$0xff] }
 0x249   : > { %4461 = vmatmul.mubr.bf16.gmra.mrb[56].mxu0 %v14740_v58 }
 0x24a   : > { %4913 = vmatmul.mubr.bf16.gmra.mrb[56].mxu1 %v14740_v58  ;;  %4506 = vmatpush1.bf16.msra.mxu0 %v12301_v51  ;;  %v12357_v51 = vcombine.low %v728_v38, %v732_v39  ;;  %v748_v58 = vld [vmem:[#allocation5 + $0x970] sm:$0xff]  ;;  %v14752_v39 = vld [vmem:[%s15373_s10 + $0xe8] ss:$28 sps:$4 sm:$0xff]  }
 0x24b   : > { %4958 = vmatpush1.bf16.msra.mxu1 %v12303_v52  ;;  %4507 = vmatprep.subr.bf16.mxu0 %v12310_v53  ;;  %v12359_v52 = vcombine.low %v729_v40, %v733_v41  ;;  %v12366_v53 = vcombine.high %v736_v46, %v740_v47  ;;  %v788_v38 = vld [vmem:[#allocation5 + $0xab0] sm:$0xff]  ;;  %v785_v40 = vld [vmem:[#allocation5 + $0xa98] sm:$0xff] }
 0x24c   : > { %4959 = vmatprep.subr.bf16.mxu1 %v12312_v55  ;;  %4470 = vmatprep.mubr.bf16.mxu0 %v14741_v0  ;;  %v14747_v55 = vld [vmem:[%s15373_s10 + $0x7c] ss:$28 sps:$4 sm:$0xff]  }
 0x24d   : > { %4922 = vmatprep.mubr.bf16.mxu1 %v14741_v0  ;;  %v12376_v0 = vcombine.high %v745_v59, %v749_v60  ;;  %v789_v41 = vld [vmem:[#allocation5 + $0xab8] sm:$0xff] }
 0x24e   : > { %4508 = vmatpush1.bf16.msra.mxu0 %v12309_v61  ;;  %v12365_v61 = vcombine.low %v736_v46, %v740_v47  ;;  %v12416_v46 = vcombine.high %v785_v40, %v789_v41  ;;  %v792_v47 = vld [vmem:[#allocation5 + $0xad0] sm:$0xff] }
 0x24f   : > { %4960 = vmatpush1.bf16.msra.mxu1 %v12311_v62  ;;  %4509 = vmatprep.subr.bf16.mxu0 %v12318_v63  ;;  %v12367_v62 = vcombine.low %v737_v49, %v741_v50  ;;  %v12374_v63 = vcombine.high %v744_v57, %v748_v58  ;;  %v793_v49 = vld [vmem:[#allocation5 + $0xad8] sm:$0xff] }
 0x250   : > { %4961 = vmatprep.subr.bf16.mxu1 %v12320_v1  ;;  %v752_v1 = vld [vmem:[#allocation5 + $0x990] sm:$0xff]  ;;  %v797_v50 = vld [vmem:[#allocation5 + $0xaf8] sm:$0xff] }
 0x251   : > { %4471 = vmatmul.mubr.bf16.gmra.mrb[60].mxu0 %v14742_v12 }
 0x252   : > { %4923 = vmatmul.mubr.bf16.gmra.mrb[60].mxu1 %v14742_v12  ;;  %4510 = vmatpush1.bf16.msra.mxu0 %v12317_v6  ;;  %v12373_v6 = vcombine.low %v744_v57, %v748_v58  ;;  %v764_v12 = vld [vmem:[#allocation5 + $0x9f0] sm:$0xff]  ;;  %v14754_v58 = vld [vmem:[%s15373_s10 + $0x120] ss:$28 sps:$4 sm:$0xff]  }
 0x253   : > { %4962 = vmatpush1.bf16.msra.mxu1 %v12319_v7  ;;  %4511 = vmatprep.subr.bf16.mxu0 %v12326_v8  ;;  %v12375_v7 = vcombine.low %v745_v59, %v749_v60  ;;  %v12382_v8 = vcombine.high %v752_v1, %v756_v2  ;;  %v804_v57 = vld [vmem:[#allocation5 + $0xb30] sm:$0xff]  ;;  %v801_v59 = vld [vmem:[#allocation5 + $0xb18] sm:$0xff] }
 0x254   : > { %4963 = vmatprep.subr.bf16.mxu1 %v12328_v9  ;;  %4513 = vmatprep.mubr.bf16.mxu0 %v14743_v18  ;;  %v14749_v9 = vld [vmem:[%s15373_s10 + $0xb4] ss:$28 sps:$4 sm:$0xff]   ;;  %v805_v60 = vld [vmem:[#allocation5 + $0xb38] sm:$0xff] }
 0x255   : > { %4965 = vmatprep.mubr.bf16.mxu1 %v14743_v18  ;;  %v12392_v18 = vcombine.high %v761_v13, %v765_v14 }
 0x256   : > { %4512 = vmatpush1.bf16.msra.mxu0 %v12325_v15  ;;  %v12381_v15 = vcombine.low %v752_v1, %v756_v2  ;;  %v12432_v1 = vcombine.high %v801_v59, %v805_v60  ;;  %v808_v2 = vld [vmem:[#allocation5 + $0xb50] sm:$0xff] }
 0x257   : > { %4964 = vmatpush1.bf16.msra.mxu1 %v12327_v16  ;;  %4594 = vmatprep.subr.bf16.mxu0 %v12334_v17  ;;  %v12383_v16 = vcombine.low %v753_v4, %v757_v5  ;;  %v12390_v17 = vcombine.high %v760_v11, %v764_v12  ;;  %v809_v4 = vld [vmem:[#allocation5 + $0xb58] sm:$0xff] }
 0x258   : > { %5046 = vmatprep.subr.bf16.mxu1 %v12336_v19  ;;  %v768_v19 = vld [vmem:[#allocation5 + $0xa10] sm:$0xff]  ;;  %v813_v5 = vld [vmem:[#allocation5 + $0xb78] sm:$0xff] }
 0x259   : > { %4514 = vmatmul.mubr.bf16.vlgmr.msra.gmra.mrb[32].mxu0 %v14744_v30 }
 0x25a   : > { %4966 = vmatmul.mubr.bf16.vlgmr.msra.gmra.mrb[32].mxu1 %v14744_v30  ;;  %4595 = vmatpush1.bf16.msra.mxu0 %v12333_v24  ;;  %v12389_v24 = vcombine.low %v760_v11, %v764_v12  ;;  %v780_v30 = vld [vmem:[#allocation5 + $0xa70] sm:$0xff] }
 0x25b   : > { %5047 = vmatpush1.bf16.msra.mxu1 %v12335_v25  ;;  %4596 = vmatprep.subr.bf16.mxu0 %v12342_v26  ;;  %v12391_v25 = vcombine.low %v761_v13, %v765_v14  ;;  %v12398_v26 = vcombine.high %v768_v19, %v772_v20  ;;  %v820_v11 = vld [vmem:[#allocation5 + $0xbb0] sm:$0xff]  ;;  %v817_v13 = vld [vmem:[#allocation5 + $0xb98] sm:$0xff] }
 0x25c   : > { %5048 = vmatprep.subr.bf16.mxu1 %v12344_v27  ;;  %4523 = vmatprep.mubr.bf16.mxu0 %v14745_v36  ;;  %v14751_v27 = vld [vmem:[%s15373_s10 + $0xec] ss:$28 sps:$4 sm:$0xff]   ;;  %v14756_v12 = vld [vmem:[%s15373_s10 + $0x158] ss:$28 sps:$4 sm:$0xff]  }
 0x25d   : > { %4975 = vmatprep.mubr.bf16.mxu1 %v14745_v36  ;;  %v12408_v36 = vcombine.high %v777_v31, %v781_v32  ;;  %v821_v14 = vld [vmem:[#allocation5 + $0xbb8] sm:$0xff] }
 0x25e   : > { %4597 = vmatpush1.bf16.msra.mxu0 %v12341_v33  ;;  %v12397_v33 = vcombine.low %v768_v19, %v772_v20  ;;  %v12448_v19 = vcombine.high %v817_v13, %v821_v14  ;;  %v824_v20 = vld [vmem:[#allocation5 + $0xbd0] sm:$0xff] }
 0x25f   : > { %5049 = vmatpush1.bf16.msra.mxu1 %v12343_v34  ;;  %4598 = vmatprep.subr.bf16.mxu0 %v12350_v35  ;;  %v12399_v34 = vcombine.low %v769_v22, %v773_v23  ;;  %v12406_v35 = vcombine.high %v776_v29, %v780_v30  ;;  %v825_v22 = vld [vmem:[#allocation5 + $0xbd8] sm:$0xff] }
 0x260   : > { %5050 = vmatprep.subr.bf16.mxu1 %v12352_v37  ;;  %v784_v37 = vld [vmem:[#allocation5 + $0xa90] sm:$0xff]  ;;  %v829_v23 = vld [vmem:[#allocation5 + $0xbf8] sm:$0xff] }
 0x261   : > { %4524 = vmatmul.mubr.bf16.gmra.mrb[36].mxu0 %v14746_v48 }
 0x262   : > { %4976 = vmatmul.mubr.bf16.gmra.mrb[36].mxu1 %v14746_v48  ;;  %4599 = vmatpush1.bf16.msra.mxu0 %v12349_v42  ;;  %v12405_v42 = vcombine.low %v776_v29, %v780_v30  ;;  %v796_v48 = vld [vmem:[#allocation5 + $0xaf0] sm:$0xff] }
 0x263   : > { %5051 = vmatpush1.bf16.msra.mxu1 %v12351_v43  ;;  %4600 = vmatprep.subr.bf16.mxu0 %v12358_v44  ;;  %v12407_v43 = vcombine.low %v777_v31, %v781_v32  ;;  %v12414_v44 = vcombine.high %v784_v37, %v788_v38  ;;  %v836_v29 = vld [vmem:[#allocation5 + $0xc30] sm:$0xff]  ;;  %v833_v31 = vld [vmem:[#allocation5 + $0xc18] sm:$0xff] }
 0x264   : > { %5052 = vmatprep.subr.bf16.mxu1 %v12360_v45  ;;  %4533 = vmatprep.mubr.bf16.mxu0 %v14747_v55  ;;  %v14753_v45 = vld [vmem:[%s15373_s10 + $0x124] ss:$28 sps:$4 sm:$0xff]   ;;  %v14758_v30 = vld [vmem:[%s15373_s10 + $0x190] ss:$28 sps:$4 sm:$0xff]   ;;  %v837_v32 = vld [vmem:[#allocation5 + $0xc38] sm:$0xff] }
 0x265   : > { %4985 = vmatprep.mubr.bf16.mxu1 %v14747_v55  ;;  %v12424_v55 = vcombine.high %v793_v49, %v797_v50 }
 0x266   : > { %4601 = vmatpush1.bf16.msra.mxu0 %v12357_v51  ;;  %v12413_v51 = vcombine.low %v784_v37, %v788_v38  ;;  %v12464_v37 = vcombine.high %v833_v31, %v837_v32  ;;  %v840_v38 = vld [vmem:[#allocation5 + $0xc50] sm:$0xff] }
 0x267   : > { %5053 = vmatpush1.bf16.msra.mxu1 %v12359_v52  ;;  %4602 = vmatprep.subr.bf16.mxu0 %v12366_v53  ;;  %v12415_v52 = vcombine.low %v785_v40, %v789_v41  ;;  %v12422_v53 = vcombine.high %v792_v47, %v796_v48  ;;  %v841_v41 = vld [vmem:[#allocation5 + $0xc58] sm:$0xff] }
 0x268   : > { %5054 = vmatprep.subr.bf16.mxu1 %v12368_v56  ;;  %v800_v56 = vld [vmem:[#allocation5 + $0xb10] sm:$0xff] }
 0x269   : > { %4534 = vmatmul.mubr.bf16.gmra.mrb[40].mxu0 %v14748_v3 }
 0x26a   : > { %4986 = vmatmul.mubr.bf16.gmra.mrb[40].mxu1 %v14748_v3  ;;  %4603 = vmatpush1.bf16.msra.mxu0 %v12365_v61  ;;  %v12421_v61 = vcombine.low %v792_v47, %v796_v48  ;;  %v812_v3 = vld [vmem:[#allocation5 + $0xb70] sm:$0xff] }
 0x26b   : > { %5055 = vmatpush1.bf16.msra.mxu1 %v12367_v62  ;;  %4604 = vmatprep.subr.bf16.mxu0 %v12374_v63  ;;  %v12423_v62 = vcombine.low %v793_v49, %v797_v50  ;;  %v12430_v63 = vcombine.high %v800_v56, %v804_v57  ;;  %v14760_v47 = vld [vmem:[%s15373_s10 + $0x10] ss:$28 sps:$4 sm:$0xff]   ;;  %v849_v50 = vld [vmem:[#allocation5 + $0xc98] sm:$0xff] }
 0x26c   : > { %5056 = vmatprep.subr.bf16.mxu1 %v12376_v0  ;;  %4543 = vmatprep.mubr.bf16.mxu0 %v14749_v9  ;;  %v14755_v0 = vld [vmem:[%s15373_s10 + $0x15c] ss:$28 sps:$4 sm:$0xff]  }
 0x26d   : > { %4995 = vmatprep.mubr.bf16.mxu1 %v14749_v9  ;;  %v12440_v9 = vcombine.high %v809_v4, %v813_v5 }
 0x26e   : > { %4605 = vmatpush1.bf16.msra.mxu0 %v12373_v6  ;;  %v12429_v6 = vcombine.low %v800_v56, %v804_v57  ;;  %v896_v56 = vlaneseq  ;;  %v856_v57 = vld [vmem:[#allocation5 + $0xcd0] sm:$0xff] }
 0x26f   : > { %5057 = vmatpush1.bf16.msra.mxu1 %v12375_v7  ;;  %4606 = vmatprep.subr.bf16.mxu0 %v12382_v8  ;;  %v12431_v7 = vcombine.low %v801_v59, %v805_v60  ;;  %v12438_v8 = vcombine.high %v808_v2, %v812_v3  ;;  %v857_v60 = vld [vmem:[#allocation5 + $0xcd8] sm:$0xff] }
 0x270   : > { %5058 = vmatprep.subr.bf16.mxu1 %v12384_v10  ;;  %v816_v10 = vld [vmem:[#allocation5 + $0xb90] sm:$0xff] }
 0x271   : > { %4544 = vmatmul.mubr.bf16.gmra.mrb[44].mxu0 %v14750_v21 }
 0x272   : > { %4996 = vmatmul.mubr.bf16.gmra.mrb[44].mxu1 %v14750_v21  ;;  %4607 = vmatpush1.bf16.msra.mxu0 %v12381_v15  ;;  %v12437_v15 = vcombine.low %v808_v2, %v812_v3  ;;  %v828_v21 = vld [vmem:[#allocation5 + $0xbf0] sm:$0xff]  ;;  %v15499_v2 = vshrl.u32 %v896_v56, 7 }
 0x273   : > { %5059 = vmatpush1.bf16.msra.mxu1 %v12383_v16  ;;  %4608 = vmatprep.subr.bf16.mxu0 %v12390_v17  ;;  %v12439_v16 = vcombine.low %v809_v4, %v813_v5  ;;  %v12446_v17 = vcombine.high %v816_v10, %v820_v11  ;;  %v864_v3 = vld [vmem:[#allocation5 + $0xd10] sm:$0xff] }
 0x274   : > { %5060 = vmatprep.subr.bf16.mxu1 %v12392_v18  ;;  %4553 = vmatprep.mubr.bf16.mxu0 %v14751_v27  ;;  %v14757_v18 = vld [vmem:[%s15373_s10 + $0x194] ss:$28 sps:$4 sm:$0xff]   ;;  %17670 = vst [vmem:[#allocation20_spill] sm:$0xff] %v15499_v2 }
 0x275   : > { %5005 = vmatprep.mubr.bf16.mxu1 %v14751_v27  ;;  %v12456_v27 = vcombine.high %v825_v22, %v829_v23  ;;  %v868_v4 = vld [vmem:[#allocation5 + $0xd30] sm:$0xff] }
 0x276   : > { %4609 = vmatpush1.bf16.msra.mxu0 %v12389_v24  ;;  %v12445_v24 = vcombine.low %v816_v10, %v820_v11  ;;  %v12494_v10 = vcombine.high %v864_v3, %v868_v4 }
 0x277   : > { %5061 = vmatpush1.bf16.msra.mxu1 %v12391_v25  ;;  %4610 = vmatprep.subr.bf16.mxu0 %v12398_v26  ;;  %v12447_v25 = vcombine.low %v817_v13, %v821_v14  ;;  %v12454_v26 = vcombine.high %v824_v20, %v828_v21  ;;  %v15503_v13 = vld [vmem:[#allocation5 + $0xd50] sm:$0xff] }
 0x278   : > { %5062 = vmatprep.subr.bf16.mxu1 %v12400_v28  ;;  %v832_v28 = vld [vmem:[#allocation5 + $0xc10] sm:$0xff] }
 0x279   : > { %4554 = vmatmul.mubr.bf16.gmra.mrb[48].mxu0 %v14752_v39  ;;  %v12461_v40 = vcombine.low %v832_v28, %v836_v29  ;;  %v876_v14 = vld [vmem:[#allocation5 + $0xd70] sm:$0xff] }
 0x27a   : > { %5006 = vmatmul.mubr.bf16.gmra.mrb[48].mxu1 %v14752_v39  ;;  %4611 = vmatpush1.bf16.msra.mxu0 %v12397_v33  ;;  %v12453_v33 = vcombine.low %v824_v20, %v828_v21  ;;  %v844_v39 = vld [vmem:[#allocation5 + $0xc70] sm:$0xff]  ;;  %v15509_v20 = vld [vmem:[#allocation5 + $0xd78] sm:$0xff]  ;;  %v17521_v21 = vsub.s32 3, %v15499_v2 }
 0x27b   : > { %5063 = vmatpush1.bf16.msra.mxu1 %v12399_v34  ;;  %4612 = vmatprep.subr.bf16.mxu0 %v12406_v35  ;;  %v12455_v34 = vcombine.low %v825_v22, %v829_v23  ;;  %v12462_v35 = vcombine.high %v832_v28, %v836_v29  ;;  %v12469_v49 = vcombine.low %v840_v38, %v844_v39  ;;  %v15520_v28 = vld [vmem:[#allocation5 + $0xdb0] sm:$0xff] }
 0x27c   : > { %5064 = vmatprep.subr.bf16.mxu1 %v12408_v36  ;;  %4563 = vmatprep.mubr.bf16.mxu0 %v14753_v45  ;;  %v14759_v36 = vld [vmem:[%s15373_s10 + $0x14] ss:$28 sps:$4 sm:$0xff]   ;;  %v12493_v22 = vcombine.low %v864_v3, %v868_v4  ;;  %v12502_v23 = vcombine.high %v15503_v13, %v876_v14 }
 0x27d   : > { %5015 = vmatprep.mubr.bf16.mxu1 %v14753_v45  ;;  %v852_v45 = vld [vmem:[#allocation5 + $0xcb0] sm:$0xff] }
 0x27e   : > { %4613 = vmatpush1.bf16.msra.mxu0 %v12405_v42  ;;  %v845_v42 = vld [vmem:[#allocation5 + $0xc78] sm:$0xff]  ;;  %v15577_v3 = vld [vmem:[#allocation8 + $0x28] sm:$0xff] }
 0x27f   : > { %5065 = vmatpush1.bf16.msra.mxu1 %v12407_v43  ;;  %4614 = vmatprep.subr.bf16.mxu0 %v12414_v44  ;;  %v12470_v43 = vcombine.high %v840_v38, %v844_v39  ;;  %v848_v44 = vld [vmem:[#allocation5 + $0xc90] sm:$0xff]  ;;  %v12472_v48 = vcombine.high %v841_v41, %v845_v42 }
 0x280   : > { %5066 = vmatprep.subr.bf16.mxu1 %v12416_v46  ;;  %v12463_v46 = vcombine.low %v833_v31, %v837_v32  ;;  %v14765_v32 = vld [vmem:[%s15373_s10 + $0xbc] ss:$28 sps:$4 sm:$0xff]   ;;  %v15544_v38 = vld [vmem:[#allocation5 + $0xdf0] sm:$0xff] }
 0x281   : > { %4564 = vmatmul.mubr.bf16.gmra.mrb[52].mxu0 %v14754_v58 }
 0x282   : > { %5016 = vmatmul.mubr.bf16.gmra.mrb[52].mxu1 %v14754_v58  ;;  %4615 = vmatpush1.bf16.msra.mxu0 %v12413_v51  ;;  %v853_v51 = vld [vmem:[#allocation5 + $0xcb8] sm:$0xff]  ;;  %v860_v58 = vld [vmem:[#allocation5 + $0xcf0] sm:$0xff] }
 0x283   : > { %5067 = vmatpush1.bf16.msra.mxu1 %v12415_v52  ;;  %4616 = vmatprep.subr.bf16.mxu0 %v12422_v53  ;;  %v14761_v52 = vld [vmem:[%s15373_s10 + $0x4c] ss:$28 sps:$4 sm:$0xff]   ;;  %v12478_v53 = vcombine.high %v848_v44, %v852_v45  ;;  %v12480_v59 = vcombine.high %v849_v50, %v853_v51 }
 0x284   : > { %5068 = vmatprep.subr.bf16.mxu1 %v12424_v55  ;;  %4573 = vmatprep.mubr.bf16.mxu0 %v14755_v0  ;;  %v12471_v55 = vcombine.low %v841_v41, %v845_v42  ;;  %v15550_v42 = vld [vmem:[#allocation5 + $0xdd8] sm:$0xff] }
 0x285   : > { %5025 = vmatprep.mubr.bf16.mxu1 %v14755_v0  ;;  %v12479_v0 = vcombine.low %v849_v50, %v853_v51 }
 0x286   : > { %4617 = vmatpush1.bf16.msra.mxu0 %v12421_v61  ;;  %v861_v61 = vld [vmem:[#allocation5 + $0xcf8] sm:$0xff] }
 0x287   : > { %5069 = vmatpush1.bf16.msra.mxu1 %v12423_v62  ;;  %4618 = vmatprep.subr.bf16.mxu0 %v12430_v63  ;;  %v12477_v62 = vcombine.low %v848_v44, %v852_v45  ;;  %v12486_v63 = vcombine.high %v856_v57, %v860_v58  ;;  %v12488_v5 = vcombine.high %v857_v60, %v861_v61 }
 0x288   : > { %5070 = vmatprep.subr.bf16.mxu1 %v12432_v1  ;;  %v14762_v1 = vld [vmem:[%s15373_s10 + $0x48] ss:$28 sps:$4 sm:$0xff]   ;;  %v12487_v11 = vcombine.low %v857_v60, %v861_v61 }
 0x289   : > { %4574 = vmatmul.mubr.bf16.gmra.mrb[56].mxu0 %v14756_v12 }
 0x28a   : > { %5026 = vmatmul.mubr.bf16.gmra.mrb[56].mxu1 %v14756_v12  ;;  %4619 = vmatpush1.bf16.msra.mxu0 %v12429_v6  ;;  %v14763_v6 = vld [vmem:[%s15373_s10 + $0x84] ss:$28 sps:$4 sm:$0xff]   ;;  %v17524_v12 = vsub.s32 0, %v15499_v2 }
 0x28b   : > { %5071 = vmatpush1.bf16.msra.mxu1 %v12431_v7  ;;  %4620 = vmatprep.subr.bf16.mxu0 %v12438_v8  ;;  %v865_v7 = vld [vmem:[#allocation5 + $0xd18] sm:$0xff] }
 0x28c   : > { %5072 = vmatprep.subr.bf16.mxu1 %v12440_v9  ;;  %4583 = vmatprep.mubr.bf16.mxu0 %v14757_v18  ;;  %v869_v8 = vld [vmem:[#allocation5 + $0xd38] sm:$0xff]  ;;  %v12485_v9 = vcombine.low %v856_v57, %v860_v58  ;;  %v15567_v57 = vld [vmem:[#allocation8] sm:$0xff] }
 0x28d   : > { %5035 = vmatprep.mubr.bf16.mxu1 %v14757_v18  ;;  %v17522_v18 = vsub.s32 1, %v15499_v2  ;;  %v15569_v58 = vld [vmem:[#allocation8 + $0x20] sm:$0xff] }
 0x28e   : > { %4621 = vmatpush1.bf16.msra.mxu0 %v12437_v15  ;;  %v12496_v15 = vcombine.high %v865_v7, %v869_v8 }
 0x28f   : > { %5073 = vmatpush1.bf16.msra.mxu1 %v12439_v16  ;;  %4622 = vmatprep.subr.bf16.mxu0 %v12446_v17  ;;  %v894_v16 = vld [vmem:[#allocation7] sm:$0xff]  ;;  %v17523_v17 = vsub.s32 2, %v15499_v2 }
 0x290   : > { %5074 = vmatprep.subr.bf16.mxu1 %v12448_v19  ;;  %v15507_v19 = vld [vmem:[#allocation5 + $0xd58] sm:$0xff]  ;;  %v15530_v31 = vrot.slane %v894_v16, %v17522_v18 }
 0x291   : > { %4584 = vmatmul.mubr.bf16.gmra.mrb[60].mxu0 %v14758_v30  ;;  %v12504_v29 = vcombine.high %v15507_v19, %v15509_v20  ;;  %v12503_v41 = vcombine.low %v15507_v19, %v15509_v20  ;;  %v14767_v19 = vld [vmem:[%s15373_s10 + $0xf4] ss:$28 sps:$4 sm:$0xff]   ;;  %v12522_v20 = vcombine.high %v15567_v57, %v15569_v58 }
 0x292   : > { %5036 = vmatmul.mubr.bf16.gmra.mrb[60].mxu1 %v14758_v30  ;;  %4623 = vmatpush1.bf16.msra.mxu0 %v12445_v24  ;;  %v12495_v24 = vcombine.low %v865_v7, %v869_v8  ;;  %v15526_v30 = vrot.slane %v894_v16, %v17523_v17 }
 0x293   : > { %5075 = vmatpush1.bf16.msra.mxu1 %v12447_v25  ;;  %4624 = vmatprep.subr.bf16.mxu0 %v12454_v26  ;;  %v14764_v25 = vld [vmem:[%s15373_s10 + $0x80] ss:$28 sps:$4 sm:$0xff]   ;;  %v15516_v26 = vrot.slane %v894_v16, %v17524_v12 }
 0x294   : > { %5076 = vmatprep.subr.bf16.mxu1 %v12456_v27  ;;  %4626 = vmatprep.mubr.bf16.mxu0 %v14759_v36  ;;  %v15518_v27 = vld [vmem:[#allocation5 + $0xd90] sm:$0xff] }
 0x295   : > { %5078 = vmatprep.mubr.bf16.mxu1 %v14759_v36  ;;  %v12501_v36 = vcombine.low %v15503_v13, %v876_v14  ;;  %v14766_v13 = vld [vmem:[%s15373_s10 + $0xb8] ss:$28 sps:$4 sm:$0xff]  }
 0x296   : > { %4625 = vmatpush1.bf16.msra.mxu0 %v12453_v33  ;;  %v15533_v33 = vld [vmem:[#allocation5 + $0xd98] sm:$0xff] }
 0x297   : > { %5077 = vmatpush1.bf16.msra.mxu1 %v12455_v34  ;;  %4707 = vmatprep.subr.bf16.mxu0 %v12462_v35  ;;  %v15535_v34 = vld [vmem:[#allocation5 + $0xdb8] sm:$0xff]  ;;  %v15539_v35 = vrot.slane %v894_v16, %v17521_v21 }
 0x298   : > { %5159 = vmatprep.subr.bf16.mxu1 %v12464_v37  ;;  %v15542_v37 = vld [vmem:[#allocation5 + $0xdd0] sm:$0xff] }
 0x299   : > { %4627 = vmatmul.mubr.bf16.vlgmr.msra.gmra.mrb[32].mxu0 %v14760_v47  ;;  %v12518_v56 = vcombine.high %v15542_v37, %v15544_v38 }
 0x29a   : > { %5079 = vmatmul.mubr.bf16.vlgmr.msra.gmra.mrb[32].mxu1 %v14760_v47  ;;  %4708 = vmatpush1.bf16.msra.mxu0 %v12461_v40  ;;  %v12510_v40 = vcombine.high %v15518_v27, %v15520_v28  ;;  %v12509_v47 = vcombine.low %v15518_v27, %v15520_v28 }
 0x29b   : > { %4636 = vmatprep.mubr.bf16.mxu0 %v14761_v52  ;;  %5088 = vmatprep.mubr.bf16.mxu1 %v14761_v52 }
 0x29c   : > { %4709 = vmatprep.subr.bf16.mxu0 %v12470_v43  ;;  %5160 = vmatpush1.bf16.msra.mxu1 %v12463_v46  ;;  %v15552_v43 = vld [vmem:[#allocation5 + $0xdf8] sm:$0xff] }
 0x29d   : > { %5161 = vmatprep.subr.bf16.mxu1 %v12472_v48  ;;  %v12511_v48 = vcombine.low %v15533_v33, %v15535_v34  ;;  %v12520_v14 = vcombine.high %v15550_v42, %v15552_v43 }
 0x29e   : > { %4710 = vmatpush1.bf16.msra.mxu0 %v12469_v49  ;;  %v12512_v49 = vcombine.high %v15533_v33, %v15535_v34 }
 0x29f   : > { %4711 = vmatprep.subr.bf16.mxu0 %v12478_v53 }
 0x2a0   : > { %5162 = vmatpush1.bf16.msra.mxu1 %v12471_v55  ;;  %v12517_v55 = vcombine.low %v15542_v37, %v15544_v38  ;;  %v14768_v37 = vld [vmem:[%s15373_s10 + $0xf0] ss:$28 sps:$4 sm:$0xff]  }
 0x2a1   : > { %4637 = vmatmul.mubr.bf16.gmra.mrb[36].mxu0 %v14762_v1  ;;  %5163 = vmatprep.subr.bf16.mxu1 %v12480_v59 }
 0x2a2   : > { %5089 = vmatmul.mubr.bf16.gmra.mrb[36].mxu1 %v14762_v1  ;;  %4646 = vmatprep.mubr.bf16.mxu0 %v14763_v6  ;;  %v15575_v1 = vld [vmem:[#allocation8 + $0x8] sm:$0xff] }
 0x2a3   : > { %5098 = vmatprep.mubr.bf16.mxu1 %v14763_v6  ;;  %4712 = vmatpush1.bf16.msra.mxu0 %v12477_v62 }
 0x2a4   : > { %4713 = vmatprep.subr.bf16.mxu0 %v12486_v63  ;;  %5164 = vmatpush1.bf16.msra.mxu1 %v12479_v0  ;;  %v12519_v0 = vcombine.low %v15550_v42, %v15552_v43 }
 0x2a5   : > { %5165 = vmatprep.subr.bf16.mxu1 %v12488_v5 }
 0x2a7   : > { %4714 = vmatpush1.bf16.msra.mxu0 %v12485_v9 }
 0x2a8   : > { %4715 = vmatprep.subr.bf16.mxu0 %v12494_v10  ;;  %5166 = vmatpush1.bf16.msra.mxu1 %v12487_v11 }
 0x2a9   : > { %4647 = vmatmul.mubr.bf16.gmra.mrb[40].mxu0 %v14764_v25  ;;  %5167 = vmatprep.subr.bf16.mxu1 %v12496_v15 }
 0x2aa   : > { %5099 = vmatmul.mubr.bf16.gmra.mrb[40].mxu1 %v14764_v25  ;;  %4656 = vmatprep.mubr.bf16.mxu0 %v14765_v32 }
 0x2ab   : > { %5108 = vmatprep.mubr.bf16.mxu1 %v14765_v32  ;;  %4716 = vmatpush1.bf16.msra.mxu0 %v12493_v22  ;;  %v12524_v22 = vcombine.high %v15575_v1, %v15577_v3 }
 0x2ac   : > { %v3837_v39 = vpop.f32.mrb[0].mxu0  ;;  %4717 = vmatprep.subr.bf16.mxu0 %v12502_v23  ;;  %5168 = vmatpush1.bf16.msra.mxu1 %v12495_v24 }
 0x2ad   : > { %v13376_v44 = vadd.f32 %v3837_v39, %v15516_v26  ;;  %v4289_v45 = vpop.f32.mrb[0].mxu1  ;;  %v3839_v46 = vpop.f32.mrb[1].mxu0  ;;  %5169 = vmatprep.subr.bf16.mxu1 %v12504_v29 }
 0x2ae   : > { %v13408_v50 = vadd.f32 %v4289_v45, %v15526_v30  ;;  %v13377_v51 = vadd.f32 %v3839_v46, %v15530_v31  ;;  %v4291_v52 = vpop.f32.mrb[1].mxu1  ;;  %v3841_v53 = vpop.f32.mrb[2].mxu0 }
 0x2af   : > { %v5272_v59 = vmul.f32 0.2, %v13376_v44  ;;  %v13409_v60 = vadd.f32 %v4291_v52, %v15539_v35  ;;  %v13378_v61 = vadd.f32 %v3841_v53, %v15516_v26  ;;  %v4293_v62 = vpop.f32.mrb[2].mxu1  ;;  %v3843_v63 = vpop.f32.mrb[3].mxu0  ;;  %4718 = vmatpush1.bf16.msra.mxu0 %v12501_v36 }
 0x2b0   : > { %v5274_v4 = vmul.f32 0.2, %v13408_v50  ;;  %v5273_v5 = vmul.f32 0.2, %v13377_v51  ;;  %v13410_v6 = vadd.f32 %v4293_v62, %v15526_v30  ;;  %v13379_v7 = vadd.f32 %v3843_v63, %v15530_v31  ;;  %v4295_v8 = vpop.f32.mrb[3].mxu1  ;;  %4719 = vmatprep.subr.bf16.mxu0 %v12510_v40  ;;  %5170 = vmatpush1.bf16.msra.mxu1 %v12503_v41 }
 0x2b1   : > { %v5275_v9 = vmul.f32 0.2, %v13409_v60  ;;  %v5280_v10 = vmul.f32 0.2, %v13378_v61  ;;  %v13411_v11 = vadd.f32 %v4295_v8, %v15539_v35  ;;  %4657 = vmatmul.mubr.bf16.gmra.mrb[44].mxu0 %v14766_v13  ;;  %5171 = vmatprep.subr.bf16.mxu1 %v12512_v49  ;;  %v5400_v23 = vmax.f32 %v13376_v44, %v5272_v59  ;;  %v15606_v59 = vld [vmem:[#allocation8 + $0x40] sm:$0xff] }
 0x2b2   : > { %v5282_v15 = vmul.f32 0.2, %v13410_v6  ;;  %v5281_v16 = vmul.f32 0.2, %v13379_v7  ;;  %5109 = vmatmul.mubr.bf16.gmra.mrb[44].mxu1 %v14766_v13  ;;  %4666 = vmatprep.mubr.bf16.mxu0 %v14767_v19  ;;  %v5402_v24 = vmax.f32 %v13408_v50, %v5274_v4  ;;  %v5401_v28 = vmax.f32 %v13377_v51, %v5273_v5  ;;  %v15610_v5 = vld [vmem:[#allocation8 + $0x60] sm:$0xff] }
 0x2b3   : > { %v5408_v25 = vmax.f32 %v13378_v61, %v5280_v10  ;;  %v5283_v27 = vmul.f32 0.2, %v13411_v11  ;;  %5118 = vmatprep.mubr.bf16.mxu1 %v14767_v19  ;;  %4720 = vmatpush1.bf16.msra.mxu0 %v12509_v47  ;;  %v5403_v34 = vmax.f32 %v13409_v60, %v5275_v9  ;;  %v14769_v9 = vld [vmem:[%s15373_s10 + $0x12c] ss:$28 sps:$4 sm:$0xff]  }
 0x2b4   : > { %v5410_v29 = vmax.f32 %v13410_v6, %v5282_v15  ;;  %v5409_v32 = vmax.f32 %v13379_v7, %v5281_v16  ;;  %v3847_v33 = vpop.f32.mrb[4].mxu0  ;;  %4721 = vmatprep.subr.bf16.mxu0 %v12518_v56  ;;  %5172 = vmatpush1.bf16.msra.mxu1 %v12511_v48 }
 0x2b5   : > { %v15590_v36 = vpack.c.bf16 %v5408_v25, %v5400_v23  ;;  %v5411_v39 = vmax.f32 %v13411_v11, %v5283_v27  ;;  %v13380_v40 = vadd.f32 %v3847_v33, %v15516_v26  ;;  %v4299_v41 = vpop.f32.mrb[4].mxu1  ;;  %v3849_v42 = vpop.f32.mrb[5].mxu0  ;;  %5173 = vmatprep.subr.bf16.mxu1 %v12520_v14 }
 0x2b6   : > { %v15593_v43 = vpack.c.bf16 %v5410_v29, %v5402_v24  ;;  %v15595_v44 = vpack.c.bf16 %v5409_v32, %v5401_v28  ;;  %v13412_v45 = vadd.f32 %v4299_v41, %v15526_v30  ;;  %v13381_v46 = vadd.f32 %v3849_v42, %v15530_v31  ;;  %v4301_v47 = vpop.f32.mrb[5].mxu1  ;;  %v3851_v49 = vpop.f32.mrb[6].mxu0 }
 0x2b7   : > { %17671 = vst [vmem:[#allocation21_spill] sm:$0xff] %v15590_v36  ;;  %v15599_v48 = vpack.c.bf16 %v5411_v39, %v5403_v34  ;;  %v5288_v50 = vmul.f32 0.2, %v13380_v40  ;;  %v13413_v51 = vadd.f32 %v4301_v47, %v15539_v35  ;;  %v13382_v52 = vadd.f32 %v3851_v49, %v15516_v26  ;;  %v4303_v53 = vpop.f32.mrb[6].mxu1  ;;  %v3853_v56 = vpop.f32.mrb[7].mxu0  ;;  %4722 = vmatpush1.bf16.msra.mxu0 %v12517_v55 }
 0x2b8   : > { %17672 = vst [vmem:[#allocation22_spill] sm:$0xff] %v15593_v43  ;;  %17673 = vst [vmem:[#allocation23_spill] sm:$0xff] %v15595_v44  ;;  %v5290_v60 = vmul.f32 0.2, %v13412_v45  ;;  %v5289_v61 = vmul.f32 0.2, %v13381_v46  ;;  %v13414_v62 = vadd.f32 %v4303_v53, %v15526_v30  ;;  %v13383_v63 = vadd.f32 %v3853_v56, %v15530_v31  ;;  %5174 = vmatpush1.bf16.msra.mxu1 %v12519_v0 }
 0x2b9   : > { %17674 = vst [vmem:[#allocation24_spill] sm:$0xff] %v15599_v48  ;;  %v4305_v4 = vpop.f32.mrb[7].mxu1  ;;  %8706 = vmatprep.subr.bf16.mxu0 %v12522_v20  ;;  %v5291_v6 = vmul.f32 0.2, %v13413_v51  ;;  %v5296_v7 = vmul.f32 0.2, %v13382_v52  ;;  %4667 = vmatmul.mubr.bf16.gmra.mrb[48].mxu0 %v14768_v37  ;;  %v5416_v11 = vmax.f32 %v13380_v40, %v5288_v50 }
 0x2ba   : > { %v13415_v8 = vadd.f32 %v4305_v4, %v15539_v35  ;;  %9158 = vmatprep.subr.bf16.mxu1 %v12524_v22  ;;  %v5298_v38 = vmul.f32 0.2, %v13414_v62  ;;  %v5297_v55 = vmul.f32 0.2, %v13383_v63  ;;  %5119 = vmatmul.mubr.bf16.gmra.mrb[48].mxu1 %v14768_v37  ;;  %v5418_v16 = vmax.f32 %v13412_v45, %v5290_v60  ;;  %v15630_v45 = vld [vmem:[#allocation8 + $0x48] sm:$0xff]  ;;  %v15638_v56 = vld [vmem:[#allocation8 + $0x80] sm:$0xff] }
 0x2bb   : > { %4676 = vmatprep.mubr.bf16.mxu0 %v14769_v9  ;;  %v5424_v13 = vmax.f32 %v13382_v52, %v5296_v7  ;;  %5128 = vmatprep.mubr.bf16.mxu1 %v14769_v9  ;;  %v5417_v19 = vmax.f32 %v13381_v46, %v5289_v61  ;;  %v5419_v24 = vmax.f32 %v13413_v51, %v5291_v6  ;;  %v15636_v53 = vld [vmem:[#allocation8 + $0x68] sm:$0xff]  ;;  %v15642_v6 = vld [vmem:[#allocation8 + $0xa0] sm:$0xff] }
 0x2bc   : > { %v5299_v14 = vmul.f32 0.2, %v13415_v8  ;;  %v5426_v20 = vmax.f32 %v13414_v62, %v5298_v38  ;;  %v5425_v22 = vmax.f32 %v13383_v63, %v5297_v55  ;;  %v3857_v23 = vpop.f32.mrb[8].mxu0  ;;  %v14770_v38 = vld [vmem:[%s15373_s10 + $0x128] ss:$28 sps:$4 sm:$0xff]  }
 0x2bd   : > { %v15621_v25 = vpack.c.bf16 %v5424_v13, %v5416_v11  ;;  %v13384_v28 = vadd.f32 %v3857_v23, %v15516_v26  ;;  %v4309_v29 = vpop.f32.mrb[8].mxu1  ;;  %v3859_v32 = vpop.f32.mrb[9].mxu0  ;;  %v14771_v13 = vld [vmem:[%s15373_s10 + $0x164] ss:$28 sps:$4 sm:$0xff]  }
 0x2be   : > { %v5427_v27 = vmax.f32 %v13415_v8, %v5299_v14  ;;  %v15624_v33 = vpack.c.bf16 %v5426_v20, %v5418_v16  ;;  %v15626_v34 = vpack.c.bf16 %v5425_v22, %v5417_v19  ;;  %v13416_v39 = vadd.f32 %v4309_v29, %v15526_v30  ;;  %v4311_v41 = vpop.f32.mrb[9].mxu1  ;;  %v3861_v42 = vpop.f32.mrb[10].mxu0 }
 0x2bf   : > { %17675 = vst [vmem:[#allocation25_spill] sm:$0xff] %v15621_v25  ;;  %v13385_v40 = vadd.f32 %v3859_v32, %v15530_v31  ;;  %v5304_v47 = vmul.f32 0.2, %v13384_v28  ;;  %v13417_v49 = vadd.f32 %v4311_v41, %v15539_v35  ;;  %v13386_v50 = vadd.f32 %v3861_v42, %v15516_v26  ;;  %v4313_v51 = vpop.f32.mrb[10].mxu1  ;;  %v3863_v52 = vpop.f32.mrb[11].mxu0 }
 0x2c0   : > { %17676 = vst [vmem:[#allocation26_spill] sm:$0xff] %v15624_v33  ;;  %17677 = vst [vmem:[#allocation27_spill] sm:$0xff] %v15626_v34  ;;  %v15632_v46 = vpack.c.bf16 %v5427_v27, %v5419_v24  ;;  %v5306_v60 = vmul.f32 0.2, %v13416_v39  ;;  %v13418_v62 = vadd.f32 %v4313_v51, %v15526_v30  ;;  %v13387_v63 = vadd.f32 %v3863_v52, %v15530_v31  ;;  %v4315_v4 = vpop.f32.mrb[11].mxu1 }
 0x2c1   : > { %v5305_v61 = vmul.f32 0.2, %v13385_v40  ;;  %v5307_v7 = vmul.f32 0.2, %v13417_v49  ;;  %v5312_v8 = vmul.f32 0.2, %v13386_v50  ;;  %v13419_v37 = vadd.f32 %v4315_v4, %v15539_v35  ;;  %4677 = vmatmul.mubr.bf16.gmra.mrb[52].mxu0 %v14770_v38 }
 0x2c2   : > { %17678 = vst [vmem:[#allocation28_spill] sm:$0xff] %v15632_v46  ;;  %v5314_v9 = vmul.f32 0.2, %v13418_v62  ;;  %v5313_v11 = vmul.f32 0.2, %v13387_v63  ;;  %5129 = vmatmul.mubr.bf16.gmra.mrb[52].mxu1 %v14770_v38  ;;  %4686 = vmatprep.mubr.bf16.mxu0 %v14771_v13  ;;  %v5432_v19 = vmax.f32 %v13384_v28, %v5304_v47  ;;  %v5434_v24 = vmax.f32 %v13416_v39, %v5306_v60 }
 0x2c3   : > { %v5440_v20 = vmax.f32 %v13386_v50, %v5312_v8  ;;  %v5315_v22 = vmul.f32 0.2, %v13419_v37  ;;  %5138 = vmatprep.mubr.bf16.mxu1 %v14771_v13  ;;  %v5433_v27 = vmax.f32 %v13385_v40, %v5305_v61  ;;  %v5435_v42 = vmax.f32 %v13417_v49, %v5307_v7  ;;  %v15664_v61 = vld [vmem:[#allocation8 + $0x88] sm:$0xff] }
 0x2c4   : > { %v5442_v29 = vmax.f32 %v13418_v62, %v5314_v9  ;;  %v5441_v32 = vmax.f32 %v13387_v63, %v5313_v11  ;;  %v3867_v41 = vpop.f32.mrb[12].mxu0  ;;  %v15670_v9 = vld [vmem:[#allocation8 + $0xa8] sm:$0xff]  ;;  %v15672_v11 = vld [vmem:[#allocation8 + $0xc0] sm:$0xff] }
 0x2c5   : > { %v15655_v51 = vpack.c.bf16 %v5440_v20, %v5432_v19  ;;  %v5443_v52 = vmax.f32 %v13419_v37, %v5315_v22  ;;  %v13388_v4 = vadd.f32 %v3867_v41, %v15516_v26  ;;  %v4319_v38 = vpop.f32.mrb[12].mxu1  ;;  %v3869_v21 = vpop.f32.mrb[13].mxu0  ;;  %v14772_v41 = vld [vmem:[%s15373_s10 + $0x160] ss:$28 sps:$4 sm:$0xff]  }
 0x2c6   : > { %v15658_v28 = vpack.c.bf16 %v5442_v29, %v5434_v24  ;;  %v15660_v47 = vpack.c.bf16 %v5441_v32, %v5433_v27  ;;  %v13420_v50 = vadd.f32 %v4319_v38, %v15526_v30  ;;  %v13389_v39 = vadd.f32 %v3869_v21, %v15530_v31  ;;  %v4321_v40 = vpop.f32.mrb[13].mxu1  ;;  %v3871_v60 = vpop.f32.mrb[14].mxu0  ;;  %v15676_v24 = vld [vmem:[#allocation8 + $0xe0] sm:$0xff] }
 0x2c7   : > { %17679 = vst [vmem:[#allocation29_spill] sm:$0xff] %v15655_v51  ;;  %v15666_v49 = vpack.c.bf16 %v5443_v52, %v5435_v42  ;;  %v5320_v62 = vmul.f32 0.2, %v13388_v4  ;;  %v13421_v63 = vadd.f32 %v4321_v40, %v15539_v35  ;;  %v13390_v7 = vadd.f32 %v3871_v60, %v15516_v26  ;;  %v4323_v8 = vpop.f32.mrb[14].mxu1  ;;  %v3873_v37 = vpop.f32.mrb[15].mxu0 }
 0x2c8   : > { %17680 = vst [vmem:[#allocation30_spill] sm:$0xff] %v15658_v28  ;;  %17681 = vst [vmem:[#allocation31_spill] sm:$0xff] %v15660_v47  ;;  %v5322_v21 = vmul.f32 0.2, %v13420_v50  ;;  %v5321_v13 = vmul.f32 0.2, %v13389_v39  ;;  %v13422_v19 = vadd.f32 %v4323_v8, %v15526_v30  ;;  %v13391_v20 = vadd.f32 %v3873_v37, %v15530_v31 }
 0x2c9   : > { %17682 = vst [vmem:[#allocation32_spill] sm:$0xff] %v15666_v49  ;;  %v4325_v22 = vpop.f32.mrb[15].mxu1  ;;  %v5323_v27 = vmul.f32 0.2, %v13421_v63  ;;  %v5328_v29 = vmul.f32 0.2, %v13390_v7  ;;  %4687 = vmatmul.mubr.bf16.gmra.mrb[56].mxu0 %v14772_v41  ;;  %v5448_v37 = vmax.f32 %v13388_v4, %v5320_v62 }
 0x2ca   : > { %v13423_v32 = vadd.f32 %v4325_v22, %v15539_v35  ;;  %v5330_v52 = vmul.f32 0.2, %v13422_v19  ;;  %v5329_v38 = vmul.f32 0.2, %v13391_v20  ;;  %5139 = vmatmul.mubr.bf16.gmra.mrb[56].mxu1 %v14772_v41  ;;  %v14773_v40 = vld [vmem:[%s15373_s10 + $0x19c] ss:$28 sps:$4 sm:$0xff]   ;;  %v5450_v12 = vmax.f32 %v13420_v50, %v5322_v21 }
 0x2cb   : > { %4696 = vmatprep.mubr.bf16.mxu0 %v14773_v40  ;;  %v5456_v18 = vmax.f32 %v13390_v7, %v5328_v29  ;;  %5148 = vmatprep.mubr.bf16.mxu1 %v14773_v40  ;;  %v5449_v42 = vmax.f32 %v13389_v39, %v5321_v13  ;;  %v5451_v55 = vmax.f32 %v13421_v63, %v5323_v27  ;;  %v15698_v13 = vld [vmem:[#allocation8 + $0xc8] sm:$0xff] }
 0x2cc   : > { %v5331_v17 = vmul.f32 0.2, %v13423_v32  ;;  %v5458_v23 = vmax.f32 %v13422_v19, %v5330_v52  ;;  %v5457_v14 = vmax.f32 %v13391_v20, %v5329_v38  ;;  %v3877_v41 = vpop.f32.mrb[16].mxu0  ;;  %v15706_v20 = vld [vmem:[#allocation8 + $0x100] sm:$0xff]  ;;  %v14774_v40 = vld [vmem:[%s15373_s10 + $0x198] ss:$28 sps:$4 sm:$0xff]  }
 0x2cd   : > { %v15689_v16 = vpack.c.bf16 %v5456_v18, %v5448_v37  ;;  %v13392_v60 = vadd.f32 %v3877_v41, %v15516_v26  ;;  %v4329_v0 = vpop.f32.mrb[16].mxu1  ;;  %v3879_v8 = vpop.f32.mrb[17].mxu0 }
 0x2ce   : > { %v5459_v15 = vmax.f32 %v13423_v32, %v5331_v17  ;;  %v15692_v4 = vpack.c.bf16 %v5458_v23, %v5450_v12  ;;  %v15694_v62 = vpack.c.bf16 %v5457_v14, %v5449_v42  ;;  %v13424_v7 = vadd.f32 %v4329_v0, %v15526_v30  ;;  %v4331_v39 = vpop.f32.mrb[17].mxu1  ;;  %v3881_v21 = vpop.f32.mrb[18].mxu0  ;;  %v15704_v14 = vld [vmem:[#allocation8 + $0xe8] sm:$0xff] }
 0x2cf   : > { %17683 = vst [vmem:[#allocation33_spill] sm:$0xff] %v15689_v16  ;;  %v13393_v50 = vadd.f32 %v3879_v8, %v15530_v31  ;;  %v5336_v18 = vmul.f32 0.2, %v13392_v60  ;;  %v13425_v17 = vadd.f32 %v4331_v39, %v15539_v35  ;;  %v13394_v19 = vadd.f32 %v3881_v21, %v15516_v26  ;;  %v4333_v12 = vpop.f32.mrb[18].mxu1  ;;  %v3883_v23 = vpop.f32.mrb[19].mxu0 }
 0x2d0   : > { %17684 = vst [vmem:[#allocation34_spill] sm:$0xff] %v15692_v4  ;;  %17685 = vst [vmem:[#allocation35_spill] sm:$0xff] %v15694_v62  ;;  %v15700_v63 = vpack.c.bf16 %v5459_v15, %v5451_v55  ;;  %v5338_v0 = vmul.f32 0.2, %v13424_v7  ;;  %v13426_v29 = vadd.f32 %v4333_v12, %v15526_v30  ;;  %v13395_v32 = vadd.f32 %v3883_v23, %v15530_v31  ;;  %v4335_v15 = vpop.f32.mrb[19].mxu1  ;;  %v15710_v55 = vld [vmem:[#allocation8 + $0x120] sm:$0xff] }
 0x2d1   : > { %v5337_v27 = vmul.f32 0.2, %v13393_v50  ;;  %v5339_v42 = vmul.f32 0.2, %v13425_v17  ;;  %v5344_v52 = vmul.f32 0.2, %v13394_v19  ;;  %v13427_v38 = vadd.f32 %v4335_v15, %v15539_v35  ;;  %4697 = vmatmul.mubr.bf16.gmra.mrb[60].mxu0 %v14774_v40 }
 0x2d2   : > { %17686 = vst [vmem:[#allocation36_spill] sm:$0xff] %v15700_v63  ;;  %v5346_v37 = vmul.f32 0.2, %v13426_v29  ;;  %v5345_v41 = vmul.f32 0.2, %v13395_v32  ;;  %5149 = vmatmul.mubr.bf16.gmra.mrb[60].mxu1 %v14774_v40  ;;  %4739 = vmatprep.mubr.bf16.mxu0 %v17531_v54  ;;  %v5464_v12 = vmax.f32 %v13392_v60, %v5336_v18  ;;  %v5466_v8 = vmax.f32 %v13424_v7, %v5338_v0 }
 0x2d3   : > { %v5472_v23 = vmax.f32 %v13394_v19, %v5344_v52  ;;  %v5347_v22 = vmul.f32 0.2, %v13427_v38  ;;  %5191 = vmatprep.mubr.bf16.mxu1 %v17531_v54  ;;  %v5465_v10 = vmax.f32 %v13393_v50, %v5337_v27  ;;  %v5467_v63 = vmax.f32 %v13425_v17, %v5339_v42 }
 0x2d4   : > { %v5474_v2 = vmax.f32 %v13426_v29, %v5346_v37  ;;  %v5473_v40 = vmax.f32 %v13395_v32, %v5345_v41  ;;  %v3887_v4 = vpop.f32.mrb[20].mxu0 }
 0x2d5   : > { %v15724_v28 = vpack.c.bf16 %v5472_v23, %v5464_v12  ;;  %v5475_v39 = vmax.f32 %v13427_v38, %v5347_v22  ;;  %v13396_v49 = vadd.f32 %v3887_v4, %v15516_v26  ;;  %v4339_v21 = vpop.f32.mrb[20].mxu1  ;;  %v3889_v60 = vpop.f32.mrb[21].mxu0  ;;  %v14775_v12 = vld [vmem:[%s15373_s10 + $0x18] ss:$28 sps:$4 sm:$0xff]   ;;  %v17692_v23 = vcombine.low %v15575_v1, %v15577_v3 }
 0x2d6   : > { %v15727_v18 = vpack.c.bf16 %v5474_v2, %v5466_v8  ;;  %v15729_v19 = vpack.c.bf16 %v5473_v40, %v5465_v10  ;;  %v13428_v52 = vadd.f32 %v4339_v21, %v15526_v30  ;;  %v13397_v7 = vadd.f32 %v3889_v60, %v15530_v31  ;;  %v4341_v50 = vpop.f32.mrb[21].mxu1  ;;  %v3891_v0 = vpop.f32.mrb[22].mxu0  ;;  %v15737_v2 = vld [vmem:[#allocation8 + $0x108] sm:$0xff] }
 0x2d7   : > { %17687 = vst [vmem:[#allocation37_spill] sm:$0xff] %v15724_v28  ;;  %v15733_v27 = vpack.c.bf16 %v5475_v39, %v5467_v63  ;;  %v5352_v17 = vmul.f32 0.2, %v13396_v49  ;;  %v13429_v22 = vadd.f32 %v4341_v50, %v15539_v35  ;;  %v13398_v4 = vadd.f32 %v3891_v0, %v15516_v26  ;;  %v4343_v29 = vpop.f32.mrb[22].mxu1  ;;  %v3893_v32 = vpop.f32.mrb[23].mxu0  ;;  %v15739_v10 = vld [vmem:[#allocation8 + $0x128] sm:$0xff] }
 0x2d8   : > { %17688 = vst [vmem:[#allocation38_spill] sm:$0xff] %v15727_v18  ;;  %17689 = vst [vmem:[#allocation39_spill] sm:$0xff] %v15729_v19  ;;  %v5354_v42 = vmul.f32 0.2, %v13428_v52  ;;  %v5353_v38 = vmul.f32 0.2, %v13397_v7  ;;  %v13430_v8 = vadd.f32 %v4343_v29, %v15526_v30  ;;  %v13399_v37 = vadd.f32 %v3893_v32, %v15530_v31 }
 0x2d9   : > { %17690 = vst [vmem:[#allocation40_spill] sm:$0xff] %v15733_v27  ;;  %v4345_v63 = vpop.f32.mrb[23].mxu1  ;;  %v5355_v41 = vmul.f32 0.2, %v13429_v22  ;;  %v5360_v39 = vmul.f32 0.2, %v13398_v4  ;;  %4740 = vmatmul.mubr.bf16.vlgmr.msra.gmra.mrb[32].mxu0 %v14775_v12  ;;  %v17691_v50 = vcombine.low %v15567_v57, %v15569_v58  ;;  %v5480_v32 = vmax.f32 %v13396_v49, %v5352_v17 }
 0x2da   : > { %v13431_v21 = vadd.f32 %v4345_v63, %v15539_v35  ;;  %v5362_v40 = vmul.f32 0.2, %v13430_v8  ;;  %v5361_v60 = vmul.f32 0.2, %v13399_v37  ;;  %5192 = vmatmul.mubr.bf16.vlgmr.msra.gmra.mrb[32].mxu1 %v14775_v12  ;;  %v5482_v63 = vmax.f32 %v13428_v52, %v5354_v42 }
 0x2db   : > { %8707 = vmatpush1.bf16.msra.mxu0 %v17691_v50  ;;  %v5488_v15 = vmax.f32 %v13398_v4, %v5360_v39  ;;  %9159 = vmatpush1.bf16.msra.mxu1 %v17692_v23  ;;  %v17693_v12 = vcombine.high %v15606_v59, %v15610_v5  ;;  %v5481_v57 = vmax.f32 %v13397_v7, %v5353_v38  ;;  %v17695_v49 = vmov 0  }
 0x2dc   : > { %v5363_v54 = vmul.f32 0.2, %v13431_v21  ;;  %v5490_v58 = vmax.f32 %v13430_v8, %v5362_v40  ;;  %v5489_v50 = vmax.f32 %v13399_v37, %v5361_v60  ;;  %v3897_v18 = vpop.f32.mrb[24].mxu0  ;;  %v17694_v0 = vcombine.high %v15630_v45, %v15636_v53  ;;  %4749 = vmatprep.mubr.bf16.mxu0 %v17695_v49  ;;  %5201 = vmatprep.mubr.bf16.mxu1 %v17695_v49 }
 0x2dd   : > { %8708 = vmatprep.subr.bf16.mxu0 %v17693_v12  ;;  %v5483_v52 = vmax.f32 %v13429_v22, %v5355_v41  ;;  %v15764_v17 = vpack.c.bf16 %v5488_v15, %v5480_v32  ;;  %v13400_v1 = vadd.f32 %v3897_v18, %v15516_v26  ;;  %v4349_v3 = vpop.f32.mrb[24].mxu1  ;;  %v3899_v42 = vpop.f32.mrb[25].mxu0  ;;  %v17699_v15 = vcombine.low %v15606_v59, %v15610_v5  ;;  %v15779_v18 = vld [vmem:[#allocation8 + $0x160] sm:$0xff]  ;;  %v15791_v5 = vld [vmem:[#allocation8 + $0x148] sm:$0xff] }
 0x2de   : > { %9160 = vmatprep.subr.bf16.mxu1 %v17694_v0  ;;  %v5491_v4 = vmax.f32 %v13431_v21, %v5363_v54  ;;  %v15768_v7 = vpack.c.bf16 %v5490_v58, %v5482_v63  ;;  %v15770_v38 = vpack.c.bf16 %v5489_v50, %v5481_v57  ;;  %v13432_v8 = vadd.f32 %v4349_v3, %v15526_v30  ;;  %v4351_v39 = vpop.f32.mrb[25].mxu1  ;;  %v3901_v23 = vpop.f32.mrb[26].mxu0  ;;  %v15777_v54 = vld [vmem:[#allocation8 + $0x140] sm:$0xff]  ;;  %v15793_v63 = vld [vmem:[#allocation8 + $0x168] sm:$0xff] }
 0x2df   : > { %17696 = vst [vmem:[#allocation41_spill] sm:$0xff] %v15764_v17  ;;  %v13401_v37 = vadd.f32 %v3899_v42, %v15530_v31  ;;  %8709 = vmatpush1.bf16.msra.mxu0 %v17699_v15  ;;  %v5368_v41 = vmul.f32 0.2, %v13400_v1  ;;  %v13433_v21 = vadd.f32 %v4351_v39, %v15539_v35  ;;  %v13402_v40 = vadd.f32 %v3901_v23, %v15516_v26  ;;  %v4353_v60 = vpop.f32.mrb[26].mxu1  ;;  %v3903_v32 = vpop.f32.mrb[27].mxu0 }
 0x2e0   : > { %17697 = vst [vmem:[#allocation42_spill] sm:$0xff] %v15768_v7  ;;  %17698 = vst [vmem:[#allocation43_spill] sm:$0xff] %v15770_v38  ;;  %v15781_v22 = vpack.c.bf16 %v5491_v4, %v5483_v52  ;;  %v17701_v0 = vcombine.low %v15630_v45, %v15636_v53  ;;  %v17702_v59 = vcombine.high %v15638_v56, %v15642_v6  ;;  %v5370_v12 = vmul.f32 0.2, %v13432_v8  ;;  %v4355_v52 = vpop.f32.mrb[27].mxu1 }
 0x2e1   : > { %v5369_v57 = vmul.f32 0.2, %v13401_v37  ;;  %v13434_v58 = vadd.f32 %v4353_v60, %v15526_v30  ;;  %v13403_v50 = vadd.f32 %v3903_v32, %v15530_v31  ;;  %v17703_v45 = vcombine.high %v15664_v61, %v15670_v9  ;;  %v14776_v42 = vld [vmem:[%s15373_s10 + $0x50] ss:$28 sps:$4 sm:$0xff]  }
 0x2e2   : > { %17700 = vst [vmem:[#allocation44_spill] sm:$0xff] %v15781_v22  ;;  %9161 = vmatpush1.bf16.msra.mxu1 %v17701_v0  ;;  %8710 = vmatprep.subr.bf16.mxu0 %v17702_v59  ;;  %v5371_v53 = vmul.f32 0.2, %v13433_v21  ;;  %v5376_v4 = vmul.f32 0.2, %v13402_v40  ;;  %v13435_v3 = vadd.f32 %v4355_v52, %v15539_v35  ;;  %v17704_v60 = vcombine.low %v15638_v56, %v15642_v6 }
 0x2e3   : > { %9162 = vmatprep.subr.bf16.mxu1 %v17703_v45  ;;  %4750 = vmatmul.mubr.bf16.gmra.mrb[36].mxu0 %v14776_v42  ;;  %v5378_v23 = vmul.f32 0.2, %v13434_v58  ;;  %v5377_v15 = vmul.f32 0.2, %v13403_v50  ;;  %v12564_v32 = vcombine.high %v15791_v5, %v15793_v63  ;;  %v5496_v59 = vmax.f32 %v13400_v1, %v5368_v41 }
 0x2e4   : > { %5202 = vmatmul.mubr.bf16.gmra.mrb[36].mxu1 %v14776_v42  ;;  %8711 = vmatpush1.bf16.msra.mxu0 %v17704_v60  ;;  %v5498_v52 = vmax.f32 %v13432_v8, %v5370_v12  ;;  %v5504_v45 = vmax.f32 %v13402_v40, %v5376_v4  ;;  %v5379_v29 = vmul.f32 0.2, %v13435_v3  ;;  %v17705_v39 = vcombine.low %v15664_v61, %v15670_v9  ;;  %v3907_v7 = vpop.f32.mrb[28].mxu0 }
 0x2e5   : > { %v17706_v42 = vcombine.high %v15672_v11, %v15676_v24  ;;  %v5497_v56 = vmax.f32 %v13401_v37, %v5369_v57  ;;  %v5506_v6 = vmax.f32 %v13434_v58, %v5378_v23  ;;  %v5505_v60 = vmax.f32 %v13403_v50, %v5377_v15  ;;  %4759 = vmatprep.mubr.bf16.mxu0 %v17695_v49  ;;  %v4359_v9 = vpop.f32.mrb[28].mxu1  ;;  %v3909_v40 = vpop.f32.mrb[29].mxu0 }
 0x2e6   : > { %9163 = vmatpush1.bf16.msra.mxu1 %v17705_v39  ;;  %v17707_v0 = vcombine.high %v15698_v13, %v15704_v14  ;;  %v5499_v1 = vmax.f32 %v13433_v21, %v5371_v53  ;;  %v15821_v8 = vpack.c.bf16 %v5504_v45, %v5496_v59  ;;  %v5507_v41 = vmax.f32 %v13435_v3, %v5379_v29  ;;  %v4361_v50 = vpop.f32.mrb[29].mxu1  ;;  %v3911_v4 = vpop.f32.mrb[30].mxu0  ;;  %v15834_v29 = vld [vmem:[#allocation8 + $0x180] sm:$0xff] }
 0x2e7   : > { %8712 = vmatprep.subr.bf16.mxu0 %v17706_v42  ;;  %v13404_v61 = vadd.f32 %v3907_v7, %v15516_v26  ;;  %5211 = vmatprep.mubr.bf16.mxu1 %v17695_v49  ;;  %v15825_v37 = vpack.c.bf16 %v5506_v6, %v5498_v52  ;;  %v15827_v12 = vpack.c.bf16 %v5505_v60, %v5497_v56  ;;  %v15836_v7 = vld [vmem:[#allocation8 + $0x1a0] sm:$0xff]  ;;  %v4363_v15 = vpop.f32.mrb[30].mxu1  ;;  %v3913_v59 = vpop.f32.mrb[31].mxu0  ;;  %v5645_v52 = vld [vmem:[#allocation8 + $0x1a8] sm:$0xff] }
 0x2e8   : > { %9164 = vmatprep.subr.bf16.mxu1 %v17707_v0  ;;  %17708 = vst [vmem:[#allocation45_spill] sm:$0xff] %v15821_v8  ;;  %v13436_v57 = vadd.f32 %v4359_v9, %v15526_v30  ;;  %v13405_v58 = vadd.f32 %v3909_v40, %v15530_v31  ;;  %v17711_v21 = vcombine.low %v15672_v11, %v15676_v24  ;;  %v5641_v24 = vld [vmem:[#allocation8 + $0x188] sm:$0xff] }
 0x2e9   : > { %17709 = vst [vmem:[#allocation46_spill] sm:$0xff] %v15825_v37  ;;  %17710 = vst [vmem:[#allocation47_spill] sm:$0xff] %v15827_v12  ;;  %v15838_v53 = vpack.c.bf16 %v5507_v41, %v5499_v1  ;;  %v5384_v3 = vmul.f32 0.2, %v13404_v61  ;;  %v13437_v39 = vadd.f32 %v4361_v50, %v15539_v35  ;;  %v13406_v23 = vadd.f32 %v3911_v4, %v15516_v26  ;;  %v4365_v26 = vpop.f32.mrb[31].mxu1 }
 0x2ea   : > { %8713 = vmatpush1.bf16.msra.mxu0 %v17711_v21  ;;  %v17713_v0 = vcombine.low %v15698_v13, %v15704_v14  ;;  %v17714_v11 = vcombine.high %v15706_v20, %v15710_v55  ;;  %v5386_v45 = vmul.f32 0.2, %v13436_v57  ;;  %v5385_v42 = vmul.f32 0.2, %v13405_v58  ;;  %v14777_v41 = vld [vmem:[%s15373_s10 + $0x88] ss:$28 sps:$4 sm:$0xff]  }
 0x2eb   : > { %17712 = vst [vmem:[#allocation48_spill] sm:$0xff] %v15838_v53  ;;  %v13438_v56 = vadd.f32 %v4363_v15, %v15526_v30  ;;  %v13407_v6 = vadd.f32 %v3913_v59, %v15530_v31  ;;  %v17715_v60 = vcombine.high %v15737_v2, %v15739_v10  ;;  %v5387_v13 = vmul.f32 0.2, %v13437_v39  ;;  %4760 = vmatmul.mubr.bf16.gmra.mrb[40].mxu0 %v14777_v41 }
 0x2ec   : > { %9165 = vmatpush1.bf16.msra.mxu1 %v17713_v0  ;;  %8714 = vmatprep.subr.bf16.mxu0 %v17714_v11  ;;  %v5392_v14 = vmul.f32 0.2, %v13406_v23  ;;  %v13439_v1 = vadd.f32 %v4365_v26, %v15539_v35  ;;  %v12563_v9 = vcombine.low %v15791_v5, %v15793_v63  ;;  %v17716_v30 = vcombine.low %v15706_v20, %v15710_v55  ;;  %v5648_v55 = vld [vmem:[#allocation8 + $0x1c0] sm:$0xff] }
 0x2ed   : > { %9166 = vmatprep.subr.bf16.mxu1 %v17715_v60  ;;  %v5394_v40 = vmul.f32 0.2, %v13438_v56  ;;  %v5393_v50 = vmul.f32 0.2, %v13407_v6  ;;  %5212 = vmatmul.mubr.bf16.gmra.mrb[40].mxu1 %v14777_v41  ;;  %v12570_v31 = vcombine.high %v15834_v29, %v15836_v7  ;;  %v12572_v4 = vcombine.high %v5641_v24, %v5645_v52  ;;  %v5661_v41 = vld [vmem:[#allocation8 + $0x228] sm:$0xff] }
 0x2ee   : > { %8715 = vmatpush1.bf16.msra.mxu0 %v17716_v30  ;;  %v5512_v21 = vmax.f32 %v13404_v61, %v5384_v3  ;;  %v5514_v15 = vmax.f32 %v13436_v57, %v5386_v45  ;;  %v5520_v0 = vmax.f32 %v13406_v23, %v5392_v14  ;;  %v5395_v35 = vmul.f32 0.2, %v13439_v1  ;;  %4769 = vmatprep.mubr.bf16.mxu0 %v17695_v49  ;;  %v5652_v61 = vld [vmem:[#allocation8 + $0x1e0] sm:$0xff]  ;;  %v5653_v23 = vld [vmem:[#allocation8 + $0x1e8] sm:$0xff]  ;;  %v14778_v14 = vld [vmem:[%s15373_s10 + $0xc0] ss:$28 sps:$4 sm:$0xff]  }
 0x2ef   : > { %v17717_v59 = vcombine.low %v15737_v2, %v15739_v10  ;;  %v17718_v11 = vcombine.high %v15777_v54, %v15779_v18  ;;  %v5513_v26 = vmax.f32 %v13405_v58, %v5385_v42  ;;  %v5522_v60 = vmax.f32 %v13438_v56, %v5394_v40  ;;  %5221 = vmatprep.mubr.bf16.mxu1 %v17695_v49  ;;  %v5649_v10 = vld [vmem:[#allocation8 + $0x1c8] sm:$0xff] }
 0x2f0   : > { %v5521_v20 = vmax.f32 %v13407_v6, %v5393_v50  ;;  %v5515_v57 = vmax.f32 %v13437_v39, %v5387_v13  ;;  %v15872_v3 = vpack.c.bf16 %v5520_v0, %v5512_v21  ;;  %v5523_v2 = vmax.f32 %v13439_v1, %v5395_v35  ;;  %v5656_v6 = vld [vmem:[#allocation8 + $0x200] sm:$0xff]  ;;  %v5657_v1 = vld [vmem:[#allocation8 + $0x208] sm:$0xff] }
 0x2f1   : > { %9167 = vmatpush1.bf16.msra.mxu1 %v17717_v59  ;;  %8716 = vmatprep.subr.bf16.mxu0 %v17718_v11  ;;  %v15875_v58 = vpack.c.bf16 %v5522_v60, %v5514_v15  ;;  %v17722_v5 = vcombine.low %v15777_v54, %v15779_v18  ;;  %v12569_v63 = vcombine.low %v15834_v29, %v15836_v7  ;;  %v5660_v13 = vld [vmem:[#allocation8 + $0x220] sm:$0xff]  ;;  %v5669_v40 = vld [vmem:[#allocation8 + $0x268] sm:$0xff] }
 0x2f2   : > { %9168 = vmatprep.subr.bf16.mxu1 %v12564_v32  ;;  %17719 = vst [vmem:[#allocation49_spill] sm:$0xff] %v15872_v3  ;;  %v15877_v45 = vpack.c.bf16 %v5521_v20, %v5513_v26  ;;  %v15884_v32 = vpack.c.bf16 %v5523_v2, %v5515_v57  ;;  %v12571_v39 = vcombine.low %v5641_v24, %v5645_v52  ;;  %v5664_v24 = vld [vmem:[#allocation8 + $0x240] sm:$0xff]  ;;  %v14779_v0 = vld [vmem:[%s15373_s10 + $0xf8] ss:$28 sps:$4 sm:$0xff]  }
 0x2f3   : > { %17720 = vst [vmem:[#allocation50_spill] sm:$0xff] %v15875_v58  ;;  %8717 = vmatpush1.bf16.msra.mxu0 %v17722_v5  ;;  %v12578_v42 = vcombine.high %v5648_v55, %v5652_v61  ;;  %v12580_v56 = vcombine.high %v5649_v10, %v5653_v23  ;;  %v12577_v54 = vcombine.low %v5648_v55, %v5652_v61  ;;  %v5668_v52 = vld [vmem:[#allocation8 + $0x260] sm:$0xff]  ;;  %v5673_v35 = vld [vmem:[#allocation8 + $0x288] sm:$0xff] }
 0x2f4   : > { %17721 = vst [vmem:[#allocation51_spill] sm:$0xff] %v15877_v45  ;;  %17723 = vst [vmem:[#allocation52_spill] sm:$0xff] %v15884_v32  ;;  %8718 = vmatprep.subr.bf16.mxu0 %v12570_v31  ;;  %4770 = vmatmul.mubr.bf16.gmra.mrb[44].mxu0 %v14778_v14  ;;  %v12579_v18 = vcombine.low %v5649_v10, %v5653_v23  ;;  %v12586_v29 = vcombine.high %v5656_v6, %v5660_v13  ;;  %v5672_v21 = vld [vmem:[#allocation8 + $0x280] sm:$0xff]  ;;  %v5677_v59 = vld [vmem:[#allocation8 + $0x2a8] sm:$0xff] }
 0x2f5   : > { %9169 = vmatpush1.bf16.msra.mxu1 %v12563_v9  ;;  %4779 = vmatprep.mubr.bf16.mxu0 %v17695_v49  ;;  %v12588_v7 = vcombine.high %v5657_v1, %v5661_v41  ;;  %v5665_v9 = vld [vmem:[#allocation8 + $0x248] sm:$0xff]  ;;  %v12585_v50 = vcombine.low %v5656_v6, %v5660_v13  ;;  %v12587_v30 = vcombine.low %v5657_v1, %v5661_v41  ;;  %v5676_v15 = vld [vmem:[#allocation8 + $0x2a0] sm:$0xff] }
 0x2f6   : > { %9170 = vmatprep.subr.bf16.mxu1 %v12572_v4  ;;  %5222 = vmatmul.mubr.bf16.gmra.mrb[44].mxu1 %v14778_v14  ;;  %v12594_v31 = vcombine.high %v5664_v24, %v5668_v52  ;;  %v12596_v4 = vcombine.high %v5665_v9, %v5669_v40  ;;  %v12593_v11 = vcombine.low %v5664_v24, %v5668_v52  ;;  %v5680_v55 = vld [vmem:[#allocation8 + $0x2c0] sm:$0xff]  ;;  %v5681_v57 = vld [vmem:[#allocation8 + $0x2c8] sm:$0xff] }
 0x2f7   : > { %8719 = vmatpush1.bf16.msra.mxu0 %v12569_v63  ;;  %5231 = vmatprep.mubr.bf16.mxu1 %v17695_v49  ;;  %v12595_v26 = vcombine.low %v5665_v9, %v5669_v40  ;;  %v12602_v60 = vcombine.high %v5672_v21, %v5676_v15  ;;  %v12604_v20 = vcombine.high %v5673_v35, %v5677_v59  ;;  %v5684_v61 = vld [vmem:[#allocation8 + $0x2e0] sm:$0xff]  ;;  %v5685_v2 = vld [vmem:[#allocation8 + $0x2e8] sm:$0xff] }
 0x2f8   : > { %8720 = vmatprep.subr.bf16.mxu0 %v12578_v42  ;;  %v12601_v10 = vcombine.low %v5672_v21, %v5676_v15  ;;  %v12603_v23 = vcombine.low %v5673_v35, %v5677_v59  ;;  %v12610_v5 = vcombine.high %v5680_v55, %v5684_v61  ;;  %v12612_v63 = vcombine.high %v5681_v57, %v5685_v2  ;;  %v5692_v42 = vld [vmem:[#allocation8 + $0x320] sm:$0xff]  ;;  %v5689_v6 = vld [vmem:[#allocation8 + $0x308] sm:$0xff] }
 0x2f9   : > { %9171 = vmatpush1.bf16.msra.mxu1 %v12571_v39  ;;  %v5688_v39 = vld [vmem:[#allocation8 + $0x300] sm:$0xff]  ;;  %v5693_v13 = vld [vmem:[#allocation8 + $0x328] sm:$0xff]  ;;  %v12609_v14 = vcombine.low %v5680_v55, %v5684_v61  ;;  %v12611_v1 = vcombine.low %v5681_v57, %v5685_v2 }
 0x2fa   : > { %9172 = vmatprep.subr.bf16.mxu1 %v12580_v56  ;;  %v14780_v56 = vld [vmem:[%s15373_s10 + $0x130] ss:$28 sps:$4 sm:$0xff]   ;;  %v12618_v41 = vcombine.high %v5688_v39, %v5692_v42  ;;  %v12617_v52 = vcombine.low %v5688_v39, %v5692_v42  ;;  %v12619_v9 = vcombine.low %v5689_v6, %v5693_v13 }
 0x2fb   : > { %8721 = vmatpush1.bf16.msra.mxu0 %v12577_v54  ;;  %v12620_v54 = vcombine.high %v5689_v6, %v5693_v13  ;;  %v5701_v24 = vld [vmem:[#allocation8 + $0x368] sm:$0xff] }
 0x2fc   : > { %8722 = vmatprep.subr.bf16.mxu0 %v12586_v29  ;;  %4780 = vmatmul.mubr.bf16.gmra.mrb[48].mxu0 %v14779_v0  ;;  %v5700_v29 = vld [vmem:[#allocation8 + $0x360] sm:$0xff]  ;;  %v5705_v21 = vld [vmem:[#allocation8 + $0x388] sm:$0xff] }
 0x2fd   : > { %9173 = vmatpush1.bf16.msra.mxu1 %v12579_v18  ;;  %4789 = vmatprep.mubr.bf16.mxu0 %v17695_v49  ;;  %v5696_v18 = vld [vmem:[#allocation8 + $0x340] sm:$0xff]  ;;  %v5709_v15 = vld [vmem:[#allocation8 + $0x3a8] sm:$0xff] }
 0x2fe   : > { %9174 = vmatprep.subr.bf16.mxu1 %v12588_v7  ;;  %5232 = vmatmul.mubr.bf16.gmra.mrb[48].mxu1 %v14779_v0  ;;  %v5697_v7 = vld [vmem:[#allocation8 + $0x348] sm:$0xff]  ;;  %v12626_v40 = vcombine.high %v5696_v18, %v5700_v29  ;;  %v12625_v0 = vcombine.low %v5696_v18, %v5700_v29  ;;  %v12635_v57 = vcombine.low %v5705_v21, %v5709_v15 }
 0x2ff   : > { %8723 = vmatpush1.bf16.msra.mxu0 %v12585_v50  ;;  %5241 = vmatprep.mubr.bf16.mxu1 %v17695_v49  ;;  %v12628_v50 = vcombine.high %v5697_v7, %v5701_v24  ;;  %v12627_v35 = vcombine.low %v5697_v7, %v5701_v24  ;;  %v5713_v55 = vld [vmem:[#allocation8 + $0x3c8] sm:$0xff] }
 0x300   : > { %8724 = vmatprep.subr.bf16.mxu0 %v12594_v31  ;;  %v5708_v31 = vld [vmem:[#allocation8 + $0x3a0] sm:$0xff]  ;;  %v5717_v61 = vld [vmem:[#allocation8 + $0x3e8] sm:$0xff] }
 0x301   : > { %9175 = vmatpush1.bf16.msra.mxu1 %v12587_v30  ;;  %v5704_v30 = vld [vmem:[#allocation8 + $0x380] sm:$0xff]  ;;  %v5721_v39 = vld [vmem:[#allocation8 + $0x408] sm:$0xff] }
 0x302   : > { %9176 = vmatprep.subr.bf16.mxu1 %v12596_v4  ;;  %v14781_v4 = vld [vmem:[%s15373_s10 + $0x168] ss:$28 sps:$4 sm:$0xff]   ;;  %v12634_v59 = vcombine.high %v5704_v30, %v5708_v31  ;;  %v5725_v42 = vld [vmem:[#allocation8 + $0x428] sm:$0xff] }
 0x303   : > { %8725 = vmatpush1.bf16.msra.mxu0 %v12593_v11  ;;  %v12636_v11 = vcombine.high %v5705_v21, %v5709_v15  ;;  %v12652_v13 = vcombine.high %v5721_v39, %v5725_v42  ;;  %v12651_v29 = vcombine.low %v5721_v39, %v5725_v42  ;;  %v5744_v15 = vld [vmem:[#allocation8 + $0x4c0] sm:$0xff] }
 0x304   : > { %8726 = vmatprep.subr.bf16.mxu0 %v12602_v60  ;;  %4790 = vmatmul.mubr.bf16.gmra.mrb[52].mxu0 %v14780_v56  ;;  %v5716_v60 = vld [vmem:[#allocation8 + $0x3e0] sm:$0xff] }
 0x305   : > { %9177 = vmatpush1.bf16.msra.mxu1 %v12595_v26  ;;  %4799 = vmatprep.mubr.bf16.mxu0 %v17695_v49  ;;  %v5712_v26 = vld [vmem:[#allocation8 + $0x3c0] sm:$0xff] }
 0x306   : > { %9178 = vmatprep.subr.bf16.mxu1 %v12604_v20  ;;  %5242 = vmatmul.mubr.bf16.gmra.mrb[52].mxu1 %v14780_v56  ;;  %v12633_v20 = vcombine.low %v5704_v30, %v5708_v31  ;;  %v12642_v2 = vcombine.high %v5712_v26, %v5716_v60  ;;  %v12643_v56 = vcombine.low %v5713_v55, %v5717_v61  ;;  %v5760_v39 = vld [vmem:[#allocation8 + $0x540] sm:$0xff] }
 0x307   : > { %8727 = vmatpush1.bf16.msra.mxu0 %v12601_v10  ;;  %5251 = vmatprep.mubr.bf16.mxu1 %v17695_v49  ;;  %v5720_v10 = vld [vmem:[#allocation8 + $0x400] sm:$0xff] }
 0x308   : > { %8728 = vmatprep.subr.bf16.mxu0 %v12610_v5  ;;  %v14782_v5 = vld [vmem:[%s15373_s10 + $0x1a0] ss:$28 sps:$4 sm:$0xff]   ;;  %v5764_v42 = vld [vmem:[#allocation8 + $0x560] sm:$0xff] }
 0x309   : > { %9179 = vmatpush1.bf16.msra.mxu1 %v12603_v23  ;;  %v5724_v23 = vld [vmem:[#allocation8 + $0x420] sm:$0xff] }
 0x30a   : > { %9180 = vmatprep.subr.bf16.mxu1 %v12612_v63  ;;  %v12644_v63 = vcombine.high %v5713_v55, %v5717_v61  ;;  %v12650_v6 = vcombine.high %v5720_v10, %v5724_v23  ;;  %v12649_v18 = vcombine.low %v5720_v10, %v5724_v23  ;;  %v5752_v55 = vld [vmem:[#allocation8 + $0x500] sm:$0xff] }
 0x30b   : > { %8729 = vmatpush1.bf16.msra.mxu0 %v12609_v14  ;;  %v5728_v14 = vld [vmem:[#allocation8 + $0x440] sm:$0xff] }
 0x30c   : > { %8730 = vmatprep.subr.bf16.mxu0 %v12618_v41  ;;  %4800 = vmatmul.mubr.bf16.gmra.mrb[56].mxu0 %v14781_v4  ;;  %v5729_v41 = vld [vmem:[#allocation8 + $0x448] sm:$0xff]  ;;  %v5756_v61 = vld [vmem:[#allocation8 + $0x520] sm:$0xff] }
 0x30d   : > { %9181 = vmatpush1.bf16.msra.mxu1 %v12611_v1  ;;  %4809 = vmatprep.mubr.bf16.mxu0 %v17695_v49  ;;  %v5732_v1 = vld [vmem:[#allocation8 + $0x460] sm:$0xff] }
 0x30e   : > { %9182 = vmatprep.subr.bf16.mxu1 %v12620_v54  ;;  %5252 = vmatmul.mubr.bf16.gmra.mrb[56].mxu1 %v14781_v4  ;;  %v5733_v54 = vld [vmem:[#allocation8 + $0x468] sm:$0xff]  ;;  %v12658_v7 = vcombine.high %v5728_v14, %v5732_v1  ;;  %v12657_v30 = vcombine.low %v5728_v14, %v5732_v1  ;;  %v12690_v14 = vcombine.high %v5760_v39, %v5764_v42 }
 0x30f   : > { %8731 = vmatpush1.bf16.msra.mxu0 %v12617_v52  ;;  %5261 = vmatprep.mubr.bf16.mxu1 %v17695_v49  ;;  %v12641_v49 = vcombine.low %v5712_v26, %v5716_v60  ;;  %v12660_v24 = vcombine.high %v5729_v41, %v5733_v54  ;;  %v5736_v52 = vld [vmem:[#allocation8 + $0x480] sm:$0xff]  ;;  %v12659_v31 = vcombine.low %v5729_v41, %v5733_v54 }
 0x310   : > { %8732 = vmatprep.subr.bf16.mxu0 %v12626_v40  ;;  %v5737_v40 = vld [vmem:[#allocation8 + $0x488] sm:$0xff]  ;;  %v5768_v41 = vld [vmem:[#allocation8 + $0x580] sm:$0xff] }
 0x311   : > { %9183 = vmatpush1.bf16.msra.mxu1 %v12619_v9  ;;  %v5740_v9 = vld [vmem:[#allocation8 + $0x4a0] sm:$0xff] }
 0x312   : > { %9184 = vmatprep.subr.bf16.mxu1 %v12628_v50  ;;  %v5741_v50 = vld [vmem:[#allocation8 + $0x4a8] sm:$0xff]  ;;  %v12666_v4 = vcombine.high %v5736_v52, %v5740_v9  ;;  %v5772_v54 = vld [vmem:[#allocation8 + $0x5a0] sm:$0xff] }
 0x313   : > { %8733 = vmatpush1.bf16.msra.mxu0 %v12625_v0  ;;  %v12668_v21 = vcombine.high %v5737_v40, %v5741_v50  ;;  %v5748_v0 = vld [vmem:[#allocation8 + $0x4e0] sm:$0xff]  ;;  %v12667_v26 = vcombine.low %v5737_v40, %v5741_v50 }
 0x314   : > { %8734 = vmatprep.subr.bf16.mxu0 %v12634_v59  ;;  %4810 = vmatmul.mubr.bf16.gmra.mrb[60].mxu0 %v14782_v5  ;;  %v5749_v59 = vld [vmem:[#allocation8 + $0x4e8] sm:$0xff]  ;;  %v12674_v60 = vcombine.high %v5744_v15, %v5748_v0  ;;  %v12673_v10 = vcombine.low %v5744_v15, %v5748_v0  ;;  %v5776_v40 = vld [vmem:[#allocation8 + $0x5c0] sm:$0xff] }
 0x315   : > { %9185 = vmatpush1.bf16.msra.mxu1 %v12627_v35  ;;  %8738 = vmatprep.mubr.bf16.mxu0 %v15595_v44  ;;  %v5745_v35 = vld [vmem:[#allocation8 + $0x4c8] sm:$0xff]  ;;  %v5780_v50 = vld [vmem:[#allocation8 + $0x5e0] sm:$0xff] }
 0x316   : > { %9186 = vmatprep.subr.bf16.mxu1 %v12636_v11  ;;  %5262 = vmatmul.mubr.bf16.gmra.mrb[60].mxu1 %v14782_v5  ;;  %v12665_v11 = vcombine.low %v5736_v52, %v5740_v9  ;;  %v12675_v23 = vcombine.low %v5745_v35, %v5749_v59  ;;  %v12682_v5 = vcombine.high %v5752_v55, %v5756_v61 }
 0x317   : > { %8735 = vmatpush1.bf16.msra.mxu0 %v12633_v20  ;;  %9190 = vmatprep.mubr.bf16.mxu1 %v15595_v44  ;;  %v12676_v20 = vcombine.high %v5745_v35, %v5749_v59  ;;  %v12698_v52 = vcombine.high %v5768_v41, %v5772_v54  ;;  %v12706_v15 = vcombine.high %v5776_v40, %v5780_v50  ;;  %v5784_v35 = vld [vmem:[#allocation8 + $0x600] sm:$0xff] }
 0x318   : > { %8736 = vmatprep.subr.bf16.mxu0 %v12642_v2  ;;  %v5757_v2 = vld [vmem:[#allocation8 + $0x528] sm:$0xff]  ;;  %v5788_v59 = vld [vmem:[#allocation8 + $0x620] sm:$0xff] }
 0x319   : > { %9187 = vmatpush1.bf16.msra.mxu1 %v12635_v57  ;;  %v5753_v57 = vld [vmem:[#allocation8 + $0x508] sm:$0xff] }
 0x31a   : > { %9188 = vmatprep.subr.bf16.mxu1 %v12644_v63  ;;  %v12684_v63 = vcombine.high %v5753_v57, %v5757_v2 }
 0x31b   : > { %8737 = vmatpush1.bf16.msra.mxu0 %v12641_v49  ;;  %v5761_v49 = vld [vmem:[#allocation8 + $0x548] sm:$0xff] }
 0x31c   : > { %8819 = vmatprep.subr.bf16.mxu0 %v12650_v6  ;;  %v12681_v6 = vcombine.low %v5752_v55, %v5756_v61  ;;  %v12714_v55 = vcombine.high %v5784_v35, %v5788_v59 }
 0x31d   : > { %9189 = vmatpush1.bf16.msra.mxu1 %v12643_v56  ;;  %v5765_v56 = vld [vmem:[#allocation8 + $0x568] sm:$0xff] }
 0x31e   : > { %9271 = vmatprep.subr.bf16.mxu1 %v12652_v13  ;;  %8739 = vmatmul.mubr.bf16.vlgmr.msra.gmra.mrb[64].mxu0 %v15590_v36  ;;  %v12683_v13 = vcombine.low %v5753_v57, %v5757_v2  ;;  %v12692_v1 = vcombine.high %v5761_v49, %v5765_v56  ;;  %v5792_v57 = vld [vmem:[#allocation8 + $0x640] sm:$0xff] }
 0x31f   : > { %8748 = vmatprep.mubr.bf16.mxu0 %v15626_v34  ;;  %8820 = vmatpush1.bf16.msra.mxu0 %v12649_v18  ;;  %v5769_v18 = vld [vmem:[#allocation8 + $0x588] sm:$0xff]  ;;  %v5796_v2 = vld [vmem:[#allocation8 + $0x660] sm:$0xff] }
 0x320   : > { %9191 = vmatmul.mubr.bf16.vlgmr.msra.gmra.mrb[64].mxu1 %v15590_v36  ;;  %8821 = vmatprep.subr.bf16.mxu0 %v12658_v7  ;;  %v12689_v7 = vcombine.low %v5760_v39, %v5764_v42  ;;  %v12722_v39 = vcombine.high %v5792_v57, %v5796_v2 }
 0x321   : > { %9200 = vmatprep.mubr.bf16.mxu1 %v15626_v34  ;;  %9272 = vmatpush1.bf16.msra.mxu1 %v12651_v29  ;;  %v5773_v29 = vld [vmem:[#allocation8 + $0x5a8] sm:$0xff] }
 0x322   : > { %9273 = vmatprep.subr.bf16.mxu1 %v12660_v24  ;;  %v12691_v24 = vcombine.low %v5761_v49, %v5765_v56  ;;  %v12700_v9 = vcombine.high %v5769_v18, %v5773_v29  ;;  %v5800_v49 = vld [vmem:[#allocation8 + $0x680] sm:$0xff] }
 0x323   : > { %8822 = vmatpush1.bf16.msra.mxu0 %v12657_v30  ;;  %v5777_v30 = vld [vmem:[#allocation8 + $0x5c8] sm:$0xff]  ;;  %v5804_v56 = vld [vmem:[#allocation8 + $0x6a0] sm:$0xff] }
 0x324   : > { %8823 = vmatprep.subr.bf16.mxu0 %v12666_v4  ;;  %v12697_v4 = vcombine.low %v5768_v41, %v5772_v54  ;;  %v12730_v41 = vcombine.high %v5800_v49, %v5804_v56 }
 0x325   : > { %9274 = vmatpush1.bf16.msra.mxu1 %v12659_v31  ;;  %v5781_v31 = vld [vmem:[#allocation8 + $0x5e8] sm:$0xff] }
 0x326   : > { %8749 = vmatmul.mubr.bf16.gmra.mrb[68].mxu0 %v15621_v25  ;;  %9275 = vmatprep.subr.bf16.mxu1 %v12668_v21  ;;  %v12699_v21 = vcombine.low %v5769_v18, %v5773_v29  ;;  %v12708_v0 = vcombine.high %v5777_v30, %v5781_v31  ;;  %v5808_v18 = vld [vmem:[#allocation8 + $0x6c0] sm:$0xff] }
 0x327   : > { %8758 = vmatprep.mubr.bf16.mxu0 %v15660_v47  ;;  %8824 = vmatpush1.bf16.msra.mxu0 %v12665_v11  ;;  %v5785_v11 = vld [vmem:[#allocation8 + $0x608] sm:$0xff]  ;;  %v5812_v29 = vld [vmem:[#allocation8 + $0x6e0] sm:$0xff] }
 0x328   : > { %9201 = vmatmul.mubr.bf16.gmra.mrb[68].mxu1 %v15621_v25  ;;  %8825 = vmatprep.subr.bf16.mxu0 %v12674_v60  ;;  %v12705_v60 = vcombine.low %v5776_v40, %v5780_v50  ;;  %v12738_v40 = vcombine.high %v5808_v18, %v5812_v29 }
 0x329   : > { %9210 = vmatprep.mubr.bf16.mxu1 %v15660_v47  ;;  %9276 = vmatpush1.bf16.msra.mxu1 %v12667_v26  ;;  %v5789_v26 = vld [vmem:[#allocation8 + $0x628] sm:$0xff] }
 0x32a   : > { %9277 = vmatprep.subr.bf16.mxu1 %v12676_v20  ;;  %v12707_v20 = vcombine.low %v5777_v30, %v5781_v31  ;;  %v12716_v61 = vcombine.high %v5785_v11, %v5789_v26  ;;  %v5816_v30 = vld [vmem:[#allocation8 + $0x700] sm:$0xff] }
 0x32b   : > { %8826 = vmatpush1.bf16.msra.mxu0 %v12673_v10  ;;  %v5793_v10 = vld [vmem:[#allocation8 + $0x648] sm:$0xff]  ;;  %v5820_v31 = vld [vmem:[#allocation8 + $0x720] sm:$0xff] }
 0x32c   : > { %8827 = vmatprep.subr.bf16.mxu0 %v12682_v5  ;;  %v12713_v5 = vcombine.low %v5784_v35, %v5788_v59  ;;  %v12746_v35 = vcombine.high %v5816_v30, %v5820_v31 }
 0x32d   : > { %9278 = vmatpush1.bf16.msra.mxu1 %v12675_v23  ;;  %v5797_v23 = vld [vmem:[#allocation8 + $0x668] sm:$0xff] }
 0x32e   : > { %8759 = vmatmul.mubr.bf16.gmra.mrb[72].mxu0 %v15655_v51  ;;  %9279 = vmatprep.subr.bf16.mxu1 %v12684_v63  ;;  %v12715_v63 = vcombine.low %v5785_v11, %v5789_v26  ;;  %v12724_v42 = vcombine.high %v5793_v10, %v5797_v23  ;;  %v5824_v11 = vld [vmem:[#allocation8 + $0x740] sm:$0xff] }
 0x32f   : > { %8768 = vmatprep.mubr.bf16.mxu0 %v15694_v62  ;;  %8828 = vmatpush1.bf16.msra.mxu0 %v12681_v6  ;;  %v5801_v6 = vld [vmem:[#allocation8 + $0x688] sm:$0xff]  ;;  %v5828_v26 = vld [vmem:[#allocation8 + $0x760] sm:$0xff] }
 0x330   : > { %9211 = vmatmul.mubr.bf16.gmra.mrb[72].mxu1 %v15655_v51  ;;  %8829 = vmatprep.subr.bf16.mxu0 %v12690_v14  ;;  %v12721_v14 = vcombine.low %v5792_v57, %v5796_v2  ;;  %v12754_v57 = vcombine.high %v5824_v11, %v5828_v26 }
 0x331   : > { %9220 = vmatprep.mubr.bf16.mxu1 %v15694_v62  ;;  %9280 = vmatpush1.bf16.msra.mxu1 %v12683_v13  ;;  %v5805_v13 = vld [vmem:[#allocation8 + $0x6a8] sm:$0xff] }
 0x332   : > { %9281 = vmatprep.subr.bf16.mxu1 %v12692_v1  ;;  %v12723_v1 = vcombine.low %v5793_v10, %v5797_v23  ;;  %v12732_v54 = vcombine.high %v5801_v6, %v5805_v13  ;;  %v5832_v10 = vld [vmem:[#allocation8 + $0x780] sm:$0xff] }
 0x333   : > { %8830 = vmatpush1.bf16.msra.mxu0 %v12689_v7  ;;  %v5809_v7 = vld [vmem:[#allocation8 + $0x6c8] sm:$0xff]  ;;  %v5836_v23 = vld [vmem:[#allocation8 + $0x7a0] sm:$0xff] }
 0x334   : > { %8831 = vmatprep.subr.bf16.mxu0 %v12698_v52  ;;  %v12729_v52 = vcombine.low %v5800_v49, %v5804_v56  ;;  %v12762_v49 = vcombine.high %v5832_v10, %v5836_v23 }
 0x335   : > { %9282 = vmatpush1.bf16.msra.mxu1 %v12691_v24  ;;  %v5813_v24 = vld [vmem:[#allocation8 + $0x6e8] sm:$0xff] }
 0x336   : > { %8769 = vmatmul.mubr.bf16.gmra.mrb[76].mxu0 %v15689_v16  ;;  %9283 = vmatprep.subr.bf16.mxu1 %v12700_v9  ;;  %v12731_v9 = vcombine.low %v5801_v6, %v5805_v13  ;;  %v12740_v50 = vcombine.high %v5809_v7, %v5813_v24  ;;  %v5840_v6 = vld [vmem:[#allocation8 + $0x7c0] sm:$0xff] }
 0x337   : > { %8778 = vmatprep.mubr.bf16.mxu0 %v15729_v19  ;;  %8832 = vmatpush1.bf16.msra.mxu0 %v12697_v4  ;;  %v5817_v4 = vld [vmem:[#allocation8 + $0x708] sm:$0xff]  ;;  %v5844_v13 = vld [vmem:[#allocation8 + $0x7e0] sm:$0xff] }
 0x338   : > { %9221 = vmatmul.mubr.bf16.gmra.mrb[76].mxu1 %v15689_v16  ;;  %8833 = vmatprep.subr.bf16.mxu0 %v12706_v15  ;;  %v12737_v15 = vcombine.low %v5808_v18, %v5812_v29  ;;  %v12770_v18 = vcombine.high %v5840_v6, %v5844_v13 }
 0x339   : > { %9230 = vmatprep.mubr.bf16.mxu1 %v15729_v19  ;;  %9284 = vmatpush1.bf16.msra.mxu1 %v12699_v21  ;;  %v5821_v21 = vld [vmem:[#allocation8 + $0x728] sm:$0xff] }
 0x33a   : > { %9285 = vmatprep.subr.bf16.mxu1 %v12708_v0  ;;  %v12739_v0 = vcombine.low %v5809_v7, %v5813_v24  ;;  %v12748_v59 = vcombine.high %v5817_v4, %v5821_v21  ;;  %v5848_v7 = vld [vmem:[#allocation8 + $0x800] sm:$0xff] }
 0x33b   : > { %8834 = vmatpush1.bf16.msra.mxu0 %v12705_v60  ;;  %v5825_v60 = vld [vmem:[#allocation8 + $0x748] sm:$0xff]  ;;  %v5852_v24 = vld [vmem:[#allocation8 + $0x820] sm:$0xff] }
 0x33c   : > { %8835 = vmatprep.subr.bf16.mxu0 %v12714_v55  ;;  %v12745_v55 = vcombine.low %v5816_v30, %v5820_v31  ;;  %v12778_v30 = vcombine.high %v5848_v7, %v5852_v24 }
 0x33d   : > { %9286 = vmatpush1.bf16.msra.mxu1 %v12707_v20  ;;  %v5829_v20 = vld [vmem:[#allocation8 + $0x768] sm:$0xff] }
 0x33e   : > { %8779 = vmatmul.mubr.bf16.gmra.mrb[80].mxu0 %v15724_v28  ;;  %9287 = vmatprep.subr.bf16.mxu1 %v12716_v61  ;;  %v12747_v61 = vcombine.low %v5817_v4, %v5821_v21  ;;  %v12756_v2 = vcombine.high %v5825_v60, %v5829_v20  ;;  %v5856_v4 = vld [vmem:[#allocation8 + $0x840] sm:$0xff] }
 0x33f   : > { %8788 = vmatprep.mubr.bf16.mxu0 %v15770_v38  ;;  %8836 = vmatpush1.bf16.msra.mxu0 %v12713_v5  ;;  %v5833_v5 = vld [vmem:[#allocation8 + $0x788] sm:$0xff]  ;;  %v5860_v21 = vld [vmem:[#allocation8 + $0x860] sm:$0xff] }
 0x340   : > { %9231 = vmatmul.mubr.bf16.gmra.mrb[80].mxu1 %v15724_v28  ;;  %8837 = vmatprep.subr.bf16.mxu0 %v12722_v39  ;;  %v12753_v39 = vcombine.low %v5824_v11, %v5828_v26  ;;  %v12786_v11 = vcombine.high %v5856_v4, %v5860_v21 }
 0x341   : > { %9240 = vmatprep.mubr.bf16.mxu1 %v15770_v38  ;;  %9288 = vmatpush1.bf16.msra.mxu1 %v12715_v63  ;;  %v5837_v63 = vld [vmem:[#allocation8 + $0x7a8] sm:$0xff] }
 0x342   : > { %9289 = vmatprep.subr.bf16.mxu1 %v12724_v42  ;;  %v12755_v42 = vcombine.low %v5825_v60, %v5829_v20  ;;  %v12764_v56 = vcombine.high %v5833_v5, %v5837_v63  ;;  %v5864_v60 = vld [vmem:[#allocation8 + $0x880] sm:$0xff] }
 0x343   : > { %8838 = vmatpush1.bf16.msra.mxu0 %v12721_v14  ;;  %v5841_v14 = vld [vmem:[#allocation8 + $0x7c8] sm:$0xff]  ;;  %v5868_v20 = vld [vmem:[#allocation8 + $0x8a0] sm:$0xff] }
 0x344   : > { %8839 = vmatprep.subr.bf16.mxu0 %v12730_v41  ;;  %v12761_v41 = vcombine.low %v5832_v10, %v5836_v23  ;;  %v12794_v10 = vcombine.high %v5864_v60, %v5868_v20 }
 0x345   : > { %9290 = vmatpush1.bf16.msra.mxu1 %v12723_v1  ;;  %v5845_v1 = vld [vmem:[#allocation8 + $0x7e8] sm:$0xff] }
 0x346   : > { %8789 = vmatmul.mubr.bf16.gmra.mrb[84].mxu0 %v15764_v17  ;;  %9291 = vmatprep.subr.bf16.mxu1 %v12732_v54  ;;  %v12763_v54 = vcombine.low %v5833_v5, %v5837_v63  ;;  %v12772_v29 = vcombine.high %v5841_v14, %v5845_v1  ;;  %v5872_v5 = vld [vmem:[#allocation8 + $0x8c0] sm:$0xff] }
 0x347   : > { %8798 = vmatprep.mubr.bf16.mxu0 %v15827_v12  ;;  %8840 = vmatpush1.bf16.msra.mxu0 %v12729_v52  ;;  %v5849_v52 = vld [vmem:[#allocation8 + $0x808] sm:$0xff]  ;;  %v5876_v63 = vld [vmem:[#allocation8 + $0x8e0] sm:$0xff] }
 0x348   : > { %9241 = vmatmul.mubr.bf16.gmra.mrb[84].mxu1 %v15764_v17  ;;  %8841 = vmatprep.subr.bf16.mxu0 %v12738_v40  ;;  %v12769_v40 = vcombine.low %v5840_v6, %v5844_v13  ;;  %v12802_v6 = vcombine.high %v5872_v5, %v5876_v63 }
 0x349   : > { %9250 = vmatprep.mubr.bf16.mxu1 %v15827_v12  ;;  %9292 = vmatpush1.bf16.msra.mxu1 %v12731_v9  ;;  %v5853_v9 = vld [vmem:[#allocation8 + $0x828] sm:$0xff] }
 0x34a   : > { %9293 = vmatprep.subr.bf16.mxu1 %v12740_v50  ;;  %v12771_v50 = vcombine.low %v5841_v14, %v5845_v1  ;;  %v12780_v31 = vcombine.high %v5849_v52, %v5853_v9  ;;  %v5880_v14 = vld [vmem:[#allocation8 + $0x900] sm:$0xff] }
 0x34b   : > { %8842 = vmatpush1.bf16.msra.mxu0 %v12737_v15  ;;  %v5857_v15 = vld [vmem:[#allocation8 + $0x848] sm:$0xff]  ;;  %v5884_v1 = vld [vmem:[#allocation8 + $0x920] sm:$0xff] }
 0x34c   : > { %8843 = vmatprep.subr.bf16.mxu0 %v12746_v35  ;;  %v12777_v35 = vcombine.low %v5848_v7, %v5852_v24  ;;  %v12810_v24 = vcombine.high %v5880_v14, %v5884_v1 }
 0x34d   : > { %9294 = vmatpush1.bf16.msra.mxu1 %v12739_v0  ;;  %v5861_v0 = vld [vmem:[#allocation8 + $0x868] sm:$0xff] }
 0x34e   : > { %8799 = vmatmul.mubr.bf16.gmra.mrb[88].mxu0 %v15821_v8  ;;  %9295 = vmatprep.subr.bf16.mxu1 %v12748_v59  ;;  %v12779_v59 = vcombine.low %v5849_v52, %v5853_v9  ;;  %v12788_v26 = vcombine.high %v5857_v15, %v5861_v0  ;;  %v5888_v9 = vld [vmem:[#allocation8 + $0x940] sm:$0xff] }
 0x34f   : > { %8808 = vmatprep.mubr.bf16.mxu0 %v15877_v45  ;;  %8844 = vmatpush1.bf16.msra.mxu0 %v12745_v55  ;;  %v5865_v55 = vld [vmem:[#allocation8 + $0x888] sm:$0xff] }
 0x350   : > { %9251 = vmatmul.mubr.bf16.gmra.mrb[88].mxu1 %v15821_v8  ;;  %8845 = vmatprep.subr.bf16.mxu0 %v12754_v57  ;;  %v12785_v57 = vcombine.low %v5856_v4, %v5860_v21 }
 0x351   : > { %9260 = vmatprep.mubr.bf16.mxu1 %v15877_v45  ;;  %9296 = vmatpush1.bf16.msra.mxu1 %v12747_v61  ;;  %v5869_v61 = vld [vmem:[#allocation8 + $0x8a8] sm:$0xff] }
 0x352   : > { %9297 = vmatprep.subr.bf16.mxu1 %v12756_v2  ;;  %v12787_v2 = vcombine.low %v5857_v15, %v5861_v0  ;;  %v12796_v23 = vcombine.high %v5865_v55, %v5869_v61  ;;  %v17725_v15 = vld [vmem:[#allocation30_spill] sm:$0xff] }
 0x353   : > { %8846 = vmatpush1.bf16.msra.mxu0 %v12753_v39  ;;  %v5873_v39 = vld [vmem:[#allocation8 + $0x8c8] sm:$0xff] }
 0x354   : > { %8847 = vmatprep.subr.bf16.mxu0 %v12762_v49  ;;  %v12793_v49 = vcombine.low %v5864_v60, %v5868_v20  ;;  %v5901_v60 = vld [vmem:[#allocation8 + $0x9a8] sm:$0xff] }
 0x355   : > { %9298 = vmatpush1.bf16.msra.mxu1 %v12755_v42  ;;  %v5877_v42 = vld [vmem:[#allocation8 + $0x8e8] sm:$0xff] }
 0x356   : > { %8809 = vmatmul.mubr.bf16.gmra.mrb[92].mxu0 %v15872_v3  ;;  %9299 = vmatprep.subr.bf16.mxu1 %v12764_v56  ;;  %v12795_v56 = vcombine.low %v5865_v55, %v5869_v61  ;;  %v12804_v13 = vcombine.high %v5873_v39, %v5877_v42  ;;  %v12803_v7 = vcombine.low %v5873_v39, %v5877_v42 }
 0x357   : > { %8851 = vmatprep.mubr.bf16.mxu0 %v15599_v48  ;;  %8848 = vmatpush1.bf16.msra.mxu0 %v12761_v41  ;;  %v17724_v41 = vld [vmem:[#allocation32_spill] sm:$0xff] }
 0x358   : > { %9261 = vmatmul.mubr.bf16.gmra.mrb[92].mxu1 %v15872_v3  ;;  %8849 = vmatprep.subr.bf16.mxu0 %v12770_v18  ;;  %v5885_v18 = vld [vmem:[#allocation8 + $0x928] sm:$0xff] }
 0x359   : > { %9303 = vmatprep.mubr.bf16.mxu1 %v15599_v48  ;;  %9300 = vmatpush1.bf16.msra.mxu1 %v12763_v54  ;;  %v5881_v54 = vld [vmem:[#allocation8 + $0x908] sm:$0xff] }
 0x35a   : > { %9301 = vmatprep.subr.bf16.mxu1 %v12772_v29  ;;  %v12801_v29 = vcombine.low %v5872_v5, %v5876_v63  ;;  %v12812_v52 = vcombine.high %v5881_v54, %v5885_v18  ;;  %v12811_v4 = vcombine.low %v5881_v54, %v5885_v18  ;;  %v5909_v5 = vld [vmem:[#allocation8 + $0x9e8] sm:$0xff] }
 0x35b   : > { %8850 = vmatpush1.bf16.msra.mxu0 %v12769_v40  ;;  %v5892_v40 = vld [vmem:[#allocation8 + $0x960] sm:$0xff] }
 0x35c   : > { %8932 = vmatprep.subr.bf16.mxu0 %v12778_v30  ;;  %v5893_v30 = vld [vmem:[#allocation8 + $0x968] sm:$0xff]  ;;  %v12818_v21 = vcombine.high %v5888_v9, %v5892_v40  ;;  %v12817_v20 = vcombine.low %v5888_v9, %v5892_v40 }
 0x35d   : > { %9302 = vmatpush1.bf16.msra.mxu1 %v12771_v50  ;;  %v5889_v50 = vld [vmem:[#allocation8 + $0x948] sm:$0xff] }
 0x35e   : > { %9384 = vmatprep.subr.bf16.mxu1 %v12780_v31  ;;  %8852 = vmatmul.mubr.bf16.vlgmr.msra.gmra.mrb[64].mxu0 %v15593_v43  ;;  %v12809_v31 = vcombine.low %v5880_v14, %v5884_v1  ;;  %v12820_v0 = vcombine.high %v5889_v50, %v5893_v30  ;;  %v12819_v55 = vcombine.low %v5889_v50, %v5893_v30  ;;  %v5913_v14 = vld [vmem:[#allocation8 + $0xa08] sm:$0xff] }
 0x35f   : > { %8861 = vmatprep.mubr.bf16.mxu0 %v15632_v46  ;;  %8933 = vmatpush1.bf16.msra.mxu0 %v12777_v35  ;;  %v5896_v35 = vld [vmem:[#allocation8 + $0x980] sm:$0xff]  ;;  %v5917_v1 = vld [vmem:[#allocation8 + $0xa28] sm:$0xff] }
 0x360   : > { %9304 = vmatmul.mubr.bf16.vlgmr.msra.gmra.mrb[64].mxu1 %v15593_v43  ;;  %8934 = vmatprep.subr.bf16.mxu0 %v12786_v11  ;;  %v17726_v11 = vld [vmem:[#allocation36_spill] sm:$0xff]  ;;  %v12843_v30 = vcombine.low %v5913_v14, %v5917_v1 }
 0x361   : > { %9313 = vmatprep.mubr.bf16.mxu1 %v15632_v46  ;;  %9385 = vmatpush1.bf16.msra.mxu1 %v12779_v59  ;;  %v5900_v59 = vld [vmem:[#allocation8 + $0x9a0] sm:$0xff]  ;;  %v5921_v9 = vld [vmem:[#allocation8 + $0xa48] sm:$0xff] }
 0x362   : > { %9386 = vmatprep.subr.bf16.mxu1 %v12788_v26  ;;  %v5897_v26 = vld [vmem:[#allocation8 + $0x988] sm:$0xff]  ;;  %v12826_v61 = vcombine.high %v5896_v35, %v5900_v59  ;;  %v12825_v63 = vcombine.low %v5896_v35, %v5900_v59  ;;  %v5932_v35 = vld [vmem:[#allocation8 + $0xaa0] sm:$0xff] }
 0x363   : > { %8935 = vmatpush1.bf16.msra.mxu0 %v12785_v57  ;;  %v12828_v57 = vcombine.high %v5897_v26, %v5901_v60  ;;  %v12827_v39 = vcombine.low %v5897_v26, %v5901_v60  ;;  %v5925_v40 = vld [vmem:[#allocation8 + $0xa68] sm:$0xff]  ;;  %v16096_v46 = vld [vmem:[#allocation8 + $0xdc0] sm:$0xff] }
 0x364   : > { %8936 = vmatprep.subr.bf16.mxu0 %v12794_v10  ;;  %v5908_v10 = vld [vmem:[#allocation8 + $0x9e0] sm:$0xff]  ;;  %v5929_v59 = vld [vmem:[#allocation8 + $0xa88] sm:$0xff] }
 0x365   : > { %9387 = vmatpush1.bf16.msra.mxu1 %v12787_v2  ;;  %v5904_v2 = vld [vmem:[#allocation8 + $0x9c0] sm:$0xff]  ;;  %v5933_v26 = vld [vmem:[#allocation8 + $0xaa8] sm:$0xff] }
 0x366   : > { %8862 = vmatmul.mubr.bf16.gmra.mrb[68].mxu0 %v15624_v33  ;;  %9388 = vmatprep.subr.bf16.mxu1 %v12796_v23  ;;  %v5905_v23 = vld [vmem:[#allocation8 + $0x9c8] sm:$0xff]  ;;  %v12834_v42 = vcombine.high %v5904_v2, %v5908_v10  ;;  %v12833_v54 = vcombine.low %v5904_v2, %v5908_v10  ;;  %v5940_v2 = vld [vmem:[#allocation8 + $0xae0] sm:$0xff] }
 0x367   : > { %8871 = vmatprep.mubr.bf16.mxu0 %v17724_v41  ;;  %8937 = vmatpush1.bf16.msra.mxu0 %v12793_v49  ;;  %v17727_v49 = vld [vmem:[#allocation34_spill] sm:$0xff]  ;;  %v12835_v18 = vcombine.low %v5905_v23, %v5909_v5  ;;  %v5937_v10 = vld [vmem:[#allocation8 + $0xac8] sm:$0xff] }
 0x368   : > { %9314 = vmatmul.mubr.bf16.gmra.mrb[68].mxu1 %v15624_v33  ;;  %8938 = vmatprep.subr.bf16.mxu0 %v12802_v6  ;;  %v5912_v6 = vld [vmem:[#allocation8 + $0xa00] sm:$0xff] }
 0x369   : > { %9323 = vmatprep.mubr.bf16.mxu1 %v17724_v41  ;;  %9389 = vmatpush1.bf16.msra.mxu1 %v12795_v56  ;;  %v12836_v56 = vcombine.high %v5905_v23, %v5909_v5  ;;  %v5941_v23 = vld [vmem:[#allocation8 + $0xae8] sm:$0xff] }
 0x36a   : > { %9390 = vmatprep.subr.bf16.mxu1 %v12804_v13  ;;  %v5916_v13 = vld [vmem:[#allocation8 + $0xa20] sm:$0xff] }
 0x36b   : > { %8939 = vmatpush1.bf16.msra.mxu0 %v12801_v29  ;;  %v12842_v29 = vcombine.high %v5912_v6, %v5916_v13  ;;  %v12841_v50 = vcombine.low %v5912_v6, %v5916_v13  ;;  %v5944_v6 = vld [vmem:[#allocation8 + $0xb00] sm:$0xff] }
 0x36c   : > { %8940 = vmatprep.subr.bf16.mxu0 %v12810_v24  ;;  %v5920_v24 = vld [vmem:[#allocation8 + $0xa40] sm:$0xff] }
 0x36d   : > { %9391 = vmatpush1.bf16.msra.mxu1 %v12803_v7  ;;  %v12844_v7 = vcombine.high %v5913_v14, %v5917_v1  ;;  %v5948_v13 = vld [vmem:[#allocation8 + $0xb20] sm:$0xff]  ;;  %v5945_v14 = vld [vmem:[#allocation8 + $0xb08] sm:$0xff] }
 0x36e   : > { %8872 = vmatmul.mubr.bf16.gmra.mrb[72].mxu0 %v17725_v15  ;;  %9392 = vmatprep.subr.bf16.mxu1 %v12812_v52  ;;  %v5924_v52 = vld [vmem:[#allocation8 + $0xa60] sm:$0xff]  ;;  %v5949_v1 = vld [vmem:[#allocation8 + $0xb28] sm:$0xff] }
 0x36f   : > { %8881 = vmatprep.mubr.bf16.mxu0 %v17726_v11  ;;  %8941 = vmatpush1.bf16.msra.mxu0 %v12809_v31  ;;  %v12850_v31 = vcombine.high %v5920_v24, %v5924_v52  ;;  %v12849_v60 = vcombine.low %v5920_v24, %v5924_v52  ;;  %v5952_v24 = vld [vmem:[#allocation8 + $0xb40] sm:$0xff] }
 0x370   : > { %9324 = vmatmul.mubr.bf16.gmra.mrb[72].mxu1 %v17725_v15  ;;  %8942 = vmatprep.subr.bf16.mxu0 %v12818_v21  ;;  %v12852_v21 = vcombine.high %v5921_v9, %v5925_v40  ;;  %v5956_v52 = vld [vmem:[#allocation8 + $0xb60] sm:$0xff]  ;;  %v16088_v15 = vld [vmem:[#allocation8 + $0xd88] sm:$0xff] }
 0x371   : > { %9333 = vmatprep.mubr.bf16.mxu1 %v17726_v11  ;;  %9393 = vmatpush1.bf16.msra.mxu1 %v12811_v4  ;;  %v17728_v4 = vld [vmem:[#allocation38_spill] sm:$0xff] }
 0x372   : > { %9394 = vmatprep.subr.bf16.mxu1 %v12820_v0  ;;  %v5928_v0 = vld [vmem:[#allocation8 + $0xa80] sm:$0xff] }
 0x373   : > { %8943 = vmatpush1.bf16.msra.mxu0 %v12817_v20  ;;  %v12851_v20 = vcombine.low %v5921_v9, %v5925_v40  ;;  %v12857_v5 = vcombine.low %v5928_v0, %v5932_v35  ;;  %v5953_v9 = vld [vmem:[#allocation8 + $0xb48] sm:$0xff] }
 0x374   : > { %8944 = vmatprep.subr.bf16.mxu0 %v12826_v61  ;;  %v12860_v61 = vcombine.high %v5929_v59, %v5933_v26  ;;  %v5957_v40 = vld [vmem:[#allocation8 + $0xb68] sm:$0xff] }
 0x375   : > { %9395 = vmatpush1.bf16.msra.mxu1 %v12819_v55  ;;  %v12858_v55 = vcombine.high %v5928_v0, %v5932_v35  ;;  %v5960_v0 = vld [vmem:[#allocation8 + $0xb80] sm:$0xff] }
 0x376   : > { %8882 = vmatmul.mubr.bf16.gmra.mrb[76].mxu0 %v17727_v49  ;;  %9396 = vmatprep.subr.bf16.mxu1 %v12828_v57  ;;  %v5936_v57 = vld [vmem:[#allocation8 + $0xac0] sm:$0xff] }
 0x377   : > { %8891 = vmatprep.mubr.bf16.mxu0 %v15733_v27  ;;  %8945 = vmatpush1.bf16.msra.mxu0 %v12825_v63  ;;  %v12859_v63 = vcombine.low %v5929_v59, %v5933_v26  ;;  %v5964_v35 = vld [vmem:[#allocation8 + $0xba0] sm:$0xff]  ;;  %v5961_v59 = vld [vmem:[#allocation8 + $0xb88] sm:$0xff] }
 0x378   : > { %9334 = vmatmul.mubr.bf16.gmra.mrb[76].mxu1 %v17727_v49  ;;  %8946 = vmatprep.subr.bf16.mxu0 %v12834_v42  ;;  %v17729_v42 = vld [vmem:[#allocation42_spill] sm:$0xff]  ;;  %v5965_v26 = vld [vmem:[#allocation8 + $0xba8] sm:$0xff] }
 0x379   : > { %9343 = vmatprep.mubr.bf16.mxu1 %v15733_v27  ;;  %9397 = vmatpush1.bf16.msra.mxu1 %v12827_v39  ;;  %v12866_v39 = vcombine.high %v5936_v57, %v5940_v2 }
 0x37a   : > { %9398 = vmatprep.subr.bf16.mxu1 %v12836_v56  ;;  %v12868_v56 = vcombine.high %v5937_v10, %v5941_v23 }
 0x37b   : > { %8947 = vmatpush1.bf16.msra.mxu0 %v12833_v54  ;;  %v12865_v54 = vcombine.low %v5936_v57, %v5940_v2  ;;  %v5968_v57 = vld [vmem:[#allocation8 + $0xbc0] sm:$0xff] }
 0x37c   : > { %8948 = vmatprep.subr.bf16.mxu0 %v12842_v29  ;;  %v12874_v29 = vcombine.high %v5944_v6, %v5948_v13  ;;  %v5972_v2 = vld [vmem:[#allocation8 + $0xbe0] sm:$0xff] }
 0x37d   : > { %9399 = vmatpush1.bf16.msra.mxu1 %v12835_v18  ;;  %v12867_v18 = vcombine.low %v5937_v10, %v5941_v23  ;;  %v5969_v10 = vld [vmem:[#allocation8 + $0xbc8] sm:$0xff] }
 0x37e   : > { %8892 = vmatmul.mubr.bf16.gmra.mrb[80].mxu0 %v17728_v4  ;;  %9400 = vmatprep.subr.bf16.mxu1 %v12844_v7  ;;  %v12876_v7 = vcombine.high %v5945_v14, %v5949_v1  ;;  %v5973_v23 = vld [vmem:[#allocation8 + $0xbe8] sm:$0xff] }
 0x37f   : > { %8901 = vmatprep.mubr.bf16.mxu0 %v15781_v22  ;;  %8949 = vmatpush1.bf16.msra.mxu0 %v12841_v50  ;;  %v12873_v50 = vcombine.low %v5944_v6, %v5948_v13  ;;  %v15962_v6 = vld [vmem:[#allocation8 + $0xc00] sm:$0xff] }
 0x380   : > { %9344 = vmatmul.mubr.bf16.gmra.mrb[80].mxu1 %v17728_v4  ;;  %8950 = vmatprep.subr.bf16.mxu0 %v12850_v31  ;;  %v12882_v31 = vcombine.high %v5952_v24, %v5956_v52  ;;  %v15964_v13 = vld [vmem:[#allocation8 + $0xc20] sm:$0xff]  ;;  %v16090_v4 = vld [vmem:[#allocation8 + $0xda8] sm:$0xff] }
 0x381   : > { %9353 = vmatprep.mubr.bf16.mxu1 %v15781_v22  ;;  %9401 = vmatpush1.bf16.msra.mxu1 %v12843_v30  ;;  %v12875_v30 = vcombine.low %v5945_v14, %v5949_v1  ;;  %v15967_v14 = vld [vmem:[#allocation8 + $0xc08] sm:$0xff]  ;;  %17731 = vst [vmem:[#allocation53_spill] sm:$0xff] %v16090_v4 }
 0x382   : > { %9402 = vmatprep.subr.bf16.mxu1 %v12852_v21  ;;  %v12884_v21 = vcombine.high %v5953_v9, %v5957_v40  ;;  %v15969_v1 = vld [vmem:[#allocation8 + $0xc28] sm:$0xff] }
 0x383   : > { %8951 = vmatpush1.bf16.msra.mxu0 %v12849_v60  ;;  %v12881_v60 = vcombine.low %v5952_v24, %v5956_v52  ;;  %v17730_v24 = vld [vmem:[#allocation20_spill] sm:$0xff] }
 0x384   : > { %8952 = vmatprep.subr.bf16.mxu0 %v12858_v55  ;;  %v12890_v55 = vcombine.high %v5960_v0, %v5964_v35  ;;  %v17538_v52 = vsub.s32 4, %v17730_v24 }
 0x385   : > { %9403 = vmatpush1.bf16.msra.mxu1 %v12851_v20  ;;  %v12883_v20 = vcombine.low %v5953_v9, %v5957_v40  ;;  %v17537_v9 = vsub.s32 6, %v17730_v24  ;;  %v17536_v40 = vsub.s32 5, %v17730_v24 }
 0x386   : > { %8902 = vmatmul.mubr.bf16.gmra.mrb[84].mxu0 %v17729_v42  ;;  %9404 = vmatprep.subr.bf16.mxu1 %v12860_v61  ;;  %v12892_v61 = vcombine.high %v5961_v59, %v5965_v26 }
 0x387   : > { %8911 = vmatprep.mubr.bf16.mxu0 %v15838_v53  ;;  %8953 = vmatpush1.bf16.msra.mxu0 %v12857_v5  ;;  %v12889_v5 = vcombine.low %v5960_v0, %v5964_v35  ;;  %v15985_v0 = vld [vmem:[#allocation8 + $0xc68] sm:$0xff]  ;;  %v15987_v35 = vld [vmem:[#allocation8 + $0xc80] sm:$0xff] }
 0x388   : > { %9354 = vmatmul.mubr.bf16.gmra.mrb[84].mxu1 %v17729_v42  ;;  %8954 = vmatprep.subr.bf16.mxu0 %v12866_v39  ;;  %v12898_v39 = vcombine.high %v5968_v57, %v5972_v2 }
 0x389   : > { %9363 = vmatprep.mubr.bf16.mxu1 %v15838_v53  ;;  %9405 = vmatpush1.bf16.msra.mxu1 %v12859_v63  ;;  %v12891_v63 = vcombine.low %v5961_v59, %v5965_v26  ;;  %v15989_v59 = vld [vmem:[#allocation8 + $0xca0] sm:$0xff]  ;;  %v15991_v26 = vld [vmem:[#allocation8 + $0xc88] sm:$0xff] }
 0x38a   : > { %9406 = vmatprep.subr.bf16.mxu1 %v12868_v56  ;;  %v12900_v56 = vcombine.high %v5969_v10, %v5973_v23 }
 0x38b   : > { %8955 = vmatpush1.bf16.msra.mxu0 %v12865_v54  ;;  %v12897_v54 = vcombine.low %v5968_v57, %v5972_v2  ;;  %v16003_v57 = vld [vmem:[#allocation8 + $0xcc0] sm:$0xff] }
 0x38c   : > { %8956 = vmatprep.subr.bf16.mxu0 %v12874_v29  ;;  %v12906_v29 = vcombine.high %v15962_v6, %v15964_v13  ;;  %v16005_v2 = vld [vmem:[#allocation8 + $0xce0] sm:$0xff] }
 0x38d   : > { %9407 = vmatpush1.bf16.msra.mxu1 %v12867_v18  ;;  %v12899_v18 = vcombine.low %v5969_v10, %v5973_v23  ;;  %v16007_v10 = vld [vmem:[#allocation8 + $0xcc8] sm:$0xff] }
 0x38e   : > { %8912 = vmatmul.mubr.bf16.gmra.mrb[88].mxu0 %v15825_v37  ;;  %9408 = vmatprep.subr.bf16.mxu1 %v12876_v7  ;;  %v12908_v7 = vcombine.high %v15967_v14, %v15969_v1 }
 0x38f   : > { %8921 = vmatprep.mubr.bf16.mxu0 %v15884_v32  ;;  %8957 = vmatpush1.bf16.msra.mxu0 %v12873_v50  ;;  %v17535_v50 = vsub.s32 7, %v17730_v24  ;;  %v16053_v24 = vld [vmem:[#allocation8 + $0xd68] sm:$0xff] }
 0x390   : > { %9364 = vmatmul.mubr.bf16.gmra.mrb[88].mxu1 %v15825_v37  ;;  %8958 = vmatprep.subr.bf16.mxu0 %v12882_v31  ;;  %v15981_v31 = vld [vmem:[#allocation8 + $0xc60] sm:$0xff] }
 0x391   : > { %9373 = vmatprep.mubr.bf16.mxu1 %v15884_v32  ;;  %9409 = vmatpush1.bf16.msra.mxu1 %v12875_v30  ;;  %v15979_v30 = vld [vmem:[#allocation8 + $0xc40] sm:$0xff] }
 0x392   : > { %9410 = vmatprep.subr.bf16.mxu1 %v12884_v21  ;;  %v15983_v21 = vld [vmem:[#allocation8 + $0xc48] sm:$0xff]  ;;  %v16063_v32 = vld [vmem:[#allocation8 + $0xd80] sm:$0xff] }
 0x393   : > { %8959 = vmatpush1.bf16.msra.mxu0 %v12881_v60  ;;  %v15993_v60 = vld [vmem:[#allocation8 + $0xca8] sm:$0xff] }
 0x394   : > { %8960 = vmatprep.subr.bf16.mxu0 %v12890_v55 }
 0x395   : > { %9411 = vmatpush1.bf16.msra.mxu1 %v12883_v20  ;;  %v14783_v20 = vld [vmem:[#allocation7] sm:$0xff] }
 0x396   : > { %8922 = vmatmul.mubr.bf16.gmra.mrb[92].mxu0 %v15875_v58  ;;  %9412 = vmatprep.subr.bf16.mxu1 %v12892_v61  ;;  %v15997_v55 = vrot.slane %v14783_v20, %v17538_v52  ;;  %v16001_v61 = vrot.slane %v14783_v20, %v17537_v9  ;;  %v16011_v23 = vrot.slane %v14783_v20, %v17536_v40  ;;  %v16035_v40 = vld [vmem:[#allocation8 + $0xd08] sm:$0xff]  ;;  %v16039_v52 = vld [vmem:[#allocation8 + $0xd40] sm:$0xff] }
 0x397   : > { %8961 = vmatpush1.bf16.msra.mxu0 %v12889_v5  ;;  %v16015_v5 = vrot.slane %v14783_v20, %v17535_v50  ;;  %v16037_v9 = vld [vmem:[#allocation8 + $0xd28] sm:$0xff]  ;;  %v16065_v20 = vld [vmem:[#allocation8 + $0xda0] sm:$0xff] }
 0x398   : > { %9374 = vmatmul.mubr.bf16.gmra.mrb[92].mxu1 %v15875_v58  ;;  %8962 = vmatprep.subr.bf16.mxu0 %v12898_v39  ;;  %v16051_v50 = vld [vmem:[#allocation8 + $0xd48] sm:$0xff] }
 0x399   : > { %9413 = vmatpush1.bf16.msra.mxu1 %v12891_v63  ;;  %v16049_v63 = vld [vmem:[#allocation8 + $0xd60] sm:$0xff] }
 0x39a   : > { %9414 = vmatprep.subr.bf16.mxu1 %v12900_v56  ;;  %v16021_v56 = vld [vmem:[#allocation8 + $0xce8] sm:$0xff] }
 0x39b   : > { %8963 = vmatpush1.bf16.msra.mxu0 %v12897_v54  ;;  %v16023_v54 = vld [vmem:[#allocation8 + $0xd00] sm:$0xff] }
 0x39c   : > { %9045 = vmatprep.subr.bf16.mxu0 %v12906_v29 }
 0x39d   : > { %9415 = vmatpush1.bf16.msra.mxu1 %v12899_v18  ;;  %v16025_v18 = vld [vmem:[#allocation8 + $0xd20] sm:$0xff] }
 0x39e   : > { %9497 = vmatprep.subr.bf16.mxu1 %v12908_v7 }
 0x3ac   : > { %v4741_v37 = vpop.f32.mrb[32].mxu0 }
 0x3ad   : > { %v13440_v42 = vadd.f32 %v4741_v37, %v15997_v55  ;;  %v5193_v7 = vpop.f32.mrb[32].mxu1  ;;  %v4743_v22 = vpop.f32.mrb[33].mxu0  ;;  %v16098_v37 = vld [vmem:[#allocation8 + $0xde0] sm:$0xff] }
 0x3ae   : > { %v13472_v58 = vadd.f32 %v5193_v7, %v16001_v61  ;;  %v13441_v39 = vadd.f32 %v4743_v22, %v16011_v23  ;;  %v5195_v49 = vpop.f32.mrb[33].mxu1  ;;  %v4745_v11 = vpop.f32.mrb[34].mxu0 }
 0x3af   : > { %v5276_v27 = vmul.f32 0.2, %v13440_v42  ;;  %v13473_v41 = vadd.f32 %v5195_v49, %v16015_v5  ;;  %v13442_v53 = vadd.f32 %v4745_v11, %v15997_v55  ;;  %v5197_v7 = vpop.f32.mrb[34].mxu1  ;;  %v4747_v33 = vpop.f32.mrb[35].mxu0 }
 0x3b0   : > { %v5278_v43 = vmul.f32 0.2, %v13472_v58  ;;  %v5277_v29 = vmul.f32 0.2, %v13441_v39  ;;  %v13474_v48 = vadd.f32 %v5197_v7, %v16001_v61  ;;  %v13443_v3 = vadd.f32 %v4747_v33, %v16011_v23  ;;  %v5199_v45 = vpop.f32.mrb[35].mxu1 }
 0x3b1   : > { %v5279_v8 = vmul.f32 0.2, %v13473_v41  ;;  %v5284_v49 = vmul.f32 0.2, %v13442_v53  ;;  %v13475_v11 = vadd.f32 %v5199_v45, %v16015_v5  ;;  %v5404_v19 = vmax.f32 %v13440_v42, %v5276_v27 }
 0x3b2   : > { %v5286_v17 = vmul.f32 0.2, %v13474_v48  ;;  %v5285_v22 = vmul.f32 0.2, %v13443_v3  ;;  %v5406_v62 = vmax.f32 %v13472_v58, %v5278_v43  ;;  %v5405_v51 = vmax.f32 %v13441_v39, %v5277_v29 }
 0x3b3   : > { %v5412_v7 = vmax.f32 %v13442_v53, %v5284_v49  ;;  %v5287_v16 = vmul.f32 0.2, %v13475_v11  ;;  %v5407_v12 = vmax.f32 %v13473_v41, %v5279_v8  ;;  %v16122_v8 = vld [vmem:[#allocation8 + $0xde8] sm:$0xff]  ;;  %v17738_v49 = vcombine.high %v15979_v30, %v15981_v31 }
 0x3b4   : > { %v5414_v45 = vmax.f32 %v13474_v48, %v5286_v17  ;;  %v5413_v47 = vmax.f32 %v13443_v3, %v5285_v22  ;;  %v16120_v17 = vld [vmem:[#allocation8 + $0xdc8] sm:$0xff] }
 0x3b5   : > { %v16111_v34 = vpack.c.bf16 %v5412_v7, %v5404_v19  ;;  %v5415_v36 = vmax.f32 %v13475_v11, %v5287_v16 }
 0x3b6   : > { %v4751_v25 = vpop.f32.mrb[36].mxu0  ;;  %v16114_v28 = vpack.c.bf16 %v5414_v45, %v5406_v62  ;;  %v16116_v27 = vpack.c.bf16 %v5413_v47, %v5405_v51  ;;  %v16128_v47 = vld [vmem:[#allocation8 + $0xe00] sm:$0xff]  ;;  %v17736_v45 = vcombine.low %v15962_v6, %v15964_v13  ;;  %v17739_v6 = vcombine.high %v15983_v21, %v15985_v0 }
 0x3b7   : > { %17732 = vst [vmem:[#allocation54_spill] sm:$0xff] %v16111_v34  ;;  %v13444_v38 = vadd.f32 %v4751_v25, %v15997_v55  ;;  %v5203_v44 = vpop.f32.mrb[36].mxu1  ;;  %v4753_v4 = vpop.f32.mrb[37].mxu0  ;;  %v16124_v19 = vpack.c.bf16 %v5415_v36, %v5407_v12 }
 0x3b8   : > { %17733 = vst [vmem:[#allocation55_spill] sm:$0xff] %v16114_v28  ;;  %17734 = vst [vmem:[#allocation56_spill] sm:$0xff] %v16116_v27  ;;  %v13476_v53 = vadd.f32 %v5203_v44, %v16001_v61  ;;  %v13445_v43 = vadd.f32 %v4753_v4, %v16011_v23  ;;  %v5205_v58 = vpop.f32.mrb[37].mxu1  ;;  %v4755_v48 = vpop.f32.mrb[38].mxu0  ;;  %v16130_v44 = vld [vmem:[#allocation8 + $0xe20] sm:$0xff]  ;;  %8964 = vmatprep.mubr.bf16.mxu0 %v16116_v27  ;;  %9416 = vmatprep.mubr.bf16.mxu1 %v16116_v27 }
 0x3b9   : > { %17735 = vst [vmem:[#allocation57_spill] sm:$0xff] %v16124_v19  ;;  %v5292_v16 = vmul.f32 0.2, %v13444_v38  ;;  %v13477_v25 = vadd.f32 %v5205_v58, %v16015_v5  ;;  %v13446_v62 = vadd.f32 %v4755_v48, %v15997_v55  ;;  %v5207_v3 = vpop.f32.mrb[38].mxu1  ;;  %v4757_v51 = vpop.f32.mrb[39].mxu0  ;;  %8965 = vmatmul.mubr.bf16.vlgmr.msra.gmra.mrb[64].mxu0 %v16111_v34  ;;  %9417 = vmatmul.mubr.bf16.vlgmr.msra.gmra.mrb[64].mxu1 %v16111_v34 }
 0x3ba   : > { %v5294_v41 = vmul.f32 0.2, %v13476_v53  ;;  %v5293_v4 = vmul.f32 0.2, %v13445_v43  ;;  %v13478_v42 = vadd.f32 %v5207_v3, %v16001_v61  ;;  %v13447_v39 = vadd.f32 %v4757_v51, %v16011_v23  ;;  %v5209_v29 = vpop.f32.mrb[39].mxu1  ;;  %9046 = vmatpush1.bf16.msra.mxu0 %v17736_v45 }
 0x3bb   : > { %v5295_v36 = vmul.f32 0.2, %v13477_v25  ;;  %v5300_v12 = vmul.f32 0.2, %v13446_v62  ;;  %v13479_v22 = vadd.f32 %v5209_v29, %v16015_v5  ;;  %v17737_v58 = vcombine.low %v15967_v14, %v15969_v1  ;;  %9047 = vmatprep.subr.bf16.mxu0 %v17738_v49 }
 0x3bc   : > { %v5302_v11 = vmul.f32 0.2, %v13478_v42  ;;  %v5301_v7 = vmul.f32 0.2, %v13447_v39  ;;  %v5420_v51 = vmax.f32 %v13444_v38, %v5292_v16  ;;  %v5422_v14 = vmax.f32 %v13476_v53, %v5294_v41 }
 0x3bd   : > { %9498 = vmatpush1.bf16.msra.mxu1 %v17737_v58  ;;  %v5428_v29 = vmax.f32 %v13446_v62, %v5300_v12  ;;  %v5303_v33 = vmul.f32 0.2, %v13479_v22  ;;  %v5421_v1 = vmax.f32 %v13445_v43, %v5293_v4  ;;  %v5423_v3 = vmax.f32 %v13477_v25, %v5295_v36  ;;  %v16171_v4 = vld [vmem:[#allocation8 + $0xe08] sm:$0xff] }
 0x3be   : > { %9499 = vmatprep.subr.bf16.mxu1 %v17739_v6  ;;  %v5430_v45 = vmax.f32 %v13478_v42, %v5302_v11  ;;  %v5429_v58 = vmax.f32 %v13447_v39, %v5301_v7  ;;  %v4761_v48 = vpop.f32.mrb[40].mxu0  ;;  %v17741_v25 = vcombine.low %v15979_v30, %v15981_v31  ;;  %v17743_v7 = vcombine.low %v15983_v21, %v15985_v0  ;;  %v16185_v31 = vld [vmem:[#allocation8 + $0xe40] sm:$0xff] }
 0x3bf   : > { %v16159_v38 = vpack.c.bf16 %v5428_v29, %v5420_v51  ;;  %v5431_v16 = vmax.f32 %v13479_v22, %v5303_v33  ;;  %v13448_v62 = vadd.f32 %v4761_v48, %v15997_v55  ;;  %v4763_v49 = vpop.f32.mrb[41].mxu0  ;;  %v16173_v33 = vld [vmem:[#allocation8 + $0xe28] sm:$0xff]  ;;  %v17744_v30 = vcombine.high %v15987_v35, %v15989_v59  ;;  %v16187_v51 = vld [vmem:[#allocation8 + $0xe60] sm:$0xff] }
 0x3c0   : > { %v5213_v12 = vpop.f32.mrb[40].mxu1  ;;  %v16162_v34 = vpack.c.bf16 %v5430_v45, %v5422_v14  ;;  %v16164_v27 = vpack.c.bf16 %v5429_v58, %v5421_v1  ;;  %v13449_v53 = vadd.f32 %v4763_v49, %v16011_v23  ;;  %v4765_v41 = vpop.f32.mrb[42].mxu0  ;;  %9048 = vmatpush1.bf16.msra.mxu0 %v17741_v25 }
 0x3c1   : > { %v13480_v6 = vadd.f32 %v5213_v12, %v16001_v61  ;;  %v5215_v43 = vpop.f32.mrb[41].mxu1  ;;  %v16175_v42 = vpack.c.bf16 %v5431_v16, %v5423_v3  ;;  %v5308_v39 = vmul.f32 0.2, %v13448_v62  ;;  %v13450_v22 = vadd.f32 %v4765_v41, %v15997_v55  ;;  %9500 = vmatpush1.bf16.msra.mxu1 %v17743_v7  ;;  %v4767_v48 = vpop.f32.mrb[43].mxu0  ;;  %9049 = vmatprep.subr.bf16.mxu0 %v17744_v30 }
 0x3c2   : > { %17740 = vst [vmem:[#allocation58_spill] sm:$0xff] %v16162_v34  ;;  %v13481_v36 = vadd.f32 %v5215_v43, %v16015_v5  ;;  %v5217_v11 = vpop.f32.mrb[42].mxu1  ;;  %v5309_v29 = vmul.f32 0.2, %v13449_v53  ;;  %v13451_v1 = vadd.f32 %v4767_v48, %v16011_v23  ;;  %8974 = vmatprep.mubr.bf16.mxu0 %v16164_v27  ;;  %9426 = vmatprep.mubr.bf16.mxu1 %v16164_v27 }
 0x3c3   : > { %17742 = vst [vmem:[#allocation59_spill] sm:$0xff] %v16175_v42  ;;  %v5310_v3 = vmul.f32 0.2, %v13480_v6  ;;  %v13482_v14 = vadd.f32 %v5217_v11, %v16001_v61  ;;  %v5219_v45 = vpop.f32.mrb[43].mxu1  ;;  %v5316_v0 = vmul.f32 0.2, %v13450_v22  ;;  %8975 = vmatmul.mubr.bf16.gmra.mrb[68].mxu0 %v16159_v38  ;;  %9427 = vmatmul.mubr.bf16.gmra.mrb[68].mxu1 %v16159_v38  ;;  %v17745_v43 = vcombine.high %v15991_v26, %v15993_v60 }
 0x3c4   : > { %v5311_v21 = vmul.f32 0.2, %v13481_v36  ;;  %v13483_v58 = vadd.f32 %v5219_v45, %v16015_v5  ;;  %v5317_v49 = vmul.f32 0.2, %v13451_v1  ;;  %v17746_v41 = vcombine.low %v15987_v35, %v15989_v59 }
 0x3c5   : > { %v5318_v12 = vmul.f32 0.2, %v13482_v14  ;;  %9501 = vmatprep.subr.bf16.mxu1 %v17745_v43  ;;  %v5436_v7 = vmax.f32 %v13448_v62, %v5308_v39  ;;  %v5444_v48 = vmax.f32 %v13450_v22, %v5316_v0  ;;  %v17747_v45 = vcombine.low %v15991_v26, %v15993_v60 }
 0x3c6   : > { %9050 = vmatpush1.bf16.msra.mxu0 %v17746_v41  ;;  %v5319_v30 = vmul.f32 0.2, %v13483_v58  ;;  %v17748_v43 = vcombine.high %v16003_v57, %v16005_v2  ;;  %v5438_v59 = vmax.f32 %v13480_v6, %v5310_v3  ;;  %v5437_v41 = vmax.f32 %v13449_v53, %v5309_v29 }
 0x3c7   : > { %9502 = vmatpush1.bf16.msra.mxu1 %v17747_v45  ;;  %v5446_v16 = vmax.f32 %v13482_v14, %v5318_v12  ;;  %v5445_v13 = vmax.f32 %v13451_v1, %v5317_v49  ;;  %v4771_v25 = vpop.f32.mrb[44].mxu0  ;;  %v17749_v62 = vcombine.high %v16007_v10, %v16021_v56  ;;  %v5439_v39 = vmax.f32 %v13481_v36, %v5311_v21  ;;  %v16231_v14 = vld [vmem:[#allocation8 + $0xe48] sm:$0xff] }
 0x3c8   : > { %9051 = vmatprep.subr.bf16.mxu0 %v17748_v43  ;;  %v16219_v22 = vpack.c.bf16 %v5444_v48, %v5436_v7  ;;  %v5447_v26 = vmax.f32 %v13483_v58, %v5319_v30  ;;  %v13452_v60 = vadd.f32 %v4771_v25, %v15997_v55  ;;  %v4773_v45 = vpop.f32.mrb[45].mxu0  ;;  %v17751_v36 = vcombine.low %v16003_v57, %v16005_v2  ;;  %v16233_v1 = vld [vmem:[#allocation8 + $0xe68] sm:$0xff]  ;;  %v16245_v2 = vld [vmem:[#allocation8 + $0xe80] sm:$0xff] }
 0x3c9   : > { %9503 = vmatprep.subr.bf16.mxu1 %v17749_v62  ;;  %v5223_v0 = vpop.f32.mrb[44].mxu1  ;;  %v16222_v43 = vpack.c.bf16 %v5446_v16, %v5438_v59  ;;  %v16224_v35 = vpack.c.bf16 %v5445_v13, %v5437_v41  ;;  %v13453_v53 = vadd.f32 %v4773_v45, %v16011_v23  ;;  %v4775_v29 = vpop.f32.mrb[46].mxu0  ;;  %v17753_v49 = vcombine.low %v16007_v10, %v16021_v56  ;;  %v16247_v7 = vld [vmem:[#allocation8 + $0xea0] sm:$0xff] }
 0x3ca   : > { %v13484_v6 = vadd.f32 %v5223_v0, %v16001_v61  ;;  %v5225_v3 = vpop.f32.mrb[45].mxu1  ;;  %9052 = vmatpush1.bf16.msra.mxu0 %v17751_v36  ;;  %v16235_v21 = vpack.c.bf16 %v5447_v26, %v5439_v39  ;;  %v5324_v58 = vmul.f32 0.2, %v13452_v60  ;;  %v13454_v16 = vadd.f32 %v4775_v29, %v15997_v55  ;;  %v4777_v25 = vpop.f32.mrb[47].mxu0 }
 0x3cb   : > { %17750 = vst [vmem:[#allocation60_spill] sm:$0xff] %v16222_v43  ;;  %v13485_v13 = vadd.f32 %v5225_v3, %v16015_v5  ;;  %v5227_v12 = vpop.f32.mrb[46].mxu1  ;;  %9504 = vmatpush1.bf16.msra.mxu1 %v17753_v49  ;;  %v17754_v57 = vcombine.high %v16023_v54, %v16025_v18  ;;  %v5325_v30 = vmul.f32 0.2, %v13453_v53  ;;  %v13455_v41 = vadd.f32 %v4777_v25, %v16011_v23 }
 0x3cc   : > { %17752 = vst [vmem:[#allocation61_spill] sm:$0xff] %v16235_v21  ;;  %v5326_v48 = vmul.f32 0.2, %v13484_v6  ;;  %v13486_v59 = vadd.f32 %v5227_v12, %v16001_v61  ;;  %v5229_v62 = vpop.f32.mrb[47].mxu1  ;;  %8984 = vmatprep.mubr.bf16.mxu0 %v16224_v35  ;;  %9436 = vmatprep.mubr.bf16.mxu1 %v16224_v35  ;;  %v5332_v56 = vmul.f32 0.2, %v13454_v16  ;;  %v17755_v3 = vcombine.high %v16035_v40, %v16037_v9 }
 0x3cd   : > { %9053 = vmatprep.subr.bf16.mxu0 %v17754_v57  ;;  %v5327_v10 = vmul.f32 0.2, %v13485_v13  ;;  %v13487_v39 = vadd.f32 %v5229_v62, %v16015_v5  ;;  %8985 = vmatmul.mubr.bf16.gmra.mrb[72].mxu0 %v16219_v22  ;;  %v5333_v45 = vmul.f32 0.2, %v13455_v41  ;;  %v17756_v29 = vcombine.low %v16023_v54, %v16025_v18 }
 0x3ce   : > { %9437 = vmatmul.mubr.bf16.gmra.mrb[72].mxu1 %v16219_v22  ;;  %v5334_v0 = vmul.f32 0.2, %v13486_v59  ;;  %9505 = vmatprep.subr.bf16.mxu1 %v17755_v3  ;;  %v5452_v49 = vmax.f32 %v13452_v60, %v5324_v58  ;;  %v5460_v25 = vmax.f32 %v13454_v16, %v5332_v56  ;;  %v17757_v62 = vcombine.low %v16035_v40, %v16037_v9 }
 0x3cf   : > { %9054 = vmatpush1.bf16.msra.mxu0 %v17756_v29  ;;  %v5335_v57 = vmul.f32 0.2, %v13487_v39  ;;  %v17758_v3 = vcombine.high %v16039_v52, %v16049_v63  ;;  %v5454_v18 = vmax.f32 %v13484_v6, %v5326_v48  ;;  %v5453_v29 = vmax.f32 %v13453_v53, %v5325_v30  ;;  %v4781_v11 = vpop.f32.mrb[48].mxu0 }
 0x3d0   : > { %9506 = vmatpush1.bf16.msra.mxu1 %v17757_v62  ;;  %v5462_v26 = vmax.f32 %v13486_v59, %v5334_v0  ;;  %v5461_v36 = vmax.f32 %v13455_v41, %v5333_v45  ;;  %v17759_v60 = vcombine.high %v16051_v50, %v16053_v24  ;;  %v5455_v58 = vmax.f32 %v13485_v13, %v5327_v10  ;;  %v4783_v62 = vpop.f32.mrb[49].mxu0  ;;  %v16291_v59 = vld [vmem:[#allocation8 + $0xe88] sm:$0xff] }
 0x3d1   : > { %9055 = vmatprep.subr.bf16.mxu0 %v17758_v3  ;;  %v16279_v16 = vpack.c.bf16 %v5460_v25, %v5452_v49  ;;  %v5463_v9 = vmax.f32 %v13487_v39, %v5335_v57  ;;  %v13456_v40 = vadd.f32 %v4781_v11, %v15997_v55  ;;  %v5233_v56 = vpop.f32.mrb[48].mxu1  ;;  %v13457_v53 = vadd.f32 %v4783_v62, %v16011_v23  ;;  %v4785_v30 = vpop.f32.mrb[50].mxu0  ;;  %v16293_v41 = vld [vmem:[#allocation8 + $0xea8] sm:$0xff]  ;;  %v16307_v49 = vld [vmem:[#allocation8 + $0xee0] sm:$0xff] }
 0x3d2   : > { %9507 = vmatprep.subr.bf16.mxu1 %v17759_v60  ;;  %v16282_v3 = vpack.c.bf16 %v5462_v26, %v5454_v18  ;;  %v16284_v54 = vpack.c.bf16 %v5461_v36, %v5453_v29  ;;  %v13488_v6 = vadd.f32 %v5233_v56, %v16001_v61  ;;  %v5235_v48 = vpop.f32.mrb[49].mxu1  ;;  %v17762_v13 = vcombine.low %v16039_v52, %v16049_v63  ;;  %v4787_v36 = vpop.f32.mrb[51].mxu0  ;;  %v16305_v63 = vld [vmem:[#allocation8 + $0xec0] sm:$0xff] }
 0x3d3   : > { %17760 = vst [vmem:[#allocation62_spill] sm:$0xff] %v16279_v16  ;;  %v16295_v11 = vpack.c.bf16 %v5463_v9, %v5455_v58  ;;  %v5340_v10 = vmul.f32 0.2, %v13456_v40  ;;  %v13489_v39 = vadd.f32 %v5235_v48, %v16015_v5  ;;  %v13458_v26 = vadd.f32 %v4785_v30, %v15997_v55  ;;  %v5237_v0 = vpop.f32.mrb[50].mxu1  ;;  %v17766_v48 = vld [vmem:[#allocation53_spill] sm:$0xff] }
 0x3d4   : > { %17761 = vst [vmem:[#allocation63_spill] sm:$0xff] %v16282_v3  ;;  %9056 = vmatpush1.bf16.msra.mxu0 %v17762_v13  ;;  %v17764_v45 = vcombine.low %v16051_v50, %v16053_v24  ;;  %v17765_v52 = vcombine.high %v16063_v32, %v16065_v20  ;;  %v5342_v25 = vmul.f32 0.2, %v13488_v6  ;;  %v5341_v57 = vmul.f32 0.2, %v13457_v53  ;;  %v5239_v60 = vpop.f32.mrb[51].mxu1  ;;  %8994 = vmatprep.mubr.bf16.mxu0 %v16284_v54 }
 0x3d5   : > { %17763 = vst [vmem:[#allocation64_spill] sm:$0xff] %v16295_v11  ;;  %v13490_v18 = vadd.f32 %v5237_v0, %v16001_v61  ;;  %v13459_v29 = vadd.f32 %v4787_v36, %v16011_v23  ;;  %9446 = vmatprep.mubr.bf16.mxu1 %v16284_v54  ;;  %v5343_v24 = vmul.f32 0.2, %v13489_v39  ;;  %v5348_v50 = vmul.f32 0.2, %v13458_v26  ;;  %8995 = vmatmul.mubr.bf16.gmra.mrb[76].mxu0 %v16279_v16 }
 0x3d6   : > { %9508 = vmatpush1.bf16.msra.mxu1 %v17764_v45  ;;  %9057 = vmatprep.subr.bf16.mxu0 %v17765_v52  ;;  %v13491_v58 = vadd.f32 %v5239_v60, %v16015_v5  ;;  %v17767_v30 = vcombine.high %v16088_v15, %v17766_v48  ;;  %v17768_v13 = vcombine.low %v16063_v32, %v16065_v20 }
 0x3d7   : > { %9447 = vmatmul.mubr.bf16.gmra.mrb[76].mxu1 %v16279_v16  ;;  %v5350_v56 = vmul.f32 0.2, %v13490_v18  ;;  %v5349_v62 = vmul.f32 0.2, %v13459_v29  ;;  %v5468_v36 = vmax.f32 %v13456_v40, %v5340_v10  ;;  %v5476_v52 = vmax.f32 %v13458_v26, %v5348_v50  ;;  %v4791_v16 = vpop.f32.mrb[52].mxu0 }
 0x3d8   : > { %9509 = vmatprep.subr.bf16.mxu1 %v17767_v30  ;;  %9058 = vmatpush1.bf16.msra.mxu0 %v17768_v13  ;;  %v5351_v60 = vmul.f32 0.2, %v13491_v58  ;;  %v17769_v9 = vcombine.low %v16088_v15, %v17766_v48  ;;  %v17770_v30 = vcombine.high %v16096_v46, %v16098_v37  ;;  %v5470_v20 = vmax.f32 %v13488_v6, %v5342_v25  ;;  %v4793_v48 = vpop.f32.mrb[53].mxu0 }
 0x3d9   : > { %v5469_v13 = vmax.f32 %v13457_v53, %v5341_v57  ;;  %v5478_v0 = vmax.f32 %v13490_v18, %v5350_v56  ;;  %v5477_v12 = vmax.f32 %v13459_v29, %v5349_v62  ;;  %v17771_v40 = vcombine.high %v16120_v17, %v16122_v8  ;;  %v4795_v57 = vpop.f32.mrb[54].mxu0  ;;  %v16351_v18 = vld [vmem:[#allocation8 + $0xec8] sm:$0xff] }
 0x3da   : > { %9510 = vmatpush1.bf16.msra.mxu1 %v17769_v9  ;;  %9059 = vmatprep.subr.bf16.mxu0 %v17770_v30  ;;  %v5471_v10 = vmax.f32 %v13489_v39, %v5343_v24  ;;  %v16339_v26 = vpack.c.bf16 %v5476_v52, %v5468_v36  ;;  %v5479_v15 = vmax.f32 %v13491_v58, %v5351_v60  ;;  %v5243_v9 = vpop.f32.mrb[52].mxu1  ;;  %v16353_v29 = vld [vmem:[#allocation8 + $0xee8] sm:$0xff]  ;;  %v16367_v36 = vld [vmem:[#allocation8 + $0xf20] sm:$0xff] }
 0x3db   : > { %9511 = vmatprep.subr.bf16.mxu1 %v17771_v40  ;;  %v13460_v50 = vadd.f32 %v4791_v16, %v15997_v55  ;;  %v16342_v30 = vpack.c.bf16 %v5478_v0, %v5470_v20  ;;  %v16344_v32 = vpack.c.bf16 %v5477_v12, %v5469_v13  ;;  %v13492_v6 = vadd.f32 %v5243_v9, %v16001_v61  ;;  %v5245_v25 = vpop.f32.mrb[53].mxu1  ;;  %v4797_v0 = vpop.f32.mrb[55].mxu0 }
 0x3dc   : > { %17772 = vst [vmem:[#allocation53_spill] sm:$0xff] %v16339_v26  ;;  %v13461_v53 = vadd.f32 %v4793_v48, %v16011_v23  ;;  %v17774_v39 = vcombine.low %v16096_v46, %v16098_v37  ;;  %v16355_v16 = vpack.c.bf16 %v5479_v15, %v5471_v10  ;;  %v13493_v12 = vadd.f32 %v5245_v25, %v16015_v5  ;;  %v5247_v56 = vpop.f32.mrb[54].mxu1  ;;  %v16365_v37 = vld [vmem:[#allocation8 + $0xf00] sm:$0xff] }
 0x3dd   : > { %17773 = vst [vmem:[#allocation65_spill] sm:$0xff] %v16342_v30  ;;  %v5356_v24 = vmul.f32 0.2, %v13460_v50  ;;  %v13462_v58 = vadd.f32 %v4795_v57, %v15997_v55  ;;  %v17776_v62 = vcombine.low %v16120_v17, %v16122_v8  ;;  %v17777_v46 = vcombine.high %v16128_v47, %v16130_v44  ;;  %v5249_v40 = vpop.f32.mrb[55].mxu1  ;;  %9004 = vmatprep.mubr.bf16.mxu0 %v16344_v32 }
 0x3de   : > { %9060 = vmatpush1.bf16.msra.mxu0 %v17774_v39  ;;  %17775 = vst [vmem:[#allocation66_spill] sm:$0xff] %v16355_v16  ;;  %v5358_v52 = vmul.f32 0.2, %v13492_v6  ;;  %v5357_v60 = vmul.f32 0.2, %v13461_v53  ;;  %v13494_v20 = vadd.f32 %v5247_v56, %v16001_v61  ;;  %v13463_v13 = vadd.f32 %v4797_v0, %v16011_v23  ;;  %9456 = vmatprep.mubr.bf16.mxu1 %v16344_v32 }
 0x3df   : > { %9512 = vmatpush1.bf16.msra.mxu1 %v17776_v62  ;;  %9061 = vmatprep.subr.bf16.mxu0 %v17777_v46  ;;  %v5359_v17 = vmul.f32 0.2, %v13493_v12  ;;  %v5364_v8 = vmul.f32 0.2, %v13462_v58  ;;  %v13495_v10 = vadd.f32 %v5249_v40, %v16015_v5  ;;  %v17778_v25 = vcombine.high %v16171_v4, %v16173_v33  ;;  %v4801_v45 = vpop.f32.mrb[56].mxu0 }
 0x3e0   : > { %9005 = vmatmul.mubr.bf16.gmra.mrb[80].mxu0 %v16339_v26  ;;  %9457 = vmatmul.mubr.bf16.gmra.mrb[80].mxu1 %v16339_v26  ;;  %v5366_v9 = vmul.f32 0.2, %v13494_v20  ;;  %v5365_v48 = vmul.f32 0.2, %v13463_v13  ;;  %v17779_v57 = vcombine.low %v16128_v47, %v16130_v44  ;;  %v5484_v62 = vmax.f32 %v13460_v50, %v5356_v24 }
 0x3e1   : > { %9513 = vmatprep.subr.bf16.mxu1 %v17778_v25  ;;  %v5492_v0 = vmax.f32 %v13462_v58, %v5364_v8  ;;  %v5367_v46 = vmul.f32 0.2, %v13495_v10  ;;  %v17780_v40 = vcombine.low %v16171_v4, %v16173_v33  ;;  %v17781_v25 = vcombine.high %v16185_v31, %v16187_v51  ;;  %v5253_v8 = vpop.f32.mrb[56].mxu1 }
 0x3e2   : > { %9062 = vmatpush1.bf16.msra.mxu0 %v17779_v57  ;;  %v5486_v44 = vmax.f32 %v13492_v6, %v5358_v52  ;;  %v5485_v57 = vmax.f32 %v13461_v53, %v5357_v60  ;;  %v5494_v15 = vmax.f32 %v13494_v20, %v5366_v9  ;;  %v5493_v39 = vmax.f32 %v13463_v13, %v5365_v48  ;;  %v5255_v52 = vpop.f32.mrb[57].mxu1  ;;  %v16411_v20 = vld [vmem:[#allocation8 + $0xf08] sm:$0xff] }
 0x3e3   : > { %9514 = vmatpush1.bf16.msra.mxu1 %v17780_v40  ;;  %9063 = vmatprep.subr.bf16.mxu0 %v17781_v25  ;;  %v17782_v50 = vcombine.high %v16231_v14, %v16233_v1  ;;  %v5487_v24 = vmax.f32 %v13493_v12, %v5359_v17  ;;  %v16399_v58 = vpack.c.bf16 %v5492_v0, %v5484_v62  ;;  %v4803_v40 = vpop.f32.mrb[57].mxu0  ;;  %v16413_v13 = vld [vmem:[#allocation8 + $0xf28] sm:$0xff]  ;;  %v5257_v48 = vpop.f32.mrb[58].mxu1  ;;  %v16427_v62 = vld [vmem:[#allocation8 + $0xf60] sm:$0xff] }
 0x3e4   : > { %v5495_v4 = vmax.f32 %v13495_v10, %v5367_v46  ;;  %v13464_v33 = vadd.f32 %v4801_v45, %v15997_v55  ;;  %v16402_v25 = vpack.c.bf16 %v5494_v15, %v5486_v44  ;;  %v16404_v47 = vpack.c.bf16 %v5493_v39, %v5485_v57  ;;  %v4805_v60 = vpop.f32.mrb[58].mxu0  ;;  %v16415_v45 = vld [vmem:[#allocation8 + $0xf40] sm:$0xff]  ;;  %v16429_v0 = vld [vmem:[#allocation8 + $0xf48] sm:$0xff] }
 0x3e5   : > { %9515 = vmatprep.subr.bf16.mxu1 %v17782_v50  ;;  %17783 = vst [vmem:[#allocation67_spill] sm:$0xff] %v16399_v58  ;;  %v13496_v6 = vadd.f32 %v5253_v8, %v16001_v61  ;;  %v13465_v53 = vadd.f32 %v4803_v40, %v16011_v23  ;;  %v17786_v12 = vcombine.low %v16185_v31, %v16187_v51  ;;  %v4807_v31 = vpop.f32.mrb[59].mxu0 }
 0x3e6   : > { %17784 = vst [vmem:[#allocation68_spill] sm:$0xff] %v16402_v25  ;;  %17785 = vst [vmem:[#allocation69_spill] sm:$0xff] %v16404_v47  ;;  %v16417_v17 = vpack.c.bf16 %v5495_v4, %v5487_v24  ;;  %v5372_v10 = vmul.f32 0.2, %v13464_v33  ;;  %v13497_v15 = vadd.f32 %v5255_v52, %v16015_v5  ;;  %v13466_v9 = vadd.f32 %v4805_v60, %v15997_v55  ;;  %v5259_v24 = vpop.f32.mrb[59].mxu1 }
 0x3e7   : > { %9064 = vmatpush1.bf16.msra.mxu0 %v17786_v12  ;;  %v17788_v39 = vcombine.low %v16231_v14, %v16233_v1  ;;  %v17789_v51 = vcombine.high %v16245_v2, %v16247_v7  ;;  %v5374_v46 = vmul.f32 0.2, %v13496_v6  ;;  %v5373_v44 = vmul.f32 0.2, %v13465_v53  ;;  %9014 = vmatprep.mubr.bf16.mxu0 %v16404_v47  ;;  %v16435_v14 = vld [vmem:[#allocation8 + $0xf68] sm:$0xff] }
 0x3e8   : > { %17787 = vst [vmem:[#allocation70_spill] sm:$0xff] %v16417_v17  ;;  %v13498_v57 = vadd.f32 %v5257_v48, %v16001_v61  ;;  %v13467_v50 = vadd.f32 %v4807_v31, %v16011_v23  ;;  %9466 = vmatprep.mubr.bf16.mxu1 %v16404_v47  ;;  %v5375_v1 = vmul.f32 0.2, %v13497_v15  ;;  %v5380_v4 = vmul.f32 0.2, %v13466_v9  ;;  %9015 = vmatmul.mubr.bf16.gmra.mrb[84].mxu0 %v16399_v58  ;;  %v4811_v47 = vpop.f32.mrb[60].mxu0 }
 0x3e9   : > { %9516 = vmatpush1.bf16.msra.mxu1 %v17788_v39  ;;  %9065 = vmatprep.subr.bf16.mxu0 %v17789_v51  ;;  %v13499_v8 = vadd.f32 %v5259_v24, %v16015_v5  ;;  %v13003_v40 = vcombine.low %v16411_v20, %v16413_v13  ;;  %v17790_v12 = vcombine.high %v16291_v59, %v16293_v41 }
 0x3ea   : > { %9467 = vmatmul.mubr.bf16.gmra.mrb[84].mxu1 %v16399_v58  ;;  %v5382_v52 = vmul.f32 0.2, %v13498_v57  ;;  %v5381_v60 = vmul.f32 0.2, %v13467_v50  ;;  %v17791_v48 = vcombine.low %v16245_v2, %v16247_v7  ;;  %v13004_v39 = vcombine.high %v16411_v20, %v16413_v13 }
 0x3eb   : > { %9517 = vmatprep.subr.bf16.mxu1 %v17790_v12  ;;  %v13010_v31 = vcombine.high %v16415_v45, %v16427_v62  ;;  %v5500_v51 = vmax.f32 %v13464_v33, %v5372_v10  ;;  %v5508_v24 = vmax.f32 %v13466_v9, %v5380_v4  ;;  %v5383_v56 = vmul.f32 0.2, %v13499_v8  ;;  %v4813_v4 = vpop.f32.mrb[61].mxu0 }
 0x3ec   : > { %9066 = vmatpush1.bf16.msra.mxu0 %v17791_v48  ;;  %v17792_v58 = vcombine.low %v16291_v59, %v16293_v41  ;;  %v17793_v12 = vcombine.high %v16305_v63, %v16307_v49  ;;  %v13012_v2 = vcombine.high %v16429_v0, %v16435_v14  ;;  %v5502_v7 = vmax.f32 %v13496_v6, %v5374_v46 }
 0x3ed   : > { %v5501_v48 = vmax.f32 %v13465_v53, %v5373_v44  ;;  %v5510_v20 = vmax.f32 %v13498_v57, %v5382_v52  ;;  %v5509_v13 = vmax.f32 %v13467_v50, %v5381_v60  ;;  %v17794_v33 = vcombine.high %v16351_v18, %v16353_v29  ;;  %v4815_v44 = vpop.f32.mrb[62].mxu0 }
 0x3ee   : > { %9518 = vmatpush1.bf16.msra.mxu1 %v17792_v58  ;;  %9067 = vmatprep.subr.bf16.mxu0 %v17793_v12  ;;  %v5503_v10 = vmax.f32 %v13497_v15, %v5375_v1  ;;  %v16463_v9 = vpack.c.bf16 %v5508_v24, %v5500_v51  ;;  %v5511_v59 = vmax.f32 %v13499_v8, %v5383_v56  ;;  %v5263_v58 = vpop.f32.mrb[60].mxu1  ;;  %v4817_v52 = vpop.f32.mrb[63].mxu0  ;;  %v6088_v51 = vld [vmem:[#allocation8 + $0xf80] sm:$0xff] }
 0x3ef   : > { %9519 = vmatprep.subr.bf16.mxu1 %v17794_v33  ;;  %v13468_v41 = vadd.f32 %v4811_v47, %v15997_v55  ;;  %v16466_v12 = vpack.c.bf16 %v5510_v20, %v5502_v7  ;;  %v16468_v26 = vpack.c.bf16 %v5509_v13, %v5501_v48  ;;  %v13500_v6 = vadd.f32 %v5263_v58, %v16001_v61  ;;  %v5265_v46 = vpop.f32.mrb[61].mxu1 }
 0x3f0   : > { %v13469_v53 = vadd.f32 %v4813_v4, %v16011_v23  ;;  %v17796_v15 = vcombine.low %v16305_v63, %v16307_v49  ;;  %v16475_v57 = vpack.c.bf16 %v5511_v59, %v5503_v10  ;;  %v13501_v47 = vadd.f32 %v5265_v46, %v16015_v5  ;;  %v5267_v1 = vpop.f32.mrb[62].mxu1  ;;  %v6089_v46 = vld [vmem:[#allocation8 + $0xf88] sm:$0xff] }
 0x3f1   : > { %17795 = vst [vmem:[#allocation71_spill] sm:$0xff] %v16466_v12  ;;  %v5388_v56 = vmul.f32 0.2, %v13468_v41  ;;  %v13470_v50 = vadd.f32 %v4815_v44, %v15997_v55  ;;  %v17798_v8 = vcombine.low %v16351_v18, %v16353_v29  ;;  %v17799_v60 = vcombine.high %v16365_v37, %v16367_v36  ;;  %v5269_v48 = vpop.f32.mrb[63].mxu1  ;;  %9024 = vmatprep.mubr.bf16.mxu0 %v16468_v26  ;;  %v6092_v55 = vld [vmem:[#allocation8 + $0xfa0] sm:$0xff]  ;;  %v6093_v44 = vld [vmem:[#allocation8 + $0xfa8] sm:$0xff] }
 0x3f2   : > { %9068 = vmatpush1.bf16.msra.mxu0 %v17796_v15  ;;  %17797 = vst [vmem:[#allocation72_spill] sm:$0xff] %v16475_v57  ;;  %v5390_v63 = vmul.f32 0.2, %v13500_v6  ;;  %v5389_v49 = vmul.f32 0.2, %v13469_v53  ;;  %v13502_v24 = vadd.f32 %v5267_v1, %v16001_v61  ;;  %v13471_v7 = vadd.f32 %v4817_v52, %v16011_v23  ;;  %9476 = vmatprep.mubr.bf16.mxu1 %v16468_v26  ;;  %v6100_v52 = vld [vmem:[#allocation8 + $0xfe0] sm:$0xff] }
 0x3f3   : > { %9520 = vmatpush1.bf16.msra.mxu1 %v17798_v8  ;;  %9069 = vmatprep.subr.bf16.mxu0 %v17799_v60  ;;  %v5391_v18 = vmul.f32 0.2, %v13501_v47  ;;  %v5396_v29 = vmul.f32 0.2, %v13470_v50  ;;  %v13503_v20 = vadd.f32 %v5269_v48, %v16015_v5  ;;  %v17800_v61 = vcombine.low %v16365_v37, %v16367_v36 }
 0x3f4   : > { %9025 = vmatmul.mubr.bf16.gmra.mrb[88].mxu0 %v16463_v9  ;;  %9477 = vmatmul.mubr.bf16.gmra.mrb[88].mxu1 %v16463_v9  ;;  %v5398_v13 = vmul.f32 0.2, %v13502_v24  ;;  %v5397_v33 = vmul.f32 0.2, %v13471_v7  ;;  %v13009_v23 = vcombine.low %v16415_v45, %v16427_v62  ;;  %v13011_v10 = vcombine.low %v16429_v0, %v16435_v14  ;;  %v6096_v62 = vld [vmem:[#allocation8 + $0xfc0] sm:$0xff] }
 0x3f5   : > { %9521 = vmatprep.subr.bf16.mxu1 %v13004_v39  ;;  %v5516_v59 = vmax.f32 %v13468_v41, %v5388_v56  ;;  %v5524_v58 = vmax.f32 %v13470_v50, %v5396_v29  ;;  %v5399_v5 = vmul.f32 0.2, %v13503_v20  ;;  %v13018_v4 = vcombine.high %v6088_v51, %v6092_v55  ;;  %v6097_v41 = vld [vmem:[#allocation8 + $0xfc8] sm:$0xff]  ;;  %v5598_v50 = vld [vmem:[#allocation8 + $0x30] sm:$0xff]  ;;  %v5603_v29 = vld [vmem:[#allocation8 + $0x58] sm:$0xff] }
 0x3f6   : > { %9070 = vmatpush1.bf16.msra.mxu0 %v17800_v61  ;;  %v5518_v15 = vmax.f32 %v13500_v6, %v5390_v63  ;;  %v5517_v39 = vmax.f32 %v13469_v53, %v5389_v49  ;;  %v5526_v1 = vmax.f32 %v13502_v24, %v5398_v13  ;;  %v5525_v8 = vmax.f32 %v13471_v7, %v5397_v33  ;;  %v6101_v56 = vld [vmem:[#allocation8 + $0xfe8] sm:$0xff]  ;;  %v5599_v63 = vld [vmem:[#allocation8 + $0x38] sm:$0xff] }
 0x3f7   : > { %9522 = vmatpush1.bf16.msra.mxu1 %v13003_v40  ;;  %9071 = vmatprep.subr.bf16.mxu0 %v13010_v31  ;;  %v5519_v37 = vmax.f32 %v13501_v47, %v5391_v18  ;;  %v16499_v36 = vpack.c.bf16 %v5524_v58, %v5516_v59  ;;  %v5527_v45 = vmax.f32 %v13503_v20, %v5399_v5  ;;  %v5594_v47 = vld [vmem:[#allocation8 + $0x10] sm:$0xff]  ;;  %v5607_v20 = vld [vmem:[#allocation8 + $0x78] sm:$0xff] }
 0x3f8   : > { %9523 = vmatprep.subr.bf16.mxu1 %v13012_v2  ;;  %v16501_v0 = vpack.c.bf16 %v5526_v1, %v5518_v15  ;;  %v16503_v14 = vpack.c.bf16 %v5525_v8, %v5517_v39  ;;  %v13017_v40 = vcombine.low %v6088_v51, %v6092_v55  ;;  %v13020_v31 = vcombine.high %v6089_v46, %v6093_v44  ;;  %v5595_v51 = vld [vmem:[#allocation8 + $0x18] sm:$0xff]  ;;  %v5602_v55 = vld [vmem:[#allocation8 + $0x50] sm:$0xff] }
 0x3f9   : > { %17801 = vst [vmem:[#allocation73_spill] sm:$0xff] %v16499_v36  ;;  %v16505_v6 = vpack.c.bf16 %v5527_v45, %v5519_v37  ;;  %v13019_v2 = vcombine.low %v6089_v46, %v6093_v44  ;;  %v13026_v53 = vcombine.high %v6096_v62, %v6100_v52  ;;  %v13028_v60 = vcombine.high %v6097_v41, %v6101_v56  ;;  %v5606_v18 = vld [vmem:[#allocation8 + $0x70] sm:$0xff]  ;;  %v5611_v58 = vld [vmem:[#allocation8 + $0x98] sm:$0xff] }
 0x3fa   : > { %17802 = vst [vmem:[#allocation74_spill] sm:$0xff] %v16501_v0  ;;  %17803 = vst [vmem:[#allocation75_spill] sm:$0xff] %v16503_v14  ;;  %9072 = vmatpush1.bf16.msra.mxu0 %v13009_v23  ;;  %9034 = vmatprep.mubr.bf16.mxu0 %v16503_v14  ;;  %v13025_v49 = vcombine.low %v6096_v62, %v6100_v52  ;;  %v13027_v24 = vcombine.low %v6097_v41, %v6101_v56  ;;  %v5614_v59 = vld [vmem:[#allocation8 + $0xb0] sm:$0xff]  ;;  %v5615_v5 = vld [vmem:[#allocation8 + $0xb8] sm:$0xff] }
 0x3fb   : > { %17804 = vst [vmem:[#allocation76_spill] sm:$0xff] %v16505_v6  ;;  %9524 = vmatpush1.bf16.msra.mxu1 %v13011_v10  ;;  %9073 = vmatprep.subr.bf16.mxu0 %v13018_v4  ;;  %v12526_v7 = vcombine.high %v5594_v47, %v5598_v50  ;;  %v12528_v48 = vcombine.high %v5595_v51, %v5599_v63  ;;  %v5610_v10 = vld [vmem:[#allocation8 + $0x90] sm:$0xff]  ;;  %v5619_v8 = vld [vmem:[#allocation8 + $0xd8] sm:$0xff] }
 0x3fc   : > { %9486 = vmatprep.mubr.bf16.mxu1 %v16503_v14  ;;  %9035 = vmatmul.mubr.bf16.gmra.mrb[92].mxu0 %v16499_v36  ;;  %v12525_v13 = vcombine.low %v5594_v47, %v5598_v50  ;;  %v12527_v33 = vcombine.low %v5595_v51, %v5599_v63  ;;  %v12534_v61 = vcombine.high %v5602_v55, %v5606_v18  ;;  %v5618_v39 = vld [vmem:[#allocation8 + $0xd0] sm:$0xff]  ;;  %v5623_v37 = vld [vmem:[#allocation8 + $0xf8] sm:$0xff] }
 0x3fd   : > { %9487 = vmatmul.mubr.bf16.gmra.mrb[92].mxu1 %v16499_v36  ;;  %9525 = vmatprep.subr.bf16.mxu1 %v13020_v31  ;;  %v12536_v23 = vcombine.high %v5603_v29, %v5607_v20  ;;  %v12533_v4 = vcombine.low %v5602_v55, %v5606_v18  ;;  %v12535_v46 = vcombine.low %v5603_v29, %v5607_v20  ;;  %v5622_v1 = vld [vmem:[#allocation8 + $0xf0] sm:$0xff]  ;;  %v5627_v56 = vld [vmem:[#allocation8 + $0x118] sm:$0xff] }
 0x3fe   : > { %9074 = vmatpush1.bf16.msra.mxu0 %v13017_v40  ;;  %9077 = vmatprep.mubr.bf16.mxu0 %v16124_v19  ;;  %v12542_v44 = vcombine.high %v5610_v10, %v5614_v59  ;;  %v12544_v15 = vcombine.high %v5611_v58, %v5615_v5  ;;  %v12541_v45 = vcombine.low %v5610_v10, %v5614_v59  ;;  %v5626_v31 = vld [vmem:[#allocation8 + $0x110] sm:$0xff] }
 0x3ff   : > { %9526 = vmatpush1.bf16.msra.mxu1 %v13019_v2  ;;  %9529 = vmatprep.mubr.bf16.mxu1 %v16124_v19  ;;  %v12543_v62 = vcombine.low %v5611_v58, %v5615_v5  ;;  %v12550_v52 = vcombine.high %v5618_v39, %v5622_v1  ;;  %v12552_v40 = vcombine.high %v5619_v8, %v5623_v37  ;;  %v5630_v41 = vld [vmem:[#allocation8 + $0x130] sm:$0xff]  ;;  %v5631_v2 = vld [vmem:[#allocation8 + $0x138] sm:$0xff] }
 0x400   : > { %9075 = vmatprep.subr.bf16.mxu0 %v13026_v53  ;;  %9527 = vmatprep.subr.bf16.mxu1 %v13028_v60  ;;  %v12549_v53 = vcombine.low %v5618_v39, %v5622_v1  ;;  %v12551_v47 = vcombine.low %v5619_v8, %v5623_v37  ;;  %v12558_v50 = vcombine.high %v5626_v31, %v5630_v41  ;;  %v5634_v51 = vld [vmem:[#allocation8 + $0x150] sm:$0xff] }
 0x401   : > { %v12560_v60 = vcombine.high %v5627_v56, %v5631_v2  ;;  %v5638_v63 = vld [vmem:[#allocation8 + $0x170] sm:$0xff] }
 0x402   : > { %9076 = vmatpush1.bf16.msra.mxu0 %v13025_v49  ;;  %v5635_v49 = vld [vmem:[#allocation8 + $0x158] sm:$0xff]  ;;  %v12566_v55 = vcombine.high %v5634_v51, %v5638_v63  ;;  %v5642_v29 = vld [vmem:[#allocation8 + $0x190] sm:$0xff] }
 0x403   : > { %9528 = vmatpush1.bf16.msra.mxu1 %v13027_v24  ;;  %9610 = vmatprep.subr.bf16.mxu0 %v12526_v7  ;;  %v5639_v24 = vld [vmem:[#allocation8 + $0x178] sm:$0xff]  ;;  %v12557_v7 = vcombine.low %v5626_v31, %v5630_v41  ;;  %v5646_v20 = vld [vmem:[#allocation8 + $0x1b0] sm:$0xff] }
 0x404   : > { %10062 = vmatprep.subr.bf16.mxu1 %v12528_v48  ;;  %v12559_v48 = vcombine.low %v5627_v56, %v5631_v2  ;;  %v12568_v18 = vcombine.high %v5635_v49, %v5639_v24  ;;  %v12574_v10 = vcombine.high %v5642_v29, %v5646_v20  ;;  %v5650_v58 = vld [vmem:[#allocation8 + $0x1d0] sm:$0xff] }
 0x405   : > { %9078 = vmatmul.mubr.bf16.vlgmr.msra.gmra.mrb[64].mxu0 %v16114_v28  ;;  %v5654_v5 = vld [vmem:[#allocation8 + $0x1f0] sm:$0xff] }
 0x406   : > { %9530 = vmatmul.mubr.bf16.vlgmr.msra.gmra.mrb[64].mxu1 %v16114_v28  ;;  %9087 = vmatprep.mubr.bf16.mxu0 %v16175_v42  ;;  %v12582_v39 = vcombine.high %v5650_v58, %v5654_v5  ;;  %v5658_v8 = vld [vmem:[#allocation8 + $0x210] sm:$0xff] }
 0x407   : > { %9539 = vmatprep.mubr.bf16.mxu1 %v16175_v42  ;;  %9611 = vmatpush1.bf16.msra.mxu0 %v12525_v13  ;;  %v5643_v13 = vld [vmem:[#allocation8 + $0x198] sm:$0xff]  ;;  %v5662_v37 = vld [vmem:[#allocation8 + $0x230] sm:$0xff] }
 0x408   : > { %10063 = vmatpush1.bf16.msra.mxu1 %v12527_v33  ;;  %9612 = vmatprep.subr.bf16.mxu0 %v12534_v61  ;;  %v5647_v33 = vld [vmem:[#allocation8 + $0x1b8] sm:$0xff]  ;;  %v12565_v61 = vcombine.low %v5634_v51, %v5638_v63  ;;  %v12590_v31 = vcombine.high %v5658_v8, %v5662_v37  ;;  %v5666_v56 = vld [vmem:[#allocation8 + $0x250] sm:$0xff] }
 0x409   : > { %10064 = vmatprep.subr.bf16.mxu1 %v12536_v23  ;;  %v12567_v23 = vcombine.low %v5635_v49, %v5639_v24  ;;  %v12576_v59 = vcombine.high %v5643_v13, %v5647_v33  ;;  %v5670_v2 = vld [vmem:[#allocation8 + $0x270] sm:$0xff] }
 0x40a   : > { %v12598_v51 = vcombine.high %v5666_v56, %v5670_v2  ;;  %v5674_v49 = vld [vmem:[#allocation8 + $0x290] sm:$0xff] }
 0x40b   : > { %9613 = vmatpush1.bf16.msra.mxu0 %v12533_v4  ;;  %v5651_v4 = vld [vmem:[#allocation8 + $0x1d8] sm:$0xff]  ;;  %v5678_v24 = vld [vmem:[#allocation8 + $0x2b0] sm:$0xff] }
 0x40c   : > { %10065 = vmatpush1.bf16.msra.mxu1 %v12535_v46  ;;  %9614 = vmatprep.subr.bf16.mxu0 %v12542_v44  ;;  %v5655_v46 = vld [vmem:[#allocation8 + $0x1f8] sm:$0xff]  ;;  %v12573_v44 = vcombine.low %v5642_v29, %v5646_v20  ;;  %v12606_v29 = vcombine.high %v5674_v49, %v5678_v24 }
 0x40d   : > { %9088 = vmatmul.mubr.bf16.gmra.mrb[68].mxu0 %v16162_v34  ;;  %10066 = vmatprep.subr.bf16.mxu1 %v12544_v15  ;;  %v12575_v15 = vcombine.low %v5643_v13, %v5647_v33  ;;  %v12584_v1 = vcombine.high %v5651_v4, %v5655_v46  ;;  %v5682_v13 = vld [vmem:[#allocation8 + $0x2d0] sm:$0xff] }
 0x40e   : > { %9540 = vmatmul.mubr.bf16.gmra.mrb[68].mxu1 %v16162_v34  ;;  %9097 = vmatprep.mubr.bf16.mxu0 %v16235_v21  ;;  %v5686_v33 = vld [vmem:[#allocation8 + $0x2f0] sm:$0xff] }
 0x40f   : > { %9549 = vmatprep.mubr.bf16.mxu1 %v16235_v21  ;;  %9615 = vmatpush1.bf16.msra.mxu0 %v12541_v45  ;;  %v5659_v45 = vld [vmem:[#allocation8 + $0x218] sm:$0xff] }
 0x410   : > { %10067 = vmatpush1.bf16.msra.mxu1 %v12543_v62  ;;  %9616 = vmatprep.subr.bf16.mxu0 %v12550_v52  ;;  %v5663_v62 = vld [vmem:[#allocation8 + $0x238] sm:$0xff]  ;;  %v12581_v52 = vcombine.low %v5650_v58, %v5654_v5  ;;  %v12614_v58 = vcombine.high %v5682_v13, %v5686_v33 }
 0x411   : > { %10068 = vmatprep.subr.bf16.mxu1 %v12552_v40  ;;  %v12583_v40 = vcombine.low %v5651_v4, %v5655_v46  ;;  %v12592_v41 = vcombine.high %v5659_v45, %v5663_v62  ;;  %v5690_v4 = vld [vmem:[#allocation8 + $0x310] sm:$0xff]  ;;  %v16846_v21 = vld [vmem:[#allocation8 + $0xf78] sm:$0xff] }
 0x412   : > { %v5694_v46 = vld [vmem:[#allocation8 + $0x330] sm:$0xff] }
 0x413   : > { %9617 = vmatpush1.bf16.msra.mxu0 %v12549_v53  ;;  %v5667_v53 = vld [vmem:[#allocation8 + $0x258] sm:$0xff] }
 0x414   : > { %10069 = vmatpush1.bf16.msra.mxu1 %v12551_v47  ;;  %9618 = vmatprep.subr.bf16.mxu0 %v12558_v50  ;;  %v5671_v47 = vld [vmem:[#allocation8 + $0x278] sm:$0xff]  ;;  %v12589_v50 = vcombine.low %v5658_v8, %v5662_v37  ;;  %v12622_v8 = vcombine.high %v5690_v4, %v5694_v46 }
 0x415   : > { %9098 = vmatmul.mubr.bf16.gmra.mrb[72].mxu0 %v16222_v43  ;;  %10070 = vmatprep.subr.bf16.mxu1 %v12560_v60  ;;  %v12591_v60 = vcombine.low %v5659_v45, %v5663_v62  ;;  %v12600_v63 = vcombine.high %v5667_v53, %v5671_v47  ;;  %v5698_v45 = vld [vmem:[#allocation8 + $0x350] sm:$0xff] }
 0x416   : > { %9550 = vmatmul.mubr.bf16.gmra.mrb[72].mxu1 %v16222_v43  ;;  %9107 = vmatprep.mubr.bf16.mxu0 %v16295_v11  ;;  %v5702_v62 = vld [vmem:[#allocation8 + $0x370] sm:$0xff] }
 0x417   : > { %9559 = vmatprep.mubr.bf16.mxu1 %v16295_v11  ;;  %9619 = vmatpush1.bf16.msra.mxu0 %v12557_v7  ;;  %v5675_v7 = vld [vmem:[#allocation8 + $0x298] sm:$0xff] }
 0x418   : > { %10071 = vmatpush1.bf16.msra.mxu1 %v12559_v48  ;;  %9620 = vmatprep.subr.bf16.mxu0 %v12566_v55  ;;  %v5679_v48 = vld [vmem:[#allocation8 + $0x2b8] sm:$0xff]  ;;  %v12597_v55 = vcombine.low %v5666_v56, %v5670_v2  ;;  %v12630_v56 = vcombine.high %v5698_v45, %v5702_v62 }
 0x419   : > { %10072 = vmatprep.subr.bf16.mxu1 %v12568_v18  ;;  %v12599_v18 = vcombine.low %v5667_v53, %v5671_v47  ;;  %v12608_v20 = vcombine.high %v5675_v7, %v5679_v48  ;;  %v5706_v53 = vld [vmem:[#allocation8 + $0x390] sm:$0xff] }
 0x41a   : > { %v5710_v47 = vld [vmem:[#allocation8 + $0x3b0] sm:$0xff] }
 0x41b   : > { %9621 = vmatpush1.bf16.msra.mxu0 %v12565_v61  ;;  %v5683_v61 = vld [vmem:[#allocation8 + $0x2d8] sm:$0xff] }
 0x41c   : > { %10073 = vmatpush1.bf16.msra.mxu1 %v12567_v23  ;;  %9622 = vmatprep.subr.bf16.mxu0 %v12574_v10  ;;  %v5687_v23 = vld [vmem:[#allocation8 + $0x2f8] sm:$0xff]  ;;  %v12605_v10 = vcombine.low %v5674_v49, %v5678_v24  ;;  %v12638_v49 = vcombine.high %v5706_v53, %v5710_v47 }
 0x41d   : > { %9108 = vmatmul.mubr.bf16.gmra.mrb[76].mxu0 %v16282_v3  ;;  %10074 = vmatprep.subr.bf16.mxu1 %v12576_v59  ;;  %v12607_v59 = vcombine.low %v5675_v7, %v5679_v48  ;;  %v12616_v5 = vcombine.high %v5683_v61, %v5687_v23  ;;  %v5714_v7 = vld [vmem:[#allocation8 + $0x3d0] sm:$0xff] }
 0x41e   : > { %9560 = vmatmul.mubr.bf16.gmra.mrb[76].mxu1 %v16282_v3  ;;  %9117 = vmatprep.mubr.bf16.mxu0 %v16355_v16  ;;  %v5718_v48 = vld [vmem:[#allocation8 + $0x3f0] sm:$0xff] }
 0x41f   : > { %9569 = vmatprep.mubr.bf16.mxu1 %v16355_v16  ;;  %9623 = vmatpush1.bf16.msra.mxu0 %v12573_v44  ;;  %v5691_v44 = vld [vmem:[#allocation8 + $0x318] sm:$0xff] }
 0x420   : > { %10075 = vmatpush1.bf16.msra.mxu1 %v12575_v15  ;;  %9624 = vmatprep.subr.bf16.mxu0 %v12582_v39  ;;  %v5695_v15 = vld [vmem:[#allocation8 + $0x338] sm:$0xff]  ;;  %v12613_v39 = vcombine.low %v5682_v13, %v5686_v33  ;;  %v12646_v13 = vcombine.high %v5714_v7, %v5718_v48 }
 0x421   : > { %10076 = vmatprep.subr.bf16.mxu1 %v12584_v1  ;;  %v12615_v1 = vcombine.low %v5683_v61, %v5687_v23  ;;  %v12624_v37 = vcombine.high %v5691_v44, %v5695_v15  ;;  %v5722_v61 = vld [vmem:[#allocation8 + $0x410] sm:$0xff] }
 0x422   : > { %v5726_v23 = vld [vmem:[#allocation8 + $0x430] sm:$0xff] }
 0x423   : > { %9625 = vmatpush1.bf16.msra.mxu0 %v12581_v52  ;;  %v5699_v52 = vld [vmem:[#allocation8 + $0x358] sm:$0xff] }
 0x424   : > { %10077 = vmatpush1.bf16.msra.mxu1 %v12583_v40  ;;  %9626 = vmatprep.subr.bf16.mxu0 %v12590_v31  ;;  %v5703_v40 = vld [vmem:[#allocation8 + $0x378] sm:$0xff]  ;;  %v12621_v31 = vcombine.low %v5690_v4, %v5694_v46  ;;  %v12654_v46 = vcombine.high %v5722_v61, %v5726_v23 }
 0x425   : > { %9118 = vmatmul.mubr.bf16.gmra.mrb[80].mxu0 %v16342_v30  ;;  %10078 = vmatprep.subr.bf16.mxu1 %v12592_v41  ;;  %v12623_v41 = vcombine.low %v5691_v44, %v5695_v15  ;;  %v12632_v2 = vcombine.high %v5699_v52, %v5703_v40  ;;  %v5730_v15 = vld [vmem:[#allocation8 + $0x450] sm:$0xff] }
 0x426   : > { %9570 = vmatmul.mubr.bf16.gmra.mrb[80].mxu1 %v16342_v30  ;;  %9127 = vmatprep.mubr.bf16.mxu0 %v16417_v17  ;;  %v16819_v30 = vld [vmem:[#allocation8 + $0xf50] sm:$0xff] }
 0x427   : > { %9579 = vmatprep.mubr.bf16.mxu1 %v16417_v17  ;;  %9627 = vmatpush1.bf16.msra.mxu0 %v12589_v50  ;;  %v5707_v50 = vld [vmem:[#allocation8 + $0x398] sm:$0xff]  ;;  %v16784_v17 = vld [vmem:[#allocation8 + $0xf30] sm:$0xff] }
 0x428   : > { %10079 = vmatpush1.bf16.msra.mxu1 %v12591_v60  ;;  %9628 = vmatprep.subr.bf16.mxu0 %v12598_v51  ;;  %v5711_v60 = vld [vmem:[#allocation8 + $0x3b8] sm:$0xff]  ;;  %v12629_v51 = vcombine.low %v5698_v45, %v5702_v62 }
 0x429   : > { %10080 = vmatprep.subr.bf16.mxu1 %v12600_v63  ;;  %v12631_v63 = vcombine.low %v5699_v52, %v5703_v40  ;;  %v12640_v24 = vcombine.high %v5707_v50, %v5711_v60  ;;  %v17806_v52 = vld [vmem:[#allocation21_spill] sm:$0xff] }
 0x42b   : > { %9629 = vmatpush1.bf16.msra.mxu0 %v12597_v55  ;;  %v5715_v55 = vld [vmem:[#allocation8 + $0x3d8] sm:$0xff] }
 0x42c   : > { %10081 = vmatpush1.bf16.msra.mxu1 %v12599_v18  ;;  %9630 = vmatprep.subr.bf16.mxu0 %v12606_v29  ;;  %v5719_v18 = vld [vmem:[#allocation8 + $0x3f8] sm:$0xff]  ;;  %v12637_v29 = vcombine.low %v5706_v53, %v5710_v47 }
 0x42d   : > { %9128 = vmatmul.mubr.bf16.gmra.mrb[84].mxu0 %v16402_v25  ;;  %10082 = vmatprep.subr.bf16.mxu1 %v12608_v20  ;;  %v12639_v20 = vcombine.low %v5707_v50, %v5711_v60  ;;  %v12648_v33 = vcombine.high %v5715_v55, %v5719_v18  ;;  %v12647_v4 = vcombine.low %v5715_v55, %v5719_v18  ;;  %v5743_v53 = vld [vmem:[#allocation8 + $0x4b8] sm:$0xff] }
 0x42e   : > { %9580 = vmatmul.mubr.bf16.gmra.mrb[84].mxu1 %v16402_v25  ;;  %9137 = vmatprep.mubr.bf16.mxu0 %v16475_v57  ;;  %v16782_v25 = vld [vmem:[#allocation8 + $0xf10] sm:$0xff] }
 0x42f   : > { %9589 = vmatprep.mubr.bf16.mxu1 %v16475_v57  ;;  %9631 = vmatpush1.bf16.msra.mxu0 %v12605_v10  ;;  %v17805_v10 = vld [vmem:[#allocation23_spill] sm:$0xff] }
 0x430   : > { %10083 = vmatpush1.bf16.msra.mxu1 %v12607_v59  ;;  %9632 = vmatprep.subr.bf16.mxu0 %v12614_v58  ;;  %v5723_v59 = vld [vmem:[#allocation8 + $0x418] sm:$0xff] }
 0x431   : > { %10084 = vmatprep.subr.bf16.mxu1 %v12616_v5  ;;  %v5727_v58 = vld [vmem:[#allocation8 + $0x438] sm:$0xff]  ;;  %v12645_v5 = vcombine.low %v5714_v7, %v5718_v48 }
 0x432   : > { %v12656_v44 = vcombine.high %v5723_v59, %v5727_v58  ;;  %v12655_v45 = vcombine.low %v5723_v59, %v5727_v58  ;;  %v5751_v7 = vld [vmem:[#allocation8 + $0x4f8] sm:$0xff] }
 0x433   : > { %9633 = vmatpush1.bf16.msra.mxu0 %v12613_v39  ;;  %v5734_v39 = vld [vmem:[#allocation8 + $0x470] sm:$0xff] }
 0x434   : > { %10085 = vmatpush1.bf16.msra.mxu1 %v12615_v1  ;;  %9634 = vmatprep.subr.bf16.mxu0 %v12622_v8  ;;  %v5731_v1 = vld [vmem:[#allocation8 + $0x458] sm:$0xff]  ;;  %v12662_v62 = vcombine.high %v5730_v15, %v5734_v39  ;;  %v12661_v47 = vcombine.low %v5730_v15, %v5734_v39 }
 0x435   : > { %9138 = vmatmul.mubr.bf16.gmra.mrb[88].mxu0 %v16466_v12  ;;  %10086 = vmatprep.subr.bf16.mxu1 %v12624_v37  ;;  %v5735_v8 = vld [vmem:[#allocation8 + $0x478] sm:$0xff]  ;;  %v12653_v37 = vcombine.low %v5722_v61, %v5726_v23  ;;  %v17809_v61 = vld [vmem:[#allocation31_spill] sm:$0xff] }
 0x436   : > { %9590 = vmatmul.mubr.bf16.gmra.mrb[88].mxu1 %v16466_v12  ;;  %9147 = vmatprep.mubr.bf16.mxu0 %v16505_v6  ;;  %v12664_v40 = vcombine.high %v5731_v1, %v5735_v8  ;;  %v12663_v50 = vcombine.low %v5731_v1, %v5735_v8  ;;  %v5755_v23 = vld [vmem:[#allocation8 + $0x518] sm:$0xff] }
 0x437   : > { %9599 = vmatprep.mubr.bf16.mxu1 %v16505_v6  ;;  %9635 = vmatpush1.bf16.msra.mxu0 %v12621_v31  ;;  %v5738_v31 = vld [vmem:[#allocation8 + $0x490] sm:$0xff]  ;;  %v5763_v15 = vld [vmem:[#allocation8 + $0x558] sm:$0xff] }
 0x438   : > { %10087 = vmatpush1.bf16.msra.mxu1 %v12623_v41  ;;  %9636 = vmatprep.subr.bf16.mxu0 %v12630_v56  ;;  %v5742_v41 = vld [vmem:[#allocation8 + $0x4b0] sm:$0xff]  ;;  %v17807_v56 = vld [vmem:[#allocation27_spill] sm:$0xff]  ;;  %v5767_v39 = vld [vmem:[#allocation8 + $0x578] sm:$0xff] }
 0x439   : > { %10088 = vmatprep.subr.bf16.mxu1 %v12632_v2  ;;  %v5739_v2 = vld [vmem:[#allocation8 + $0x498] sm:$0xff]  ;;  %v12670_v60 = vcombine.high %v5738_v31, %v5742_v41  ;;  %v12669_v48 = vcombine.low %v5738_v31, %v5742_v41  ;;  %v17811_v31 = vld [vmem:[#allocation35_spill] sm:$0xff]  ;;  %v16765_v6 = vld [vmem:[#allocation8 + $0xef0] sm:$0xff] }
 0x43a   : > { %v12671_v55 = vcombine.low %v5739_v2, %v5743_v53  ;;  %v5771_v41 = vld [vmem:[#allocation8 + $0x598] sm:$0xff] }
 0x43b   : > { %9637 = vmatpush1.bf16.msra.mxu0 %v12629_v51  ;;  %v12672_v51 = vcombine.high %v5739_v2, %v5743_v53  ;;  %v12695_v53 = vcombine.low %v5763_v15, %v5767_v39  ;;  %v16769_v12 = vld [vmem:[#allocation8 + $0xef8] sm:$0xff] }
 0x43c   : > { %10089 = vmatpush1.bf16.msra.mxu1 %v12631_v63  ;;  %9638 = vmatprep.subr.bf16.mxu0 %v12638_v49  ;;  %v5746_v63 = vld [vmem:[#allocation8 + $0x4d0] sm:$0xff] }
 0x43d   : > { %9148 = vmatmul.mubr.bf16.gmra.mrb[92].mxu0 %v16501_v0  ;;  %10090 = vmatprep.subr.bf16.mxu1 %v12640_v24  ;;  %v5750_v49 = vld [vmem:[#allocation8 + $0x4f0] sm:$0xff]  ;;  %v5747_v24 = vld [vmem:[#allocation8 + $0x4d8] sm:$0xff] }
 0x43e   : > { %9600 = vmatmul.mubr.bf16.gmra.mrb[92].mxu1 %v16501_v0  ;;  %9642 = vmatprep.mubr.bf16.mxu0 %v17805_v10  ;;  %v12678_v18 = vcombine.high %v5746_v63, %v5750_v49  ;;  %v12677_v59 = vcombine.low %v5746_v63, %v5750_v49  ;;  %v12679_v58 = vcombine.low %v5747_v24, %v5751_v7  ;;  %v5779_v63 = vld [vmem:[#allocation8 + $0x5d8] sm:$0xff]  ;;  %v16755_v0 = vld [vmem:[#allocation8 + $0xed0] sm:$0xff] }
 0x43f   : > { %9639 = vmatpush1.bf16.msra.mxu0 %v12637_v29  ;;  %10094 = vmatprep.mubr.bf16.mxu1 %v17805_v10  ;;  %v17808_v29 = vld [vmem:[#allocation25_spill] sm:$0xff] }
 0x440   : > { %10091 = vmatpush1.bf16.msra.mxu1 %v12639_v20  ;;  %9640 = vmatprep.subr.bf16.mxu0 %v12646_v13  ;;  %v12680_v20 = vcombine.high %v5747_v24, %v5751_v7  ;;  %v5754_v13 = vld [vmem:[#allocation8 + $0x510] sm:$0xff]  ;;  %v5759_v10 = vld [vmem:[#allocation8 + $0x538] sm:$0xff] }
 0x441   : > { %10092 = vmatprep.subr.bf16.mxu1 %v12648_v33  ;;  %v5758_v33 = vld [vmem:[#allocation8 + $0x530] sm:$0xff]  ;;  %v12687_v8 = vcombine.low %v5755_v23, %v5759_v10  ;;  %v5783_v49 = vld [vmem:[#allocation8 + $0x5f8] sm:$0xff] }
 0x442   : > { %v12685_v1 = vcombine.low %v5754_v13, %v5758_v33 }
 0x443   : > { %9641 = vmatpush1.bf16.msra.mxu0 %v12645_v5  ;;  %v12686_v5 = vcombine.high %v5754_v13, %v5758_v33  ;;  %v17813_v13 = vld [vmem:[#allocation39_spill] sm:$0xff]  ;;  %v5787_v33 = vld [vmem:[#allocation8 + $0x618] sm:$0xff] }
 0x444   : > { %10093 = vmatpush1.bf16.msra.mxu1 %v12647_v4  ;;  %9723 = vmatprep.subr.bf16.mxu0 %v12654_v46  ;;  %v12688_v4 = vcombine.high %v5755_v23, %v5759_v10  ;;  %v5762_v46 = vld [vmem:[#allocation8 + $0x550] sm:$0xff]  ;;  %v12711_v10 = vcombine.low %v5779_v63, %v5783_v49 }
 0x445   : > { %10175 = vmatprep.subr.bf16.mxu1 %v12656_v44  ;;  %v5766_v44 = vld [vmem:[#allocation8 + $0x570] sm:$0xff] }
 0x446   : > { %9643 = vmatmul.mubr.bf16.vlgmr.msra.gmra.mrb[96].mxu0 %v17806_v52  ;;  %v12693_v2 = vcombine.low %v5762_v46, %v5766_v44 }
 0x447   : > { %10095 = vmatmul.mubr.bf16.vlgmr.msra.gmra.mrb[96].mxu1 %v17806_v52  ;;  %9652 = vmatprep.mubr.bf16.mxu0 %v17807_v56  ;;  %v5770_v52 = vld [vmem:[#allocation8 + $0x590] sm:$0xff] }
 0x448   : > { %9724 = vmatpush1.bf16.msra.mxu0 %v12653_v37  ;;  %10104 = vmatprep.mubr.bf16.mxu1 %v17807_v56  ;;  %v12694_v37 = vcombine.high %v5762_v46, %v5766_v44  ;;  %v5775_v56 = vld [vmem:[#allocation8 + $0x5b8] sm:$0xff] }
 0x449   : > { %10176 = vmatpush1.bf16.msra.mxu1 %v12655_v45  ;;  %9725 = vmatprep.subr.bf16.mxu0 %v12662_v62  ;;  %v17810_v45 = vld [vmem:[#allocation29_spill] sm:$0xff]  ;;  %v12696_v62 = vcombine.high %v5763_v15, %v5767_v39  ;;  %v12703_v7 = vcombine.low %v5771_v41, %v5775_v56 }
 0x44a   : > { %10177 = vmatprep.subr.bf16.mxu1 %v12664_v40  ;;  %v5774_v40 = vld [vmem:[#allocation8 + $0x5b0] sm:$0xff]  ;;  %v5795_v46 = vld [vmem:[#allocation8 + $0x658] sm:$0xff] }
 0x44b   : > { %v12701_v24 = vcombine.low %v5770_v52, %v5774_v40  ;;  %v5799_v44 = vld [vmem:[#allocation8 + $0x678] sm:$0xff] }
 0x44c   : > { %9726 = vmatpush1.bf16.msra.mxu0 %v12661_v47  ;;  %v12702_v47 = vcombine.high %v5770_v52, %v5774_v40  ;;  %v17815_v52 = vld [vmem:[#allocation43_spill] sm:$0xff]  ;;  %v5803_v40 = vld [vmem:[#allocation8 + $0x698] sm:$0xff] }
 0x44d   : > { %10178 = vmatpush1.bf16.msra.mxu1 %v12663_v50  ;;  %9727 = vmatprep.subr.bf16.mxu0 %v12670_v60  ;;  %v12704_v50 = vcombine.high %v5771_v41, %v5775_v56  ;;  %v5778_v60 = vld [vmem:[#allocation8 + $0x5d0] sm:$0xff]  ;;  %v12727_v56 = vcombine.low %v5795_v46, %v5799_v44 }
 0x44e   : > { %9653 = vmatmul.mubr.bf16.gmra.mrb[100].mxu0 %v17808_v29  ;;  %10179 = vmatprep.subr.bf16.mxu1 %v12672_v51  ;;  %v5782_v51 = vld [vmem:[#allocation8 + $0x5f0] sm:$0xff] }
 0x44f   : > { %10105 = vmatmul.mubr.bf16.gmra.mrb[100].mxu1 %v17808_v29  ;;  %9662 = vmatprep.mubr.bf16.mxu0 %v17809_v61  ;;  %v5786_v29 = vld [vmem:[#allocation8 + $0x610] sm:$0xff]  ;;  %v12709_v23 = vcombine.low %v5778_v60, %v5782_v51 }
 0x450   : > { %9728 = vmatpush1.bf16.msra.mxu0 %v12669_v48  ;;  %10114 = vmatprep.mubr.bf16.mxu1 %v17809_v61  ;;  %v12710_v48 = vcombine.high %v5778_v60, %v5782_v51  ;;  %v5791_v61 = vld [vmem:[#allocation8 + $0x638] sm:$0xff] }
 0x451   : > { %10180 = vmatpush1.bf16.msra.mxu1 %v12671_v55  ;;  %9729 = vmatprep.subr.bf16.mxu0 %v12678_v18  ;;  %v17812_v55 = vld [vmem:[#allocation33_spill] sm:$0xff]  ;;  %v12712_v18 = vcombine.high %v5779_v63, %v5783_v49  ;;  %v12719_v39 = vcombine.low %v5787_v33, %v5791_v61 }
 0x452   : > { %10181 = vmatprep.subr.bf16.mxu1 %v12680_v20  ;;  %v5790_v20 = vld [vmem:[#allocation8 + $0x630] sm:$0xff]  ;;  %v5811_v60 = vld [vmem:[#allocation8 + $0x6d8] sm:$0xff] }
 0x453   : > { %v12717_v15 = vcombine.low %v5786_v29, %v5790_v20  ;;  %v5815_v51 = vld [vmem:[#allocation8 + $0x6f8] sm:$0xff] }
 0x454   : > { %9730 = vmatpush1.bf16.msra.mxu0 %v12677_v59  ;;  %v12718_v59 = vcombine.high %v5786_v29, %v5790_v20  ;;  %v17817_v29 = vld [vmem:[#allocation47_spill] sm:$0xff]  ;;  %v5819_v20 = vld [vmem:[#allocation8 + $0x718] sm:$0xff] }
 0x455   : > { %10182 = vmatpush1.bf16.msra.mxu1 %v12679_v58  ;;  %9731 = vmatprep.subr.bf16.mxu0 %v12686_v5  ;;  %v12720_v58 = vcombine.high %v5787_v33, %v5791_v61  ;;  %v5794_v5 = vld [vmem:[#allocation8 + $0x650] sm:$0xff]  ;;  %v12743_v61 = vcombine.low %v5811_v60, %v5815_v51 }
 0x456   : > { %9663 = vmatmul.mubr.bf16.gmra.mrb[104].mxu0 %v17810_v45  ;;  %10183 = vmatprep.subr.bf16.mxu1 %v12688_v4  ;;  %v5798_v4 = vld [vmem:[#allocation8 + $0x670] sm:$0xff] }
 0x457   : > { %10115 = vmatmul.mubr.bf16.gmra.mrb[104].mxu1 %v17810_v45  ;;  %9672 = vmatprep.mubr.bf16.mxu0 %v17811_v31  ;;  %v5802_v45 = vld [vmem:[#allocation8 + $0x690] sm:$0xff]  ;;  %v12725_v41 = vcombine.low %v5794_v5, %v5798_v4 }
 0x458   : > { %9732 = vmatpush1.bf16.msra.mxu0 %v12685_v1  ;;  %10124 = vmatprep.mubr.bf16.mxu1 %v17811_v31  ;;  %v12726_v1 = vcombine.high %v5794_v5, %v5798_v4  ;;  %v5807_v31 = vld [vmem:[#allocation8 + $0x6b8] sm:$0xff] }
 0x459   : > { %10184 = vmatpush1.bf16.msra.mxu1 %v12687_v8  ;;  %9733 = vmatprep.subr.bf16.mxu0 %v12694_v37  ;;  %v17814_v8 = vld [vmem:[#allocation37_spill] sm:$0xff]  ;;  %v12728_v37 = vcombine.high %v5795_v46, %v5799_v44  ;;  %v12735_v49 = vcombine.low %v5803_v40, %v5807_v31 }
 0x45a   : > { %10185 = vmatprep.subr.bf16.mxu1 %v12696_v62  ;;  %v5806_v62 = vld [vmem:[#allocation8 + $0x6b0] sm:$0xff]  ;;  %v5827_v5 = vld [vmem:[#allocation8 + $0x758] sm:$0xff] }
 0x45b   : > { %v12733_v63 = vcombine.low %v5802_v45, %v5806_v62  ;;  %v5831_v4 = vld [vmem:[#allocation8 + $0x778] sm:$0xff] }
 0x45c   : > { %9734 = vmatpush1.bf16.msra.mxu0 %v12693_v2  ;;  %v12734_v2 = vcombine.high %v5802_v45, %v5806_v62  ;;  %v17819_v45 = vld [vmem:[#allocation51_spill] sm:$0xff]  ;;  %v5835_v62 = vld [vmem:[#allocation8 + $0x798] sm:$0xff] }
 0x45d   : > { %10186 = vmatpush1.bf16.msra.mxu1 %v12695_v53  ;;  %9735 = vmatprep.subr.bf16.mxu0 %v12702_v47  ;;  %v12736_v53 = vcombine.high %v5803_v40, %v5807_v31  ;;  %v5810_v47 = vld [vmem:[#allocation8 + $0x6d0] sm:$0xff]  ;;  %v12759_v31 = vcombine.low %v5827_v5, %v5831_v4 }
 0x45e   : > { %9673 = vmatmul.mubr.bf16.gmra.mrb[108].mxu0 %v17812_v55  ;;  %10187 = vmatprep.subr.bf16.mxu1 %v12704_v50  ;;  %v5814_v50 = vld [vmem:[#allocation8 + $0x6f0] sm:$0xff] }
 0x45f   : > { %10125 = vmatmul.mubr.bf16.gmra.mrb[108].mxu1 %v17812_v55  ;;  %9682 = vmatprep.mubr.bf16.mxu0 %v17813_v13  ;;  %v5818_v55 = vld [vmem:[#allocation8 + $0x710] sm:$0xff]  ;;  %v12741_v33 = vcombine.low %v5810_v47, %v5814_v50 }
 0x460   : > { %9736 = vmatpush1.bf16.msra.mxu0 %v12701_v24  ;;  %10134 = vmatprep.mubr.bf16.mxu1 %v17813_v13  ;;  %v12742_v24 = vcombine.high %v5810_v47, %v5814_v50  ;;  %v5823_v13 = vld [vmem:[#allocation8 + $0x738] sm:$0xff] }
 0x461   : > { %10188 = vmatpush1.bf16.msra.mxu1 %v12703_v7  ;;  %9737 = vmatprep.subr.bf16.mxu0 %v12710_v48  ;;  %v17816_v7 = vld [vmem:[#allocation41_spill] sm:$0xff]  ;;  %v12744_v48 = vcombine.high %v5811_v60, %v5815_v51  ;;  %v12751_v44 = vcombine.low %v5819_v20, %v5823_v13 }
 0x462   : > { %10189 = vmatprep.subr.bf16.mxu1 %v12712_v18  ;;  %v5822_v18 = vld [vmem:[#allocation8 + $0x730] sm:$0xff]  ;;  %v5843_v47 = vld [vmem:[#allocation8 + $0x7d8] sm:$0xff] }
 0x463   : > { %v12749_v46 = vcombine.low %v5818_v55, %v5822_v18  ;;  %v5847_v50 = vld [vmem:[#allocation8 + $0x7f8] sm:$0xff] }
 0x464   : > { %9738 = vmatpush1.bf16.msra.mxu0 %v12709_v23  ;;  %v12750_v23 = vcombine.high %v5818_v55, %v5822_v18  ;;  %v17821_v55 = vld [vmem:[#allocation24_spill] sm:$0xff]  ;;  %v5851_v18 = vld [vmem:[#allocation8 + $0x818] sm:$0xff] }
 0x465   : > { %10190 = vmatpush1.bf16.msra.mxu1 %v12711_v10  ;;  %9739 = vmatprep.subr.bf16.mxu0 %v12718_v59  ;;  %v12752_v10 = vcombine.high %v5819_v20, %v5823_v13  ;;  %v5826_v59 = vld [vmem:[#allocation8 + $0x750] sm:$0xff]  ;;  %v12775_v13 = vcombine.low %v5843_v47, %v5847_v50 }
 0x466   : > { %9683 = vmatmul.mubr.bf16.gmra.mrb[112].mxu0 %v17814_v8  ;;  %10191 = vmatprep.subr.bf16.mxu1 %v12720_v58  ;;  %v5830_v58 = vld [vmem:[#allocation8 + $0x770] sm:$0xff] }
 0x467   : > { %10135 = vmatmul.mubr.bf16.gmra.mrb[112].mxu1 %v17814_v8  ;;  %9692 = vmatprep.mubr.bf16.mxu0 %v17815_v52  ;;  %v5834_v8 = vld [vmem:[#allocation8 + $0x790] sm:$0xff]  ;;  %v12757_v40 = vcombine.low %v5826_v59, %v5830_v58 }
 0x468   : > { %9740 = vmatpush1.bf16.msra.mxu0 %v12717_v15  ;;  %10144 = vmatprep.mubr.bf16.mxu1 %v17815_v52  ;;  %v12758_v15 = vcombine.high %v5826_v59, %v5830_v58  ;;  %v5839_v52 = vld [vmem:[#allocation8 + $0x7b8] sm:$0xff] }
 0x469   : > { %10192 = vmatpush1.bf16.msra.mxu1 %v12719_v39  ;;  %9741 = vmatprep.subr.bf16.mxu0 %v12726_v1  ;;  %v17818_v39 = vld [vmem:[#allocation45_spill] sm:$0xff]  ;;  %v12760_v1 = vcombine.high %v5827_v5, %v5831_v4  ;;  %v12767_v51 = vcombine.low %v5835_v62, %v5839_v52 }
 0x46a   : > { %10193 = vmatprep.subr.bf16.mxu1 %v12728_v37  ;;  %v5838_v37 = vld [vmem:[#allocation8 + $0x7b0] sm:$0xff]  ;;  %v5859_v59 = vld [vmem:[#allocation8 + $0x858] sm:$0xff] }
 0x46b   : > { %v12765_v60 = vcombine.low %v5834_v8, %v5838_v37  ;;  %v5863_v58 = vld [vmem:[#allocation8 + $0x878] sm:$0xff] }
 0x46c   : > { %9742 = vmatpush1.bf16.msra.mxu0 %v12725_v41  ;;  %v12766_v41 = vcombine.high %v5834_v8, %v5838_v37  ;;  %v17823_v8 = vld [vmem:[#allocation28_spill] sm:$0xff]  ;;  %v5867_v37 = vld [vmem:[#allocation8 + $0x898] sm:$0xff] }
 0x46d   : > { %10194 = vmatpush1.bf16.msra.mxu1 %v12727_v56  ;;  %9743 = vmatprep.subr.bf16.mxu0 %v12734_v2  ;;  %v12768_v56 = vcombine.high %v5835_v62, %v5839_v52  ;;  %v5842_v2 = vld [vmem:[#allocation8 + $0x7d0] sm:$0xff]  ;;  %v12791_v52 = vcombine.low %v5859_v59, %v5863_v58 }
 0x46e   : > { %9693 = vmatmul.mubr.bf16.gmra.mrb[116].mxu0 %v17816_v7  ;;  %10195 = vmatprep.subr.bf16.mxu1 %v12736_v53  ;;  %v5846_v53 = vld [vmem:[#allocation8 + $0x7f0] sm:$0xff] }
 0x46f   : > { %10145 = vmatmul.mubr.bf16.gmra.mrb[116].mxu1 %v17816_v7  ;;  %9702 = vmatprep.mubr.bf16.mxu0 %v17817_v29  ;;  %v5850_v7 = vld [vmem:[#allocation8 + $0x810] sm:$0xff]  ;;  %v12773_v20 = vcombine.low %v5842_v2, %v5846_v53 }
 0x470   : > { %9744 = vmatpush1.bf16.msra.mxu0 %v12733_v63  ;;  %10154 = vmatprep.mubr.bf16.mxu1 %v17817_v29  ;;  %v12774_v63 = vcombine.high %v5842_v2, %v5846_v53  ;;  %v5855_v29 = vld [vmem:[#allocation8 + $0x838] sm:$0xff] }
 0x471   : > { %10196 = vmatpush1.bf16.msra.mxu1 %v12735_v49  ;;  %9745 = vmatprep.subr.bf16.mxu0 %v12742_v24  ;;  %v17820_v49 = vld [vmem:[#allocation49_spill] sm:$0xff]  ;;  %v12776_v24 = vcombine.high %v5843_v47, %v5847_v50  ;;  %v12783_v4 = vcombine.low %v5851_v18, %v5855_v29 }
 0x472   : > { %10197 = vmatprep.subr.bf16.mxu1 %v12744_v48  ;;  %v5854_v48 = vld [vmem:[#allocation8 + $0x830] sm:$0xff]  ;;  %v5875_v2 = vld [vmem:[#allocation8 + $0x8d8] sm:$0xff] }
 0x473   : > { %v12781_v5 = vcombine.low %v5850_v7, %v5854_v48  ;;  %v5879_v53 = vld [vmem:[#allocation8 + $0x8f8] sm:$0xff] }
 0x474   : > { %9746 = vmatpush1.bf16.msra.mxu0 %v12741_v33  ;;  %v12782_v33 = vcombine.high %v5850_v7, %v5854_v48  ;;  %v17825_v7 = vld [vmem:[#allocation32_spill] sm:$0xff]  ;;  %v5883_v48 = vld [vmem:[#allocation8 + $0x918] sm:$0xff] }
 0x475   : > { %10198 = vmatpush1.bf16.msra.mxu1 %v12743_v61  ;;  %9747 = vmatprep.subr.bf16.mxu0 %v12750_v23  ;;  %v12784_v61 = vcombine.high %v5851_v18, %v5855_v29  ;;  %v5858_v23 = vld [vmem:[#allocation8 + $0x850] sm:$0xff]  ;;  %v12807_v29 = vcombine.low %v5875_v2, %v5879_v53 }
 0x476   : > { %9703 = vmatmul.mubr.bf16.gmra.mrb[120].mxu0 %v17818_v39  ;;  %10199 = vmatprep.subr.bf16.mxu1 %v12752_v10  ;;  %v5862_v10 = vld [vmem:[#allocation8 + $0x870] sm:$0xff] }
 0x477   : > { %10155 = vmatmul.mubr.bf16.gmra.mrb[120].mxu1 %v17818_v39  ;;  %9712 = vmatprep.mubr.bf16.mxu0 %v17819_v45  ;;  %v5866_v39 = vld [vmem:[#allocation8 + $0x890] sm:$0xff]  ;;  %v12789_v62 = vcombine.low %v5858_v23, %v5862_v10 }
 0x478   : > { %9748 = vmatpush1.bf16.msra.mxu0 %v12749_v46  ;;  %10164 = vmatprep.mubr.bf16.mxu1 %v17819_v45  ;;  %v12790_v46 = vcombine.high %v5858_v23, %v5862_v10  ;;  %v5871_v45 = vld [vmem:[#allocation8 + $0x8b8] sm:$0xff] }
 0x479   : > { %10200 = vmatpush1.bf16.msra.mxu1 %v12751_v44  ;;  %9749 = vmatprep.subr.bf16.mxu0 %v12758_v15  ;;  %v17822_v44 = vld [vmem:[#allocation22_spill] sm:$0xff]  ;;  %v12792_v15 = vcombine.high %v5859_v59, %v5863_v58  ;;  %v12799_v50 = vcombine.low %v5867_v37, %v5871_v45 }
 0x47a   : > { %10201 = vmatprep.subr.bf16.mxu1 %v12760_v1  ;;  %v5870_v1 = vld [vmem:[#allocation8 + $0x8b0] sm:$0xff]  ;;  %v5891_v23 = vld [vmem:[#allocation8 + $0x958] sm:$0xff] }
 0x47b   : > { %v12797_v47 = vcombine.low %v5866_v39, %v5870_v1  ;;  %v5895_v10 = vld [vmem:[#allocation8 + $0x978] sm:$0xff] }
 0x47c   : > { %9750 = vmatpush1.bf16.msra.mxu0 %v12757_v40  ;;  %v12798_v40 = vcombine.high %v5866_v39, %v5870_v1  ;;  %v17827_v39 = vld [vmem:[#allocation36_spill] sm:$0xff]  ;;  %v5899_v1 = vld [vmem:[#allocation8 + $0x998] sm:$0xff] }
 0x47d   : > { %10202 = vmatpush1.bf16.msra.mxu1 %v12759_v31  ;;  %9751 = vmatprep.subr.bf16.mxu0 %v12766_v41  ;;  %v12800_v31 = vcombine.high %v5867_v37, %v5871_v45  ;;  %v5874_v41 = vld [vmem:[#allocation8 + $0x8d0] sm:$0xff]  ;;  %v12823_v45 = vcombine.low %v5891_v23, %v5895_v10 }
 0x47e   : > { %9713 = vmatmul.mubr.bf16.gmra.mrb[124].mxu0 %v17820_v49  ;;  %10203 = vmatprep.subr.bf16.mxu1 %v12768_v56  ;;  %v5878_v56 = vld [vmem:[#allocation8 + $0x8f0] sm:$0xff] }
 0x47f   : > { %10165 = vmatmul.mubr.bf16.gmra.mrb[124].mxu1 %v17820_v49  ;;  %9755 = vmatprep.mubr.bf16.mxu0 %v17821_v55  ;;  %v5882_v49 = vld [vmem:[#allocation8 + $0x910] sm:$0xff]  ;;  %v12805_v18 = vcombine.low %v5874_v41, %v5878_v56 }
 0x480   : > { %9752 = vmatpush1.bf16.msra.mxu0 %v12765_v60  ;;  %10207 = vmatprep.mubr.bf16.mxu1 %v17821_v55  ;;  %v12806_v60 = vcombine.high %v5874_v41, %v5878_v56  ;;  %v5887_v55 = vld [vmem:[#allocation8 + $0x938] sm:$0xff] }
 0x481   : > { %10204 = vmatpush1.bf16.msra.mxu1 %v12767_v51  ;;  %9753 = vmatprep.subr.bf16.mxu0 %v12774_v63  ;;  %v17824_v51 = vld [vmem:[#allocation26_spill] sm:$0xff]  ;;  %v12808_v63 = vcombine.high %v5875_v2, %v5879_v53  ;;  %v12815_v58 = vcombine.low %v5883_v48, %v5887_v55 }
 0x482   : > { %10205 = vmatprep.subr.bf16.mxu1 %v12776_v24  ;;  %v5886_v24 = vld [vmem:[#allocation8 + $0x930] sm:$0xff]  ;;  %v5907_v41 = vld [vmem:[#allocation8 + $0x9d8] sm:$0xff] }
 0x483   : > { %v12813_v59 = vcombine.low %v5882_v49, %v5886_v24  ;;  %v5911_v56 = vld [vmem:[#allocation8 + $0x9f8] sm:$0xff] }
 0x484   : > { %9754 = vmatpush1.bf16.msra.mxu0 %v12773_v20  ;;  %v12814_v20 = vcombine.high %v5882_v49, %v5886_v24  ;;  %v17829_v49 = vld [vmem:[#allocation40_spill] sm:$0xff]  ;;  %v5915_v24 = vld [vmem:[#allocation8 + $0xa18] sm:$0xff] }
 0x485   : > { %10206 = vmatpush1.bf16.msra.mxu1 %v12775_v13  ;;  %9836 = vmatprep.subr.bf16.mxu0 %v12782_v33  ;;  %v12816_v13 = vcombine.high %v5883_v48, %v5887_v55  ;;  %v5890_v33 = vld [vmem:[#allocation8 + $0x950] sm:$0xff]  ;;  %v12839_v55 = vcombine.low %v5907_v41, %v5911_v56 }
 0x486   : > { %10288 = vmatprep.subr.bf16.mxu1 %v12784_v61  ;;  %v5894_v61 = vld [vmem:[#allocation8 + $0x970] sm:$0xff] }
 0x487   : > { %9756 = vmatmul.mubr.bf16.vlgmr.msra.gmra.mrb[96].mxu0 %v17822_v44  ;;  %v12821_v37 = vcombine.low %v5890_v33, %v5894_v61 }
 0x488   : > { %10208 = vmatmul.mubr.bf16.vlgmr.msra.gmra.mrb[96].mxu1 %v17822_v44  ;;  %9765 = vmatprep.mubr.bf16.mxu0 %v17823_v8  ;;  %v5898_v44 = vld [vmem:[#allocation8 + $0x990] sm:$0xff] }
 0x489   : > { %9837 = vmatpush1.bf16.msra.mxu0 %v12781_v5  ;;  %10217 = vmatprep.mubr.bf16.mxu1 %v17823_v8  ;;  %v12822_v5 = vcombine.high %v5890_v33, %v5894_v61  ;;  %v5903_v8 = vld [vmem:[#allocation8 + $0x9b8] sm:$0xff] }
 0x48a   : > { %10289 = vmatpush1.bf16.msra.mxu1 %v12783_v4  ;;  %9838 = vmatprep.subr.bf16.mxu0 %v12790_v46  ;;  %v17826_v4 = vld [vmem:[#allocation30_spill] sm:$0xff]  ;;  %v12824_v46 = vcombine.high %v5891_v23, %v5895_v10  ;;  %v12831_v53 = vcombine.low %v5899_v1, %v5903_v8 }
 0x48b   : > { %10290 = vmatprep.subr.bf16.mxu1 %v12792_v15  ;;  %v5902_v15 = vld [vmem:[#allocation8 + $0x9b0] sm:$0xff]  ;;  %v5923_v33 = vld [vmem:[#allocation8 + $0xa58] sm:$0xff] }
 0x48c   : > { %v12829_v2 = vcombine.low %v5898_v44, %v5902_v15  ;;  %v5927_v61 = vld [vmem:[#allocation8 + $0xa78] sm:$0xff] }
 0x48d   : > { %9839 = vmatpush1.bf16.msra.mxu0 %v12789_v62  ;;  %v12830_v62 = vcombine.high %v5898_v44, %v5902_v15  ;;  %v17831_v44 = vld [vmem:[#allocation44_spill] sm:$0xff]  ;;  %v5931_v15 = vld [vmem:[#allocation8 + $0xa98] sm:$0xff] }
 0x48e   : > { %10291 = vmatpush1.bf16.msra.mxu1 %v12791_v52  ;;  %9840 = vmatprep.subr.bf16.mxu0 %v12798_v40  ;;  %v12832_v52 = vcombine.high %v5899_v1, %v5903_v8  ;;  %v5906_v40 = vld [vmem:[#allocation8 + $0x9d0] sm:$0xff]  ;;  %v12855_v8 = vcombine.low %v5923_v33, %v5927_v61 }
 0x48f   : > { %9766 = vmatmul.mubr.bf16.gmra.mrb[100].mxu0 %v17824_v51  ;;  %10292 = vmatprep.subr.bf16.mxu1 %v12800_v31  ;;  %v5910_v31 = vld [vmem:[#allocation8 + $0x9f0] sm:$0xff] }
 0x490   : > { %10218 = vmatmul.mubr.bf16.gmra.mrb[100].mxu1 %v17824_v51  ;;  %9775 = vmatprep.mubr.bf16.mxu0 %v17825_v7  ;;  %v5914_v51 = vld [vmem:[#allocation8 + $0xa10] sm:$0xff]  ;;  %v12837_v48 = vcombine.low %v5906_v40, %v5910_v31 }
 0x491   : > { %9841 = vmatpush1.bf16.msra.mxu0 %v12797_v47  ;;  %10227 = vmatprep.mubr.bf16.mxu1 %v17825_v7  ;;  %v12838_v47 = vcombine.high %v5906_v40, %v5910_v31  ;;  %v5919_v7 = vld [vmem:[#allocation8 + $0xa38] sm:$0xff] }
 0x492   : > { %10293 = vmatpush1.bf16.msra.mxu1 %v12799_v50  ;;  %9842 = vmatprep.subr.bf16.mxu0 %v12806_v60  ;;  %v17828_v50 = vld [vmem:[#allocation34_spill] sm:$0xff]  ;;  %v12840_v60 = vcombine.high %v5907_v41, %v5911_v56  ;;  %v12847_v10 = vcombine.low %v5915_v24, %v5919_v7 }
 0x493   : > { %10294 = vmatprep.subr.bf16.mxu1 %v12808_v63  ;;  %v5918_v63 = vld [vmem:[#allocation8 + $0xa30] sm:$0xff]  ;;  %v5939_v40 = vld [vmem:[#allocation8 + $0xad8] sm:$0xff] }
 0x494   : > { %v12845_v23 = vcombine.low %v5914_v51, %v5918_v63  ;;  %v5943_v31 = vld [vmem:[#allocation8 + $0xaf8] sm:$0xff] }
 0x495   : > { %9843 = vmatpush1.bf16.msra.mxu0 %v12805_v18  ;;  %v12846_v18 = vcombine.high %v5914_v51, %v5918_v63  ;;  %v17833_v51 = vld [vmem:[#allocation48_spill] sm:$0xff]  ;;  %v5947_v63 = vld [vmem:[#allocation8 + $0xb18] sm:$0xff] }
 0x496   : > { %10295 = vmatpush1.bf16.msra.mxu1 %v12807_v29  ;;  %9844 = vmatprep.subr.bf16.mxu0 %v12814_v20  ;;  %v12848_v29 = vcombine.high %v5915_v24, %v5919_v7  ;;  %v5922_v20 = vld [vmem:[#allocation8 + $0xa50] sm:$0xff]  ;;  %v12871_v7 = vcombine.low %v5939_v40, %v5943_v31 }
 0x497   : > { %9776 = vmatmul.mubr.bf16.gmra.mrb[104].mxu0 %v17826_v4  ;;  %10296 = vmatprep.subr.bf16.mxu1 %v12816_v13  ;;  %v5926_v13 = vld [vmem:[#allocation8 + $0xa70] sm:$0xff] }
 0x498   : > { %10228 = vmatmul.mubr.bf16.gmra.mrb[104].mxu1 %v17826_v4  ;;  %9785 = vmatprep.mubr.bf16.mxu0 %v17827_v39  ;;  %v5930_v4 = vld [vmem:[#allocation8 + $0xa90] sm:$0xff]  ;;  %v12853_v1 = vcombine.low %v5922_v20, %v5926_v13 }
 0x499   : > { %9845 = vmatpush1.bf16.msra.mxu0 %v12813_v59  ;;  %10237 = vmatprep.mubr.bf16.mxu1 %v17827_v39  ;;  %v12854_v59 = vcombine.high %v5922_v20, %v5926_v13  ;;  %v5935_v39 = vld [vmem:[#allocation8 + $0xab8] sm:$0xff] }
 0x49a   : > { %10297 = vmatpush1.bf16.msra.mxu1 %v12815_v58  ;;  %9846 = vmatprep.subr.bf16.mxu0 %v12822_v5  ;;  %v17830_v58 = vld [vmem:[#allocation38_spill] sm:$0xff]  ;;  %v12856_v5 = vcombine.high %v5923_v33, %v5927_v61  ;;  %v12863_v56 = vcombine.low %v5931_v15, %v5935_v39 }
 0x49b   : > { %10298 = vmatprep.subr.bf16.mxu1 %v12824_v46  ;;  %v5934_v46 = vld [vmem:[#allocation8 + $0xab0] sm:$0xff]  ;;  %v5955_v20 = vld [vmem:[#allocation8 + $0xb58] sm:$0xff] }
 0x49c   : > { %v12861_v41 = vcombine.low %v5930_v4, %v5934_v46  ;;  %v5959_v13 = vld [vmem:[#allocation8 + $0xb78] sm:$0xff] }
 0x49d   : > { %9847 = vmatpush1.bf16.msra.mxu0 %v12821_v37  ;;  %v12862_v37 = vcombine.high %v5930_v4, %v5934_v46  ;;  %v17835_v4 = vld [vmem:[#allocation52_spill] sm:$0xff]  ;;  %v5963_v46 = vld [vmem:[#allocation8 + $0xb98] sm:$0xff] }
 0x49e   : > { %10299 = vmatpush1.bf16.msra.mxu1 %v12823_v45  ;;  %9848 = vmatprep.subr.bf16.mxu0 %v12830_v62  ;;  %v12864_v45 = vcombine.high %v5931_v15, %v5935_v39  ;;  %v5938_v62 = vld [vmem:[#allocation8 + $0xad0] sm:$0xff]  ;;  %v12887_v39 = vcombine.low %v5955_v20, %v5959_v13 }
 0x49f   : > { %9786 = vmatmul.mubr.bf16.gmra.mrb[108].mxu0 %v17828_v50  ;;  %10300 = vmatprep.subr.bf16.mxu1 %v12832_v52  ;;  %v5942_v52 = vld [vmem:[#allocation8 + $0xaf0] sm:$0xff] }
 0x4a0   : > { %10238 = vmatmul.mubr.bf16.gmra.mrb[108].mxu1 %v17828_v50  ;;  %9795 = vmatprep.mubr.bf16.mxu0 %v17829_v49  ;;  %v5946_v50 = vld [vmem:[#allocation8 + $0xb10] sm:$0xff]  ;;  %v12869_v24 = vcombine.low %v5938_v62, %v5942_v52 }
 0x4a1   : > { %9849 = vmatpush1.bf16.msra.mxu0 %v12829_v2  ;;  %10247 = vmatprep.mubr.bf16.mxu1 %v17829_v49  ;;  %v12870_v2 = vcombine.high %v5938_v62, %v5942_v52  ;;  %v5951_v49 = vld [vmem:[#allocation8 + $0xb38] sm:$0xff] }
 0x4a2   : > { %10301 = vmatpush1.bf16.msra.mxu1 %v12831_v53  ;;  %9850 = vmatprep.subr.bf16.mxu0 %v12838_v47  ;;  %v17832_v53 = vld [vmem:[#allocation42_spill] sm:$0xff]  ;;  %v12872_v47 = vcombine.high %v5939_v40, %v5943_v31  ;;  %v12879_v61 = vcombine.low %v5947_v63, %v5951_v49 }
 0x4a3   : > { %10302 = vmatprep.subr.bf16.mxu1 %v12840_v60  ;;  %v5950_v60 = vld [vmem:[#allocation8 + $0xb30] sm:$0xff]  ;;  %v5971_v62 = vld [vmem:[#allocation8 + $0xbd8] sm:$0xff] }
 0x4a4   : > { %v12877_v33 = vcombine.low %v5946_v50, %v5950_v60  ;;  %v5975_v52 = vld [vmem:[#allocation8 + $0xbf8] sm:$0xff] }
 0x4a5   : > { %9851 = vmatpush1.bf16.msra.mxu0 %v12837_v48  ;;  %v12878_v48 = vcombine.high %v5946_v50, %v5950_v60  ;;  %v17837_v50 = vld [vmem:[#allocation56_spill] sm:$0xff]  ;;  %v5979_v60 = vld [vmem:[#allocation8 + $0xc18] sm:$0xff] }
 0x4a6   : > { %10303 = vmatpush1.bf16.msra.mxu1 %v12839_v55  ;;  %9852 = vmatprep.subr.bf16.mxu0 %v12846_v18  ;;  %v12880_v55 = vcombine.high %v5947_v63, %v5951_v49  ;;  %v5954_v18 = vld [vmem:[#allocation8 + $0xb50] sm:$0xff]  ;;  %v12903_v49 = vcombine.low %v5971_v62, %v5975_v52 }
 0x4a7   : > { %9796 = vmatmul.mubr.bf16.gmra.mrb[112].mxu0 %v17830_v58  ;;  %10304 = vmatprep.subr.bf16.mxu1 %v12848_v29  ;;  %v5958_v29 = vld [vmem:[#allocation8 + $0xb70] sm:$0xff] }
 0x4a8   : > { %10248 = vmatmul.mubr.bf16.gmra.mrb[112].mxu1 %v17830_v58  ;;  %9805 = vmatprep.mubr.bf16.mxu0 %v17831_v44  ;;  %v5962_v58 = vld [vmem:[#allocation8 + $0xb90] sm:$0xff]  ;;  %v12885_v15 = vcombine.low %v5954_v18, %v5958_v29 }
 0x4a9   : > { %9853 = vmatpush1.bf16.msra.mxu0 %v12845_v23  ;;  %10257 = vmatprep.mubr.bf16.mxu1 %v17831_v44  ;;  %v12886_v23 = vcombine.high %v5954_v18, %v5958_v29  ;;  %v5967_v44 = vld [vmem:[#allocation8 + $0xbb8] sm:$0xff] }
 0x4aa   : > { %10305 = vmatpush1.bf16.msra.mxu1 %v12847_v10  ;;  %9854 = vmatprep.subr.bf16.mxu0 %v12854_v59  ;;  %v17834_v10 = vld [vmem:[#allocation46_spill] sm:$0xff]  ;;  %v12888_v59 = vcombine.high %v5955_v20, %v5959_v13  ;;  %v12895_v31 = vcombine.low %v5963_v46, %v5967_v44 }
 0x4ab   : > { %10306 = vmatprep.subr.bf16.mxu1 %v12856_v5  ;;  %v5966_v5 = vld [vmem:[#allocation8 + $0xbb0] sm:$0xff]  ;;  %v5987_v18 = vld [vmem:[#allocation8 + $0xc58] sm:$0xff] }
 0x4ac   : > { %v12893_v40 = vcombine.low %v5962_v58, %v5966_v5  ;;  %v5991_v29 = vld [vmem:[#allocation8 + $0xc78] sm:$0xff] }
 0x4ad   : > { %9855 = vmatpush1.bf16.msra.mxu0 %v12853_v1  ;;  %v12894_v1 = vcombine.high %v5962_v58, %v5966_v5  ;;  %v16616_v58 = vld [vmem:[#allocation8 + $0xc98] sm:$0xff] }
 0x4ae   : > { %10307 = vmatpush1.bf16.msra.mxu1 %v12855_v8  ;;  %9856 = vmatprep.subr.bf16.mxu0 %v12862_v37  ;;  %v12896_v8 = vcombine.high %v5963_v46, %v5967_v44  ;;  %v5970_v37 = vld [vmem:[#allocation8 + $0xbd0] sm:$0xff]  ;;  %v16618_v5 = vld [vmem:[#allocation8 + $0xcb8] sm:$0xff] }
 0x4af   : > { %9806 = vmatmul.mubr.bf16.gmra.mrb[116].mxu0 %v17832_v53  ;;  %10308 = vmatprep.subr.bf16.mxu1 %v12864_v45  ;;  %v5974_v45 = vld [vmem:[#allocation8 + $0xbf0] sm:$0xff] }
 0x4b0   : > { %10258 = vmatmul.mubr.bf16.gmra.mrb[116].mxu1 %v17832_v53  ;;  %9815 = vmatprep.mubr.bf16.mxu0 %v17833_v51  ;;  %v5978_v53 = vld [vmem:[#allocation8 + $0xc10] sm:$0xff]  ;;  %v12901_v63 = vcombine.low %v5970_v37, %v5974_v45 }
 0x4b1   : > { %9857 = vmatpush1.bf16.msra.mxu0 %v12861_v41  ;;  %10267 = vmatprep.mubr.bf16.mxu1 %v17833_v51  ;;  %v12902_v41 = vcombine.high %v5970_v37, %v5974_v45  ;;  %v5983_v51 = vld [vmem:[#allocation8 + $0xc38] sm:$0xff]  ;;  %v16623_v44 = vld [vmem:[#allocation8 + $0xcf0] sm:$0xff] }
 0x4b2   : > { %10309 = vmatpush1.bf16.msra.mxu1 %v12863_v56  ;;  %9858 = vmatprep.subr.bf16.mxu0 %v12870_v2  ;;  %v17836_v56 = vld [vmem:[#allocation50_spill] sm:$0xff]  ;;  %v12904_v2 = vcombine.high %v5971_v62, %v5975_v52  ;;  %v12911_v13 = vcombine.low %v5979_v60, %v5983_v51  ;;  %v16631_v37 = vld [vmem:[#allocation8 + $0xd10] sm:$0xff] }
 0x4b3   : > { %10310 = vmatprep.subr.bf16.mxu1 %v12872_v47  ;;  %v5982_v47 = vld [vmem:[#allocation8 + $0xc30] sm:$0xff]  ;;  %v16635_v62 = vld [vmem:[#allocation8 + $0xd18] sm:$0xff] }
 0x4b4   : > { %v12909_v20 = vcombine.low %v5978_v53, %v5982_v47  ;;  %v16633_v45 = vld [vmem:[#allocation8 + $0xd30] sm:$0xff]  ;;  %v16639_v52 = vld [vmem:[#allocation8 + $0xd38] sm:$0xff] }
 0x4b5   : > { %9859 = vmatpush1.bf16.msra.mxu0 %v12869_v24  ;;  %v12910_v24 = vcombine.high %v5978_v53, %v5982_v47  ;;  %v16651_v47 = vld [vmem:[#allocation8 + $0xd70] sm:$0xff]  ;;  %v17850_v16 = vcombine.low %v16631_v37, %v16633_v45  ;;  %v17851_v11 = vcombine.low %v16635_v62, %v16639_v52 }
 0x4b6   : > { %10311 = vmatpush1.bf16.msra.mxu1 %v12871_v7  ;;  %9860 = vmatprep.subr.bf16.mxu0 %v12878_v48  ;;  %v12912_v7 = vcombine.high %v5979_v60, %v5983_v51  ;;  %v5986_v48 = vld [vmem:[#allocation8 + $0xc50] sm:$0xff]  ;;  %v16655_v60 = vld [vmem:[#allocation8 + $0xd78] sm:$0xff] }
 0x4b7   : > { %9816 = vmatmul.mubr.bf16.gmra.mrb[120].mxu0 %v17834_v10  ;;  %10312 = vmatprep.subr.bf16.mxu1 %v12880_v55  ;;  %v5990_v55 = vld [vmem:[#allocation8 + $0xc70] sm:$0xff]  ;;  %v16729_v51 = vld [vmem:[#allocation8 + $0xe58] sm:$0xff] }
 0x4b8   : > { %10268 = vmatmul.mubr.bf16.gmra.mrb[120].mxu1 %v17834_v10  ;;  %9825 = vmatprep.mubr.bf16.mxu0 %v17835_v4  ;;  %v16610_v10 = vld [vmem:[#allocation8 + $0xc90] sm:$0xff]  ;;  %v12917_v46 = vcombine.low %v5986_v48, %v5990_v55 }
 0x4b9   : > { %9861 = vmatpush1.bf16.msra.mxu0 %v12877_v33  ;;  %10277 = vmatprep.mubr.bf16.mxu1 %v17835_v4  ;;  %v12918_v33 = vcombine.high %v5986_v48, %v5990_v55  ;;  %v16620_v4 = vld [vmem:[#allocation8 + $0xcd0] sm:$0xff]  ;;  %v16669_v55 = vld [vmem:[#allocation8 + $0xd98] sm:$0xff] }
 0x4ba   : > { %10313 = vmatpush1.bf16.msra.mxu1 %v12879_v61  ;;  %9862 = vmatprep.subr.bf16.mxu0 %v12886_v23  ;;  %v17838_v61 = vld [vmem:[#allocation54_spill] sm:$0xff]  ;;  %v12920_v23 = vcombine.high %v5987_v18, %v5991_v29  ;;  %v12934_v53 = vcombine.high %v16620_v4, %v16623_v44  ;;  %v16667_v48 = vld [vmem:[#allocation8 + $0xdb0] sm:$0xff]  ;;  %v17844_v57 = vcombine.low %v16620_v4, %v16623_v44 }
 0x4bb   : > { %10314 = vmatprep.subr.bf16.mxu1 %v12888_v59  ;;  %v16612_v59 = vld [vmem:[#allocation8 + $0xcb0] sm:$0xff]  ;;  %v16810_v44 = vld [vmem:[#allocation8 + $0xf38] sm:$0xff] }
 0x4bc   : > { %17848 = vst [vmem:[#allocation23_spill] sm:$0xff] %v16810_v44 }
 0x4bd   : > { %9863 = vmatpush1.bf16.msra.mxu0 %v12885_v15  ;;  %v16625_v15 = vld [vmem:[#allocation8 + $0xcd8] sm:$0xff] }
 0x4be   : > { %10315 = vmatpush1.bf16.msra.mxu1 %v12887_v39  ;;  %9864 = vmatprep.subr.bf16.mxu0 %v12894_v1  ;;  %v16627_v39 = vld [vmem:[#allocation8 + $0xcf8] sm:$0xff]  ;;  %v12919_v1 = vcombine.low %v5987_v18, %v5991_v29  ;;  %v16700_v18 = vld [vmem:[#allocation8 + $0xe10] sm:$0xff] }
 0x4bf   : > { %9826 = vmatmul.mubr.bf16.gmra.mrb[124].mxu0 %v17836_v56  ;;  %10316 = vmatprep.subr.bf16.mxu1 %v12896_v8  ;;  %v12926_v8 = vcombine.high %v16610_v10, %v16612_v59  ;;  %v16714_v29 = vld [vmem:[#allocation8 + $0xe18] sm:$0xff]  ;;  %v17845_v4 = vcombine.low %v16625_v15, %v16627_v39 }
 0x4c0   : > { %10278 = vmatmul.mubr.bf16.gmra.mrb[124].mxu1 %v17836_v56  ;;  %9868 = vmatprep.mubr.bf16.mxu0 %v17837_v50  ;;  %v12927_v56 = vcombine.low %v16616_v58, %v16618_v5 }
 0x4c1   : > { %9865 = vmatpush1.bf16.msra.mxu0 %v12893_v40  ;;  %10320 = vmatprep.mubr.bf16.mxu1 %v17837_v50  ;;  %v6104_v40 = vld [vmem:[#allocation10] sm:$0xff]  ;;  %v16653_v50 = vld [vmem:[#allocation8 + $0xd58] sm:$0xff] }
 0x4c2   : > { %10317 = vmatpush1.bf16.msra.mxu1 %v12895_v31  ;;  %9866 = vmatprep.subr.bf16.mxu0 %v12902_v41  ;;  %v16641_v31 = vld [vmem:[#allocation8 + $0xd50] sm:$0xff]  ;;  %v12925_v41 = vcombine.low %v16610_v10, %v16612_v59 }
 0x4c3   : > { %10318 = vmatprep.subr.bf16.mxu1 %v12904_v2  ;;  %v16683_v10 = vld [vmem:[#allocation8 + $0xdf0] sm:$0xff] }
 0x4c4   : > { %v16741_v2 = vld [vmem:[#allocation8 + $0xeb0] sm:$0xff] }
 0x4c5   : > { %9867 = vmatpush1.bf16.msra.mxu0 %v12901_v63  ;;  %v12936_v63 = vcombine.high %v16625_v15, %v16627_v39 }
 0x4c6   : > { %10319 = vmatpush1.bf16.msra.mxu1 %v12903_v49  ;;  %9949 = vmatprep.subr.bf16.mxu0 %v12910_v24  ;;  %v16712_v49 = vld [vmem:[#allocation8 + $0xe30] sm:$0xff]  ;;  %v16716_v24 = vld [vmem:[#allocation8 + $0xe38] sm:$0xff] }
 0x4c7   : > { %10401 = vmatprep.subr.bf16.mxu1 %v12912_v7  ;;  %v16665_v7 = vld [vmem:[#allocation8 + $0xd90] sm:$0xff] }
 0x4c8   : > { %9869 = vmatmul.mubr.bf16.vlgmr.msra.gmra.mrb[96].mxu0 %v17838_v61  ;;  %v17856_v44 = vcombine.high %v16665_v7, %v16667_v48 }
 0x4c9   : > { %10321 = vmatmul.mubr.bf16.vlgmr.msra.gmra.mrb[96].mxu1 %v17838_v61  ;;  %9878 = vmatprep.mubr.bf16.mxu0 %v16164_v27  ;;  %v16679_v61 = vld [vmem:[#allocation8 + $0xdb8] sm:$0xff] }
 0x4ca   : > { %9950 = vmatpush1.bf16.msra.mxu0 %v12909_v20  ;;  %10330 = vmatprep.mubr.bf16.mxu1 %v16164_v27  ;;  %v12928_v27 = vcombine.high %v16616_v58, %v16618_v5  ;;  %v17839_v20 = vld [vmem:[#allocation20_spill] sm:$0xff] }
 0x4cb   : > { %10402 = vmatpush1.bf16.msra.mxu1 %v12911_v13  ;;  %9951 = vmatprep.subr.bf16.mxu0 %v12918_v33  ;;  %v17840_v13 = vsub.s32 0, %v17839_v20  ;;  %v17841_v59 = vsub.s32 2, %v17839_v20  ;;  %v17842_v5 = vsub.s32 1, %v17839_v20 }
 0x4cc   : > { %10403 = vmatprep.subr.bf16.mxu1 %v12920_v23  ;;  %v16681_v23 = vld [vmem:[#allocation8 + $0xdd0] sm:$0xff] }
 0x4cd   : > { %v16677_v33 = vrot.slane %v6104_v40, %v17840_v13  ;;  %v16688_v58 = vrot.slane %v6104_v40, %v17841_v59  ;;  %v16698_v13 = vld [vmem:[#allocation8 + $0xdf8] sm:$0xff] }
 0x4ce   : > { %9952 = vmatpush1.bf16.msra.mxu0 %v12917_v46  ;;  %v16692_v46 = vrot.slane %v6104_v40, %v17842_v5  ;;  %v16725_v5 = vld [vmem:[#allocation8 + $0xe50] sm:$0xff] }
 0x4cf   : > { %10404 = vmatpush1.bf16.msra.mxu1 %v12919_v1  ;;  %9953 = vmatprep.subr.bf16.mxu0 %v12926_v8  ;;  %v16696_v8 = vld [vmem:[#allocation8 + $0xdd8] sm:$0xff]  ;;  %v16727_v1 = vld [vmem:[#allocation8 + $0xe70] sm:$0xff] }
 0x4d0   : > { %9879 = vmatmul.mubr.bf16.gmra.mrb[100].mxu0 %v16159_v38  ;;  %10405 = vmatprep.subr.bf16.mxu1 %v12928_v27  ;;  %v17843_v27 = vsub.s32 3, %v17839_v20  ;;  %v16753_v20 = vld [vmem:[#allocation8 + $0xeb8] sm:$0xff] }
 0x4d1   : > { %10331 = vmatmul.mubr.bf16.gmra.mrb[100].mxu1 %v16159_v38  ;;  %9888 = vmatprep.mubr.bf16.mxu0 %v16224_v35  ;;  %v16737_v38 = vld [vmem:[#allocation8 + $0xe78] sm:$0xff] }
 0x4d2   : > { %v16706_v59 = vrot.slane %v6104_v40, %v17843_v27  ;;  %9954 = vmatpush1.bf16.msra.mxu0 %v12925_v41  ;;  %10340 = vmatprep.mubr.bf16.mxu1 %v16224_v35  ;;  %v16739_v27 = vld [vmem:[#allocation8 + $0xe90] sm:$0xff]  ;;  %v16751_v40 = vld [vmem:[#allocation8 + $0xe98] sm:$0xff] }
 0x4d3   : > { %10406 = vmatpush1.bf16.msra.mxu1 %v12927_v56  ;;  %9955 = vmatprep.subr.bf16.mxu0 %v12934_v53  ;;  %v16767_v41 = vld [vmem:[#allocation8 + $0xed8] sm:$0xff] }
 0x4d4   : > { %10407 = vmatprep.subr.bf16.mxu1 %v12936_v63  ;;  %v17847_v63 = vcombine.high %v16635_v62, %v16639_v52  ;;  %v16808_v56 = vld [vmem:[#allocation8 + $0xf18] sm:$0xff]  ;;  %v17853_v62 = vcombine.high %v16653_v50, %v16655_v60 }
 0x4d6   : > { %9956 = vmatpush1.bf16.msra.mxu0 %v17844_v57  ;;  %v17846_v57 = vcombine.high %v16631_v37, %v16633_v45 }
 0x4d7   : > { %10408 = vmatpush1.bf16.msra.mxu1 %v17845_v4  ;;  %v16844_v4 = vld [vmem:[#allocation8 + $0xf58] sm:$0xff] }
 0x4d8   : > { %9957 = vmatprep.subr.bf16.mxu0 %v17846_v57  ;;  %9889 = vmatmul.mubr.bf16.gmra.mrb[104].mxu0 %v16219_v22  ;;  %v9079_v15 = vpop.f32.mrb[64].mxu0  ;;  %v16821_v57 = vld [vmem:[#allocation8 + $0xf70] sm:$0xff] }
 0x4d9   : > { %10409 = vmatprep.subr.bf16.mxu1 %v17847_v63  ;;  %10341 = vmatmul.mubr.bf16.gmra.mrb[104].mxu1 %v16219_v22  ;;  %v13504_v63 = vadd.f32 %v9079_v15, %v16677_v33  ;;  %v9531_v35 = vpop.f32.mrb[64].mxu1  ;;  %v9081_v53 = vpop.f32.mrb[65].mxu0  ;;  %17849 = vst [vmem:[#allocation21_spill] sm:$0xff] %v16821_v57  ;;  %v17857_v57 = vld [vmem:[#allocation62_spill] sm:$0xff] }
 0x4da   : > { %9898 = vmatprep.mubr.bf16.mxu0 %v16284_v54  ;;  %9958 = vmatpush1.bf16.msra.mxu0 %v17850_v16  ;;  %v13536_v22 = vadd.f32 %v9531_v35, %v16688_v58  ;;  %v16829_v15 = vadd.f32 %v9081_v53, %v16692_v46  ;;  %v9533_v3 = vpop.f32.mrb[65].mxu1  ;;  %v9083_v39 = vpop.f32.mrb[66].mxu0  ;;  %v17852_v16 = vcombine.high %v16641_v31, %v16651_v47  ;;  %v17866_v35 = vld [vmem:[#allocation53_spill] sm:$0xff] }
 0x4db   : > { %10350 = vmatprep.mubr.bf16.mxu1 %v16284_v54  ;;  %10410 = vmatpush1.bf16.msra.mxu1 %v17851_v11  ;;  %v10514_v43 = vmul.f32 0.2, %v13504_v63  ;;  %v13506_v54 = vadd.f32 %v9083_v39, %v16677_v33  ;;  %v9535_v37 = vpop.f32.mrb[66].mxu1  ;;  %v9085_v45 = vpop.f32.mrb[67].mxu0  ;;  %v16857_v53 = vadd.f32 %v9533_v3, %v16706_v59  ;;  %v17855_v3 = vcombine.low %v16653_v50, %v16655_v60 }
 0x4dc   : > { %9959 = vmatprep.subr.bf16.mxu0 %v17852_v16  ;;  %v10516_v11 = vmul.f32 0.2, %v13536_v22  ;;  %10411 = vmatprep.subr.bf16.mxu1 %v17853_v62  ;;  %v13538_v52 = vadd.f32 %v9535_v37, %v16688_v58  ;;  %v13507_v39 = vadd.f32 %v9085_v45, %v16692_v46  ;;  %v9537_v16 = vpop.f32.mrb[67].mxu1  ;;  %v10515_v34 = vmul.f32 0.2, %v16829_v15 }
 0x4dd   : > { %v10522_v42 = vmul.f32 0.2, %v13506_v54  ;;  %v16860_v28 = vadd.f32 %v9537_v16, %v16706_v59  ;;  %v17854_v62 = vcombine.low %v16641_v31, %v16651_v47  ;;  %v10642_v36 = vmax.f32 %v13504_v63, %v10514_v43 }
 0x4de   : > { %v10524_v19 = vmul.f32 0.2, %v13538_v52  ;;  %v10523_v37 = vmul.f32 0.2, %v13507_v39  ;;  %v13016_v31 = vcombine.high %v16844_v4, %v16846_v21  ;;  %v10644_v47 = vmax.f32 %v13536_v22, %v10516_v11 }
 0x4df   : > { %9960 = vmatpush1.bf16.msra.mxu0 %v17854_v62  ;;  %v10650_v14 = vmax.f32 %v13506_v54, %v10522_v42  ;;  %10412 = vmatpush1.bf16.msra.mxu1 %v17855_v3  ;;  %v10525_v16 = vmul.f32 0.2, %v16860_v28  ;;  %v17858_v42 = vcombine.high %v16669_v55, %v16679_v61  ;;  %v10643_v50 = vmax.f32 %v16829_v15, %v10515_v34  ;;  %v16907_v3 = vld [vmem:[#allocation8 + $0xfb0] sm:$0xff] }
 0x4e0   : > { %9961 = vmatprep.subr.bf16.mxu0 %v17856_v44  ;;  %v10652_v62 = vmax.f32 %v13538_v52, %v10524_v19  ;;  %v10651_v45 = vmax.f32 %v13507_v39, %v10523_v37  ;;  %9899 = vmatmul.mubr.bf16.gmra.mrb[108].mxu0 %v17857_v57  ;;  %v9089_v43 = vpop.f32.mrb[68].mxu0  ;;  %v10517_v60 = vmul.f32 0.2, %v16857_v53  ;;  %v17859_v52 = vcombine.low %v16665_v7, %v16667_v48 }
 0x4e1   : > { %10413 = vmatprep.subr.bf16.mxu1 %v17858_v42  ;;  %v16884_v63 = vpack.c.bf16 %v10650_v14, %v10642_v36  ;;  %10351 = vmatmul.mubr.bf16.gmra.mrb[108].mxu1 %v17857_v57  ;;  %v13508_v19 = vadd.f32 %v9089_v43, %v16677_v33  ;;  %v9541_v44 = vpop.f32.mrb[68].mxu1  ;;  %v9091_v22 = vpop.f32.mrb[69].mxu0  ;;  %v10653_v11 = vmax.f32 %v16860_v28, %v10525_v16 }
 0x4e2   : > { %9908 = vmatprep.mubr.bf16.mxu0 %v16344_v32  ;;  %v16889_v54 = vpack.c.bf16 %v10652_v62, %v10644_v47  ;;  %10360 = vmatprep.mubr.bf16.mxu1 %v16344_v32  ;;  %v13509_v34 = vadd.f32 %v9091_v22, %v16692_v46  ;;  %v9543_v36 = vpop.f32.mrb[69].mxu1  ;;  %v9093_v14 = vpop.f32.mrb[70].mxu0  ;;  %v17860_v57 = vcombine.low %v16669_v55, %v16679_v61  ;;  %v16905_v32 = vld [vmem:[#allocation8 + $0xf90] sm:$0xff] }
 0x4e3   : > { %9962 = vmatpush1.bf16.msra.mxu0 %v17859_v52  ;;  %v10530_v15 = vmul.f32 0.2, %v13508_v19  ;;  %v13541_v39 = vadd.f32 %v9543_v36, %v16706_v59  ;;  %v17861_v28 = vcombine.high %v16681_v23, %v16683_v10  ;;  %v13510_v7 = vadd.f32 %v9093_v14, %v16677_v33  ;;  %v9545_v48 = vpop.f32.mrb[70].mxu1  ;;  %v9095_v37 = vpop.f32.mrb[71].mxu0 }
 0x4e4   : > { %10414 = vmatpush1.bf16.msra.mxu1 %v17860_v57  ;;  %v16909_v16 = vpack.c.bf16 %v10651_v45, %v10643_v50  ;;  %v16912_v55 = vadd.f32 %v9541_v44, %v16688_v58  ;;  %v10531_v61 = vmul.f32 0.2, %v13509_v34  ;;  %v17862_v47 = vcombine.high %v16696_v8, %v16698_v13  ;;  %v9547_v43 = vpop.f32.mrb[71].mxu1 }
 0x4e5   : > { %9963 = vmatprep.subr.bf16.mxu0 %v17861_v28  ;;  %v16918_v62 = vadd.f32 %v9545_v48, %v16688_v58  ;;  %v13511_v42 = vadd.f32 %v9095_v37, %v16692_v46  ;;  %v10645_v22 = vmax.f32 %v16857_v53, %v10517_v60  ;;  %v10533_v52 = vmul.f32 0.2, %v13541_v39 }
 0x4e6   : > { %10415 = vmatprep.subr.bf16.mxu1 %v17862_v47  ;;  %v10538_v36 = vmul.f32 0.2, %v13510_v7  ;;  %v13543_v45 = vadd.f32 %v9547_v43, %v16706_v59  ;;  %v17863_v44 = vcombine.low %v16681_v23, %v16683_v10  ;;  %v13022_v28 = vcombine.high %v16905_v32, %v16907_v3 }
 0x4e7   : > { %v16924_v50 = vmul.f32 0.2, %v16918_v62  ;;  %v10539_v14 = vmul.f32 0.2, %v13511_v42  ;;  %v10658_v48 = vmax.f32 %v13508_v19, %v10530_v15  ;;  %v17864_v60 = vcombine.low %v16696_v8, %v16698_v13  ;;  %v17868_v15 = vld [vmem:[#allocation69_spill] sm:$0xff] }
 0x4e8   : > { %9964 = vmatpush1.bf16.msra.mxu0 %v17863_v44  ;;  %v10666_v53 = vmax.f32 %v13510_v7, %v10538_v36  ;;  %v10541_v37 = vmul.f32 0.2, %v13543_v45  ;;  %v17865_v47 = vcombine.high %v16700_v18, %v16712_v49  ;;  %v16939_v23 = vpack.c.bf16 %v10653_v11, %v10645_v22  ;;  %v9099_v8 = vpop.f32.mrb[72].mxu0 }
 0x4e9   : > { %10416 = vmatpush1.bf16.msra.mxu1 %v17864_v60  ;;  %v10532_v10 = vmul.f32 0.2, %v16912_v55  ;;  %v10659_v43 = vmax.f32 %v13509_v34, %v10531_v61  ;;  %v10661_v44 = vmax.f32 %v13541_v39, %v10533_v52  ;;  %v10667_v57 = vmax.f32 %v13511_v42, %v10539_v14  ;;  %9909 = vmatmul.mubr.bf16.gmra.mrb[112].mxu0 %v17866_v35  ;;  %v9551_v7 = vpop.f32.mrb[72].mxu1  ;;  %v9101_v22 = vpop.f32.mrb[73].mxu0  ;;  %v16970_v60 = vld [vmem:[#allocation8 + $0xfb8] sm:$0xff] }
 0x4ea   : > { %9965 = vmatprep.subr.bf16.mxu0 %v17865_v47  ;;  %v17867_v19 = vcombine.high %v16714_v29, %v16716_v24  ;;  %v10669_v13 = vmax.f32 %v13543_v45, %v10541_v37  ;;  %10361 = vmatmul.mubr.bf16.gmra.mrb[112].mxu1 %v17866_v35  ;;  %v13512_v11 = vadd.f32 %v9099_v8, %v16677_v33  ;;  %v9553_v35 = vpop.f32.mrb[73].mxu1  ;;  %v9103_v42 = vpop.f32.mrb[74].mxu0 }
 0x4eb   : > { %9918 = vmatprep.mubr.bf16.mxu0 %v17868_v15  ;;  %v16949_v36 = vpack.c.bf16 %v10666_v53, %v10658_v48  ;;  %v10668_v34 = vmax.f32 %v16918_v62, %v16924_v50  ;;  %v17869_v39 = vcombine.low %v16700_v18, %v16712_v49  ;;  %10370 = vmatprep.mubr.bf16.mxu1 %v17868_v15  ;;  %v9555_v18 = vpop.f32.mrb[74].mxu1  ;;  %v9105_v50 = vpop.f32.mrb[75].mxu0  ;;  %v16968_v53 = vld [vmem:[#allocation8 + $0xf98] sm:$0xff] }
 0x4ec   : > { %10417 = vmatprep.subr.bf16.mxu1 %v17867_v19  ;;  %v13513_v61 = vadd.f32 %v9101_v22, %v16692_v46  ;;  %v16958_v52 = vpack.c.bf16 %v10667_v57, %v10659_v43  ;;  %v17870_v45 = vcombine.low %v16714_v29, %v16716_v24  ;;  %v10546_v14 = vmul.f32 0.2, %v13512_v11  ;;  %v9557_v19 = vpop.f32.mrb[75].mxu1 }
 0x4ed   : > { %9966 = vmatpush1.bf16.msra.mxu0 %v17869_v39  ;;  %v13545_v48 = vadd.f32 %v9553_v35, %v16706_v59  ;;  %v17871_v62 = vcombine.high %v16725_v5, %v16727_v1  ;;  %v13514_v49 = vadd.f32 %v9103_v42, %v16677_v33  ;;  %v16972_v57 = vpack.c.bf16 %v10669_v13, %v10661_v44 }
 0x4ee   : > { %10418 = vmatpush1.bf16.msra.mxu1 %v17870_v45  ;;  %v10660_v24 = vmax.f32 %v16912_v55, %v10532_v10  ;;  %v10547_v29 = vmul.f32 0.2, %v13513_v61  ;;  %v17872_v37 = vcombine.high %v16729_v51, %v16737_v38  ;;  %v16979_v47 = vadd.f32 %v9555_v18, %v16688_v58 }
 0x4ef   : > { %9967 = vmatprep.subr.bf16.mxu0 %v17871_v62  ;;  %v13515_v43 = vadd.f32 %v9105_v50, %v16692_v46  ;;  %v16983_v8 = vadd.f32 %v9551_v7, %v16688_v58  ;;  %v10549_v15 = vmul.f32 0.2, %v13545_v48  ;;  %v10554_v22 = vmul.f32 0.2, %v13514_v49 }
 0x4f0   : > { %10419 = vmatprep.subr.bf16.mxu1 %v17872_v37  ;;  %v13547_v44 = vadd.f32 %v9557_v19, %v16706_v59  ;;  %v16987_v55 = vmul.f32 0.2, %v16979_v47  ;;  %v17873_v10 = vcombine.low %v16725_v5, %v16727_v1  ;;  %v13023_v39 = vcombine.low %v16968_v53, %v16970_v60  ;;  %v17876_v19 = vld [vmem:[#allocation67_spill] sm:$0xff] }
 0x4f1   : > { %v10555_v13 = vmul.f32 0.2, %v13515_v43  ;;  %v13024_v35 = vcombine.high %v16968_v53, %v16970_v60  ;;  %v10674_v7 = vmax.f32 %v13512_v11, %v10546_v14  ;;  %v10682_v42 = vmax.f32 %v13514_v49, %v10554_v22  ;;  %9919 = vmatmul.mubr.bf16.gmra.mrb[116].mxu0 %v17876_v19  ;;  %v9109_v14 = vpop.f32.mrb[76].mxu0  ;;  %v9561_v49 = vpop.f32.mrb[76].mxu1 }
 0x4f2   : > { %9968 = vmatpush1.bf16.msra.mxu0 %v17873_v10  ;;  %v17874_v45 = vcombine.low %v16729_v51, %v16737_v38  ;;  %v10557_v62 = vmul.f32 0.2, %v13547_v44  ;;  %v17875_v18 = vcombine.high %v16739_v27, %v16741_v2  ;;  %v17002_v1 = vpack.c.bf16 %v10668_v34, %v10660_v24  ;;  %10371 = vmatmul.mubr.bf16.gmra.mrb[116].mxu1 %v17876_v19 }
 0x4f3   : > { %v10675_v5 = vmax.f32 %v13513_v61, %v10547_v29  ;;  %v10677_v50 = vmax.f32 %v13545_v48, %v10549_v15  ;;  %v10683_v37 = vmax.f32 %v13515_v43, %v10555_v13  ;;  %v17877_v11 = vcombine.high %v16751_v40, %v16753_v20  ;;  %9928 = vmatprep.mubr.bf16.mxu0 %v16468_v26  ;;  %v9111_v61 = vpop.f32.mrb[77].mxu0  ;;  %v9563_v15 = vpop.f32.mrb[77].mxu1 }
 0x4f4   : > { %10420 = vmatpush1.bf16.msra.mxu1 %v17874_v45  ;;  %9969 = vmatprep.subr.bf16.mxu0 %v17875_v18  ;;  %v10548_v51 = vmul.f32 0.2, %v16983_v8  ;;  %v10685_v38 = vmax.f32 %v13547_v44, %v10557_v62  ;;  %v13516_v34 = vadd.f32 %v9109_v14, %v16677_v33  ;;  %v17012_v48 = vpack.c.bf16 %v10682_v42, %v10674_v7  ;;  %v9113_v22 = vpop.f32.mrb[78].mxu0  ;;  %v17033_v42 = vld [vmem:[#allocation8 + $0xff0] sm:$0xff] }
 0x4f5   : > { %10421 = vmatprep.subr.bf16.mxu1 %v17877_v11  ;;  %v10684_v24 = vmax.f32 %v16979_v47, %v16987_v55  ;;  %v17878_v29 = vcombine.low %v16739_v27, %v16741_v2  ;;  %10380 = vmatprep.mubr.bf16.mxu1 %v16468_v26  ;;  %v13517_v43 = vadd.f32 %v9111_v61, %v16692_v46  ;;  %v9565_v26 = vpop.f32.mrb[78].mxu1  ;;  %v9115_v27 = vpop.f32.mrb[79].mxu0  ;;  %v17031_v55 = vld [vmem:[#allocation8 + $0xfd0] sm:$0xff] }
 0x4f6   : > { %v17021_v44 = vpack.c.bf16 %v10683_v37, %v10675_v5  ;;  %v17879_v10 = vcombine.low %v16751_v40, %v16753_v20  ;;  %v10562_v13 = vmul.f32 0.2, %v13516_v34  ;;  %v13549_v7 = vadd.f32 %v9563_v15, %v16706_v59  ;;  %v9567_v37 = vpop.f32.mrb[79].mxu1 }
 0x4f7   : > { %9970 = vmatpush1.bf16.msra.mxu0 %v17878_v29  ;;  %v17880_v47 = vcombine.high %v16755_v0, %v16765_v6  ;;  %v13518_v2 = vadd.f32 %v9113_v22, %v16677_v33  ;;  %v17035_v45 = vpack.c.bf16 %v10685_v38, %v10677_v50  ;;  %v17038_v20 = vadd.f32 %v9561_v49, %v16688_v58 }
 0x4f8   : > { %10422 = vmatpush1.bf16.msra.mxu1 %v17879_v10  ;;  %v10563_v40 = vmul.f32 0.2, %v13517_v43  ;;  %v17881_v62 = vcombine.high %v16767_v41, %v16769_v12  ;;  %v17044_v18 = vadd.f32 %v9565_v26, %v16688_v58  ;;  %v13519_v5 = vadd.f32 %v9115_v27, %v16692_v46 }
 0x4f9   : > { %9971 = vmatprep.subr.bf16.mxu0 %v17880_v47  ;;  %v10676_v19 = vmax.f32 %v16983_v8, %v10548_v51  ;;  %v10565_v11 = vmul.f32 0.2, %v13549_v7  ;;  %v10570_v14 = vmul.f32 0.2, %v13518_v2  ;;  %v13551_v50 = vadd.f32 %v9567_v37, %v16706_v59  ;;  %9929 = vmatmul.mubr.bf16.gmra.mrb[120].mxu0 %v16463_v9  ;;  %v9571_v37 = vpop.f32.mrb[80].mxu1 }
 0x4fa   : > { %10423 = vmatprep.subr.bf16.mxu1 %v17881_v62  ;;  %v17050_v38 = vmul.f32 0.2, %v17044_v18  ;;  %v17882_v49 = vcombine.low %v16755_v0, %v16765_v6  ;;  %v10571_v61 = vmul.f32 0.2, %v13519_v5  ;;  %v13029_v29 = vcombine.low %v17031_v55, %v17033_v42  ;;  %10381 = vmatmul.mubr.bf16.gmra.mrb[120].mxu1 %v16463_v9  ;;  %v9573_v9 = vpop.f32.mrb[81].mxu1 }
 0x4fb   : > { %v13030_v15 = vcombine.high %v17031_v55, %v17033_v42  ;;  %v10690_v22 = vmax.f32 %v13516_v34, %v10562_v13  ;;  %v10698_v8 = vmax.f32 %v13518_v2, %v10570_v14  ;;  %v17883_v51 = vcombine.low %v16767_v41, %v16769_v12  ;;  %v17885_v34 = vld [vmem:[#allocation23_spill] sm:$0xff]  ;;  %v9119_v12 = vpop.f32.mrb[80].mxu0 }
 0x4fc   : > { %9972 = vmatpush1.bf16.msra.mxu0 %v17882_v49  ;;  %v10573_v10 = vmul.f32 0.2, %v13551_v50  ;;  %v17884_v47 = vcombine.high %v16782_v25, %v16784_v17  ;;  %v17065_v0 = vpack.c.bf16 %v10684_v24, %v10676_v19  ;;  %v10564_v6 = vmul.f32 0.2, %v17038_v20  ;;  %v17887_v2 = vld [vmem:[#allocation75_spill] sm:$0xff]  ;;  %v9121_v19 = vpop.f32.mrb[81].mxu0 }
 0x4fd   : > { %10424 = vmatpush1.bf16.msra.mxu1 %v17883_v51  ;;  %v10691_v26 = vmax.f32 %v13517_v43, %v10563_v40  ;;  %v10693_v27 = vmax.f32 %v13549_v7, %v10565_v11  ;;  %v10699_v62 = vmax.f32 %v13519_v5, %v10571_v61  ;;  %v17886_v13 = vcombine.high %v16808_v56, %v17885_v34  ;;  %v9123_v5 = vpop.f32.mrb[82].mxu0  ;;  %v17096_v51 = vld [vmem:[#allocation8 + $0xff8] sm:$0xff]  ;;  %v17897_v42 = vld [vmem:[#allocation55_spill] sm:$0xff] }
 0x4fe   : > { %9973 = vmatprep.subr.bf16.mxu0 %v17884_v47  ;;  %v10701_v41 = vmax.f32 %v13551_v50, %v10573_v10  ;;  %9938 = vmatprep.mubr.bf16.mxu0 %v17887_v2  ;;  %v13520_v24 = vadd.f32 %v9119_v12, %v16677_v33  ;;  %v17075_v14 = vpack.c.bf16 %v10698_v8, %v10690_v22  ;;  %v9125_v22 = vpop.f32.mrb[83].mxu0  ;;  %v17094_v8 = vld [vmem:[#allocation8 + $0xfd8] sm:$0xff] }
 0x4ff   : > { %10425 = vmatprep.subr.bf16.mxu1 %v17886_v13  ;;  %v10700_v43 = vmax.f32 %v17044_v18, %v17050_v38  ;;  %v17888_v7 = vcombine.low %v16782_v25, %v16784_v17  ;;  %10390 = vmatprep.mubr.bf16.mxu1 %v17887_v2  ;;  %v13521_v40 = vadd.f32 %v9121_v19, %v16692_v46  ;;  %v17890_v18 = vld [vmem:[#allocation21_spill] sm:$0xff]  ;;  %v9575_v17 = vpop.f32.mrb[82].mxu1 }
 0x500   : > { %v17084_v11 = vpack.c.bf16 %v10699_v62, %v10691_v26  ;;  %v17889_v50 = vcombine.low %v16808_v56, %v17885_v34  ;;  %v10578_v49 = vmul.f32 0.2, %v13520_v24  ;;  %v13553_v61 = vadd.f32 %v9573_v9, %v16706_v59  ;;  %v9577_v34 = vpop.f32.mrb[83].mxu1 }
 0x501   : > { %9974 = vmatpush1.bf16.msra.mxu0 %v17888_v7  ;;  %v17891_v38 = vcombine.high %v16819_v30, %v17890_v18  ;;  %v13522_v25 = vadd.f32 %v9123_v5, %v16677_v33  ;;  %v17098_v10 = vpack.c.bf16 %v10701_v41, %v10693_v27  ;;  %v10692_v56 = vmax.f32 %v17038_v20, %v10564_v6 }
 0x502   : > { %10426 = vmatpush1.bf16.msra.mxu1 %v17889_v50  ;;  %v10579_v47 = vmul.f32 0.2, %v13521_v40  ;;  %v17105_v26 = vadd.f32 %v9575_v17, %v16688_v58  ;;  %v13523_v62 = vadd.f32 %v9125_v22, %v16692_v46  ;;  %v17109_v13 = vadd.f32 %v9571_v37, %v16688_v58  ;;  %v17894_v17 = vld [vmem:[#allocation73_spill] sm:$0xff] }
 0x503   : > { %9975 = vmatprep.subr.bf16.mxu0 %v17891_v38  ;;  %10427 = vmatprep.subr.bf16.mxu1 %v13016_v31  ;;  %v10581_v12 = vmul.f32 0.2, %v13553_v61  ;;  %v10586_v2 = vmul.f32 0.2, %v13522_v25  ;;  %v13555_v27 = vadd.f32 %v9577_v34, %v16706_v59  ;;  %v17892_v6 = vcombine.low %v16819_v30, %v17890_v18  ;;  %v14599_v34 = vld [vmem:[#allocation11 + $0x40] sm:$0xff]  }
 0x504   : > { %v10588_v20 = vmul.f32 0.2, %v17105_v26  ;;  %v10587_v31 = vmul.f32 0.2, %v13523_v62  ;;  %v13031_v41 = vcombine.low %v17094_v8, %v17096_v51  ;;  %v13032_v19 = vcombine.high %v17094_v8, %v17096_v51  ;;  %9939 = vmatmul.mubr.bf16.gmra.mrb[124].mxu0 %v17894_v17  ;;  %10391 = vmatmul.mubr.bf16.gmra.mrb[124].mxu1 %v17894_v17 }
 0x505   : > { %9976 = vmatpush1.bf16.msra.mxu0 %v17892_v6  ;;  %v10706_v7 = vmax.f32 %v13520_v24, %v10578_v49  ;;  %v10714_v37 = vmax.f32 %v13522_v25, %v10586_v2  ;;  %v17893_v9 = vcombine.low %v16844_v4, %v16846_v21  ;;  %v10589_v5 = vmul.f32 0.2, %v13555_v27  ;;  %v9129_v24 = vpop.f32.mrb[84].mxu0  ;;  %v17895_v49 = vld [vmem:[#allocation57_spill] sm:$0xff] }
 0x506   : > { %9977 = vmatprep.subr.bf16.mxu0 %v13022_v28  ;;  %v17126_v30 = vpack.c.bf16 %v10700_v43, %v10692_v56  ;;  %v10707_v50 = vmax.f32 %v13521_v40, %v10579_v47  ;;  %v10709_v18 = vmax.f32 %v13553_v61, %v10581_v12  ;;  %v10715_v38 = vmax.f32 %v13523_v62, %v10587_v31  ;;  %v9581_v43 = vpop.f32.mrb[84].mxu1  ;;  %v9131_v40 = vpop.f32.mrb[85].mxu0 }
 0x507   : > { %10428 = vmatpush1.bf16.msra.mxu1 %v17893_v9  ;;  %v10580_v21 = vmul.f32 0.2, %v17109_v13  ;;  %v10717_v4 = vmax.f32 %v13555_v27, %v10589_v5  ;;  %9981 = vmatprep.mubr.bf16.mxu0 %v17895_v49  ;;  %v13524_v28 = vadd.f32 %v9129_v24, %v16677_v33  ;;  %v17136_v61 = vpack.c.bf16 %v10714_v37, %v10706_v7  ;;  %v9583_v8 = vpop.f32.mrb[85].mxu1  ;;  %v9133_v51 = vpop.f32.mrb[86].mxu0 }
 0x508   : > { %10429 = vmatprep.subr.bf16.mxu1 %v13024_v35  ;;  %v10716_v25 = vmax.f32 %v17105_v26, %v10588_v20  ;;  %v17896_v22 = vcombine.low %v16905_v32, %v16907_v3  ;;  %10433 = vmatprep.mubr.bf16.mxu1 %v17895_v49  ;;  %v13525_v35 = vadd.f32 %v9131_v40, %v16692_v46  ;;  %v9585_v3 = vpop.f32.mrb[86].mxu1  ;;  %v9135_v26 = vpop.f32.mrb[87].mxu0  ;;  %v14600_v20 = vld [vmem:[#allocation11 + $0xc0] sm:$0xff]   ;;  %v14603_v49 = vld [vmem:[#allocation11 + $0x48] sm:$0xff]  }
 0x509   : > { %v17144_v56 = vpack.c.bf16 %v10715_v38, %v10707_v50  ;;  %v10594_v47 = vmul.f32 0.2, %v13524_v28  ;;  %v13557_v62 = vadd.f32 %v9583_v8, %v16706_v59  ;;  %v13526_v32 = vadd.f32 %v9133_v51, %v16677_v33  ;;  %v14604_v40 = vld [vmem:[#allocation11 + $0xc8] sm:$0xff]  }
 0x50a   : > { %9978 = vmatpush1.bf16.msra.mxu0 %v17896_v22  ;;  %v17154_v12 = vpack.c.bf16 %v10717_v4, %v10709_v18  ;;  %v17157_v2 = vadd.f32 %v9581_v43, %v16688_v58  ;;  %v10595_v27 = vmul.f32 0.2, %v13525_v35  ;;  %v17160_v53 = vadd.f32 %v9585_v3, %v16688_v58  ;;  %v14601_v18 = vld [vmem:[#allocation11] sm:$0xff]  }
 0x50b   : > { %10430 = vmatpush1.bf16.msra.mxu1 %v13023_v39  ;;  %9979 = vmatprep.subr.bf16.mxu0 %v13030_v15  ;;  %v13527_v60 = vadd.f32 %v9135_v26, %v16692_v46  ;;  %v9587_v39 = vpop.f32.mrb[87].mxu1  ;;  %v10708_v15 = vmax.f32 %v17109_v13, %v10580_v21  ;;  %v10597_v6 = vmul.f32 0.2, %v13557_v62  ;;  %v10602_v31 = vmul.f32 0.2, %v13526_v32  ;;  %v9139_v21 = vpop.f32.mrb[88].mxu0 }
 0x50c   : > { %10431 = vmatprep.subr.bf16.mxu1 %v13032_v19  ;;  %v13559_v7 = vadd.f32 %v9587_v39, %v16706_v59  ;;  %v17166_v37 = vmul.f32 0.2, %v17160_v53  ;;  %v10722_v9 = vmax.f32 %v13524_v28, %v10594_v47  ;;  %v10596_v13 = vmul.f32 0.2, %v17157_v2  ;;  %v14602_v4 = vld [vmem:[#allocation11 + $0x80] sm:$0xff]   ;;  %v9141_v28 = vpop.f32.mrb[89].mxu0 }
 0x50d   : > { %v10603_v19 = vmul.f32 0.2, %v13527_v60  ;;  %v10730_v5 = vmax.f32 %v13526_v32, %v10602_v31  ;;  %v17171_v38 = vpack.c.bf16 %v10716_v25, %v10708_v15  ;;  %v10723_v17 = vmax.f32 %v13525_v35, %v10595_v27  ;;  %v17898_v35 = vld [vmem:[#allocation59_spill] sm:$0xff]  ;;  %v9143_v47 = vpop.f32.mrb[90].mxu0 }
 0x50e   : > { %9980 = vmatpush1.bf16.msra.mxu0 %v13029_v29  ;;  %v10605_v50 = vmul.f32 0.2, %v13559_v7  ;;  %v10725_v43 = vmax.f32 %v13557_v62, %v10597_v6  ;;  %v13528_v29 = vadd.f32 %v9139_v21, %v16677_v33  ;;  %v10732_v25 = vmax.f32 %v17160_v53, %v17166_v37  ;;  %v9145_v27 = vpop.f32.mrb[91].mxu0  ;;  %v14605_v53 = vld [vmem:[#allocation11 + $0x8] sm:$0xff]   ;;  %v14607_v37 = vld [vmem:[#allocation11 + $0x50] sm:$0xff]  }
 0x50f   : > { %10432 = vmatpush1.bf16.msra.mxu1 %v13031_v41  ;;  %13120 = vmatprep.subr.bf16.mxu0 %v14599_v34  ;;  %v10731_v24 = vmax.f32 %v13527_v60, %v10603_v19  ;;  %v9591_v41 = vpop.f32.mrb[88].mxu1  ;;  %v17176_v22 = vpack.c.bf16 %v10730_v5, %v10722_v9  ;;  %v13529_v8 = vadd.f32 %v9141_v28, %v16692_v46 }
 0x510   : > { %13184 = vmatprep.subr.bf16.mxu1 %v14600_v20  ;;  %v10733_v55 = vmax.f32 %v13559_v7, %v10605_v50  ;;  %v9593_v51 = vpop.f32.mrb[89].mxu1  ;;  %v10610_v32 = vmul.f32 0.2, %v13528_v29  ;;  %v13530_v26 = vadd.f32 %v9143_v47, %v16677_v33  ;;  %v10724_v39 = vmax.f32 %v17157_v2, %v10596_v13  ;;  %v14606_v7 = vld [vmem:[#allocation11 + $0x88] sm:$0xff]   ;;  %v14608_v2 = vld [vmem:[#allocation11 + $0xd0] sm:$0xff]   ;;  %v9149_v28 = vpop.f32.mrb[92].mxu0 }
 0x511   : > { %9982 = vmatmul.mubr.bf16.vlgmr.msra.gmra.mrb[96].mxu0 %v17897_v42  ;;  %v17183_v62 = vpack.c.bf16 %v10731_v24, %v10723_v17  ;;  %v17187_v3 = vadd.f32 %v9593_v51, %v16706_v59  ;;  %v9595_v34 = vpop.f32.mrb[90].mxu1  ;;  %v10611_v20 = vmul.f32 0.2, %v13529_v8  ;;  %v13531_v6 = vadd.f32 %v9145_v27, %v16692_v46  ;;  %v17899_v51 = vld [vmem:[#allocation58_spill] sm:$0xff] }
 0x512   : > { %10434 = vmatmul.mubr.bf16.vlgmr.msra.gmra.mrb[96].mxu1 %v17897_v42  ;;  %9991 = vmatprep.mubr.bf16.mxu0 %v17898_v35  ;;  %v17190_v60 = vpack.c.bf16 %v10733_v55, %v10725_v43  ;;  %v17194_v15 = vadd.f32 %v9595_v34, %v16688_v58  ;;  %v9597_v31 = vpop.f32.mrb[91].mxu1  ;;  %v17198_v19 = vadd.f32 %v9591_v41, %v16688_v58  ;;  %v10618_v5 = vmul.f32 0.2, %v13530_v26  ;;  %v17900_v34 = vld [vmem:[#allocation61_spill] sm:$0xff] }
 0x513   : > { %10443 = vmatprep.mubr.bf16.mxu1 %v17898_v35  ;;  %13121 = vmatpush3.bf16.msra.mxu0 %v14601_v18  ;;  %v10613_v9 = vmul.f32 0.2, %v17187_v3  ;;  %v13563_v50 = vadd.f32 %v9597_v31, %v16706_v59  ;;  %v10738_v18 = vmax.f32 %v13528_v29, %v10610_v32  ;;  %v10619_v17 = vmul.f32 0.2, %v13531_v6  ;;  %v14610_v29 = vld [vmem:[#allocation11 + $0x90] sm:$0xff]   ;;  %v9151_v32 = vpop.f32.mrb[93].mxu0 }
 0x514   : > { %13185 = vmatpush3.bf16.msra.mxu1 %v14602_v4  ;;  %13122 = vmatprep.subr.bf16.mxu0 %v14603_v49  ;;  %v17203_v13 = vmul.f32 0.2, %v17194_v15  ;;  %v10739_v24 = vmax.f32 %v13529_v8, %v10611_v20  ;;  %v10746_v21 = vmax.f32 %v13530_v26, %v10618_v5  ;;  %v14609_v49 = vld [vmem:[#allocation11 + $0x10] sm:$0xff]   ;;  %v17205_v43 = vpack.c.bf16 %v10732_v25, %v10724_v39  ;;  %v9601_v25 = vpop.f32.mrb[92].mxu1  ;;  %v9153_v20 = vpop.f32.mrb[94].mxu0  ;;  %v14613_v5 = vld [vmem:[#allocation11 + $0x18] sm:$0xff]  }
 0x515   : > { %13186 = vmatprep.subr.bf16.mxu1 %v14604_v40  ;;  %v10621_v4 = vmul.f32 0.2, %v13563_v50  ;;  %v10741_v55 = vmax.f32 %v17187_v3, %v10613_v9  ;;  %v10747_v41 = vmax.f32 %v13531_v6, %v10619_v17  ;;  %v14611_v40 = vld [vmem:[#allocation11 + $0x58] sm:$0xff]   ;;  %v10612_v35 = vmul.f32 0.2, %v17198_v19  ;;  %v9603_v39 = vpop.f32.mrb[93].mxu1 }
 0x516   : > { %v10748_v42 = vmax.f32 %v17194_v15, %v17203_v13  ;;  %v13532_v47 = vadd.f32 %v9149_v28, %v16677_v33  ;;  %v14612_v3 = vld [vmem:[#allocation11 + $0xd8] sm:$0xff]   ;;  %v17213_v26 = vpack.c.bf16 %v10746_v21, %v10738_v18  ;;  %v13564_v27 = vadd.f32 %v9601_v25, %v16688_v58  ;;  %v9155_v9 = vpop.f32.mrb[95].mxu0 }
 0x517   : > { %13123 = vmatpush3.bf16.msra.mxu0 %v14605_v53  ;;  %v10749_v8 = vmax.f32 %v13563_v50, %v10621_v4  ;;  %v13533_v53 = vadd.f32 %v9151_v32, %v16692_v46  ;;  %v17219_v15 = vpack.c.bf16 %v10747_v41, %v10739_v24  ;;  %v13565_v31 = vadd.f32 %v9603_v39, %v16706_v59  ;;  %v14614_v50 = vld [vmem:[#allocation11 + $0x98] sm:$0xff]   ;;  %v14615_v4 = vld [vmem:[#allocation11 + $0x60] sm:$0xff]  }
 0x518   : > { %13187 = vmatpush3.bf16.msra.mxu1 %v14606_v7  ;;  %13124 = vmatprep.subr.bf16.mxu0 %v14607_v37  ;;  %v10626_v6 = vmul.f32 0.2, %v13532_v47  ;;  %v13534_v7 = vadd.f32 %v9153_v20, %v16677_v33  ;;  %v9605_v37 = vpop.f32.mrb[94].mxu1  ;;  %v10628_v18 = vmul.f32 0.2, %v13564_v27  ;;  %v13535_v24 = vadd.f32 %v9155_v9, %v16692_v46  ;;  %v14617_v46 = vld [vmem:[#allocation11 + $0x20] sm:$0xff]  }
 0x519   : > { %9992 = vmatmul.mubr.bf16.gmra.mrb[100].mxu0 %v17899_v51  ;;  %13188 = vmatprep.subr.bf16.mxu1 %v14608_v2  ;;  %v17224_v2 = vpack.c.bf16 %v10749_v8, %v10741_v55  ;;  %v10627_v13 = vmul.f32 0.2, %v13533_v53  ;;  %v13566_v17 = vadd.f32 %v9605_v37, %v16688_v58  ;;  %v9607_v21 = vpop.f32.mrb[95].mxu1  ;;  %v10740_v41 = vmax.f32 %v17198_v19, %v10612_v35  ;;  %v14618_v19 = vld [vmem:[#allocation11 + $0xa0] sm:$0xff]   ;;  %v14619_v35 = vld [vmem:[#allocation11 + $0x68] sm:$0xff]  }
 0x51a   : > { %10444 = vmatmul.mubr.bf16.gmra.mrb[100].mxu1 %v17899_v51  ;;  %10001 = vmatprep.mubr.bf16.mxu0 %v17900_v34  ;;  %v10629_v33 = vmul.f32 0.2, %v13565_v31  ;;  %v10634_v28 = vmul.f32 0.2, %v13534_v7  ;;  %v14616_v51 = vld [vmem:[#allocation11 + $0xe0] sm:$0xff]   ;;  %v10754_v55 = vmax.f32 %v13532_v47, %v10626_v6  ;;  %v10756_v32 = vmax.f32 %v13564_v27, %v10628_v18  ;;  %v14620_v47 = vld [vmem:[#allocation11 + $0xe8] sm:$0xff]  }
 0x51b   : > { %10453 = vmatprep.mubr.bf16.mxu1 %v17900_v34  ;;  %13125 = vmatpush3.bf16.msra.mxu0 %v14609_v49  ;;  %v13567_v49 = vadd.f32 %v9607_v21, %v16706_v59  ;;  %v10636_v8 = vmul.f32 0.2, %v13566_v17  ;;  %v10635_v25 = vmul.f32 0.2, %v13535_v24  ;;  %v17230_v39 = vpack.c.bf16 %v10748_v42, %v10740_v41  ;;  %v17901_v37 = vld [vmem:[#allocation60_spill] sm:$0xff]  ;;  %v14625_v18 = vld [vmem:[#allocation11 + $0x30] sm:$0xff]  }
 0x51c   : > { %13189 = vmatpush3.bf16.msra.mxu1 %v14610_v29  ;;  %13126 = vmatprep.subr.bf16.mxu0 %v14611_v40  ;;  %v10762_v34 = vmax.f32 %v13534_v7, %v10634_v28  ;;  %v10755_v29 = vmax.f32 %v13533_v53, %v10627_v13  ;;  %v10757_v59 = vmax.f32 %v13565_v31, %v10629_v33  ;;  %v17902_v6 = vld [vmem:[#allocation64_spill] sm:$0xff]  ;;  %v14626_v13 = vld [vmem:[#allocation11 + $0xb0] sm:$0xff]   ;;  %v14628_v21 = vld [vmem:[#allocation11 + $0xf8] sm:$0xff]  }
 0x51d   : > { %13190 = vmatprep.subr.bf16.mxu1 %v14612_v3  ;;  %v10637_v58 = vmul.f32 0.2, %v13567_v49  ;;  %v10764_v40 = vmax.f32 %v13566_v17, %v10636_v8  ;;  %v10763_v20 = vmax.f32 %v13535_v24, %v10635_v25  ;;  %v14621_v7 = vld [vmem:[#allocation11 + $0x28] sm:$0xff]   ;;  %v14627_v17 = vld [vmem:[#allocation11 + $0x78] sm:$0xff]   ;;  %v14631_v28 = vld [vmem:[#allocation11 + $0x140] sm:$0xff]  }
 0x51e   : > { %v17233_v27 = vpack.c.bf16 %v10762_v34, %v10754_v55  ;;  %v14622_v9 = vld [vmem:[#allocation11 + $0xa8] sm:$0xff]   ;;  %v17903_v24 = vld [vmem:[#allocation63_spill] sm:$0xff]  ;;  %v17906_v55 = vld [vmem:[#allocation70_spill] sm:$0xff] }
 0x51f   : > { %13127 = vmatpush3.bf16.msra.mxu0 %v14613_v5  ;;  %v10765_v3 = vmax.f32 %v13567_v49, %v10637_v58  ;;  %v17237_v42 = vpack.c.bf16 %v10763_v20, %v10755_v29  ;;  %v17239_v53 = vpack.c.bf16 %v10764_v40, %v10756_v32  ;;  %v14623_v5 = vld [vmem:[#allocation11 + $0x70] sm:$0xff]   ;;  %v14629_v41 = vld [vmem:[#allocation11 + $0x38] sm:$0xff]   ;;  %v14633_v49 = vld [vmem:[#allocation11 + $0x1c0] sm:$0xff]  }
 0x520   : > { %13191 = vmatpush3.bf16.msra.mxu1 %v14614_v50  ;;  %13128 = vmatprep.subr.bf16.mxu0 %v14615_v4  ;;  %v14624_v50 = vld [vmem:[#allocation11 + $0xf0] sm:$0xff]   ;;  %v14630_v33 = vld [vmem:[#allocation11 + $0xb8] sm:$0xff]   ;;  %v17907_v8 = vld [vmem:[#allocation68_spill] sm:$0xff] }
 0x521   : > { %10002 = vmatmul.mubr.bf16.gmra.mrb[104].mxu0 %v17901_v37  ;;  %13192 = vmatprep.subr.bf16.mxu1 %v14616_v51  ;;  %v17242_v31 = vpack.c.bf16 %v10765_v3, %v10757_v59  ;;  %v17904_v4 = vld [vmem:[#allocation66_spill] sm:$0xff]  ;;  %v17905_v51 = vld [vmem:[#allocation65_spill] sm:$0xff]  ;;  %v17908_v25 = vld [vmem:[#allocation72_spill] sm:$0xff] }
 0x522   : > { %10454 = vmatmul.mubr.bf16.gmra.mrb[104].mxu1 %v17901_v37  ;;  %10011 = vmatprep.mubr.bf16.mxu0 %v17902_v6  ;;  %v17909_v32 = vld [vmem:[#allocation71_spill] sm:$0xff]  ;;  %v17910_v34 = vld [vmem:[#allocation76_spill] sm:$0xff]  ;;  %v17911_v58 = vld [vmem:[#allocation74_spill] sm:$0xff] }
 0x523   : > { %10463 = vmatprep.mubr.bf16.mxu1 %v17902_v6  ;;  %13129 = vmatpush3.bf16.msra.mxu0 %v14617_v46  ;;  %v14632_v46 = vld [vmem:[#allocation11 + $0x100] sm:$0xff]   ;;  %v14635_v40 = vld [vmem:[#allocation11 + $0x148] sm:$0xff]   ;;  %v14640_v59 = vld [vmem:[#allocation11 + $0x110] sm:$0xff]  }
 0x524   : > { %13193 = vmatpush3.bf16.msra.mxu1 %v14618_v19  ;;  %13130 = vmatprep.subr.bf16.mxu0 %v14619_v35  ;;  %v14634_v29 = vld [vmem:[#allocation11 + $0x180] sm:$0xff]   ;;  %v14637_v20 = vld [vmem:[#allocation11 + $0x1c8] sm:$0xff]   ;;  %v14643_v3 = vld [vmem:[#allocation11 + $0x158] sm:$0xff]  }
 0x525   : > { %13194 = vmatprep.subr.bf16.mxu1 %v14620_v47  ;;  %v14636_v19 = vld [vmem:[#allocation11 + $0x108] sm:$0xff]   ;;  %v14647_v37 = vld [vmem:[#allocation11 + $0x160] sm:$0xff]  }
 0x526   : > { %v14638_v35 = vld [vmem:[#allocation11 + $0x188] sm:$0xff]   ;;  %v14649_v47 = vld [vmem:[#allocation11 + $0x1e0] sm:$0xff]  }
 0x527   : > { %13131 = vmatpush3.bf16.msra.mxu0 %v14621_v7  ;;  %v14648_v6 = vld [vmem:[#allocation11 + $0x120] sm:$0xff]   ;;  %v14651_v7 = vld [vmem:[#allocation11 + $0x168] sm:$0xff]  }
 0x528   : > { %13195 = vmatpush3.bf16.msra.mxu1 %v14622_v9  ;;  %13132 = vmatprep.subr.bf16.mxu0 %v14623_v5  ;;  %v14655_v9 = vld [vmem:[#allocation11 + $0x170] sm:$0xff]  }
 0x529   : > { %10012 = vmatmul.mubr.bf16.gmra.mrb[108].mxu0 %v17903_v24  ;;  %13196 = vmatprep.subr.bf16.mxu1 %v14624_v50  ;;  %v14657_v5 = vld [vmem:[#allocation11 + $0x1f0] sm:$0xff]  }
 0x52a   : > { %10464 = vmatmul.mubr.bf16.gmra.mrb[108].mxu1 %v17903_v24  ;;  %10021 = vmatprep.mubr.bf16.mxu0 %v17904_v4  ;;  %v14656_v50 = vld [vmem:[#allocation11 + $0x130] sm:$0xff]  }
 0x52b   : > { %10473 = vmatprep.mubr.bf16.mxu1 %v17904_v4  ;;  %13133 = vmatpush3.bf16.msra.mxu0 %v14625_v18  ;;  %v14662_v18 = vld [vmem:[#allocation11 + $0x1b8] sm:$0xff]  }
 0x52c   : > { %13197 = vmatpush3.bf16.msra.mxu1 %v14626_v13  ;;  %13134 = vmatprep.subr.bf16.mxu0 %v14627_v17 }
 0x52d   : > { %13198 = vmatprep.subr.bf16.mxu1 %v14628_v21 }
 0x52f   : > { %13135 = vmatpush3.bf16.msra.mxu0 %v14629_v41 }
 0x530   : > { %13199 = vmatpush3.bf16.msra.mxu1 %v14630_v33  ;;  %13248 = vmatprep.subr.bf16.mxu0 %v14631_v28 }
 0x531   : > { %10022 = vmatmul.mubr.bf16.gmra.mrb[112].mxu0 %v17905_v51  ;;  %13312 = vmatprep.subr.bf16.mxu1 %v14633_v49 }
 0x532   : > { %10474 = vmatmul.mubr.bf16.gmra.mrb[112].mxu1 %v17905_v51  ;;  %10031 = vmatprep.mubr.bf16.mxu0 %v17906_v55 }
 0x533   : > { %10483 = vmatprep.mubr.bf16.mxu1 %v17906_v55 }
 0x539   : > { %10032 = vmatmul.mubr.bf16.gmra.mrb[116].mxu0 %v17907_v8 }
 0x53a   : > { %10484 = vmatmul.mubr.bf16.gmra.mrb[116].mxu1 %v17907_v8  ;;  %10041 = vmatprep.mubr.bf16.mxu0 %v17908_v25 }
 0x53b   : > { %10493 = vmatprep.mubr.bf16.mxu1 %v17908_v25 }
 0x541   : > { %10042 = vmatmul.mubr.bf16.gmra.mrb[120].mxu0 %v17909_v32 }
 0x542   : > { %10494 = vmatmul.mubr.bf16.gmra.mrb[120].mxu1 %v17909_v32  ;;  %10051 = vmatprep.mubr.bf16.mxu0 %v17910_v34 }
 0x543   : > { %10503 = vmatprep.mubr.bf16.mxu1 %v17910_v34 }
 0x549   : > { %10052 = vmatmul.mubr.bf16.gmra.mrb[124].mxu0 %v17911_v58 }
 0x54a   : > { %10504 = vmatmul.mubr.bf16.gmra.mrb[124].mxu1 %v17911_v58  ;;  %11385 = vmatprep.mubr.bf16.mxu0 %v16909_v16  ;;  %v14639_v16 = vld [vmem:[#allocation11 + $0x150] sm:$0xff]  }
 0x54b   : > { %11482 = vmatprep.mubr.bf16.mxu1 %v16939_v23  ;;  %v14641_v23 = vld [vmem:[#allocation11 + $0x1d0] sm:$0xff]  }
 0x551   : > { %11386 = vmatmul.mubr.bf16.vlgmr.msra.gmra.mrb[128].mxu0 %v16884_v63  ;;  %v14642_v63 = vld [vmem:[#allocation11 + $0x190] sm:$0xff]  }
 0x552   : > { %11483 = vmatmul.mubr.bf16.vlgmr.msra.gmra.mrb[128].mxu1 %v16889_v54  ;;  %11393 = vmatprep.mubr.bf16.mxu0 %v16958_v52  ;;  %v14645_v54 = vld [vmem:[#allocation11 + $0x1d8] sm:$0xff]  }
 0x553   : > { %11490 = vmatprep.mubr.bf16.mxu1 %v16972_v57  ;;  %13249 = vmatpush3.bf16.msra.mxu0 %v14632_v46  ;;  %v14644_v52 = vld [vmem:[#allocation11 + $0x118] sm:$0xff]  }
 0x554   : > { %13313 = vmatpush3.bf16.msra.mxu1 %v14634_v29  ;;  %13250 = vmatprep.subr.bf16.mxu0 %v14635_v40  ;;  %v14646_v57 = vld [vmem:[#allocation11 + $0x198] sm:$0xff]  }
 0x555   : > { %13314 = vmatprep.subr.bf16.mxu1 %v14637_v20 }
 0x557   : > { %13251 = vmatpush3.bf16.msra.mxu0 %v14636_v19 }
 0x558   : > { %13315 = vmatpush3.bf16.msra.mxu1 %v14638_v35  ;;  %13252 = vmatprep.subr.bf16.mxu0 %v14639_v16 }
 0x559   : > { %11394 = vmatmul.mubr.bf16.gmra.mrb[132].mxu0 %v16949_v36  ;;  %13316 = vmatprep.subr.bf16.mxu1 %v14641_v23  ;;  %v14650_v36 = vld [vmem:[#allocation11 + $0x1a0] sm:$0xff]  }
 0x55a   : > { %11491 = vmatmul.mubr.bf16.gmra.mrb[132].mxu1 %v17002_v1  ;;  %11401 = vmatprep.mubr.bf16.mxu0 %v17021_v44  ;;  %v14653_v1 = vld [vmem:[#allocation11 + $0x1e8] sm:$0xff]  }
 0x55b   : > { %11498 = vmatprep.mubr.bf16.mxu1 %v17035_v45  ;;  %13253 = vmatpush3.bf16.msra.mxu0 %v14640_v59  ;;  %v14652_v44 = vld [vmem:[#allocation11 + $0x128] sm:$0xff]  }
 0x55c   : > { %13317 = vmatpush3.bf16.msra.mxu1 %v14642_v63  ;;  %13254 = vmatprep.subr.bf16.mxu0 %v14643_v3  ;;  %v14654_v45 = vld [vmem:[#allocation11 + $0x1a8] sm:$0xff]  }
 0x55d   : > { %13318 = vmatprep.subr.bf16.mxu1 %v14645_v54 }
 0x55f   : > { %13255 = vmatpush3.bf16.msra.mxu0 %v14644_v52 }
 0x560   : > { %13319 = vmatpush3.bf16.msra.mxu1 %v14646_v57  ;;  %13256 = vmatprep.subr.bf16.mxu0 %v14647_v37 }
 0x561   : > { %11402 = vmatmul.mubr.bf16.gmra.mrb[136].mxu0 %v17012_v48  ;;  %13320 = vmatprep.subr.bf16.mxu1 %v14649_v47  ;;  %v14658_v48 = vld [vmem:[#allocation11 + $0x1b0] sm:$0xff]  }
 0x562   : > { %11499 = vmatmul.mubr.bf16.gmra.mrb[136].mxu1 %v17065_v0  ;;  %11409 = vmatprep.mubr.bf16.mxu0 %v17084_v11  ;;  %v14659_v0 = vld [vmem:[#allocation11 + $0x178] sm:$0xff]  }
 0x563   : > { %11506 = vmatprep.mubr.bf16.mxu1 %v17098_v10  ;;  %13257 = vmatpush3.bf16.msra.mxu0 %v14648_v6  ;;  %v14661_v11 = vld [vmem:[#allocation11 + $0x1f8] sm:$0xff]  }
 0x564   : > { %13321 = vmatpush3.bf16.msra.mxu1 %v14650_v36  ;;  %13258 = vmatprep.subr.bf16.mxu0 %v14651_v7  ;;  %v14660_v10 = vld [vmem:[#allocation11 + $0x138] sm:$0xff]  }
 0x565   : > { %13322 = vmatprep.subr.bf16.mxu1 %v14653_v1 }
 0x567   : > { %13259 = vmatpush3.bf16.msra.mxu0 %v14652_v44 }
 0x568   : > { %13323 = vmatpush3.bf16.msra.mxu1 %v14654_v45  ;;  %13260 = vmatprep.subr.bf16.mxu0 %v14655_v9 }
 0x569   : > { %11410 = vmatmul.mubr.bf16.gmra.mrb[140].mxu0 %v17075_v14  ;;  %13324 = vmatprep.subr.bf16.mxu1 %v14657_v5  ;;  %v14784_v14 = vld [vmem:[#allocation10] sm:$0xff] }
 0x56a   : > { %11507 = vmatmul.mubr.bf16.gmra.mrb[140].mxu1 %v17126_v30  ;;  %11417 = vmatprep.mubr.bf16.mxu0 %v17144_v56  ;;  %v17912_v30 = vld [vmem:[#allocation20_spill] sm:$0xff] }
 0x56b   : > { %11514 = vmatprep.mubr.bf16.mxu1 %v17154_v12  ;;  %13261 = vmatpush3.bf16.msra.mxu0 %v14656_v50  ;;  %v17914_v12 = vsub.s32 6, %v17912_v30 }
 0x56c   : > { %13325 = vmatpush3.bf16.msra.mxu1 %v14658_v48  ;;  %13262 = vmatprep.subr.bf16.mxu0 %v14659_v0 }
 0x56d   : > { %13326 = vmatprep.subr.bf16.mxu1 %v14661_v11 }
 0x56f   : > { %13263 = vmatpush3.bf16.msra.mxu0 %v14660_v10 }
 0x570   : > { %13327 = vmatpush3.bf16.msra.mxu1 %v14662_v18 }
 0x571   : > { %11418 = vmatmul.mubr.bf16.gmra.mrb[144].mxu0 %v17136_v61  ;;  %v17913_v61 = vsub.s32 4, %v17912_v30 }
 0x572   : > { %11515 = vmatmul.mubr.bf16.gmra.mrb[144].mxu1 %v17171_v38  ;;  %11425 = vmatprep.mubr.bf16.mxu0 %v17183_v62  ;;  %v17300_v38 = vrot.slane %v14784_v14, %v17914_v12 }
 0x573   : > { %11522 = vmatprep.mubr.bf16.mxu1 %v17190_v60  ;;  %v17296_v56 = vrot.slane %v14784_v14, %v17913_v61  ;;  %v17916_v60 = vsub.s32 7, %v17912_v30 }
 0x579   : > { %11426 = vmatmul.mubr.bf16.gmra.mrb[148].mxu0 %v17176_v22  ;;  %v17915_v22 = vsub.s32 5, %v17912_v30 }
 0x57a   : > { %11523 = vmatmul.mubr.bf16.gmra.mrb[148].mxu1 %v17205_v43  ;;  %11433 = vmatprep.mubr.bf16.mxu0 %v17219_v15  ;;  %v17308_v43 = vrot.slane %v14784_v14, %v17916_v60 }
 0x57b   : > { %11530 = vmatprep.mubr.bf16.mxu1 %v17224_v2  ;;  %v17304_v62 = vrot.slane %v14784_v14, %v17915_v22 }
 0x581   : > { %11434 = vmatmul.mubr.bf16.gmra.mrb[152].mxu0 %v17213_v26 }
 0x582   : > { %11531 = vmatmul.mubr.bf16.gmra.mrb[152].mxu1 %v17230_v39  ;;  %11441 = vmatprep.mubr.bf16.mxu0 %v17237_v42 }
 0x583   : > { %11538 = vmatprep.mubr.bf16.mxu1 %v17242_v31 }
 0x589   : > { %11442 = vmatmul.mubr.bf16.gmra.mrb[156].mxu0 %v17233_v27 }
 0x58a   : > { %11539 = vmatmul.mubr.bf16.gmra.mrb[156].mxu1 %v17239_v53 }
 0x5e4   : > { %v9983_v26 = vpop.f32.mrb[96].mxu0 }
 0x5e5   : > { %v13568_v15 = vadd.f32 %v9983_v26, %v17296_v56  ;;  %v10435_v2 = vpop.f32.mrb[96].mxu1  ;;  %v9985_v39 = vpop.f32.mrb[97].mxu0 }
 0x5e6   : > { %v13600_v27 = vadd.f32 %v10435_v2, %v17300_v38  ;;  %v13569_v42 = vadd.f32 %v9985_v39, %v17304_v62  ;;  %v10437_v53 = vpop.f32.mrb[97].mxu1  ;;  %v9987_v31 = vpop.f32.mrb[98].mxu0 }
 0x5e7   : > { %v10518_v13 = vmul.f32 0.2, %v13568_v15  ;;  %v13601_v17 = vadd.f32 %v10437_v53, %v17308_v43  ;;  %v13570_v24 = vadd.f32 %v9987_v31, %v17296_v56  ;;  %v10439_v21 = vpop.f32.mrb[98].mxu1  ;;  %v9989_v4 = vpop.f32.mrb[99].mxu0 }
 0x5e8   : > { %v10520_v41 = vmul.f32 0.2, %v13600_v27  ;;  %v10519_v33 = vmul.f32 0.2, %v13569_v42  ;;  %v13602_v28 = vadd.f32 %v10439_v21, %v17300_v38  ;;  %v13571_v49 = vadd.f32 %v9989_v4, %v17304_v62  ;;  %v10441_v51 = vpop.f32.mrb[99].mxu1 }
 0x5e9   : > { %v10521_v55 = vmul.f32 0.2, %v13601_v17  ;;  %v10526_v8 = vmul.f32 0.2, %v13570_v24  ;;  %v13603_v25 = vadd.f32 %v10441_v51, %v17308_v43  ;;  %v10646_v58 = vmax.f32 %v13568_v15, %v10518_v13 }
 0x5ea   : > { %v10528_v32 = vmul.f32 0.2, %v13602_v28  ;;  %v10527_v34 = vmul.f32 0.2, %v13571_v49  ;;  %v10648_v40 = vmax.f32 %v13600_v27, %v10520_v41  ;;  %v10647_v20 = vmax.f32 %v13569_v42, %v10519_v33 }
 0x5eb   : > { %v10654_v46 = vmax.f32 %v13570_v24, %v10526_v8  ;;  %v10529_v29 = vmul.f32 0.2, %v13603_v25  ;;  %v10649_v23 = vmax.f32 %v13601_v17, %v10521_v55 }
 0x5ec   : > { %v10656_v19 = vmax.f32 %v13602_v28, %v10528_v32  ;;  %v10655_v35 = vmax.f32 %v13571_v49, %v10527_v34  ;;  %v9993_v16 = vpop.f32.mrb[100].mxu0 }
 0x5ed   : > { %v10774_v59 = vpack.c.bf16 %v10654_v46, %v10646_v58  ;;  %v10657_v63 = vmax.f32 %v13603_v25, %v10529_v29  ;;  %v13572_v3 = vadd.f32 %v9993_v16, %v17296_v56  ;;  %v10445_v54 = vpop.f32.mrb[100].mxu1  ;;  %v9995_v52 = vpop.f32.mrb[101].mxu0 }
 0x5ee   : > { %v10776_v57 = vpack.c.bf16 %v10656_v19, %v10648_v40  ;;  %v13604_v37 = vadd.f32 %v10445_v54, %v17300_v38  ;;  %v13573_v47 = vadd.f32 %v9995_v52, %v17304_v62  ;;  %v10447_v6 = vpop.f32.mrb[101].mxu1  ;;  %v9997_v36 = vpop.f32.mrb[102].mxu0  ;;  %v10775_v7 = vpack.c.bf16 %v10655_v35, %v10647_v20 }
 0x5ef   : > { %v10534_v1 = vmul.f32 0.2, %v13572_v3  ;;  %v13605_v44 = vadd.f32 %v10447_v6, %v17308_v43  ;;  %v13574_v45 = vadd.f32 %v9997_v36, %v17296_v56  ;;  %v10449_v9 = vpop.f32.mrb[102].mxu1  ;;  %v9999_v5 = vpop.f32.mrb[103].mxu0  ;;  %v10777_v50 = vpack.c.bf16 %v10657_v63, %v10649_v23 }
 0x5f0   : > { %v10536_v48 = vmul.f32 0.2, %v13604_v37  ;;  %v10535_v0 = vmul.f32 0.2, %v13573_v47  ;;  %v13606_v11 = vadd.f32 %v10449_v9, %v17300_v38  ;;  %v13575_v10 = vadd.f32 %v9999_v5, %v17304_v62  ;;  %v10451_v18 = vpop.f32.mrb[103].mxu1  ;;  %11579 = vmatprep.mubr.bf16.mxu0 %v10775_v7 }
 0x5f1   : > { %v10537_v14 = vmul.f32 0.2, %v13605_v44  ;;  %v10542_v30 = vmul.f32 0.2, %v13574_v45  ;;  %v13607_v61 = vadd.f32 %v10451_v18, %v17308_v43  ;;  %11676 = vmatprep.mubr.bf16.mxu1 %v10777_v50  ;;  %11580 = vmatmul.mubr.bf16.vlgmr.msra.gmra.mrb[160].mxu0 %v10774_v59  ;;  %v10662_v60 = vmax.f32 %v13572_v3, %v10534_v1 }
 0x5f2   : > { %v10544_v12 = vmul.f32 0.2, %v13606_v11  ;;  %v10543_v22 = vmul.f32 0.2, %v13575_v10  ;;  %11677 = vmatmul.mubr.bf16.vlgmr.msra.gmra.mrb[160].mxu1 %v10776_v57  ;;  %v10664_v2 = vmax.f32 %v13604_v37, %v10536_v48  ;;  %v10663_v39 = vmax.f32 %v13573_v47, %v10535_v0 }
 0x5f3   : > { %v10670_v26 = vmax.f32 %v13574_v45, %v10542_v30  ;;  %v10545_v15 = vmul.f32 0.2, %v13607_v61  ;;  %v10665_v31 = vmax.f32 %v13605_v44, %v10537_v14 }
 0x5f4   : > { %v10672_v27 = vmax.f32 %v13606_v11, %v10544_v12  ;;  %v10671_v42 = vmax.f32 %v13575_v10, %v10543_v22  ;;  %v10003_v53 = vpop.f32.mrb[104].mxu0 }
 0x5f5   : > { %v10673_v13 = vmax.f32 %v13607_v61, %v10545_v15  ;;  %v13576_v17 = vadd.f32 %v10003_v53, %v17296_v56  ;;  %v10455_v24 = vpop.f32.mrb[104].mxu1  ;;  %v10005_v21 = vpop.f32.mrb[105].mxu0  ;;  %v10782_v4 = vpack.c.bf16 %v10670_v26, %v10662_v60 }
 0x5f6   : > { %v13608_v41 = vadd.f32 %v10455_v24, %v17300_v38  ;;  %v13577_v33 = vadd.f32 %v10005_v21, %v17304_v62  ;;  %v10457_v28 = vpop.f32.mrb[105].mxu1  ;;  %v10007_v49 = vpop.f32.mrb[106].mxu0  ;;  %v10783_v51 = vpack.c.bf16 %v10671_v42, %v10663_v39  ;;  %v10784_v55 = vpack.c.bf16 %v10672_v27, %v10664_v2 }
 0x5f7   : > { %v10550_v8 = vmul.f32 0.2, %v13576_v17  ;;  %v13609_v25 = vadd.f32 %v10457_v28, %v17308_v43  ;;  %v13578_v32 = vadd.f32 %v10007_v49, %v17296_v56  ;;  %v10459_v34 = vpop.f32.mrb[106].mxu1  ;;  %v10009_v58 = vpop.f32.mrb[107].mxu0  ;;  %v10785_v46 = vpack.c.bf16 %v10673_v13, %v10665_v31 }
 0x5f8   : > { %v10552_v29 = vmul.f32 0.2, %v13608_v41  ;;  %v10551_v40 = vmul.f32 0.2, %v13577_v33  ;;  %v13610_v20 = vadd.f32 %v10459_v34, %v17300_v38  ;;  %v13579_v19 = vadd.f32 %v10009_v58, %v17304_v62  ;;  %v10461_v35 = vpop.f32.mrb[107].mxu1  ;;  %11587 = vmatprep.mubr.bf16.mxu0 %v10783_v51 }
 0x5f9   : > { %v10553_v16 = vmul.f32 0.2, %v13609_v25  ;;  %v10558_v23 = vmul.f32 0.2, %v13578_v32  ;;  %v13611_v59 = vadd.f32 %v10461_v35, %v17308_v43  ;;  %11684 = vmatprep.mubr.bf16.mxu1 %v10785_v46  ;;  %11588 = vmatmul.mubr.bf16.gmra.mrb[164].mxu0 %v10782_v4  ;;  %v10678_v54 = vmax.f32 %v13576_v17, %v10550_v8 }
 0x5fa   : > { %v10560_v63 = vmul.f32 0.2, %v13610_v20  ;;  %v10559_v3 = vmul.f32 0.2, %v13579_v19  ;;  %11685 = vmatmul.mubr.bf16.gmra.mrb[164].mxu1 %v10784_v55  ;;  %v10680_v37 = vmax.f32 %v13608_v41, %v10552_v29  ;;  %v10679_v47 = vmax.f32 %v13577_v33, %v10551_v40 }
 0x5fb   : > { %v10686_v52 = vmax.f32 %v13578_v32, %v10558_v23  ;;  %v10561_v57 = vmul.f32 0.2, %v13611_v59  ;;  %v10681_v1 = vmax.f32 %v13609_v25, %v10553_v16 }
 0x5fc   : > { %v10688_v6 = vmax.f32 %v13610_v20, %v10560_v63  ;;  %v10687_v36 = vmax.f32 %v13579_v19, %v10559_v3  ;;  %v10013_v7 = vpop.f32.mrb[108].mxu0 }
 0x5fd   : > { %v10689_v44 = vmax.f32 %v13611_v59, %v10561_v57  ;;  %v13580_v45 = vadd.f32 %v10013_v7, %v17296_v56  ;;  %v10465_v9 = vpop.f32.mrb[108].mxu1  ;;  %v10015_v5 = vpop.f32.mrb[109].mxu0  ;;  %v10790_v50 = vpack.c.bf16 %v10686_v52, %v10678_v54 }
 0x5fe   : > { %v13612_v48 = vadd.f32 %v10465_v9, %v17300_v38  ;;  %v13581_v0 = vadd.f32 %v10015_v5, %v17304_v62  ;;  %v10467_v11 = vpop.f32.mrb[109].mxu1  ;;  %v10017_v10 = vpop.f32.mrb[110].mxu0  ;;  %v10791_v18 = vpack.c.bf16 %v10687_v36, %v10679_v47  ;;  %v10792_v14 = vpack.c.bf16 %v10688_v6, %v10680_v37 }
 0x5ff   : > { %v10566_v30 = vmul.f32 0.2, %v13580_v45  ;;  %v13613_v61 = vadd.f32 %v10467_v11, %v17308_v43  ;;  %v13582_v12 = vadd.f32 %v10017_v10, %v17296_v56  ;;  %v10469_v22 = vpop.f32.mrb[110].mxu1  ;;  %v10019_v60 = vpop.f32.mrb[111].mxu0  ;;  %v10793_v26 = vpack.c.bf16 %v10689_v44, %v10681_v1 }
 0x600   : > { %v10568_v15 = vmul.f32 0.2, %v13612_v48  ;;  %v10567_v2 = vmul.f32 0.2, %v13581_v0  ;;  %v13614_v39 = vadd.f32 %v10469_v22, %v17300_v38  ;;  %v13583_v27 = vadd.f32 %v10019_v60, %v17304_v62  ;;  %v10471_v42 = vpop.f32.mrb[111].mxu1  ;;  %11595 = vmatprep.mubr.bf16.mxu0 %v10791_v18 }
 0x601   : > { %v10569_v53 = vmul.f32 0.2, %v13613_v61  ;;  %v10574_v31 = vmul.f32 0.2, %v13582_v12  ;;  %v13615_v13 = vadd.f32 %v10471_v42, %v17308_v43  ;;  %11692 = vmatprep.mubr.bf16.mxu1 %v10793_v26  ;;  %11596 = vmatmul.mubr.bf16.gmra.mrb[168].mxu0 %v10790_v50  ;;  %v10694_v21 = vmax.f32 %v13580_v45, %v10566_v30 }
 0x602   : > { %v10576_v17 = vmul.f32 0.2, %v13614_v39  ;;  %v10575_v24 = vmul.f32 0.2, %v13583_v27  ;;  %11693 = vmatmul.mubr.bf16.gmra.mrb[168].mxu1 %v10792_v14  ;;  %v10696_v33 = vmax.f32 %v13612_v48, %v10568_v15  ;;  %v10695_v28 = vmax.f32 %v13581_v0, %v10567_v2 }
 0x603   : > { %v10702_v4 = vmax.f32 %v13582_v12, %v10574_v31  ;;  %v10577_v41 = vmul.f32 0.2, %v13615_v13  ;;  %v10697_v8 = vmax.f32 %v13613_v61, %v10569_v53 }
 0x604   : > { %v10704_v49 = vmax.f32 %v13614_v39, %v10576_v17  ;;  %v10703_v51 = vmax.f32 %v13583_v27, %v10575_v24  ;;  %v10023_v55 = vpop.f32.mrb[112].mxu0 }
 0x605   : > { %v10705_v25 = vmax.f32 %v13615_v13, %v10577_v41  ;;  %v13584_v32 = vadd.f32 %v10023_v55, %v17296_v56  ;;  %v10475_v34 = vpop.f32.mrb[112].mxu1  ;;  %v10025_v58 = vpop.f32.mrb[113].mxu0  ;;  %v10798_v46 = vpack.c.bf16 %v10702_v4, %v10694_v21 }
 0x606   : > { %v13616_v29 = vadd.f32 %v10475_v34, %v17300_v38  ;;  %v13585_v40 = vadd.f32 %v10025_v58, %v17304_v62  ;;  %v10477_v20 = vpop.f32.mrb[113].mxu1  ;;  %v10027_v19 = vpop.f32.mrb[114].mxu0  ;;  %v10799_v35 = vpack.c.bf16 %v10703_v51, %v10695_v28  ;;  %v10800_v16 = vpack.c.bf16 %v10704_v49, %v10696_v33 }
 0x607   : > { %v10582_v23 = vmul.f32 0.2, %v13584_v32  ;;  %v13617_v59 = vadd.f32 %v10477_v20, %v17308_v43  ;;  %v13586_v63 = vadd.f32 %v10027_v19, %v17296_v56  ;;  %v10479_v3 = vpop.f32.mrb[114].mxu1  ;;  %v10029_v54 = vpop.f32.mrb[115].mxu0  ;;  %v10801_v52 = vpack.c.bf16 %v10705_v25, %v10697_v8 }
 0x608   : > { %v10584_v57 = vmul.f32 0.2, %v13616_v29  ;;  %v10583_v37 = vmul.f32 0.2, %v13585_v40  ;;  %v13618_v47 = vadd.f32 %v10479_v3, %v17300_v38  ;;  %v13587_v6 = vadd.f32 %v10029_v54, %v17304_v62  ;;  %v10481_v36 = vpop.f32.mrb[115].mxu1  ;;  %11603 = vmatprep.mubr.bf16.mxu0 %v10799_v35 }
 0x609   : > { %v10585_v7 = vmul.f32 0.2, %v13617_v59  ;;  %v10590_v1 = vmul.f32 0.2, %v13586_v63  ;;  %v13619_v44 = vadd.f32 %v10481_v36, %v17308_v43  ;;  %11700 = vmatprep.mubr.bf16.mxu1 %v10801_v52  ;;  %11604 = vmatmul.mubr.bf16.gmra.mrb[172].mxu0 %v10798_v46  ;;  %v10710_v5 = vmax.f32 %v13584_v32, %v10582_v23 }
 0x60a   : > { %v10592_v45 = vmul.f32 0.2, %v13618_v47  ;;  %v10591_v9 = vmul.f32 0.2, %v13587_v6  ;;  %11701 = vmatmul.mubr.bf16.gmra.mrb[172].mxu1 %v10800_v16  ;;  %v10712_v0 = vmax.f32 %v13616_v29, %v10584_v57  ;;  %v10711_v11 = vmax.f32 %v13585_v40, %v10583_v37 }
 0x60b   : > { %v10718_v50 = vmax.f32 %v13586_v63, %v10590_v1  ;;  %v10593_v48 = vmul.f32 0.2, %v13619_v44  ;;  %v10713_v30 = vmax.f32 %v13617_v59, %v10585_v7 }
 0x60c   : > { %v10720_v10 = vmax.f32 %v13618_v47, %v10592_v45  ;;  %v10719_v18 = vmax.f32 %v13587_v6, %v10591_v9  ;;  %v10033_v14 = vpop.f32.mrb[116].mxu0 }
 0x60d   : > { %v10721_v61 = vmax.f32 %v13619_v44, %v10593_v48  ;;  %v13588_v12 = vadd.f32 %v10033_v14, %v17296_v56  ;;  %v10485_v22 = vpop.f32.mrb[116].mxu1  ;;  %v10035_v60 = vpop.f32.mrb[117].mxu0  ;;  %v10806_v26 = vpack.c.bf16 %v10718_v50, %v10710_v5 }
 0x60e   : > { %v13620_v15 = vadd.f32 %v10485_v22, %v17300_v38  ;;  %v13589_v2 = vadd.f32 %v10035_v60, %v17304_v62  ;;  %v10487_v39 = vpop.f32.mrb[117].mxu1  ;;  %v10037_v27 = vpop.f32.mrb[118].mxu0  ;;  %v10807_v42 = vpack.c.bf16 %v10719_v18, %v10711_v11  ;;  %v10808_v53 = vpack.c.bf16 %v10720_v10, %v10712_v0 }
 0x60f   : > { %v10598_v31 = vmul.f32 0.2, %v13588_v12  ;;  %v13621_v13 = vadd.f32 %v10487_v39, %v17308_v43  ;;  %v13590_v17 = vadd.f32 %v10037_v27, %v17296_v56  ;;  %v10489_v24 = vpop.f32.mrb[118].mxu1  ;;  %v10039_v21 = vpop.f32.mrb[119].mxu0  ;;  %v10809_v4 = vpack.c.bf16 %v10721_v61, %v10713_v30 }
 0x610   : > { %v10600_v41 = vmul.f32 0.2, %v13620_v15  ;;  %v10599_v33 = vmul.f32 0.2, %v13589_v2  ;;  %v13622_v28 = vadd.f32 %v10489_v24, %v17300_v38  ;;  %v13591_v49 = vadd.f32 %v10039_v21, %v17304_v62  ;;  %v10491_v51 = vpop.f32.mrb[119].mxu1  ;;  %11611 = vmatprep.mubr.bf16.mxu0 %v10807_v42 }
 0x611   : > { %v10601_v55 = vmul.f32 0.2, %v13621_v13  ;;  %v10606_v8 = vmul.f32 0.2, %v13590_v17  ;;  %v13623_v25 = vadd.f32 %v10491_v51, %v17308_v43  ;;  %11708 = vmatprep.mubr.bf16.mxu1 %v10809_v4  ;;  %11612 = vmatmul.mubr.bf16.gmra.mrb[176].mxu0 %v10806_v26  ;;  %v10726_v58 = vmax.f32 %v13588_v12, %v10598_v31 }
 0x612   : > { %v10608_v32 = vmul.f32 0.2, %v13622_v28  ;;  %v10607_v34 = vmul.f32 0.2, %v13591_v49  ;;  %11709 = vmatmul.mubr.bf16.gmra.mrb[176].mxu1 %v10808_v53  ;;  %v10728_v40 = vmax.f32 %v13620_v15, %v10600_v41  ;;  %v10727_v20 = vmax.f32 %v13589_v2, %v10599_v33 }
 0x613   : > { %v10734_v46 = vmax.f32 %v13590_v17, %v10606_v8  ;;  %v10609_v29 = vmul.f32 0.2, %v13623_v25  ;;  %v10729_v23 = vmax.f32 %v13621_v13, %v10601_v55 }
 0x614   : > { %v10736_v19 = vmax.f32 %v13622_v28, %v10608_v32  ;;  %v10735_v35 = vmax.f32 %v13591_v49, %v10607_v34  ;;  %v10043_v16 = vpop.f32.mrb[120].mxu0 }
 0x615   : > { %v10737_v59 = vmax.f32 %v13623_v25, %v10609_v29  ;;  %v13592_v63 = vadd.f32 %v10043_v16, %v17296_v56  ;;  %v10495_v3 = vpop.f32.mrb[120].mxu1  ;;  %v10045_v54 = vpop.f32.mrb[121].mxu0  ;;  %v10814_v52 = vpack.c.bf16 %v10734_v46, %v10726_v58 }
 0x616   : > { %v13624_v57 = vadd.f32 %v10495_v3, %v17300_v38  ;;  %v13593_v37 = vadd.f32 %v10045_v54, %v17304_v62  ;;  %v10497_v47 = vpop.f32.mrb[121].mxu1  ;;  %v10047_v6 = vpop.f32.mrb[122].mxu0  ;;  %v10815_v36 = vpack.c.bf16 %v10735_v35, %v10727_v20  ;;  %v10816_v7 = vpack.c.bf16 %v10736_v19, %v10728_v40 }
 0x617   : > { %v10614_v1 = vmul.f32 0.2, %v13592_v63  ;;  %v13625_v44 = vadd.f32 %v10497_v47, %v17308_v43  ;;  %v13594_v45 = vadd.f32 %v10047_v6, %v17296_v56  ;;  %v10499_v9 = vpop.f32.mrb[122].mxu1  ;;  %v10049_v5 = vpop.f32.mrb[123].mxu0  ;;  %v10817_v50 = vpack.c.bf16 %v10737_v59, %v10729_v23 }
 0x618   : > { %v10616_v48 = vmul.f32 0.2, %v13624_v57  ;;  %v10615_v0 = vmul.f32 0.2, %v13593_v37  ;;  %v13626_v11 = vadd.f32 %v10499_v9, %v17300_v38  ;;  %v13595_v10 = vadd.f32 %v10049_v5, %v17304_v62  ;;  %v10501_v18 = vpop.f32.mrb[123].mxu1  ;;  %11619 = vmatprep.mubr.bf16.mxu0 %v10815_v36 }
 0x619   : > { %v10617_v14 = vmul.f32 0.2, %v13625_v44  ;;  %v10622_v30 = vmul.f32 0.2, %v13594_v45  ;;  %v13627_v61 = vadd.f32 %v10501_v18, %v17308_v43  ;;  %11716 = vmatprep.mubr.bf16.mxu1 %v10817_v50  ;;  %11620 = vmatmul.mubr.bf16.gmra.mrb[180].mxu0 %v10814_v52  ;;  %v10742_v60 = vmax.f32 %v13592_v63, %v10614_v1  ;;  %v17374_v1 = vld [vmem:[#allocation13] ss:$0 sm:$0xff] }
 0x61a   : > { %v10624_v12 = vmul.f32 0.2, %v13626_v11  ;;  %v10623_v22 = vmul.f32 0.2, %v13595_v10  ;;  %11717 = vmatmul.mubr.bf16.gmra.mrb[180].mxu1 %v10816_v7  ;;  %v10744_v2 = vmax.f32 %v13624_v57, %v10616_v48  ;;  %v10743_v39 = vmax.f32 %v13593_v37, %v10615_v0 }
 0x61b   : > { %v10750_v26 = vmax.f32 %v13594_v45, %v10622_v30  ;;  %v10625_v15 = vmul.f32 0.2, %v13627_v61  ;;  %v10745_v31 = vmax.f32 %v13625_v44, %v10617_v14 }
 0x61c   : > { %v10752_v27 = vmax.f32 %v13626_v11, %v10624_v12  ;;  %v10751_v42 = vmax.f32 %v13595_v10, %v10623_v22  ;;  %v10053_v53 = vpop.f32.mrb[124].mxu0 }
 0x61d   : > { %v10753_v13 = vmax.f32 %v13627_v61, %v10625_v15  ;;  %v13596_v17 = vadd.f32 %v10053_v53, %v17296_v56  ;;  %v10505_v24 = vpop.f32.mrb[124].mxu1  ;;  %v10055_v21 = vpop.f32.mrb[125].mxu0  ;;  %v10822_v4 = vpack.c.bf16 %v10750_v26, %v10742_v60 }
 0x61e   : > { %v13628_v41 = vadd.f32 %v10505_v24, %v17300_v38  ;;  %v13597_v33 = vadd.f32 %v10055_v21, %v17304_v62  ;;  %v10507_v28 = vpop.f32.mrb[125].mxu1  ;;  %v10057_v49 = vpop.f32.mrb[126].mxu0  ;;  %v10823_v51 = vpack.c.bf16 %v10751_v42, %v10743_v39  ;;  %v10824_v55 = vpack.c.bf16 %v10752_v27, %v10744_v2 }
 0x61f   : > { %v10630_v8 = vmul.f32 0.2, %v13596_v17  ;;  %v13629_v25 = vadd.f32 %v10507_v28, %v17308_v43  ;;  %v13598_v32 = vadd.f32 %v10057_v49, %v17296_v56  ;;  %v10509_v34 = vpop.f32.mrb[126].mxu1  ;;  %v10059_v58 = vpop.f32.mrb[127].mxu0  ;;  %v10825_v46 = vpack.c.bf16 %v10753_v13, %v10745_v31 }
 0x620   : > { %v10632_v29 = vmul.f32 0.2, %v13628_v41  ;;  %v10631_v40 = vmul.f32 0.2, %v13597_v33  ;;  %v13630_v20 = vadd.f32 %v10509_v34, %v17300_v38  ;;  %v13599_v19 = vadd.f32 %v10059_v58, %v17304_v62  ;;  %v10511_v35 = vpop.f32.mrb[127].mxu1  ;;  %11627 = vmatprep.mubr.bf16.mxu0 %v10823_v51 }
 0x621   : > { %v10633_v16 = vmul.f32 0.2, %v13629_v25  ;;  %v10638_v23 = vmul.f32 0.2, %v13598_v32  ;;  %v13631_v59 = vadd.f32 %v10511_v35, %v17308_v43  ;;  %11724 = vmatprep.mubr.bf16.mxu1 %v10825_v46  ;;  %11628 = vmatmul.mubr.bf16.gmra.mrb[184].mxu0 %v10822_v4  ;;  %v10758_v56 = vmax.f32 %v13596_v17, %v10630_v8 }
 0x622   : > { %v10640_v63 = vmul.f32 0.2, %v13630_v20  ;;  %v10639_v3 = vmul.f32 0.2, %v13599_v19  ;;  %11725 = vmatmul.mubr.bf16.gmra.mrb[184].mxu1 %v10824_v55  ;;  %v10760_v57 = vmax.f32 %v13628_v41, %v10632_v29  ;;  %v10759_v37 = vmax.f32 %v13597_v33, %v10631_v40 }
 0x623   : > { %v10766_v54 = vmax.f32 %v13598_v32, %v10638_v23  ;;  %v10641_v52 = vmul.f32 0.2, %v13631_v59  ;;  %v10761_v62 = vmax.f32 %v13629_v25, %v10633_v16 }
 0x624   : > { %v10768_v47 = vmax.f32 %v13630_v20, %v10640_v63  ;;  %v10767_v38 = vmax.f32 %v13599_v19, %v10639_v3  ;;  %v13136_v6 = vpop.f32.mrb[128].mxu0 }
 0x625   : > { %v10769_v36 = vmax.f32 %v13631_v59, %v10641_v52  ;;  %v13200_v7 = vpop.f32.mrb[128].mxu1  ;;  %v13137_v44 = vpop.f32.mrb[129].mxu0  ;;  %v10830_v43 = vpack.c.bf16 %v10766_v54, %v10758_v56 }
 0x626   : > { %v13138_v45 = vadd.f32 %v13137_v44, %v13136_v6  ;;  %v13201_v9 = vpop.f32.mrb[129].mxu1  ;;  %v13139_v5 = vpop.f32.mrb[130].mxu0  ;;  %v10831_v50 = vpack.c.bf16 %v10767_v38, %v10759_v37  ;;  %v10832_v48 = vpack.c.bf16 %v10768_v47, %v10760_v57 }
 0x627   : > { %v13202_v0 = vadd.f32 %v13201_v9, %v13200_v7  ;;  %v13203_v11 = vpop.f32.mrb[130].mxu1  ;;  %v13140_v10 = vpop.f32.mrb[131].mxu0  ;;  %v10833_v18 = vpack.c.bf16 %v10769_v36, %v10761_v62 }
 0x628   : > { %v11388_v14 = vadd.f32 %v13138_v45, %v17374_v1  ;;  %v13141_v30 = vadd.f32 %v13140_v10, %v13139_v5  ;;  %v13204_v61 = vpop.f32.mrb[131].mxu1  ;;  %11635 = vmatprep.mubr.bf16.mxu0 %v10831_v50 }
 0x629   : > { %v13205_v12 = vadd.f32 %v13204_v61, %v13203_v11  ;;  %11732 = vmatprep.mubr.bf16.mxu1 %v10833_v18  ;;  %11636 = vmatmul.mubr.bf16.gmra.mrb[188].mxu0 %v10830_v43 }
 0x62a   : > { %v17377_v22 = vadd.f32 %v13202_v0, %v11388_v14  ;;  %v11391_v60 = vadd.f32 %v13141_v30, %v17374_v1  ;;  %11733 = vmatmul.mubr.bf16.gmra.mrb[188].mxu1 %v10832_v48 }
 0x62c   : > { %v17380_v26 = vadd.f32 %v13205_v12, %v11391_v60  ;;  %v13142_v15 = vpop.f32.mrb[132].mxu0 }
 0x62d   : > { %v13206_v2 = vpop.f32.mrb[132].mxu1  ;;  %v13143_v39 = vpop.f32.mrb[133].mxu0 }
 0x62e   : > { %v13144_v27 = vadd.f32 %v13143_v39, %v13142_v15  ;;  %v13207_v42 = vpop.f32.mrb[133].mxu1  ;;  %v13145_v53 = vpop.f32.mrb[134].mxu0 }
 0x62f   : > { %v13208_v31 = vadd.f32 %v13207_v42, %v13206_v2  ;;  %v13209_v13 = vpop.f32.mrb[134].mxu1  ;;  %v13146_v17 = vpop.f32.mrb[135].mxu0 }
 0x630   : > { %v11396_v24 = vadd.f32 %v13144_v27, %v17374_v1  ;;  %v13147_v21 = vadd.f32 %v13146_v17, %v13145_v53  ;;  %v13210_v4 = vpop.f32.mrb[135].mxu1 }
 0x631   : > { %v13211_v41 = vadd.f32 %v13210_v4, %v13209_v13 }
 0x632   : > { %v17383_v33 = vadd.f32 %v13208_v31, %v11396_v24  ;;  %v11399_v28 = vadd.f32 %v13147_v21, %v17374_v1 }
 0x634   : > { %v17386_v49 = vadd.f32 %v13211_v41, %v11399_v28  ;;  %v13148_v51 = vpop.f32.mrb[136].mxu0 }
 0x635   : > { %v13212_v55 = vpop.f32.mrb[136].mxu1  ;;  %v13149_v8 = vpop.f32.mrb[137].mxu0 }
 0x636   : > { %v13150_v25 = vadd.f32 %v13149_v8, %v13148_v51  ;;  %v13213_v32 = vpop.f32.mrb[137].mxu1  ;;  %v13151_v34 = vpop.f32.mrb[138].mxu0 }
 0x637   : > { %v13214_v58 = vadd.f32 %v13213_v32, %v13212_v55  ;;  %v13215_v46 = vpop.f32.mrb[138].mxu1  ;;  %v13152_v29 = vpop.f32.mrb[139].mxu0 }
 0x638   : > { %v11404_v40 = vadd.f32 %v13150_v25, %v17374_v1  ;;  %v13153_v20 = vadd.f32 %v13152_v29, %v13151_v34  ;;  %v13216_v19 = vpop.f32.mrb[139].mxu1 }
 0x639   : > { %v13217_v35 = vadd.f32 %v13216_v19, %v13215_v46 }
 0x63a   : > { %v17389_v16 = vadd.f32 %v13214_v58, %v11404_v40  ;;  %v11407_v23 = vadd.f32 %v13153_v20, %v17374_v1 }
 0x63c   : > { %v17392_v59 = vadd.f32 %v13217_v35, %v11407_v23  ;;  %v13154_v63 = vpop.f32.mrb[140].mxu0 }
 0x63d   : > { %v13218_v3 = vpop.f32.mrb[140].mxu1  ;;  %v13155_v56 = vpop.f32.mrb[141].mxu0 }
 0x63e   : > { %v13156_v54 = vadd.f32 %v13155_v56, %v13154_v63  ;;  %v13219_v52 = vpop.f32.mrb[141].mxu1  ;;  %v13157_v57 = vpop.f32.mrb[142].mxu0 }
 0x63f   : > { %v13220_v37 = vadd.f32 %v13219_v52, %v13218_v3  ;;  %v13221_v47 = vpop.f32.mrb[142].mxu1  ;;  %v13158_v38 = vpop.f32.mrb[143].mxu0 }
 0x640   : > { %v11412_v6 = vadd.f32 %v13156_v54, %v17374_v1  ;;  %v13159_v62 = vadd.f32 %v13158_v38, %v13157_v57  ;;  %v13222_v36 = vpop.f32.mrb[143].mxu1 }
 0x641   : > { %v13223_v7 = vadd.f32 %v13222_v36, %v13221_v47 }
 0x642   : > { %v17395_v44 = vadd.f32 %v13220_v37, %v11412_v6  ;;  %v11415_v43 = vadd.f32 %v13159_v62, %v17374_v1 }
 0x644   : > { %v17398_v45 = vadd.f32 %v13223_v7, %v11415_v43  ;;  %v13160_v9 = vpop.f32.mrb[144].mxu0 }
 0x645   : > { %v13224_v5 = vpop.f32.mrb[144].mxu1  ;;  %v13161_v50 = vpop.f32.mrb[145].mxu0 }
 0x646   : > { %v13162_v48 = vadd.f32 %v13161_v50, %v13160_v9  ;;  %v13225_v0 = vpop.f32.mrb[145].mxu1  ;;  %v13163_v11 = vpop.f32.mrb[146].mxu0 }
 0x647   : > { %v13226_v10 = vadd.f32 %v13225_v0, %v13224_v5  ;;  %v13227_v18 = vpop.f32.mrb[146].mxu1  ;;  %v13164_v14 = vpop.f32.mrb[147].mxu0 }
 0x648   : > { %v11420_v30 = vadd.f32 %v13162_v48, %v17374_v1  ;;  %v13165_v61 = vadd.f32 %v13164_v14, %v13163_v11  ;;  %v13228_v12 = vpop.f32.mrb[147].mxu1 }
 0x649   : > { %v13229_v60 = vadd.f32 %v13228_v12, %v13227_v18 }
 0x64a   : > { %v17401_v15 = vadd.f32 %v13226_v10, %v11420_v30  ;;  %v11423_v2 = vadd.f32 %v13165_v61, %v17374_v1 }
 0x64c   : > { %v17404_v39 = vadd.f32 %v13229_v60, %v11423_v2  ;;  %v13166_v27 = vpop.f32.mrb[148].mxu0 }
 0x64d   : > { %v13230_v42 = vpop.f32.mrb[148].mxu1  ;;  %v13167_v53 = vpop.f32.mrb[149].mxu0 }
 0x64e   : > { %v13168_v31 = vadd.f32 %v13167_v53, %v13166_v27  ;;  %v13231_v13 = vpop.f32.mrb[149].mxu1  ;;  %v13169_v17 = vpop.f32.mrb[150].mxu0 }
 0x64f   : > { %v13232_v24 = vadd.f32 %v13231_v13, %v13230_v42  ;;  %v13233_v21 = vpop.f32.mrb[150].mxu1  ;;  %v13170_v4 = vpop.f32.mrb[151].mxu0 }
 0x650   : > { %v11428_v41 = vadd.f32 %v13168_v31, %v17374_v1  ;;  %v13171_v28 = vadd.f32 %v13170_v4, %v13169_v17  ;;  %v13234_v51 = vpop.f32.mrb[151].mxu1 }
 0x651   : > { %v13235_v55 = vadd.f32 %v13234_v51, %v13233_v21 }
 0x652   : > { %v17407_v8 = vadd.f32 %v13232_v24, %v11428_v41  ;;  %v11431_v25 = vadd.f32 %v13171_v28, %v17374_v1 }
 0x654   : > { %v17410_v32 = vadd.f32 %v13235_v55, %v11431_v25  ;;  %v13172_v34 = vpop.f32.mrb[152].mxu0 }
 0x655   : > { %v13236_v58 = vpop.f32.mrb[152].mxu1  ;;  %v13173_v46 = vpop.f32.mrb[153].mxu0 }
 0x656   : > { %v13174_v29 = vadd.f32 %v13173_v46, %v13172_v34  ;;  %v13237_v40 = vpop.f32.mrb[153].mxu1  ;;  %v13175_v20 = vpop.f32.mrb[154].mxu0 }
 0x657   : > { %v13238_v19 = vadd.f32 %v13237_v40, %v13236_v58  ;;  %v13239_v35 = vpop.f32.mrb[154].mxu1  ;;  %v13176_v23 = vpop.f32.mrb[155].mxu0 }
 0x658   : > { %v11436_v63 = vadd.f32 %v13174_v29, %v17374_v1  ;;  %v13177_v3 = vadd.f32 %v13176_v23, %v13175_v20  ;;  %v13240_v56 = vpop.f32.mrb[155].mxu1 }
 0x659   : > { %v13241_v54 = vadd.f32 %v13240_v56, %v13239_v35 }
 0x65a   : > { %v17413_v52 = vadd.f32 %v13238_v19, %v11436_v63  ;;  %v11439_v57 = vadd.f32 %v13177_v3, %v17374_v1 }
 0x65c   : > { %v17416_v37 = vadd.f32 %v13241_v54, %v11439_v57  ;;  %v13178_v47 = vpop.f32.mrb[156].mxu0 }
 0x65d   : > { %v13242_v38 = vpop.f32.mrb[156].mxu1  ;;  %v13179_v6 = vpop.f32.mrb[157].mxu0 }
 0x65e   : > { %v13180_v62 = vadd.f32 %v13179_v6, %v13178_v47  ;;  %v13243_v36 = vpop.f32.mrb[157].mxu1  ;;  %v13181_v7 = vpop.f32.mrb[158].mxu0 }
 0x65f   : > { %v13244_v43 = vadd.f32 %v13243_v36, %v13242_v38  ;;  %v13245_v9 = vpop.f32.mrb[158].mxu1  ;;  %v13182_v5 = vpop.f32.mrb[159].mxu0 }
 0x660   : > { %v11444_v50 = vadd.f32 %v13180_v62, %v17374_v1  ;;  %v13183_v48 = vadd.f32 %v13182_v5, %v13181_v7  ;;  %v13246_v0 = vpop.f32.mrb[159].mxu1 }
 0x661   : > { %v13247_v11 = vadd.f32 %v13246_v0, %v13245_v9 }
 0x662   : > { %v17419_v10 = vadd.f32 %v13244_v43, %v11444_v50  ;;  %v11447_v18 = vadd.f32 %v13183_v48, %v17374_v1 }
 0x664   : > { %v17422_v14 = vadd.f32 %v13247_v11, %v11447_v18 }
 0x6c4   : > { %v13264_v30 = vpop.f32.mrb[160].mxu0 }
 0x6c5   : > { %v13328_v61 = vpop.f32.mrb[160].mxu1  ;;  %v13265_v12 = vpop.f32.mrb[161].mxu0 }
 0x6c6   : > { %v13266_v60 = vadd.f32 %v13265_v12, %v13264_v30  ;;  %v13329_v2 = vpop.f32.mrb[161].mxu1  ;;  %v13267_v27 = vpop.f32.mrb[162].mxu0 }
 0x6c7   : > { %v13330_v42 = vadd.f32 %v13329_v2, %v13328_v61  ;;  %v13331_v53 = vpop.f32.mrb[162].mxu1  ;;  %v13268_v31 = vpop.f32.mrb[163].mxu0 }
 0x6c8   : > { %v11582_v13 = vadd.f32 %v13266_v60, %v17377_v22  ;;  %v13269_v17 = vadd.f32 %v13268_v31, %v13267_v27  ;;  %v13332_v24 = vpop.f32.mrb[163].mxu1 }
 0x6c9   : > { %v13333_v21 = vadd.f32 %v13332_v24, %v13331_v53 }
 0x6ca   : > { %v11679_v4 = vadd.f32 %v13330_v42, %v11582_v13  ;;  %v11585_v41 = vadd.f32 %v13269_v17, %v17380_v26 }
 0x6cc   : > { %v13098_v1 = vmul.f32 -1.442695, %v11679_v4  ;;  %v11682_v28 = vadd.f32 %v13333_v21, %v11585_v41  ;;  %v13270_v51 = vpop.f32.mrb[164].mxu0 }
 0x6cd   : > { %v13334_v55 = vpop.f32.mrb[164].mxu1  ;;  %v13271_v25 = vpop.f32.mrb[165].mxu0 }
 0x6ce   : > { %14663 = vpow2.f32 %v13098_v1  ;;  %v13099_v34 = vmul.f32 -1.442695, %v11682_v28  ;;  %v13272_v58 = vadd.f32 %v13271_v25, %v13270_v51  ;;  %v13335_v46 = vpop.f32.mrb[165].mxu1  ;;  %v13273_v29 = vpop.f32.mrb[166].mxu0 }
 0x6cf   : > { %v13336_v40 = vadd.f32 %v13335_v46, %v13334_v55  ;;  %v13337_v20 = vpop.f32.mrb[166].mxu1  ;;  %v13274_v19 = vpop.f32.mrb[167].mxu0 }
 0x6d0   : > { %14665 = vpow2.f32 %v13099_v34  ;;  %v11590_v22 = vadd.f32 %v13272_v58, %v17383_v33  ;;  %v13275_v35 = vadd.f32 %v13274_v19, %v13273_v29  ;;  %v13338_v23 = vpop.f32.mrb[167].mxu1 }
 0x6d1   : > { %v13339_v63 = vadd.f32 %v13338_v23, %v13337_v20 }
 0x6d2   : > { %v11687_v26 = vadd.f32 %v13336_v40, %v11590_v22  ;;  %v11593_v3 = vadd.f32 %v13275_v35, %v17386_v49 }
 0x6d4   : > { %v13100_v56 = vmul.f32 -1.442695, %v11687_v26  ;;  %v11690_v54 = vadd.f32 %v13339_v63, %v11593_v3  ;;  %v13276_v57 = vpop.f32.mrb[168].mxu0 }
 0x6d5   : > { %v13340_v47 = vpop.f32.mrb[168].mxu1  ;;  %v13277_v38 = vpop.f32.mrb[169].mxu0 }
 0x6d6   : > { %14667 = vpow2.f32 %v13100_v56  ;;  %v13101_v6 = vmul.f32 -1.442695, %v11690_v54  ;;  %v13278_v62 = vadd.f32 %v13277_v38, %v13276_v57  ;;  %v13341_v36 = vpop.f32.mrb[169].mxu1  ;;  %v13279_v7 = vpop.f32.mrb[170].mxu0 }
 0x6d7   : > { %v13342_v43 = vadd.f32 %v13341_v36, %v13340_v47  ;;  %v13343_v9 = vpop.f32.mrb[170].mxu1  ;;  %v13280_v5 = vpop.f32.mrb[171].mxu0 }
 0x6d8   : > { %v14664_v33 = vpop.eup %14663  ;;  %14669 = vpow2.f32 %v13101_v6  ;;  %v11598_v50 = vadd.f32 %v13278_v62, %v17389_v16  ;;  %v13281_v48 = vadd.f32 %v13280_v5, %v13279_v7  ;;  %v13344_v0 = vpop.f32.mrb[171].mxu1 }
 0x6d9   : > { %v11789_v49 = vadd.f32 1.0, %v14664_v33  ;;  %v13345_v11 = vadd.f32 %v13344_v0, %v13343_v9 }
 0x6da   : > { %v14666_v18 = vpop.eup %14665  ;;  %v11695_v30 = vadd.f32 %v13342_v43, %v11598_v50  ;;  %v11601_v61 = vadd.f32 %v13281_v48, %v17392_v59 }
 0x6db   : > { %14671 = vrcp.f32 %v11789_v49  ;;  %v11790_v12 = vadd.f32 1.0, %v14666_v18 }
 0x6dc   : > { %v13102_v60 = vmul.f32 -1.442695, %v11695_v30  ;;  %v11698_v2 = vadd.f32 %v13345_v11, %v11601_v61  ;;  %v13282_v27 = vpop.f32.mrb[172].mxu0 }
 0x6dd   : > { %14673 = vrcp.f32 %v11790_v12  ;;  %v13346_v42 = vpop.f32.mrb[172].mxu1  ;;  %v13283_v53 = vpop.f32.mrb[173].mxu0 }
 0x6de   : > { %14675 = vpow2.f32 %v13102_v60  ;;  %v13103_v31 = vmul.f32 -1.442695, %v11698_v2  ;;  %v13284_v16 = vadd.f32 %v13283_v53, %v13282_v27  ;;  %v13347_v13 = vpop.f32.mrb[173].mxu1  ;;  %v13285_v17 = vpop.f32.mrb[174].mxu0 }
 0x6df   : > { %v13348_v24 = vadd.f32 %v13347_v13, %v13346_v42  ;;  %v13349_v21 = vpop.f32.mrb[174].mxu1  ;;  %v13286_v4 = vpop.f32.mrb[175].mxu0 }
 0x6e0   : > { %v14668_v41 = vpop.eup %14667  ;;  %14677 = vpow2.f32 %v13103_v31  ;;  %v11606_v59 = vadd.f32 %v13284_v16, %v17395_v44  ;;  %v13287_v1 = vadd.f32 %v13286_v4, %v13285_v17  ;;  %v13350_v28 = vpop.f32.mrb[175].mxu1 }
 0x6e1   : > { %v11791_v51 = vadd.f32 1.0, %v14668_v41  ;;  %v13351_v55 = vadd.f32 %v13350_v28, %v13349_v21 }
 0x6e2   : > { %v14670_v25 = vpop.eup %14669  ;;  %v11703_v34 = vadd.f32 %v13348_v24, %v11606_v59  ;;  %v11609_v58 = vadd.f32 %v13287_v1, %v17398_v45 }
 0x6e3   : > { %14679 = vrcp.f32 %v11791_v51  ;;  %v11792_v46 = vadd.f32 1.0, %v14670_v25 }
 0x6e4   : > { %v13104_v29 = vmul.f32 -1.442695, %v11703_v34  ;;  %v11706_v40 = vadd.f32 %v13351_v55, %v11609_v58  ;;  %v13288_v20 = vpop.f32.mrb[176].mxu0 }
 0x6e5   : > { %v14672_v19 = vpop.eup %14671  ;;  %14681 = vrcp.f32 %v11792_v46  ;;  %v13352_v22 = vpop.f32.mrb[176].mxu1 }
 0x6e6   : > { %v13289_v35 = vpop.f32.mrb[177].mxu0  ;;  %11837 = vst [vmem:[%s17433_s20] sm:$0xff] %v14672_v19  ;;  %14683 = vpow2.f32 %v13104_v29  ;;  %v13105_v44 = vmul.f32 -1.442695, %v11706_v40  ;;  %v13353_v63 = vpop.f32.mrb[177].mxu1 }
 0x6e7   : > { %v13290_v23 = vadd.f32 %v13289_v35, %v13288_v20  ;;  %v13291_v26 = vpop.f32.mrb[178].mxu0  ;;  %v14674_v45 = vpop.eup %14673  ;;  %v13354_v3 = vadd.f32 %v13353_v63, %v13352_v22 }
 0x6e8   : > { %v13355_v56 = vpop.f32.mrb[178].mxu1  ;;  %v13292_v54 = vpop.f32.mrb[179].mxu0  ;;  %11838 = vst [vmem:[%s17433_s20 + $0x8] sm:$0xff] %v14674_v45  ;;  %14685 = vpow2.f32 %v13105_v44 }
 0x6e9   : > { %v14676_v57 = vpop.eup %14675  ;;  %v11614_v47 = vadd.f32 %v13290_v23, %v17401_v15  ;;  %v13293_v38 = vadd.f32 %v13292_v54, %v13291_v26  ;;  %v13356_v6 = vpop.f32.mrb[179].mxu1 }
 0x6ea   : > { %v11793_v62 = vadd.f32 1.0, %v14676_v57  ;;  %v13357_v36 = vadd.f32 %v13356_v6, %v13355_v56  ;;  %v14678_v7 = vpop.eup %14677 }
 0x6eb   : > { %v11711_v43 = vadd.f32 %v13354_v3, %v11614_v47  ;;  %v11617_v9 = vadd.f32 %v13293_v38, %v17404_v39  ;;  %v11794_v5 = vadd.f32 1.0, %v14678_v7 }
 0x6ec   : > { %14687 = vrcp.f32 %v11793_v62  ;;  %v13294_v48 = vpop.f32.mrb[180].mxu0 }
 0x6ed   : > { %v13106_v33 = vmul.f32 -1.442695, %v11711_v43  ;;  %v11714_v50 = vadd.f32 %v13357_v36, %v11617_v9  ;;  %v14680_v0 = vpop.eup %14679  ;;  %14689 = vrcp.f32 %v11794_v5  ;;  %v13358_v49 = vpop.f32.mrb[180].mxu1 }
 0x6ee   : > { %v13295_v11 = vpop.f32.mrb[181].mxu0  ;;  %11839 = vst [vmem:[%s17433_s20 + $0x10] sm:$0xff] %v14680_v0  ;;  %v13359_v30 = vpop.f32.mrb[181].mxu1 }
 0x6ef   : > { %14691 = vpow2.f32 %v13106_v33  ;;  %v13107_v15 = vmul.f32 -1.442695, %v11714_v50  ;;  %v13296_v18 = vadd.f32 %v13295_v11, %v13294_v48  ;;  %v13297_v61 = vpop.f32.mrb[182].mxu0  ;;  %v14682_v12 = vpop.eup %14681  ;;  %v13360_v60 = vadd.f32 %v13359_v30, %v13358_v49 }
 0x6f0   : > { %v13361_v2 = vpop.f32.mrb[182].mxu1  ;;  %v13298_v39 = vpop.f32.mrb[183].mxu0  ;;  %11840 = vst [vmem:[%s17433_s20 + $0x18] sm:$0xff] %v14682_v12 }
 0x6f1   : > { %v14684_v27 = vpop.eup %14683  ;;  %14693 = vpow2.f32 %v13107_v15  ;;  %v11622_v42 = vadd.f32 %v13296_v18, %v17407_v8  ;;  %v13299_v53 = vadd.f32 %v13298_v39, %v13297_v61  ;;  %v13362_v31 = vpop.f32.mrb[183].mxu1 }
 0x6f2   : > { %v11795_v16 = vadd.f32 1.0, %v14684_v27  ;;  %v13363_v13 = vadd.f32 %v13362_v31, %v13361_v2  ;;  %v14686_v17 = vpop.eup %14685 }
 0x6f3   : > { %v11719_v24 = vadd.f32 %v13360_v60, %v11622_v42  ;;  %v11625_v21 = vadd.f32 %v13299_v53, %v17410_v32  ;;  %v11796_v4 = vadd.f32 1.0, %v14686_v17 }
 0x6f4   : > { %14695 = vrcp.f32 %v11795_v16  ;;  %v13300_v1 = vpop.f32.mrb[184].mxu0 }
 0x6f5   : > { %v13108_v41 = vmul.f32 -1.442695, %v11719_v24  ;;  %v11722_v59 = vadd.f32 %v13363_v13, %v11625_v21  ;;  %14697 = vrcp.f32 %v11796_v4  ;;  %v13364_v51 = vpop.f32.mrb[184].mxu1  ;;  %v13301_v55 = vpop.f32.mrb[185].mxu0 }
 0x6f6   : > { %v14688_v28 = vpop.eup %14687  ;;  %v13302_v25 = vadd.f32 %v13301_v55, %v13300_v1  ;;  %v13365_v34 = vpop.f32.mrb[185].mxu1 }
 0x6f7   : > { %11841 = vst [vmem:[%s17433_s20 + $0x20] sm:$0xff] %v14688_v28  ;;  %14699 = vpow2.f32 %v13108_v41  ;;  %v13109_v8 = vmul.f32 -1.442695, %v11722_v59  ;;  %v13303_v58 = vpop.f32.mrb[186].mxu0  ;;  %v14690_v46 = vpop.eup %14689  ;;  %v13366_v29 = vadd.f32 %v13365_v34, %v13364_v51 }
 0x6f8   : > { %v13367_v40 = vpop.f32.mrb[186].mxu1  ;;  %v13304_v32 = vpop.f32.mrb[187].mxu0  ;;  %11842 = vst [vmem:[%s17433_s20 + $0x28] sm:$0xff] %v14690_v46  ;;  %v11630_v19 = vadd.f32 %v13302_v25, %v17413_v52 }
 0x6f9   : > { %v14692_v20 = vpop.eup %14691  ;;  %14701 = vpow2.f32 %v13109_v8  ;;  %v13305_v22 = vadd.f32 %v13304_v32, %v13303_v58  ;;  %v13368_v35 = vpop.f32.mrb[187].mxu1 }
 0x6fa   : > { %v11797_v44 = vadd.f32 1.0, %v14692_v20  ;;  %v13369_v23 = vadd.f32 %v13368_v35, %v13367_v40  ;;  %v11727_v26 = vadd.f32 %v13366_v29, %v11630_v19 }
 0x6fb   : > { %v14694_v63 = vpop.eup %14693  ;;  %v11633_v45 = vadd.f32 %v13305_v22, %v17416_v37 }
 0x6fc   : > { %14703 = vrcp.f32 %v11797_v44  ;;  %v11798_v3 = vadd.f32 1.0, %v14694_v63  ;;  %v13110_v56 = vmul.f32 -1.442695, %v11727_v26  ;;  %v13306_v57 = vpop.f32.mrb[188].mxu0 }
 0x6fd   : > { %v11730_v54 = vadd.f32 %v13369_v23, %v11633_v45  ;;  %v13370_v38 = vpop.f32.mrb[188].mxu1  ;;  %v13307_v6 = vpop.f32.mrb[189].mxu0 }
 0x6fe   : > { %v14696_v47 = vpop.eup %14695  ;;  %14705 = vrcp.f32 %v11798_v3  ;;  %v13308_v62 = vadd.f32 %v13307_v6, %v13306_v57  ;;  %v13371_v36 = vpop.f32.mrb[189].mxu1 }
 0x6ff   : > { %11843 = vst [vmem:[%s17433_s20 + $0x30] sm:$0xff] %v14696_v47  ;;  %14707 = vpow2.f32 %v13110_v56  ;;  %v13111_v52 = vmul.f32 -1.442695, %v11730_v54  ;;  %v13309_v7 = vpop.f32.mrb[190].mxu0  ;;  %v14698_v43 = vpop.eup %14697  ;;  %v13372_v9 = vadd.f32 %v13371_v36, %v13370_v38 }
 0x700   : > { %v13373_v5 = vpop.f32.mrb[190].mxu1  ;;  %v13310_v37 = vpop.f32.mrb[191].mxu0  ;;  %11844 = vst [vmem:[%s17433_s20 + $0x38] sm:$0xff] %v14698_v43  ;;  %v11638_v50 = vadd.f32 %v13308_v62, %v17419_v10 }
 0x701   : > { %v14700_v33 = vpop.eup %14699  ;;  %14709 = vpow2.f32 %v13111_v52  ;;  %v13311_v48 = vadd.f32 %v13310_v37, %v13309_v7  ;;  %v13374_v0 = vpop.f32.mrb[191].mxu1 }
 0x702   : > { %v11799_v49 = vadd.f32 1.0, %v14700_v33  ;;  %v13375_v11 = vadd.f32 %v13374_v0, %v13373_v5  ;;  %v11735_v18 = vadd.f32 %v13372_v9, %v11638_v50 }
 0x703   : > { %v14702_v15 = vpop.eup %14701  ;;  %v11641_v30 = vadd.f32 %v13311_v48, %v17422_v14 }
 0x704   : > { %14711 = vrcp.f32 %v11799_v49  ;;  %v11800_v61 = vadd.f32 1.0, %v14702_v15  ;;  %v13112_v12 = vmul.f32 -1.442695, %v11735_v18 }
 0x705   : > { %v11738_v60 = vadd.f32 %v13375_v11, %v11641_v30 }
 0x706   : > { %v14704_v2 = vpop.eup %14703  ;;  %14713 = vrcp.f32 %v11800_v61 }
 0x707   : > { %11845 = vst [vmem:[%s17433_s20 + $0x40] sm:$0xff] %v14704_v2  ;;  %14715 = vpow2.f32 %v13112_v12  ;;  %v13113_v10 = vmul.f32 -1.442695, %v11738_v60 }
 0x708   : > { %v14706_v39 = vpop.eup %14705 }
 0x709   : > { %v14708_v27 = vpop.eup %14707  ;;  %11846 = vst [vmem:[%s17433_s20 + $0x48] sm:$0xff] %v14706_v39  ;;  %14717 = vpow2.f32 %v13113_v10 }
 0x70a   : > { %v11801_v42 = vadd.f32 1.0, %v14708_v27 }
 0x70b   : > { %v14710_v53 = vpop.eup %14709 }
 0x70c   : > { %14719 = vrcp.f32 %v11801_v42  ;;  %v11802_v14 = vadd.f32 1.0, %v14710_v53 }
 0x70e   : > { %v14712_v31 = vpop.eup %14711  ;;  %14721 = vrcp.f32 %v11802_v14 }
 0x70f   : > { %11847 = vst [vmem:[%s17433_s20 + $0x50] sm:$0xff] %v14712_v31 }
 0x710   : > { %v14714_v16 = vpop.eup %14713 }
 0x711   : > { %v14716_v13 = vpop.eup %14715  ;;  %11848 = vst [vmem:[%s17433_s20 + $0x58] sm:$0xff] %v14714_v16 }
 0x712   : > { %v11803_v17 = vadd.f32 1.0, %v14716_v13 }
 0x713   : > { %v14718_v24 = vpop.eup %14717 }
 0x714   : > { %14723 = vrcp.f32 %v11803_v17  ;;  %v11804_v21 = vadd.f32 1.0, %v14718_v24 }
 0x716   : > { %v14720_v4 = vpop.eup %14719  ;;  %14725 = vrcp.f32 %v11804_v21 }
 0x717   : > { %11849 = vst [vmem:[%s17433_s20 + $0x60] sm:$0xff] %v14720_v4 }
 0x718   : > { %v14722_v41 = vpop.eup %14721 }
 0x719   : > { %11850 = vst [vmem:[%s17433_s20 + $0x68] sm:$0xff] %v14722_v41 }
 0x71e   : > { %v14724_v59 = vpop.eup %14723 }
 0x71f   : > { %11851 = vst [vmem:[%s17433_s20 + $0x70] sm:$0xff] %v14724_v59 }
 0x720   : > { %v14726_v1 = vpop.eup %14725 }
 0x721   : > { %11852 = vst [vmem:[%s17433_s20 + $0x78] sm:$0xff] %v14726_v1 }
 0x722   : > { %14996 = shalt.err (!%p14993_p8)
}
 0x723   : > { %s14997_s29 = scalar_lea.hbm %s17462_s28, 2048  ;;  %s15001_s8 = scalar_lea.hbm %s17517_s7, 4096 }
 0x724   : > { %p14998_p4 = scmp.ne.s32.totalorder %s17462_s28, %s14997_s29  ;;  %p15002_p0 = scmp.lt.u32.totalorder %s17462_s28, %s17517_s7 }
 0x725   : > { %p15003_p6 = scmp.lt.u32.totalorder %s15001_s8, %s14997_s29  ;;  %p15005_p5 = scmp.lt.u32.totalorder %s14997_s29, %s17462_s28 }
 0x726   : > { %p14999_p10 = pnand %p14998_p4, %p17917_p9 }
 0x727   : > { %p15004_p7 = por %p15003_p6, %p15002_p0 }
 0x728   : > { %p15000_p11 = pneg %p14999_p10 }
 0x729   : > { %p15006_p12 = por %p15005_p5, %p15004_p7 }
 0x72b   : > { %p15007_p13 = pnand %p15006_p12, %p15000_p11 }
 0x72d   : > { %15010 = shalt.err (!%p15007_p13)
}
 0x72e   : > { %s15078_s15 = smov 128   ;;  %s15079_s16 = smov 8  }
 0x72f   : > { %14429 = dma.vmem_to_hbm [thread:$0]  (%p17917_p9), %s17464_s14, 2048, %s17462_s28, %s11854_s12, %s15078_s15, %s15078_s15, %s15079_s16  }
 0x730 PF: > { %s11882_s17 = sand.u32 1, %s15049_s24   ;;  %p17918_p1 = scmp.ne.s32.totalorder %s17661_s23, 0 }
 0x731   : > { %p17919_p3 = scmp.ge.s32.totalorder %s15061_s27, 2  ;;  %s11883_s30 = scalar_lea.sflag [#allocation4], %s11882_s17 }
 0x733   : > { %p14455_p2 = pnand %p17919_p3, %p17918_p1 }
 0x735   : > { %15044 = dma.done.wait (!%p14455_p2), %s11883_s30, 2048  }
 0x736   : > { %15046 = vsyncadd (!%p14455_p2), %s11883_s30, 4294965248  ;;  %p23_p8 = scmp.ge.s32.totalorder %s15296_s11, 4   ;;  %s17920_s24 = smov %s15053_s25 }
 0x737   : > { %s17921_s25 = smov %s15057_s26  ;;  %s17922_s26 = smov %s15307_s18 }
 0x738   : > { %s17923_s27 = smov %s15296_s11  ;;  %25 = sbr.rel (!%p23_p8) target bundleno = 10 (0xa), region = 117 }
 0x73f   :  { %11888 = vsyncpa [#allocation3], 1 }
 0x740   :  { %11890 = vsyncpa [#allocation3 + $0x1], 1 }
 0x741   :  { %11891 = vsyncpa [#allocation6], 1 }
 0x742   :  { %11892 = vsyncpa [#allocation9], 1 }
 0x743   :  { %11893 = vsyncpa [#allocation12], 1 }
 0x744   :  { %11894 = vsyncpa [#allocation4], 1 }
 0x745   :  { %11896 = vsyncpa [#allocation4 + $0x1], 1 }

</bundles_post_ra>
